<compile_context>
chip_gen: v5e
topology: v5e:2x2
jax: 0.10.0
libtpu: 0.0.40
codegen_flags: <defaults>
</compile_context>

<pallas_src>
import jax
import jax.numpy as jnp
from jax.experimental import pallas as pl
from jax.experimental.pallas import tpu as pltpu


# --------------------------- parameter preparation ---------------------------

def prepare_params(w1, b1, w2, b2, compute_dtype=jnp.float32):
    """One-time prep: (O,I,KH,KW) conv weights -> (KH*KW*I, O) GEMM matrices.

    compute_dtype controls the MXU *operand* dtype only (bf16 recommended on
    v6e/v5e); bias / accumulation stay f32.
    """
    c1, cin = w1.shape[0], w1.shape[1]
    c2 = w2.shape[0]
    w1m = jnp.transpose(w1, (2, 3, 1, 0)).reshape(7 * 7 * cin, c1)
    w2m = jnp.transpose(w2, (2, 3, 1, 0)).reshape(3 * 3 * c1, c2)
    return (w1m.astype(compute_dtype),
            b1.reshape(1, c1).astype(jnp.float32),
            w2m.astype(compute_dtype),
            b2.reshape(1, c2).astype(jnp.float32))


# ------------------------------ fused kernel --------------------------------

def make_encoder_forward(B, H, W, Cin, C1, compute_dtype=jnp.float32):
    """Build the fused Encoder forward for static (B, H, W, Cin, C1)."""
    # -------- static geometry (PyTorch: ZeroPad2d(1), k=7/3, stride=2) -------
    Hp, Wp = H + 2, W + 2                       # after ZeroPad2d(1)
    Ho1, Wo1 = (Hp - 7) // 2 + 1, (Wp - 7) // 2 + 1
    assert Ho1 % 2 == 0 and Wo1 % 2 == 0, (
        "parity-grouped conv1 output requires even conv1 spatial dims")
    H1h, W1h = Ho1 // 2, Wo1 // 2               # per-parity conv1 block
    Ho2, Wo2 = (Ho1 + 2 - 3) // 2 + 1, (Wo1 + 2 - 3) // 2 + 1
    assert Ho2 == H1h and Wo2 == W1h
    # block-4 space-to-depth grid of the padded input (zero-duplication)
    Hq = max(-(-Hp // 4), H1h + 2)
    Wq = max(-(-Wp // 4), W1h + 2)
    K1, K2 = 7 * 7 * Cin, 3 * 3 * C1
    M1, M2 = 4 * H1h * W1h, Ho2 * Wo2           # == Ho1*Wo1, Ho2*Wo2
    assert M2 > 1, "unbiased std needs >1 spatial element"

    # conv2 tap -> (parity index, shift): input row r = 2*ho2 + k - 1
    #   k=0 -> odd rows, shifted by -1 (top/left zero pad); k=1 -> even rows;
    #   k=2 -> odd rows, no shift.
    TAP2 = {0: (1, -1), 1: (0, 0), 2: (1, 0)}

    def kernel(x_ref, w1_ref, b1_ref, w2_ref, b2_ref, o_ref):
        # x_ref: (1, 16*Hq, Wq, Cin)  block-4 space-to-depth of padded image,
        #        dim1 index = (r4y*4 + r4x)*Hq + qi,  element = xp[4qi+r4y, 4qj+r4x, c]
        # ---------------- conv1: in-kernel im2col + one GEMM -----------------
        # Output rows are grouped by output parity (po, qo): row order
        # (po, qo, i, j) with ho = 2i+po, wo = 2j+qo.  Every tap read is a
        # static contiguous slice of the space-to-depth buffer.
        par_blocks = []
        for po in range(2):
            for qo in range(2):
                pieces = []
                for ky in range(7):
                    ty = 2 * po + ky
                    r4y, ay = ty % 4, ty // 4
                    for kx in range(7):
                        tx = 2 * qo + kx
                        r4x, ax = tx % 4, tx // 4
                        row0 = (r4y * 4 + r4x) * Hq + ay
                        pieces.append(
                            x_ref[0, row0:row0 + H1h, ax:ax + W1h, :])
                blk = jnp.concatenate(pieces, axis=-1)        # (H1h, W1h, K1)
                par_blocks.append(blk.reshape(H1h * W1h, K1))
        a1 = jnp.concatenate(par_blocks, axis=0)              # (M1, K1)

        c1 = jnp.dot(a1.astype(compute_dtype), w1_ref[...],
                     preferred_element_type=jnp.float32)
        c1 = jnp.maximum(c1 + b1_ref[...], 0.0)               # (M1, C1), f32

        # c1 rows are already the block-2 space-to-depth of the conv1 output.
        n = H1h * W1h
        qplane = [c1[p * n:(p + 1) * n, :].reshape(H1h, W1h, C1)
                  for p in range(4)]

        # --------- conv2 (ZeroPad2d(1), k=3, s=2) on the parity planes --------
        zrow = jnp.zeros((1, Wo2, C1), jnp.float32)
        zcol = jnp.zeros((Ho2, 1, C1), jnp.float32)
        pieces2 = []
        for ky in range(3):
            ry, dy = TAP2[ky]
            for kx in range(3):
                rx, dx = TAP2[kx]
                q = qplane[ry * 2 + rx]                       # (Ho2, Wo2, C1)
                if dy == -1:                                  # top zero pad
                    q = jnp.concatenate([zrow, q[:Ho2 - 1]], axis=0)
                if dx == -1:                                  # left zero pad
                    q = jnp.concatenate([zcol, q[:, :Wo2 - 1, :]], axis=1)
                pieces2.append(q)
        a2 = jnp.concatenate(pieces2, axis=-1).reshape(M2, K2)

        c2 = jnp.dot(a2.astype(compute_dtype), w2_ref[...],
                     preferred_element_type=jnp.float32)
        c2 = jnp.maximum(c2 + b2_ref[...], 0.0)               # (M2, C1), f32

        # ------------- std / mean / max over spatial, single pass ------------
        s = jnp.sum(c2, axis=0, keepdims=True)                # (1, C1)
        ss = jnp.sum(c2 * c2, axis=0, keepdims=True)
        mean = s / M2
        var = (ss - M2 * mean * mean) / (M2 - 1)              # Bessel (torch.std)
        std = jnp.sqrt(jnp.maximum(var, 0.0))
        mx = jnp.max(c2, axis=0, keepdims=True)
        o_ref[0, :, 0:C1] = std
        o_ref[0, :, C1:2 * C1] = mean
        o_ref[0, :, 2 * C1:3 * C1] = mx

    call = pl.pallas_call(
        kernel,
        out_shape=jax.ShapeDtypeStruct((B, 1, 3 * C1), jnp.float32),
        grid=(B,),
        in_specs=[
            pl.BlockSpec((1, 16 * Hq, Wq, Cin), lambda b: (b, 0, 0, 0)),
            pl.BlockSpec((K1, C1), lambda b: (0, 0)),
            pl.BlockSpec((1, C1), lambda b: (0, 0)),
            pl.BlockSpec((K2, C1), lambda b: (0, 0)),
            pl.BlockSpec((1, C1), lambda b: (0, 0)),
        ],
        out_specs=pl.BlockSpec((1, 1, 3 * C1), lambda b: (b, 0, 0)),
        compiler_params=pltpu.CompilerParams(
            dimension_semantics=("parallel",)),   # shards batch over v7x's 2 TCs
    )

    def forward(x_nchw, prepped):
        w1m, b1r, w2m, b2r = prepped
        # NCHW -> NHWC, ZeroPad2d(1), then block-4 space-to-depth relayout
        # (pure layout change, no data duplication).
        x = jnp.transpose(x_nchw, (0, 2, 3, 1)).astype(jnp.float32)
        xp = jnp.pad(x, ((0, 0), (1, 1), (1, 1), (0, 0)))
        xp = jnp.pad(xp, ((0, 0), (0, 4 * Hq - Hp), (0, 4 * Wq - Wp), (0, 0)))
        x4 = xp.reshape(B, Hq, 4, Wq, 4, Cin).transpose(0, 2, 4, 1, 3, 5)
        x4 = x4.reshape(B, 16 * Hq, Wq, Cin)
        out = call(x4, w1m, b1r, w2m, b2r)
        return out.reshape(B, 3 * C1)

    return jax.jit(forward)


# --------------------------- pure-JAX reference ------------------------------

def encoder_reference(x_nchw, params):
    w1, b1, w2, b2 = params
    xp = jnp.pad(x_nchw, ((0, 0), (0, 0), (1, 1), (1, 1)))
    c1 = jax.lax.conv_general_dilated(
        xp, w1, (2, 2), 'VALID',
        dimension_numbers=('NCHW', 'OIHW', 'NCHW')) + b1[None, :, None, None]
    c1 = jnp.maximum(c1, 0.0)
    c1p = jnp.pad(c1, ((0, 0), (0, 0), (1, 1), (1, 1)))
    c2 = jax.lax.conv_general_dilated(
        c1p, w2, (2, 2), 'VALID',
        dimension_numbers=('NCHW', 'OIHW', 'NCHW')) + b2[None, :, None, None]
    c2 = jnp.maximum(c2, 0.0)
    std = jnp.std(c2, axis=(2, 3), ddof=1)
    mean = jnp.mean(c2, axis=(2, 3))
    mx = jnp.max(c2, axis=(2, 3))
    return jnp.concatenate([std, mean, mx], axis=1)


# --------------------------------- main --------------------------------------

if __name__ == "__main__":
    key = jax.random.PRNGKey(0)
    k1, k2, k3, k4, kx = jax.random.split(key, 5)

    in_channels, encode_nf = 3, 32
    B, H, W = 2, 16, 16

    # Deterministic synthetic parameters (shapes per Encoder.__init__).
    w1 = jax.random.normal(k1, (encode_nf, in_channels, 7, 7), jnp.float32) * 0.05
    b1 = jax.random.normal(k2, (encode_nf,), jnp.float32) * 0.05
    w2 = jax.random.normal(k3, (encode_nf, encode_nf, 3, 3), jnp.float32) * 0.05
    b2 = jax.random.normal(k4, (encode_nf,), jnp.float32) * 0.05
    x = jax.random.normal(kx, (B, in_channels, H, W), jnp.float32)

    ref = jax.block_until_ready(encoder_reference(x, (w1, b1, w2, b2)))

    # f32 MXU operands: bit-for-bit-ish, tight tolerance.
    fwd_f32 = make_encoder_forward(B, H, W, in_channels, encode_nf, jnp.float32)
    p_f32 = prepare_params(w1, b1, w2, b2, jnp.float32)
    out_f32 = jax.block_until_ready(fwd_f32(x, p_f32))
    assert out_f32.shape == (B, 3 * encode_nf), out_f32.shape
    assert bool(jnp.all(jnp.isfinite(out_f32)))
    assert bool(jnp.allclose(out_f32, ref, atol=1e-4, rtol=1e-4)), (
        float(jnp.max(jnp.abs(out_f32 - ref))))

    # bf16 MXU operands (v6e/v5e MXU + traffic optimization), f32 accumulation.
    fwd_bf16 = make_encoder_forward(B, H, W, in_channels, encode_nf, jnp.bfloat16)
    p_bf16 = prepare_params(w1, b1, w2, b2, jnp.bfloat16)
    out_bf16 = jax.block_until_ready(fwd_bf16(x, p_bf16))
    assert bool(jnp.all(jnp.isfinite(out_bf16)))
    assert bool(jnp.allclose(out_bf16, ref, atol=2e-2, rtol=5e-2)), (
        float(jnp.max(jnp.abs(out_bf16 - ref))))

    print("KERNEL_OK")
</pallas_src>

<mosaic_0001>
module attributes {stable_mosaic.version = 11 : i64} {
  func.func @kernel(%arg0: i32, %arg1: memref<1x80x5x3xf32, #tpu.memory_space<vmem>>, %arg2: memref<147x32xf32, #tpu.memory_space<vmem>>, %arg3: memref<1x32xf32, #tpu.memory_space<vmem>>, %arg4: memref<288x32xf32, #tpu.memory_space<vmem>>, %arg5: memref<1x32xf32, #tpu.memory_space<vmem>>, %arg6: memref<1x1x96xf32, #tpu.memory_space<vmem>>) attributes {dimension_semantics = [#tpu.dimension_semantics<parallel>], iteration_bounds = array<i64: 2>, scalar_prefetch = 0 : i64, scratch_operands = 0 : i64, tpu.core_type = #tpu.core_type<tc>, window_params = [{transform_indices = @transform_0, window_bounds = array<i64: 1, 80, 5, 3>}, {pipeline_mode = #tpu.pipeline_mode<synchronous>, transform_indices = @transform_1, window_bounds = array<i64: 147, 32>}, {pipeline_mode = #tpu.pipeline_mode<synchronous>, transform_indices = @transform_2, window_bounds = array<i64: 1, 32>}, {pipeline_mode = #tpu.pipeline_mode<synchronous>, transform_indices = @transform_3, window_bounds = array<i64: 288, 32>}, {pipeline_mode = #tpu.pipeline_mode<synchronous>, transform_indices = @transform_4, window_bounds = array<i64: 1, 32>}, {transform_indices = @transform_5, window_bounds = array<i64: 1, 1, 96>}]} {
    %c0 = arith.constant 0 : index
    %c0_0 = arith.constant 0 : index
    %c0_1 = arith.constant 0 : index
    %c0_2 = arith.constant 0 : index
    %0 = vector.load %arg1[%c0, %c0_0, %c0_1, %c0_2] : memref<1x80x5x3xf32, #tpu.memory_space<vmem>>, vector<1x3x3x3xf32>
    %1 = vector.shape_cast %0 : vector<1x3x3x3xf32> to vector<3x3x3xf32>
    %c0_3 = arith.constant 0 : index
    %c5 = arith.constant 5 : index
    %c0_4 = arith.constant 0 : index
    %c0_5 = arith.constant 0 : index
    %2 = vector.load %arg1[%c0_3, %c5, %c0_4, %c0_5] : memref<1x80x5x3xf32, #tpu.memory_space<vmem>>, vector<1x3x3x3xf32>
    %3 = vector.shape_cast %2 : vector<1x3x3x3xf32> to vector<3x3x3xf32>
    %c0_6 = arith.constant 0 : index
    %c10 = arith.constant 10 : index
    %c0_7 = arith.constant 0 : index
    %c0_8 = arith.constant 0 : index
    %4 = vector.load %arg1[%c0_6, %c10, %c0_7, %c0_8] : memref<1x80x5x3xf32, #tpu.memory_space<vmem>>, vector<1x3x3x3xf32>
    %5 = vector.shape_cast %4 : vector<1x3x3x3xf32> to vector<3x3x3xf32>
    %c0_9 = arith.constant 0 : index
    %c15 = arith.constant 15 : index
    %c0_10 = arith.constant 0 : index
    %c0_11 = arith.constant 0 : index
    %6 = vector.load %arg1[%c0_9, %c15, %c0_10, %c0_11] : memref<1x80x5x3xf32, #tpu.memory_space<vmem>>, vector<1x3x3x3xf32>
    %7 = vector.shape_cast %6 : vector<1x3x3x3xf32> to vector<3x3x3xf32>
    %c0_12 = arith.constant 0 : index
    %c0_13 = arith.constant 0 : index
    %c1 = arith.constant 1 : index
    %c0_14 = arith.constant 0 : index
    %8 = vector.load %arg1[%c0_12, %c0_13, %c1, %c0_14] : memref<1x80x5x3xf32, #tpu.memory_space<vmem>>, vector<1x3x3x3xf32>
    %9 = vector.shape_cast %8 : vector<1x3x3x3xf32> to vector<3x3x3xf32>
    %c0_15 = arith.constant 0 : index
    %c5_16 = arith.constant 5 : index
    %c1_17 = arith.constant 1 : index
    %c0_18 = arith.constant 0 : index
    %10 = vector.load %arg1[%c0_15, %c5_16, %c1_17, %c0_18] : memref<1x80x5x3xf32, #tpu.memory_space<vmem>>, vector<1x3x3x3xf32>
    %11 = vector.shape_cast %10 : vector<1x3x3x3xf32> to vector<3x3x3xf32>
    %c0_19 = arith.constant 0 : index
    %c10_20 = arith.constant 10 : index
    %c1_21 = arith.constant 1 : index
    %c0_22 = arith.constant 0 : index
    %12 = vector.load %arg1[%c0_19, %c10_20, %c1_21, %c0_22] : memref<1x80x5x3xf32, #tpu.memory_space<vmem>>, vector<1x3x3x3xf32>
    %13 = vector.shape_cast %12 : vector<1x3x3x3xf32> to vector<3x3x3xf32>
    %c0_23 = arith.constant 0 : index
    %c20 = arith.constant 20 : index
    %c0_24 = arith.constant 0 : index
    %c0_25 = arith.constant 0 : index
    %14 = vector.load %arg1[%c0_23, %c20, %c0_24, %c0_25] : memref<1x80x5x3xf32, #tpu.memory_space<vmem>>, vector<1x3x3x3xf32>
    %15 = vector.shape_cast %14 : vector<1x3x3x3xf32> to vector<3x3x3xf32>
    %c0_26 = arith.constant 0 : index
    %c25 = arith.constant 25 : index
    %c0_27 = arith.constant 0 : index
    %c0_28 = arith.constant 0 : index
    %16 = vector.load %arg1[%c0_26, %c25, %c0_27, %c0_28] : memref<1x80x5x3xf32, #tpu.memory_space<vmem>>, vector<1x3x3x3xf32>
    %17 = vector.shape_cast %16 : vector<1x3x3x3xf32> to vector<3x3x3xf32>
    %c0_29 = arith.constant 0 : index
    %c30 = arith.constant 30 : index
    %c0_30 = arith.constant 0 : index
    %c0_31 = arith.constant 0 : index
    %18 = vector.load %arg1[%c0_29, %c30, %c0_30, %c0_31] : memref<1x80x5x3xf32, #tpu.memory_space<vmem>>, vector<1x3x3x3xf32>
    %19 = vector.shape_cast %18 : vector<1x3x3x3xf32> to vector<3x3x3xf32>
    %c0_32 = arith.constant 0 : index
    %c35 = arith.constant 35 : index
    %c0_33 = arith.constant 0 : index
    %c0_34 = arith.constant 0 : index
    %20 = vector.load %arg1[%c0_32, %c35, %c0_33, %c0_34] : memref<1x80x5x3xf32, #tpu.memory_space<vmem>>, vector<1x3x3x3xf32>
    %21 = vector.shape_cast %20 : vector<1x3x3x3xf32> to vector<3x3x3xf32>
    %c0_35 = arith.constant 0 : index
    %c20_36 = arith.constant 20 : index
    %c1_37 = arith.constant 1 : index
    %c0_38 = arith.constant 0 : index
    %22 = vector.load %arg1[%c0_35, %c20_36, %c1_37, %c0_38] : memref<1x80x5x3xf32, #tpu.memory_space<vmem>>, vector<1x3x3x3xf32>
    %23 = vector.shape_cast %22 : vector<1x3x3x3xf32> to vector<3x3x3xf32>
    %c0_39 = arith.constant 0 : index
    %c25_40 = arith.constant 25 : index
    %c1_41 = arith.constant 1 : index
    %c0_42 = arith.constant 0 : index
    %24 = vector.load %arg1[%c0_39, %c25_40, %c1_41, %c0_42] : memref<1x80x5x3xf32, #tpu.memory_space<vmem>>, vector<1x3x3x3xf32>
    %25 = vector.shape_cast %24 : vector<1x3x3x3xf32> to vector<3x3x3xf32>
    %c0_43 = arith.constant 0 : index
    %c30_44 = arith.constant 30 : index
    %c1_45 = arith.constant 1 : index
    %c0_46 = arith.constant 0 : index
    %26 = vector.load %arg1[%c0_43, %c30_44, %c1_45, %c0_46] : memref<1x80x5x3xf32, #tpu.memory_space<vmem>>, vector<1x3x3x3xf32>
    %27 = vector.shape_cast %26 : vector<1x3x3x3xf32> to vector<3x3x3xf32>
    %c0_47 = arith.constant 0 : index
    %c40 = arith.constant 40 : index
    %c0_48 = arith.constant 0 : index
    %c0_49 = arith.constant 0 : index
    %28 = vector.load %arg1[%c0_47, %c40, %c0_48, %c0_49] : memref<1x80x5x3xf32, #tpu.memory_space<vmem>>, vector<1x3x3x3xf32>
    %29 = vector.shape_cast %28 : vector<1x3x3x3xf32> to vector<3x3x3xf32>
    %c0_50 = arith.constant 0 : index
    %c45 = arith.constant 45 : index
    %c0_51 = arith.constant 0 : index
    %c0_52 = arith.constant 0 : index
    %30 = vector.load %arg1[%c0_50, %c45, %c0_51, %c0_52] : memref<1x80x5x3xf32, #tpu.memory_space<vmem>>, vector<1x3x3x3xf32>
    %31 = vector.shape_cast %30 : vector<1x3x3x3xf32> to vector<3x3x3xf32>
    %c0_53 = arith.constant 0 : index
    %c50 = arith.constant 50 : index
    %c0_54 = arith.constant 0 : index
    %c0_55 = arith.constant 0 : index
    %32 = vector.load %arg1[%c0_53, %c50, %c0_54, %c0_55] : memref<1x80x5x3xf32, #tpu.memory_space<vmem>>, vector<1x3x3x3xf32>
    %33 = vector.shape_cast %32 : vector<1x3x3x3xf32> to vector<3x3x3xf32>
    %c0_56 = arith.constant 0 : index
    %c55 = arith.constant 55 : index
    %c0_57 = arith.constant 0 : index
    %c0_58 = arith.constant 0 : index
    %34 = vector.load %arg1[%c0_56, %c55, %c0_57, %c0_58] : memref<1x80x5x3xf32, #tpu.memory_space<vmem>>, vector<1x3x3x3xf32>
    %35 = vector.shape_cast %34 : vector<1x3x3x3xf32> to vector<3x3x3xf32>
    %c0_59 = arith.constant 0 : index
    %c40_60 = arith.constant 40 : index
    %c1_61 = arith.constant 1 : index
    %c0_62 = arith.constant 0 : index
    %36 = vector.load %arg1[%c0_59, %c40_60, %c1_61, %c0_62] : memref<1x80x5x3xf32, #tpu.memory_space<vmem>>, vector<1x3x3x3xf32>
    %37 = vector.shape_cast %36 : vector<1x3x3x3xf32> to vector<3x3x3xf32>
    %c0_63 = arith.constant 0 : index
    %c45_64 = arith.constant 45 : index
    %c1_65 = arith.constant 1 : index
    %c0_66 = arith.constant 0 : index
    %38 = vector.load %arg1[%c0_63, %c45_64, %c1_65, %c0_66] : memref<1x80x5x3xf32, #tpu.memory_space<vmem>>, vector<1x3x3x3xf32>
    %39 = vector.shape_cast %38 : vector<1x3x3x3xf32> to vector<3x3x3xf32>
    %c0_67 = arith.constant 0 : index
    %c50_68 = arith.constant 50 : index
    %c1_69 = arith.constant 1 : index
    %c0_70 = arith.constant 0 : index
    %40 = vector.load %arg1[%c0_67, %c50_68, %c1_69, %c0_70] : memref<1x80x5x3xf32, #tpu.memory_space<vmem>>, vector<1x3x3x3xf32>
    %41 = vector.shape_cast %40 : vector<1x3x3x3xf32> to vector<3x3x3xf32>
    %c0_71 = arith.constant 0 : index
    %c60 = arith.constant 60 : index
    %c0_72 = arith.constant 0 : index
    %c0_73 = arith.constant 0 : index
    %42 = vector.load %arg1[%c0_71, %c60, %c0_72, %c0_73] : memref<1x80x5x3xf32, #tpu.memory_space<vmem>>, vector<1x3x3x3xf32>
    %43 = vector.shape_cast %42 : vector<1x3x3x3xf32> to vector<3x3x3xf32>
    %c0_74 = arith.constant 0 : index
    %c65 = arith.constant 65 : index
    %c0_75 = arith.constant 0 : index
    %c0_76 = arith.constant 0 : index
    %44 = vector.load %arg1[%c0_74, %c65, %c0_75, %c0_76] : memref<1x80x5x3xf32, #tpu.memory_space<vmem>>, vector<1x3x3x3xf32>
    %45 = vector.shape_cast %44 : vector<1x3x3x3xf32> to vector<3x3x3xf32>
    %c0_77 = arith.constant 0 : index
    %c70 = arith.constant 70 : index
    %c0_78 = arith.constant 0 : index
    %c0_79 = arith.constant 0 : index
    %46 = vector.load %arg1[%c0_77, %c70, %c0_78, %c0_79] : memref<1x80x5x3xf32, #tpu.memory_space<vmem>>, vector<1x3x3x3xf32>
    %47 = vector.shape_cast %46 : vector<1x3x3x3xf32> to vector<3x3x3xf32>
    %c0_80 = arith.constant 0 : index
    %c75 = arith.constant 75 : index
    %c0_81 = arith.constant 0 : index
    %c0_82 = arith.constant 0 : index
    %48 = vector.load %arg1[%c0_80, %c75, %c0_81, %c0_82] : memref<1x80x5x3xf32, #tpu.memory_space<vmem>>, vector<1x3x3x3xf32>
    %49 = vector.shape_cast %48 : vector<1x3x3x3xf32> to vector<3x3x3xf32>
    %c0_83 = arith.constant 0 : index
    %c60_84 = arith.constant 60 : index
    %c1_85 = arith.constant 1 : index
    %c0_86 = arith.constant 0 : index
    %50 = vector.load %arg1[%c0_83, %c60_84, %c1_85, %c0_86] : memref<1x80x5x3xf32, #tpu.memory_space<vmem>>, vector<1x3x3x3xf32>
    %51 = vector.shape_cast %50 : vector<1x3x3x3xf32> to vector<3x3x3xf32>
    %c0_87 = arith.constant 0 : index
    %c65_88 = arith.constant 65 : index
    %c1_89 = arith.constant 1 : index
    %c0_90 = arith.constant 0 : index
    %52 = vector.load %arg1[%c0_87, %c65_88, %c1_89, %c0_90] : memref<1x80x5x3xf32, #tpu.memory_space<vmem>>, vector<1x3x3x3xf32>
    %53 = vector.shape_cast %52 : vector<1x3x3x3xf32> to vector<3x3x3xf32>
    %c0_91 = arith.constant 0 : index
    %c70_92 = arith.constant 70 : index
    %c1_93 = arith.constant 1 : index
    %c0_94 = arith.constant 0 : index
    %54 = vector.load %arg1[%c0_91, %c70_92, %c1_93, %c0_94] : memref<1x80x5x3xf32, #tpu.memory_space<vmem>>, vector<1x3x3x3xf32>
    %55 = vector.shape_cast %54 : vector<1x3x3x3xf32> to vector<3x3x3xf32>
    %c0_95 = arith.constant 0 : index
    %c1_96 = arith.constant 1 : index
    %c0_97 = arith.constant 0 : index
    %c0_98 = arith.constant 0 : index
    %56 = vector.load %arg1[%c0_95, %c1_96, %c0_97, %c0_98] : memref<1x80x5x3xf32, #tpu.memory_space<vmem>>, vector<1x3x3x3xf32>
    %57 = vector.shape_cast %56 : vector<1x3x3x3xf32> to vector<3x3x3xf32>
    %c0_99 = arith.constant 0 : index
    %c6 = arith.constant 6 : index
    %c0_100 = arith.constant 0 : index
    %c0_101 = arith.constant 0 : index
    %58 = vector.load %arg1[%c0_99, %c6, %c0_100, %c0_101] : memref<1x80x5x3xf32, #tpu.memory_space<vmem>>, vector<1x3x3x3xf32>
    %59 = vector.shape_cast %58 : vector<1x3x3x3xf32> to vector<3x3x3xf32>
    %c0_102 = arith.constant 0 : index
    %c11 = arith.constant 11 : index
    %c0_103 = arith.constant 0 : index
    %c0_104 = arith.constant 0 : index
    %60 = vector.load %arg1[%c0_102, %c11, %c0_103, %c0_104] : memref<1x80x5x3xf32, #tpu.memory_space<vmem>>, vector<1x3x3x3xf32>
    %61 = vector.shape_cast %60 : vector<1x3x3x3xf32> to vector<3x3x3xf32>
    %c0_105 = arith.constant 0 : index
    %c16 = arith.constant 16 : index
    %c0_106 = arith.constant 0 : index
    %c0_107 = arith.constant 0 : index
    %62 = vector.load %arg1[%c0_105, %c16, %c0_106, %c0_107] : memref<1x80x5x3xf32, #tpu.memory_space<vmem>>, vector<1x3x3x3xf32>
    %63 = vector.shape_cast %62 : vector<1x3x3x3xf32> to vector<3x3x3xf32>
    %c0_108 = arith.constant 0 : index
    %c1_109 = arith.constant 1 : index
    %c1_110 = arith.constant 1 : index
    %c0_111 = arith.constant 0 : index
    %64 = vector.load %arg1[%c0_108, %c1_109, %c1_110, %c0_111] : memref<1x80x5x3xf32, #tpu.memory_space<vmem>>, vector<1x3x3x3xf32>
    %65 = vector.shape_cast %64 : vector<1x3x3x3xf32> to vector<3x3x3xf32>
    %c0_112 = arith.constant 0 : index
    %c6_113 = arith.constant 6 : index
    %c1_114 = arith.constant 1 : index
    %c0_115 = arith.constant 0 : index
    %66 = vector.load %arg1[%c0_112, %c6_113, %c1_114, %c0_115] : memref<1x80x5x3xf32, #tpu.memory_space<vmem>>, vector<1x3x3x3xf32>
    %67 = vector.shape_cast %66 : vector<1x3x3x3xf32> to vector<3x3x3xf32>
    %c0_116 = arith.constant 0 : index
    %c11_117 = arith.constant 11 : index
    %c1_118 = arith.constant 1 : index
    %c0_119 = arith.constant 0 : index
    %68 = vector.load %arg1[%c0_116, %c11_117, %c1_118, %c0_119] : memref<1x80x5x3xf32, #tpu.memory_space<vmem>>, vector<1x3x3x3xf32>
    %69 = vector.shape_cast %68 : vector<1x3x3x3xf32> to vector<3x3x3xf32>
    %c0_120 = arith.constant 0 : index
    %c21 = arith.constant 21 : index
    %c0_121 = arith.constant 0 : index
    %c0_122 = arith.constant 0 : index
    %70 = vector.load %arg1[%c0_120, %c21, %c0_121, %c0_122] : memref<1x80x5x3xf32, #tpu.memory_space<vmem>>, vector<1x3x3x3xf32>
    %71 = vector.shape_cast %70 : vector<1x3x3x3xf32> to vector<3x3x3xf32>
    %c0_123 = arith.constant 0 : index
    %c26 = arith.constant 26 : index
    %c0_124 = arith.constant 0 : index
    %c0_125 = arith.constant 0 : index
    %72 = vector.load %arg1[%c0_123, %c26, %c0_124, %c0_125] : memref<1x80x5x3xf32, #tpu.memory_space<vmem>>, vector<1x3x3x3xf32>
    %73 = vector.shape_cast %72 : vector<1x3x3x3xf32> to vector<3x3x3xf32>
    %c0_126 = arith.constant 0 : index
    %c31 = arith.constant 31 : index
    %c0_127 = arith.constant 0 : index
    %c0_128 = arith.constant 0 : index
    %74 = vector.load %arg1[%c0_126, %c31, %c0_127, %c0_128] : memref<1x80x5x3xf32, #tpu.memory_space<vmem>>, vector<1x3x3x3xf32>
    %75 = vector.shape_cast %74 : vector<1x3x3x3xf32> to vector<3x3x3xf32>
    %c0_129 = arith.constant 0 : index
    %c36 = arith.constant 36 : index
    %c0_130 = arith.constant 0 : index
    %c0_131 = arith.constant 0 : index
    %76 = vector.load %arg1[%c0_129, %c36, %c0_130, %c0_131] : memref<1x80x5x3xf32, #tpu.memory_space<vmem>>, vector<1x3x3x3xf32>
    %77 = vector.shape_cast %76 : vector<1x3x3x3xf32> to vector<3x3x3xf32>
    %c0_132 = arith.constant 0 : index
    %c21_133 = arith.constant 21 : index
    %c1_134 = arith.constant 1 : index
    %c0_135 = arith.constant 0 : index
    %78 = vector.load %arg1[%c0_132, %c21_133, %c1_134, %c0_135] : memref<1x80x5x3xf32, #tpu.memory_space<vmem>>, vector<1x3x3x3xf32>
    %79 = vector.shape_cast %78 : vector<1x3x3x3xf32> to vector<3x3x3xf32>
    %c0_136 = arith.constant 0 : index
    %c26_137 = arith.constant 26 : index
    %c1_138 = arith.constant 1 : index
    %c0_139 = arith.constant 0 : index
    %80 = vector.load %arg1[%c0_136, %c26_137, %c1_138, %c0_139] : memref<1x80x5x3xf32, #tpu.memory_space<vmem>>, vector<1x3x3x3xf32>
    %81 = vector.shape_cast %80 : vector<1x3x3x3xf32> to vector<3x3x3xf32>
    %c0_140 = arith.constant 0 : index
    %c31_141 = arith.constant 31 : index
    %c1_142 = arith.constant 1 : index
    %c0_143 = arith.constant 0 : index
    %82 = vector.load %arg1[%c0_140, %c31_141, %c1_142, %c0_143] : memref<1x80x5x3xf32, #tpu.memory_space<vmem>>, vector<1x3x3x3xf32>
    %83 = vector.shape_cast %82 : vector<1x3x3x3xf32> to vector<3x3x3xf32>
    %c0_144 = arith.constant 0 : index
    %c41 = arith.constant 41 : index
    %c0_145 = arith.constant 0 : index
    %c0_146 = arith.constant 0 : index
    %84 = vector.load %arg1[%c0_144, %c41, %c0_145, %c0_146] : memref<1x80x5x3xf32, #tpu.memory_space<vmem>>, vector<1x3x3x3xf32>
    %85 = vector.shape_cast %84 : vector<1x3x3x3xf32> to vector<3x3x3xf32>
    %c0_147 = arith.constant 0 : index
    %c46 = arith.constant 46 : index
    %c0_148 = arith.constant 0 : index
    %c0_149 = arith.constant 0 : index
    %86 = vector.load %arg1[%c0_147, %c46, %c0_148, %c0_149] : memref<1x80x5x3xf32, #tpu.memory_space<vmem>>, vector<1x3x3x3xf32>
    %87 = vector.shape_cast %86 : vector<1x3x3x3xf32> to vector<3x3x3xf32>
    %c0_150 = arith.constant 0 : index
    %c51 = arith.constant 51 : index
    %c0_151 = arith.constant 0 : index
    %c0_152 = arith.constant 0 : index
    %88 = vector.load %arg1[%c0_150, %c51, %c0_151, %c0_152] : memref<1x80x5x3xf32, #tpu.memory_space<vmem>>, vector<1x3x3x3xf32>
    %89 = vector.shape_cast %88 : vector<1x3x3x3xf32> to vector<3x3x3xf32>
    %c0_153 = arith.constant 0 : index
    %c56 = arith.constant 56 : index
    %c0_154 = arith.constant 0 : index
    %c0_155 = arith.constant 0 : index
    %90 = vector.load %arg1[%c0_153, %c56, %c0_154, %c0_155] : memref<1x80x5x3xf32, #tpu.memory_space<vmem>>, vector<1x3x3x3xf32>
    %91 = vector.shape_cast %90 : vector<1x3x3x3xf32> to vector<3x3x3xf32>
    %c0_156 = arith.constant 0 : index
    %c41_157 = arith.constant 41 : index
    %c1_158 = arith.constant 1 : index
    %c0_159 = arith.constant 0 : index
    %92 = vector.load %arg1[%c0_156, %c41_157, %c1_158, %c0_159] : memref<1x80x5x3xf32, #tpu.memory_space<vmem>>, vector<1x3x3x3xf32>
    %93 = vector.shape_cast %92 : vector<1x3x3x3xf32> to vector<3x3x3xf32>
    %c0_160 = arith.constant 0 : index
    %c46_161 = arith.constant 46 : index
    %c1_162 = arith.constant 1 : index
    %c0_163 = arith.constant 0 : index
    %94 = vector.load %arg1[%c0_160, %c46_161, %c1_162, %c0_163] : memref<1x80x5x3xf32, #tpu.memory_space<vmem>>, vector<1x3x3x3xf32>
    %95 = vector.shape_cast %94 : vector<1x3x3x3xf32> to vector<3x3x3xf32>
    %c0_164 = arith.constant 0 : index
    %c51_165 = arith.constant 51 : index
    %c1_166 = arith.constant 1 : index
    %c0_167 = arith.constant 0 : index
    %96 = vector.load %arg1[%c0_164, %c51_165, %c1_166, %c0_167] : memref<1x80x5x3xf32, #tpu.memory_space<vmem>>, vector<1x3x3x3xf32>
    %97 = vector.shape_cast %96 : vector<1x3x3x3xf32> to vector<3x3x3xf32>
    %98 = tpu.concatenate %1, %3, %5, %7, %9, %11, %13, %15, %17, %19, %21, %23, %25, %27, %29, %31 in 2 : vector<3x3x3xf32>, vector<3x3x3xf32>, vector<3x3x3xf32>, vector<3x3x3xf32>, vector<3x3x3xf32>, vector<3x3x3xf32>, vector<3x3x3xf32>, vector<3x3x3xf32>, vector<3x3x3xf32>, vector<3x3x3xf32>, vector<3x3x3xf32>, vector<3x3x3xf32>, vector<3x3x3xf32>, vector<3x3x3xf32>, vector<3x3x3xf32>, vector<3x3x3xf32> -> vector<3x3x48xf32>
    %99 = tpu.concatenate %33, %35, %37, %39, %41, %43, %45, %47, %49, %51, %53, %55, %57, %59, %61, %63 in 2 : vector<3x3x3xf32>, vector<3x3x3xf32>, vector<3x3x3xf32>, vector<3x3x3xf32>, vector<3x3x3xf32>, vector<3x3x3xf32>, vector<3x3x3xf32>, vector<3x3x3xf32>, vector<3x3x3xf32>, vector<3x3x3xf32>, vector<3x3x3xf32>, vector<3x3x3xf32>, vector<3x3x3xf32>, vector<3x3x3xf32>, vector<3x3x3xf32>, vector<3x3x3xf32> -> vector<3x3x48xf32>
    %100 = tpu.concatenate %65, %67, %69, %71, %73, %75, %77, %79, %81, %83, %85, %87, %89, %91, %93, %95 in 2 : vector<3x3x3xf32>, vector<3x3x3xf32>, vector<3x3x3xf32>, vector<3x3x3xf32>, vector<3x3x3xf32>, vector<3x3x3xf32>, vector<3x3x3xf32>, vector<3x3x3xf32>, vector<3x3x3xf32>, vector<3x3x3xf32>, vector<3x3x3xf32>, vector<3x3x3xf32>, vector<3x3x3xf32>, vector<3x3x3xf32>, vector<3x3x3xf32>, vector<3x3x3xf32> -> vector<3x3x48xf32>
    %101 = tpu.concatenate %98, %99, %100, %97 in 2 : vector<3x3x48xf32>, vector<3x3x48xf32>, vector<3x3x48xf32>, vector<3x3x3xf32> -> vector<3x3x147xf32>
    %102 = vector.shape_cast %101 : vector<3x3x147xf32> to vector<9x147xf32>
    %c0_168 = arith.constant 0 : index
    %c10_169 = arith.constant 10 : index
    %c0_170 = arith.constant 0 : index
    %c0_171 = arith.constant 0 : index
    %103 = vector.load %arg1[%c0_168, %c10_169, %c0_170, %c0_171] : memref<1x80x5x3xf32, #tpu.memory_space<vmem>>, vector<1x3x3x3xf32>
    %104 = vector.shape_cast %103 : vector<1x3x3x3xf32> to vector<3x3x3xf32>
    %c0_172 = arith.constant 0 : index
    %c15_173 = arith.constant 15 : index
    %c0_174 = arith.constant 0 : index
    %c0_175 = arith.constant 0 : index
    %105 = vector.load %arg1[%c0_172, %c15_173, %c0_174, %c0_175] : memref<1x80x5x3xf32, #tpu.memory_space<vmem>>, vector<1x3x3x3xf32>
    %106 = vector.shape_cast %105 : vector<1x3x3x3xf32> to vector<3x3x3xf32>
    %c0_176 = arith.constant 0 : index
    %c0_177 = arith.constant 0 : index
    %c1_178 = arith.constant 1 : index
    %c0_179 = arith.constant 0 : index
    %107 = vector.load %arg1[%c0_176, %c0_177, %c1_178, %c0_179] : memref<1x80x5x3xf32, #tpu.memory_space<vmem>>, vector<1x3x3x3xf32>
    %108 = vector.shape_cast %107 : vector<1x3x3x3xf32> to vector<3x3x3xf32>
    %c0_180 = arith.constant 0 : index
    %c5_181 = arith.constant 5 : index
    %c1_182 = arith.constant 1 : index
    %c0_183 = arith.constant 0 : index
    %109 = vector.load %arg1[%c0_180, %c5_181, %c1_182, %c0_183] : memref<1x80x5x3xf32, #tpu.memory_space<vmem>>, vector<1x3x3x3xf32>
    %110 = vector.shape_cast %109 : vector<1x3x3x3xf32> to vector<3x3x3xf32>
    %c0_184 = arith.constant 0 : index
    %c10_185 = arith.constant 10 : index
    %c1_186 = arith.constant 1 : index
    %c0_187 = arith.constant 0 : index
    %111 = vector.load %arg1[%c0_184, %c10_185, %c1_186, %c0_187] : memref<1x80x5x3xf32, #tpu.memory_space<vmem>>, vector<1x3x3x3xf32>
    %112 = vector.shape_cast %111 : vector<1x3x3x3xf32> to vector<3x3x3xf32>
    %c0_188 = arith.constant 0 : index
    %c15_189 = arith.constant 15 : index
    %c1_190 = arith.constant 1 : index
    %c0_191 = arith.constant 0 : index
    %113 = vector.load %arg1[%c0_188, %c15_189, %c1_190, %c0_191] : memref<1x80x5x3xf32, #tpu.memory_space<vmem>>, vector<1x3x3x3xf32>
    %114 = vector.shape_cast %113 : vector<1x3x3x3xf32> to vector<3x3x3xf32>
    %c0_192 = arith.constant 0 : index
    %c0_193 = arith.constant 0 : index
    %c2 = arith.constant 2 : index
    %c0_194 = arith.constant 0 : index
    %115 = vector.load %arg1[%c0_192, %c0_193, %c2, %c0_194] : memref<1x80x5x3xf32, #tpu.memory_space<vmem>>, vector<1x3x3x3xf32>
    %116 = vector.shape_cast %115 : vector<1x3x3x3xf32> to vector<3x3x3xf32>
    %c0_195 = arith.constant 0 : index
    %c30_196 = arith.constant 30 : index
    %c0_197 = arith.constant 0 : index
    %c0_198 = arith.constant 0 : index
    %117 = vector.load %arg1[%c0_195, %c30_196, %c0_197, %c0_198] : memref<1x80x5x3xf32, #tpu.memory_space<vmem>>, vector<1x3x3x3xf32>
    %118 = vector.shape_cast %117 : vector<1x3x3x3xf32> to vector<3x3x3xf32>
    %c0_199 = arith.constant 0 : index
    %c35_200 = arith.constant 35 : index
    %c0_201 = arith.constant 0 : index
    %c0_202 = arith.constant 0 : index
    %119 = vector.load %arg1[%c0_199, %c35_200, %c0_201, %c0_202] : memref<1x80x5x3xf32, #tpu.memory_space<vmem>>, vector<1x3x3x3xf32>
    %120 = vector.shape_cast %119 : vector<1x3x3x3xf32> to vector<3x3x3xf32>
    %c0_203 = arith.constant 0 : index
    %c20_204 = arith.constant 20 : index
    %c1_205 = arith.constant 1 : index
    %c0_206 = arith.constant 0 : index
    %121 = vector.load %arg1[%c0_203, %c20_204, %c1_205, %c0_206] : memref<1x80x5x3xf32, #tpu.memory_space<vmem>>, vector<1x3x3x3xf32>
    %122 = vector.shape_cast %121 : vector<1x3x3x3xf32> to vector<3x3x3xf32>
    %c0_207 = arith.constant 0 : index
    %c25_208 = arith.constant 25 : index
    %c1_209 = arith.constant 1 : index
    %c0_210 = arith.constant 0 : index
    %123 = vector.load %arg1[%c0_207, %c25_208, %c1_209, %c0_210] : memref<1x80x5x3xf32, #tpu.memory_space<vmem>>, vector<1x3x3x3xf32>
    %124 = vector.shape_cast %123 : vector<1x3x3x3xf32> to vector<3x3x3xf32>
    %c0_211 = arith.constant 0 : index
    %c30_212 = arith.constant 30 : index
    %c1_213 = arith.constant 1 : index
    %c0_214 = arith.constant 0 : index
    %125 = vector.load %arg1[%c0_211, %c30_212, %c1_213, %c0_214] : memref<1x80x5x3xf32, #tpu.memory_space<vmem>>, vector<1x3x3x3xf32>
    %126 = vector.shape_cast %125 : vector<1x3x3x3xf32> to vector<3x3x3xf32>
    %c0_215 = arith.constant 0 : index
    %c35_216 = arith.constant 35 : index
    %c1_217 = arith.constant 1 : index
    %c0_218 = arith.constant 0 : index
    %127 = vector.load %arg1[%c0_215, %c35_216, %c1_217, %c0_218] : memref<1x80x5x3xf32, #tpu.memory_space<vmem>>, vector<1x3x3x3xf32>
    %128 = vector.shape_cast %127 : vector<1x3x3x3xf32> to vector<3x3x3xf32>
    %c0_219 = arith.constant 0 : index
    %c20_220 = arith.constant 20 : index
    %c2_221 = arith.constant 2 : index
    %c0_222 = arith.constant 0 : index
    %129 = vector.load %arg1[%c0_219, %c20_220, %c2_221, %c0_222] : memref<1x80x5x3xf32, #tpu.memory_space<vmem>>, vector<1x3x3x3xf32>
    %130 = vector.shape_cast %129 : vector<1x3x3x3xf32> to vector<3x3x3xf32>
    %c0_223 = arith.constant 0 : index
    %c50_224 = arith.constant 50 : index
    %c0_225 = arith.constant 0 : index
    %c0_226 = arith.constant 0 : index
    %131 = vector.load %arg1[%c0_223, %c50_224, %c0_225, %c0_226] : memref<1x80x5x3xf32, #tpu.memory_space<vmem>>, vector<1x3x3x3xf32>
    %132 = vector.shape_cast %131 : vector<1x3x3x3xf32> to vector<3x3x3xf32>
    %c0_227 = arith.constant 0 : index
    %c55_228 = arith.constant 55 : index
    %c0_229 = arith.constant 0 : index
    %c0_230 = arith.constant 0 : index
    %133 = vector.load %arg1[%c0_227, %c55_228, %c0_229, %c0_230] : memref<1x80x5x3xf32, #tpu.memory_space<vmem>>, vector<1x3x3x3xf32>
    %134 = vector.shape_cast %133 : vector<1x3x3x3xf32> to vector<3x3x3xf32>
    %c0_231 = arith.constant 0 : index
    %c40_232 = arith.constant 40 : index
    %c1_233 = arith.constant 1 : index
    %c0_234 = arith.constant 0 : index
    %135 = vector.load %arg1[%c0_231, %c40_232, %c1_233, %c0_234] : memref<1x80x5x3xf32, #tpu.memory_space<vmem>>, vector<1x3x3x3xf32>
    %136 = vector.shape_cast %135 : vector<1x3x3x3xf32> to vector<3x3x3xf32>
    %c0_235 = arith.constant 0 : index
    %c45_236 = arith.constant 45 : index
    %c1_237 = arith.constant 1 : index
    %c0_238 = arith.constant 0 : index
    %137 = vector.load %arg1[%c0_235, %c45_236, %c1_237, %c0_238] : memref<1x80x5x3xf32, #tpu.memory_space<vmem>>, vector<1x3x3x3xf32>
    %138 = vector.shape_cast %137 : vector<1x3x3x3xf32> to vector<3x3x3xf32>
    %c0_239 = arith.constant 0 : index
    %c50_240 = arith.constant 50 : index
    %c1_241 = arith.constant 1 : index
    %c0_242 = arith.constant 0 : index
    %139 = vector.load %arg1[%c0_239, %c50_240, %c1_241, %c0_242] : memref<1x80x5x3xf32, #tpu.memory_space<vmem>>, vector<1x3x3x3xf32>
    %140 = vector.shape_cast %139 : vector<1x3x3x3xf32> to vector<3x3x3xf32>
    %c0_243 = arith.constant 0 : index
    %c55_244 = arith.constant 55 : index
    %c1_245 = arith.constant 1 : index
    %c0_246 = arith.constant 0 : index
    %141 = vector.load %arg1[%c0_243, %c55_244, %c1_245, %c0_246] : memref<1x80x5x3xf32, #tpu.memory_space<vmem>>, vector<1x3x3x3xf32>
    %142 = vector.shape_cast %141 : vector<1x3x3x3xf32> to vector<3x3x3xf32>
    %c0_247 = arith.constant 0 : index
    %c40_248 = arith.constant 40 : index
    %c2_249 = arith.constant 2 : index
    %c0_250 = arith.constant 0 : index
    %143 = vector.load %arg1[%c0_247, %c40_248, %c2_249, %c0_250] : memref<1x80x5x3xf32, #tpu.memory_space<vmem>>, vector<1x3x3x3xf32>
    %144 = vector.shape_cast %143 : vector<1x3x3x3xf32> to vector<3x3x3xf32>
    %c0_251 = arith.constant 0 : index
    %c70_252 = arith.constant 70 : index
    %c0_253 = arith.constant 0 : index
    %c0_254 = arith.constant 0 : index
    %145 = vector.load %arg1[%c0_251, %c70_252, %c0_253, %c0_254] : memref<1x80x5x3xf32, #tpu.memory_space<vmem>>, vector<1x3x3x3xf32>
    %146 = vector.shape_cast %145 : vector<1x3x3x3xf32> to vector<3x3x3xf32>
    %c0_255 = arith.constant 0 : index
    %c75_256 = arith.constant 75 : index
    %c0_257 = arith.constant 0 : index
    %c0_258 = arith.constant 0 : index
    %147 = vector.load %arg1[%c0_255, %c75_256, %c0_257, %c0_258] : memref<1x80x5x3xf32, #tpu.memory_space<vmem>>, vector<1x3x3x3xf32>
    %148 = vector.shape_cast %147 : vector<1x3x3x3xf32> to vector<3x3x3xf32>
    %c0_259 = arith.constant 0 : index
    %c60_260 = arith.constant 60 : index
    %c1_261 = arith.constant 1 : index
    %c0_262 = arith.constant 0 : index
    %149 = vector.load %arg1[%c0_259, %c60_260, %c1_261, %c0_262] : memref<1x80x5x3xf32, #tpu.memory_space<vmem>>, vector<1x3x3x3xf32>
    %150 = vector.shape_cast %149 : vector<1x3x3x3xf32> to vector<3x3x3xf32>
    %c0_263 = arith.constant 0 : index
    %c65_264 = arith.constant 65 : index
    %c1_265 = arith.constant 1 : index
    %c0_266 = arith.constant 0 : index
    %151 = vector.load %arg1[%c0_263, %c65_264, %c1_265, %c0_266] : memref<1x80x5x3xf32, #tpu.memory_space<vmem>>, vector<1x3x3x3xf32>
    %152 = vector.shape_cast %151 : vector<1x3x3x3xf32> to vector<3x3x3xf32>
    %c0_267 = arith.constant 0 : index
    %c70_268 = arith.constant 70 : index
    %c1_269 = arith.constant 1 : index
    %c0_270 = arith.constant 0 : index
    %153 = vector.load %arg1[%c0_267, %c70_268, %c1_269, %c0_270] : memref<1x80x5x3xf32, #tpu.memory_space<vmem>>, vector<1x3x3x3xf32>
    %154 = vector.shape_cast %153 : vector<1x3x3x3xf32> to vector<3x3x3xf32>
    %c0_271 = arith.constant 0 : index
    %c75_272 = arith.constant 75 : index
    %c1_273 = arith.constant 1 : index
    %c0_274 = arith.constant 0 : index
    %155 = vector.load %arg1[%c0_271, %c75_272, %c1_273, %c0_274] : memref<1x80x5x3xf32, #tpu.memory_space<vmem>>, vector<1x3x3x3xf32>
    %156 = vector.shape_cast %155 : vector<1x3x3x3xf32> to vector<3x3x3xf32>
    %c0_275 = arith.constant 0 : index
    %c60_276 = arith.constant 60 : index
    %c2_277 = arith.constant 2 : index
    %c0_278 = arith.constant 0 : index
    %157 = vector.load %arg1[%c0_275, %c60_276, %c2_277, %c0_278] : memref<1x80x5x3xf32, #tpu.memory_space<vmem>>, vector<1x3x3x3xf32>
    %158 = vector.shape_cast %157 : vector<1x3x3x3xf32> to vector<3x3x3xf32>
    %c0_279 = arith.constant 0 : index
    %c11_280 = arith.constant 11 : index
    %c0_281 = arith.constant 0 : index
    %c0_282 = arith.constant 0 : index
    %159 = vector.load %arg1[%c0_279, %c11_280, %c0_281, %c0_282] : memref<1x80x5x3xf32, #tpu.memory_space<vmem>>, vector<1x3x3x3xf32>
    %160 = vector.shape_cast %159 : vector<1x3x3x3xf32> to vector<3x3x3xf32>
    %c0_283 = arith.constant 0 : index
    %c16_284 = arith.constant 16 : index
    %c0_285 = arith.constant 0 : index
    %c0_286 = arith.constant 0 : index
    %161 = vector.load %arg1[%c0_283, %c16_284, %c0_285, %c0_286] : memref<1x80x5x3xf32, #tpu.memory_space<vmem>>, vector<1x3x3x3xf32>
    %162 = vector.shape_cast %161 : vector<1x3x3x3xf32> to vector<3x3x3xf32>
    %c0_287 = arith.constant 0 : index
    %c1_288 = arith.constant 1 : index
    %c1_289 = arith.constant 1 : index
    %c0_290 = arith.constant 0 : index
    %163 = vector.load %arg1[%c0_287, %c1_288, %c1_289, %c0_290] : memref<1x80x5x3xf32, #tpu.memory_space<vmem>>, vector<1x3x3x3xf32>
    %164 = vector.shape_cast %163 : vector<1x3x3x3xf32> to vector<3x3x3xf32>
    %c0_291 = arith.constant 0 : index
    %c6_292 = arith.constant 6 : index
    %c1_293 = arith.constant 1 : index
    %c0_294 = arith.constant 0 : index
    %165 = vector.load %arg1[%c0_291, %c6_292, %c1_293, %c0_294] : memref<1x80x5x3xf32, #tpu.memory_space<vmem>>, vector<1x3x3x3xf32>
    %166 = vector.shape_cast %165 : vector<1x3x3x3xf32> to vector<3x3x3xf32>
    %c0_295 = arith.constant 0 : index
    %c11_296 = arith.constant 11 : index
    %c1_297 = arith.constant 1 : index
    %c0_298 = arith.constant 0 : index
    %167 = vector.load %arg1[%c0_295, %c11_296, %c1_297, %c0_298] : memref<1x80x5x3xf32, #tpu.memory_space<vmem>>, vector<1x3x3x3xf32>
    %168 = vector.shape_cast %167 : vector<1x3x3x3xf32> to vector<3x3x3xf32>
    %c0_299 = arith.constant 0 : index
    %c16_300 = arith.constant 16 : index
    %c1_301 = arith.constant 1 : index
    %c0_302 = arith.constant 0 : index
    %169 = vector.load %arg1[%c0_299, %c16_300, %c1_301, %c0_302] : memref<1x80x5x3xf32, #tpu.memory_space<vmem>>, vector<1x3x3x3xf32>
    %170 = vector.shape_cast %169 : vector<1x3x3x3xf32> to vector<3x3x3xf32>
    %c0_303 = arith.constant 0 : index
    %c1_304 = arith.constant 1 : index
    %c2_305 = arith.constant 2 : index
    %c0_306 = arith.constant 0 : index
    %171 = vector.load %arg1[%c0_303, %c1_304, %c2_305, %c0_306] : memref<1x80x5x3xf32, #tpu.memory_space<vmem>>, vector<1x3x3x3xf32>
    %172 = vector.shape_cast %171 : vector<1x3x3x3xf32> to vector<3x3x3xf32>
    %c0_307 = arith.constant 0 : index
    %c31_308 = arith.constant 31 : index
    %c0_309 = arith.constant 0 : index
    %c0_310 = arith.constant 0 : index
    %173 = vector.load %arg1[%c0_307, %c31_308, %c0_309, %c0_310] : memref<1x80x5x3xf32, #tpu.memory_space<vmem>>, vector<1x3x3x3xf32>
    %174 = vector.shape_cast %173 : vector<1x3x3x3xf32> to vector<3x3x3xf32>
    %c0_311 = arith.constant 0 : index
    %c36_312 = arith.constant 36 : index
    %c0_313 = arith.constant 0 : index
    %c0_314 = arith.constant 0 : index
    %175 = vector.load %arg1[%c0_311, %c36_312, %c0_313, %c0_314] : memref<1x80x5x3xf32, #tpu.memory_space<vmem>>, vector<1x3x3x3xf32>
    %176 = vector.shape_cast %175 : vector<1x3x3x3xf32> to vector<3x3x3xf32>
    %c0_315 = arith.constant 0 : index
    %c21_316 = arith.constant 21 : index
    %c1_317 = arith.constant 1 : index
    %c0_318 = arith.constant 0 : index
    %177 = vector.load %arg1[%c0_315, %c21_316, %c1_317, %c0_318] : memref<1x80x5x3xf32, #tpu.memory_space<vmem>>, vector<1x3x3x3xf32>
    %178 = vector.shape_cast %177 : vector<1x3x3x3xf32> to vector<3x3x3xf32>
    %c0_319 = arith.constant 0 : index
    %c26_320 = arith.constant 26 : index
    %c1_321 = arith.constant 1 : index
    %c0_322 = arith.constant 0 : index
    %179 = vector.load %arg1[%c0_319, %c26_320, %c1_321, %c0_322] : memref<1x80x5x3xf32, #tpu.memory_space<vmem>>, vector<1x3x3x3xf32>
    %180 = vector.shape_cast %179 : vector<1x3x3x3xf32> to vector<3x3x3xf32>
    %c0_323 = arith.constant 0 : index
    %c31_324 = arith.constant 31 : index
    %c1_325 = arith.constant 1 : index
    %c0_326 = arith.constant 0 : index
    %181 = vector.load %arg1[%c0_323, %c31_324, %c1_325, %c0_326] : memref<1x80x5x3xf32, #tpu.memory_space<vmem>>, vector<1x3x3x3xf32>
    %182 = vector.shape_cast %181 : vector<1x3x3x3xf32> to vector<3x3x3xf32>
    %c0_327 = arith.constant 0 : index
    %c36_328 = arith.constant 36 : index
    %c1_329 = arith.constant 1 : index
    %c0_330 = arith.constant 0 : index
    %183 = vector.load %arg1[%c0_327, %c36_328, %c1_329, %c0_330] : memref<1x80x5x3xf32, #tpu.memory_space<vmem>>, vector<1x3x3x3xf32>
    %184 = vector.shape_cast %183 : vector<1x3x3x3xf32> to vector<3x3x3xf32>
    %c0_331 = arith.constant 0 : index
    %c21_332 = arith.constant 21 : index
    %c2_333 = arith.constant 2 : index
    %c0_334 = arith.constant 0 : index
    %185 = vector.load %arg1[%c0_331, %c21_332, %c2_333, %c0_334] : memref<1x80x5x3xf32, #tpu.memory_space<vmem>>, vector<1x3x3x3xf32>
    %186 = vector.shape_cast %185 : vector<1x3x3x3xf32> to vector<3x3x3xf32>
    %c0_335 = arith.constant 0 : index
    %c51_336 = arith.constant 51 : index
    %c0_337 = arith.constant 0 : index
    %c0_338 = arith.constant 0 : index
    %187 = vector.load %arg1[%c0_335, %c51_336, %c0_337, %c0_338] : memref<1x80x5x3xf32, #tpu.memory_space<vmem>>, vector<1x3x3x3xf32>
    %188 = vector.shape_cast %187 : vector<1x3x3x3xf32> to vector<3x3x3xf32>
    %c0_339 = arith.constant 0 : index
    %c56_340 = arith.constant 56 : index
    %c0_341 = arith.constant 0 : index
    %c0_342 = arith.constant 0 : index
    %189 = vector.load %arg1[%c0_339, %c56_340, %c0_341, %c0_342] : memref<1x80x5x3xf32, #tpu.memory_space<vmem>>, vector<1x3x3x3xf32>
    %190 = vector.shape_cast %189 : vector<1x3x3x3xf32> to vector<3x3x3xf32>
    %c0_343 = arith.constant 0 : index
    %c41_344 = arith.constant 41 : index
    %c1_345 = arith.constant 1 : index
    %c0_346 = arith.constant 0 : index
    %191 = vector.load %arg1[%c0_343, %c41_344, %c1_345, %c0_346] : memref<1x80x5x3xf32, #tpu.memory_space<vmem>>, vector<1x3x3x3xf32>
    %192 = vector.shape_cast %191 : vector<1x3x3x3xf32> to vector<3x3x3xf32>
    %c0_347 = arith.constant 0 : index
    %c46_348 = arith.constant 46 : index
    %c1_349 = arith.constant 1 : index
    %c0_350 = arith.constant 0 : index
    %193 = vector.load %arg1[%c0_347, %c46_348, %c1_349, %c0_350] : memref<1x80x5x3xf32, #tpu.memory_space<vmem>>, vector<1x3x3x3xf32>
    %194 = vector.shape_cast %193 : vector<1x3x3x3xf32> to vector<3x3x3xf32>
    %c0_351 = arith.constant 0 : index
    %c51_352 = arith.constant 51 : index
    %c1_353 = arith.constant 1 : index
    %c0_354 = arith.constant 0 : index
    %195 = vector.load %arg1[%c0_351, %c51_352, %c1_353, %c0_354] : memref<1x80x5x3xf32, #tpu.memory_space<vmem>>, vector<1x3x3x3xf32>
    %196 = vector.shape_cast %195 : vector<1x3x3x3xf32> to vector<3x3x3xf32>
    %c0_355 = arith.constant 0 : index
    %c56_356 = arith.constant 56 : index
    %c1_357 = arith.constant 1 : index
    %c0_358 = arith.constant 0 : index
    %197 = vector.load %arg1[%c0_355, %c56_356, %c1_357, %c0_358] : memref<1x80x5x3xf32, #tpu.memory_space<vmem>>, vector<1x3x3x3xf32>
    %198 = vector.shape_cast %197 : vector<1x3x3x3xf32> to vector<3x3x3xf32>
    %c0_359 = arith.constant 0 : index
    %c41_360 = arith.constant 41 : index
    %c2_361 = arith.constant 2 : index
    %c0_362 = arith.constant 0 : index
    %199 = vector.load %arg1[%c0_359, %c41_360, %c2_361, %c0_362] : memref<1x80x5x3xf32, #tpu.memory_space<vmem>>, vector<1x3x3x3xf32>
    %200 = vector.shape_cast %199 : vector<1x3x3x3xf32> to vector<3x3x3xf32>
    %201 = tpu.concatenate %104, %106, %108, %110, %112, %114, %116, %118, %120, %122, %124, %126, %128, %130, %132, %134 in 2 : vector<3x3x3xf32>, vector<3x3x3xf32>, vector<3x3x3xf32>, vector<3x3x3xf32>, vector<3x3x3xf32>, vector<3x3x3xf32>, vector<3x3x3xf32>, vector<3x3x3xf32>, vector<3x3x3xf32>, vector<3x3x3xf32>, vector<3x3x3xf32>, vector<3x3x3xf32>, vector<3x3x3xf32>, vector<3x3x3xf32>, vector<3x3x3xf32>, vector<3x3x3xf32> -> vector<3x3x48xf32>
    %202 = tpu.concatenate %136, %138, %140, %142, %144, %146, %148, %150, %152, %154, %156, %158, %160, %162, %164, %166 in 2 : vector<3x3x3xf32>, vector<3x3x3xf32>, vector<3x3x3xf32>, vector<3x3x3xf32>, vector<3x3x3xf32>, vector<3x3x3xf32>, vector<3x3x3xf32>, vector<3x3x3xf32>, vector<3x3x3xf32>, vector<3x3x3xf32>, vector<3x3x3xf32>, vector<3x3x3xf32>, vector<3x3x3xf32>, vector<3x3x3xf32>, vector<3x3x3xf32>, vector<3x3x3xf32> -> vector<3x3x48xf32>
    %203 = tpu.concatenate %168, %170, %172, %174, %176, %178, %180, %182, %184, %186, %188, %190, %192, %194, %196, %198 in 2 : vector<3x3x3xf32>, vector<3x3x3xf32>, vector<3x3x3xf32>, vector<3x3x3xf32>, vector<3x3x3xf32>, vector<3x3x3xf32>, vector<3x3x3xf32>, vector<3x3x3xf32>, vector<3x3x3xf32>, vector<3x3x3xf32>, vector<3x3x3xf32>, vector<3x3x3xf32>, vector<3x3x3xf32>, vector<3x3x3xf32>, vector<3x3x3xf32>, vector<3x3x3xf32> -> vector<3x3x48xf32>
    %204 = tpu.concatenate %201, %202, %203, %200 in 2 : vector<3x3x48xf32>, vector<3x3x48xf32>, vector<3x3x48xf32>, vector<3x3x3xf32> -> vector<3x3x147xf32>
    %205 = vector.shape_cast %204 : vector<3x3x147xf32> to vector<9x147xf32>
    %c0_363 = arith.constant 0 : index
    %c40_364 = arith.constant 40 : index
    %c0_365 = arith.constant 0 : index
    %c0_366 = arith.constant 0 : index
    %206 = vector.load %arg1[%c0_363, %c40_364, %c0_365, %c0_366] : memref<1x80x5x3xf32, #tpu.memory_space<vmem>>, vector<1x3x3x3xf32>
    %207 = vector.shape_cast %206 : vector<1x3x3x3xf32> to vector<3x3x3xf32>
    %c0_367 = arith.constant 0 : index
    %c45_368 = arith.constant 45 : index
    %c0_369 = arith.constant 0 : index
    %c0_370 = arith.constant 0 : index
    %208 = vector.load %arg1[%c0_367, %c45_368, %c0_369, %c0_370] : memref<1x80x5x3xf32, #tpu.memory_space<vmem>>, vector<1x3x3x3xf32>
    %209 = vector.shape_cast %208 : vector<1x3x3x3xf32> to vector<3x3x3xf32>
    %c0_371 = arith.constant 0 : index
    %c50_372 = arith.constant 50 : index
    %c0_373 = arith.constant 0 : index
    %c0_374 = arith.constant 0 : index
    %210 = vector.load %arg1[%c0_371, %c50_372, %c0_373, %c0_374] : memref<1x80x5x3xf32, #tpu.memory_space<vmem>>, vector<1x3x3x3xf32>
    %211 = vector.shape_cast %210 : vector<1x3x3x3xf32> to vector<3x3x3xf32>
    %c0_375 = arith.constant 0 : index
    %c55_376 = arith.constant 55 : index
    %c0_377 = arith.constant 0 : index
    %c0_378 = arith.constant 0 : index
    %212 = vector.load %arg1[%c0_375, %c55_376, %c0_377, %c0_378] : memref<1x80x5x3xf32, #tpu.memory_space<vmem>>, vector<1x3x3x3xf32>
    %213 = vector.shape_cast %212 : vector<1x3x3x3xf32> to vector<3x3x3xf32>
    %c0_379 = arith.constant 0 : index
    %c40_380 = arith.constant 40 : index
    %c1_381 = arith.constant 1 : index
    %c0_382 = arith.constant 0 : index
    %214 = vector.load %arg1[%c0_379, %c40_380, %c1_381, %c0_382] : memref<1x80x5x3xf32, #tpu.memory_space<vmem>>, vector<1x3x3x3xf32>
    %215 = vector.shape_cast %214 : vector<1x3x3x3xf32> to vector<3x3x3xf32>
    %c0_383 = arith.constant 0 : index
    %c45_384 = arith.constant 45 : index
    %c1_385 = arith.constant 1 : index
    %c0_386 = arith.constant 0 : index
    %216 = vector.load %arg1[%c0_383, %c45_384, %c1_385, %c0_386] : memref<1x80x5x3xf32, #tpu.memory_space<vmem>>, vector<1x3x3x3xf32>
    %217 = vector.shape_cast %216 : vector<1x3x3x3xf32> to vector<3x3x3xf32>
    %c0_387 = arith.constant 0 : index
    %c50_388 = arith.constant 50 : index
    %c1_389 = arith.constant 1 : index
    %c0_390 = arith.constant 0 : index
    %218 = vector.load %arg1[%c0_387, %c50_388, %c1_389, %c0_390] : memref<1x80x5x3xf32, #tpu.memory_space<vmem>>, vector<1x3x3x3xf32>
    %219 = vector.shape_cast %218 : vector<1x3x3x3xf32> to vector<3x3x3xf32>
    %c0_391 = arith.constant 0 : index
    %c60_392 = arith.constant 60 : index
    %c0_393 = arith.constant 0 : index
    %c0_394 = arith.constant 0 : index
    %220 = vector.load %arg1[%c0_391, %c60_392, %c0_393, %c0_394] : memref<1x80x5x3xf32, #tpu.memory_space<vmem>>, vector<1x3x3x3xf32>
    %221 = vector.shape_cast %220 : vector<1x3x3x3xf32> to vector<3x3x3xf32>
    %c0_395 = arith.constant 0 : index
    %c65_396 = arith.constant 65 : index
    %c0_397 = arith.constant 0 : index
    %c0_398 = arith.constant 0 : index
    %222 = vector.load %arg1[%c0_395, %c65_396, %c0_397, %c0_398] : memref<1x80x5x3xf32, #tpu.memory_space<vmem>>, vector<1x3x3x3xf32>
    %223 = vector.shape_cast %222 : vector<1x3x3x3xf32> to vector<3x3x3xf32>
    %c0_399 = arith.constant 0 : index
    %c70_400 = arith.constant 70 : index
    %c0_401 = arith.constant 0 : index
    %c0_402 = arith.constant 0 : index
    %224 = vector.load %arg1[%c0_399, %c70_400, %c0_401, %c0_402] : memref<1x80x5x3xf32, #tpu.memory_space<vmem>>, vector<1x3x3x3xf32>
    %225 = vector.shape_cast %224 : vector<1x3x3x3xf32> to vector<3x3x3xf32>
    %c0_403 = arith.constant 0 : index
    %c75_404 = arith.constant 75 : index
    %c0_405 = arith.constant 0 : index
    %c0_406 = arith.constant 0 : index
    %226 = vector.load %arg1[%c0_403, %c75_404, %c0_405, %c0_406] : memref<1x80x5x3xf32, #tpu.memory_space<vmem>>, vector<1x3x3x3xf32>
    %227 = vector.shape_cast %226 : vector<1x3x3x3xf32> to vector<3x3x3xf32>
    %c0_407 = arith.constant 0 : index
    %c60_408 = arith.constant 60 : index
    %c1_409 = arith.constant 1 : index
    %c0_410 = arith.constant 0 : index
    %228 = vector.load %arg1[%c0_407, %c60_408, %c1_409, %c0_410] : memref<1x80x5x3xf32, #tpu.memory_space<vmem>>, vector<1x3x3x3xf32>
    %229 = vector.shape_cast %228 : vector<1x3x3x3xf32> to vector<3x3x3xf32>
    %c0_411 = arith.constant 0 : index
    %c65_412 = arith.constant 65 : index
    %c1_413 = arith.constant 1 : index
    %c0_414 = arith.constant 0 : index
    %230 = vector.load %arg1[%c0_411, %c65_412, %c1_413, %c0_414] : memref<1x80x5x3xf32, #tpu.memory_space<vmem>>, vector<1x3x3x3xf32>
    %231 = vector.shape_cast %230 : vector<1x3x3x3xf32> to vector<3x3x3xf32>
    %c0_415 = arith.constant 0 : index
    %c70_416 = arith.constant 70 : index
    %c1_417 = arith.constant 1 : index
    %c0_418 = arith.constant 0 : index
    %232 = vector.load %arg1[%c0_415, %c70_416, %c1_417, %c0_418] : memref<1x80x5x3xf32, #tpu.memory_space<vmem>>, vector<1x3x3x3xf32>
    %233 = vector.shape_cast %232 : vector<1x3x3x3xf32> to vector<3x3x3xf32>
    %c0_419 = arith.constant 0 : index
    %c1_420 = arith.constant 1 : index
    %c0_421 = arith.constant 0 : index
    %c0_422 = arith.constant 0 : index
    %234 = vector.load %arg1[%c0_419, %c1_420, %c0_421, %c0_422] : memref<1x80x5x3xf32, #tpu.memory_space<vmem>>, vector<1x3x3x3xf32>
    %235 = vector.shape_cast %234 : vector<1x3x3x3xf32> to vector<3x3x3xf32>
    %c0_423 = arith.constant 0 : index
    %c6_424 = arith.constant 6 : index
    %c0_425 = arith.constant 0 : index
    %c0_426 = arith.constant 0 : index
    %236 = vector.load %arg1[%c0_423, %c6_424, %c0_425, %c0_426] : memref<1x80x5x3xf32, #tpu.memory_space<vmem>>, vector<1x3x3x3xf32>
    %237 = vector.shape_cast %236 : vector<1x3x3x3xf32> to vector<3x3x3xf32>
    %c0_427 = arith.constant 0 : index
    %c11_428 = arith.constant 11 : index
    %c0_429 = arith.constant 0 : index
    %c0_430 = arith.constant 0 : index
    %238 = vector.load %arg1[%c0_427, %c11_428, %c0_429, %c0_430] : memref<1x80x5x3xf32, #tpu.memory_space<vmem>>, vector<1x3x3x3xf32>
    %239 = vector.shape_cast %238 : vector<1x3x3x3xf32> to vector<3x3x3xf32>
    %c0_431 = arith.constant 0 : index
    %c16_432 = arith.constant 16 : index
    %c0_433 = arith.constant 0 : index
    %c0_434 = arith.constant 0 : index
    %240 = vector.load %arg1[%c0_431, %c16_432, %c0_433, %c0_434] : memref<1x80x5x3xf32, #tpu.memory_space<vmem>>, vector<1x3x3x3xf32>
    %241 = vector.shape_cast %240 : vector<1x3x3x3xf32> to vector<3x3x3xf32>
    %c0_435 = arith.constant 0 : index
    %c1_436 = arith.constant 1 : index
    %c1_437 = arith.constant 1 : index
    %c0_438 = arith.constant 0 : index
    %242 = vector.load %arg1[%c0_435, %c1_436, %c1_437, %c0_438] : memref<1x80x5x3xf32, #tpu.memory_space<vmem>>, vector<1x3x3x3xf32>
    %243 = vector.shape_cast %242 : vector<1x3x3x3xf32> to vector<3x3x3xf32>
    %c0_439 = arith.constant 0 : index
    %c6_440 = arith.constant 6 : index
    %c1_441 = arith.constant 1 : index
    %c0_442 = arith.constant 0 : index
    %244 = vector.load %arg1[%c0_439, %c6_440, %c1_441, %c0_442] : memref<1x80x5x3xf32, #tpu.memory_space<vmem>>, vector<1x3x3x3xf32>
    %245 = vector.shape_cast %244 : vector<1x3x3x3xf32> to vector<3x3x3xf32>
    %c0_443 = arith.constant 0 : index
    %c11_444 = arith.constant 11 : index
    %c1_445 = arith.constant 1 : index
    %c0_446 = arith.constant 0 : index
    %246 = vector.load %arg1[%c0_443, %c11_444, %c1_445, %c0_446] : memref<1x80x5x3xf32, #tpu.memory_space<vmem>>, vector<1x3x3x3xf32>
    %247 = vector.shape_cast %246 : vector<1x3x3x3xf32> to vector<3x3x3xf32>
    %c0_447 = arith.constant 0 : index
    %c21_448 = arith.constant 21 : index
    %c0_449 = arith.constant 0 : index
    %c0_450 = arith.constant 0 : index
    %248 = vector.load %arg1[%c0_447, %c21_448, %c0_449, %c0_450] : memref<1x80x5x3xf32, #tpu.memory_space<vmem>>, vector<1x3x3x3xf32>
    %249 = vector.shape_cast %248 : vector<1x3x3x3xf32> to vector<3x3x3xf32>
    %c0_451 = arith.constant 0 : index
    %c26_452 = arith.constant 26 : index
    %c0_453 = arith.constant 0 : index
    %c0_454 = arith.constant 0 : index
    %250 = vector.load %arg1[%c0_451, %c26_452, %c0_453, %c0_454] : memref<1x80x5x3xf32, #tpu.memory_space<vmem>>, vector<1x3x3x3xf32>
    %251 = vector.shape_cast %250 : vector<1x3x3x3xf32> to vector<3x3x3xf32>
    %c0_455 = arith.constant 0 : index
    %c31_456 = arith.constant 31 : index
    %c0_457 = arith.constant 0 : index
    %c0_458 = arith.constant 0 : index
    %252 = vector.load %arg1[%c0_455, %c31_456, %c0_457, %c0_458] : memref<1x80x5x3xf32, #tpu.memory_space<vmem>>, vector<1x3x3x3xf32>
    %253 = vector.shape_cast %252 : vector<1x3x3x3xf32> to vector<3x3x3xf32>
    %c0_459 = arith.constant 0 : index
    %c36_460 = arith.constant 36 : index
    %c0_461 = arith.constant 0 : index
    %c0_462 = arith.constant 0 : index
    %254 = vector.load %arg1[%c0_459, %c36_460, %c0_461, %c0_462] : memref<1x80x5x3xf32, #tpu.memory_space<vmem>>, vector<1x3x3x3xf32>
    %255 = vector.shape_cast %254 : vector<1x3x3x3xf32> to vector<3x3x3xf32>
    %c0_463 = arith.constant 0 : index
    %c21_464 = arith.constant 21 : index
    %c1_465 = arith.constant 1 : index
    %c0_466 = arith.constant 0 : index
    %256 = vector.load %arg1[%c0_463, %c21_464, %c1_465, %c0_466] : memref<1x80x5x3xf32, #tpu.memory_space<vmem>>, vector<1x3x3x3xf32>
    %257 = vector.shape_cast %256 : vector<1x3x3x3xf32> to vector<3x3x3xf32>
    %c0_467 = arith.constant 0 : index
    %c26_468 = arith.constant 26 : index
    %c1_469 = arith.constant 1 : index
    %c0_470 = arith.constant 0 : index
    %258 = vector.load %arg1[%c0_467, %c26_468, %c1_469, %c0_470] : memref<1x80x5x3xf32, #tpu.memory_space<vmem>>, vector<1x3x3x3xf32>
    %259 = vector.shape_cast %258 : vector<1x3x3x3xf32> to vector<3x3x3xf32>
    %c0_471 = arith.constant 0 : index
    %c31_472 = arith.constant 31 : index
    %c1_473 = arith.constant 1 : index
    %c0_474 = arith.constant 0 : index
    %260 = vector.load %arg1[%c0_471, %c31_472, %c1_473, %c0_474] : memref<1x80x5x3xf32, #tpu.memory_space<vmem>>, vector<1x3x3x3xf32>
    %261 = vector.shape_cast %260 : vector<1x3x3x3xf32> to vector<3x3x3xf32>
    %c0_475 = arith.constant 0 : index
    %c41_476 = arith.constant 41 : index
    %c0_477 = arith.constant 0 : index
    %c0_478 = arith.constant 0 : index
    %262 = vector.load %arg1[%c0_475, %c41_476, %c0_477, %c0_478] : memref<1x80x5x3xf32, #tpu.memory_space<vmem>>, vector<1x3x3x3xf32>
    %263 = vector.shape_cast %262 : vector<1x3x3x3xf32> to vector<3x3x3xf32>
    %c0_479 = arith.constant 0 : index
    %c46_480 = arith.constant 46 : index
    %c0_481 = arith.constant 0 : index
    %c0_482 = arith.constant 0 : index
    %264 = vector.load %arg1[%c0_479, %c46_480, %c0_481, %c0_482] : memref<1x80x5x3xf32, #tpu.memory_space<vmem>>, vector<1x3x3x3xf32>
    %265 = vector.shape_cast %264 : vector<1x3x3x3xf32> to vector<3x3x3xf32>
    %c0_483 = arith.constant 0 : index
    %c51_484 = arith.constant 51 : index
    %c0_485 = arith.constant 0 : index
    %c0_486 = arith.constant 0 : index
    %266 = vector.load %arg1[%c0_483, %c51_484, %c0_485, %c0_486] : memref<1x80x5x3xf32, #tpu.memory_space<vmem>>, vector<1x3x3x3xf32>
    %267 = vector.shape_cast %266 : vector<1x3x3x3xf32> to vector<3x3x3xf32>
    %c0_487 = arith.constant 0 : index
    %c56_488 = arith.constant 56 : index
    %c0_489 = arith.constant 0 : index
    %c0_490 = arith.constant 0 : index
    %268 = vector.load %arg1[%c0_487, %c56_488, %c0_489, %c0_490] : memref<1x80x5x3xf32, #tpu.memory_space<vmem>>, vector<1x3x3x3xf32>
    %269 = vector.shape_cast %268 : vector<1x3x3x3xf32> to vector<3x3x3xf32>
    %c0_491 = arith.constant 0 : index
    %c41_492 = arith.constant 41 : index
    %c1_493 = arith.constant 1 : index
    %c0_494 = arith.constant 0 : index
    %270 = vector.load %arg1[%c0_491, %c41_492, %c1_493, %c0_494] : memref<1x80x5x3xf32, #tpu.memory_space<vmem>>, vector<1x3x3x3xf32>
    %271 = vector.shape_cast %270 : vector<1x3x3x3xf32> to vector<3x3x3xf32>
    %c0_495 = arith.constant 0 : index
    %c46_496 = arith.constant 46 : index
    %c1_497 = arith.constant 1 : index
    %c0_498 = arith.constant 0 : index
    %272 = vector.load %arg1[%c0_495, %c46_496, %c1_497, %c0_498] : memref<1x80x5x3xf32, #tpu.memory_space<vmem>>, vector<1x3x3x3xf32>
    %273 = vector.shape_cast %272 : vector<1x3x3x3xf32> to vector<3x3x3xf32>
    %c0_499 = arith.constant 0 : index
    %c51_500 = arith.constant 51 : index
    %c1_501 = arith.constant 1 : index
    %c0_502 = arith.constant 0 : index
    %274 = vector.load %arg1[%c0_499, %c51_500, %c1_501, %c0_502] : memref<1x80x5x3xf32, #tpu.memory_space<vmem>>, vector<1x3x3x3xf32>
    %275 = vector.shape_cast %274 : vector<1x3x3x3xf32> to vector<3x3x3xf32>
    %c0_503 = arith.constant 0 : index
    %c61 = arith.constant 61 : index
    %c0_504 = arith.constant 0 : index
    %c0_505 = arith.constant 0 : index
    %276 = vector.load %arg1[%c0_503, %c61, %c0_504, %c0_505] : memref<1x80x5x3xf32, #tpu.memory_space<vmem>>, vector<1x3x3x3xf32>
    %277 = vector.shape_cast %276 : vector<1x3x3x3xf32> to vector<3x3x3xf32>
    %c0_506 = arith.constant 0 : index
    %c66 = arith.constant 66 : index
    %c0_507 = arith.constant 0 : index
    %c0_508 = arith.constant 0 : index
    %278 = vector.load %arg1[%c0_506, %c66, %c0_507, %c0_508] : memref<1x80x5x3xf32, #tpu.memory_space<vmem>>, vector<1x3x3x3xf32>
    %279 = vector.shape_cast %278 : vector<1x3x3x3xf32> to vector<3x3x3xf32>
    %c0_509 = arith.constant 0 : index
    %c71 = arith.constant 71 : index
    %c0_510 = arith.constant 0 : index
    %c0_511 = arith.constant 0 : index
    %280 = vector.load %arg1[%c0_509, %c71, %c0_510, %c0_511] : memref<1x80x5x3xf32, #tpu.memory_space<vmem>>, vector<1x3x3x3xf32>
    %281 = vector.shape_cast %280 : vector<1x3x3x3xf32> to vector<3x3x3xf32>
    %c0_512 = arith.constant 0 : index
    %c76 = arith.constant 76 : index
    %c0_513 = arith.constant 0 : index
    %c0_514 = arith.constant 0 : index
    %282 = vector.load %arg1[%c0_512, %c76, %c0_513, %c0_514] : memref<1x80x5x3xf32, #tpu.memory_space<vmem>>, vector<1x3x3x3xf32>
    %283 = vector.shape_cast %282 : vector<1x3x3x3xf32> to vector<3x3x3xf32>
    %c0_515 = arith.constant 0 : index
    %c61_516 = arith.constant 61 : index
    %c1_517 = arith.constant 1 : index
    %c0_518 = arith.constant 0 : index
    %284 = vector.load %arg1[%c0_515, %c61_516, %c1_517, %c0_518] : memref<1x80x5x3xf32, #tpu.memory_space<vmem>>, vector<1x3x3x3xf32>
    %285 = vector.shape_cast %284 : vector<1x3x3x3xf32> to vector<3x3x3xf32>
    %c0_519 = arith.constant 0 : index
    %c66_520 = arith.constant 66 : index
    %c1_521 = arith.constant 1 : index
    %c0_522 = arith.constant 0 : index
    %286 = vector.load %arg1[%c0_519, %c66_520, %c1_521, %c0_522] : memref<1x80x5x3xf32, #tpu.memory_space<vmem>>, vector<1x3x3x3xf32>
    %287 = vector.shape_cast %286 : vector<1x3x3x3xf32> to vector<3x3x3xf32>
    %c0_523 = arith.constant 0 : index
    %c71_524 = arith.constant 71 : index
    %c1_525 = arith.constant 1 : index
    %c0_526 = arith.constant 0 : index
    %288 = vector.load %arg1[%c0_523, %c71_524, %c1_525, %c0_526] : memref<1x80x5x3xf32, #tpu.memory_space<vmem>>, vector<1x3x3x3xf32>
    %289 = vector.shape_cast %288 : vector<1x3x3x3xf32> to vector<3x3x3xf32>
    %c0_527 = arith.constant 0 : index
    %c2_528 = arith.constant 2 : index
    %c0_529 = arith.constant 0 : index
    %c0_530 = arith.constant 0 : index
    %290 = vector.load %arg1[%c0_527, %c2_528, %c0_529, %c0_530] : memref<1x80x5x3xf32, #tpu.memory_space<vmem>>, vector<1x3x3x3xf32>
    %291 = vector.shape_cast %290 : vector<1x3x3x3xf32> to vector<3x3x3xf32>
    %c0_531 = arith.constant 0 : index
    %c7 = arith.constant 7 : index
    %c0_532 = arith.constant 0 : index
    %c0_533 = arith.constant 0 : index
    %292 = vector.load %arg1[%c0_531, %c7, %c0_532, %c0_533] : memref<1x80x5x3xf32, #tpu.memory_space<vmem>>, vector<1x3x3x3xf32>
    %293 = vector.shape_cast %292 : vector<1x3x3x3xf32> to vector<3x3x3xf32>
    %c0_534 = arith.constant 0 : index
    %c12 = arith.constant 12 : index
    %c0_535 = arith.constant 0 : index
    %c0_536 = arith.constant 0 : index
    %294 = vector.load %arg1[%c0_534, %c12, %c0_535, %c0_536] : memref<1x80x5x3xf32, #tpu.memory_space<vmem>>, vector<1x3x3x3xf32>
    %295 = vector.shape_cast %294 : vector<1x3x3x3xf32> to vector<3x3x3xf32>
    %c0_537 = arith.constant 0 : index
    %c17 = arith.constant 17 : index
    %c0_538 = arith.constant 0 : index
    %c0_539 = arith.constant 0 : index
    %296 = vector.load %arg1[%c0_537, %c17, %c0_538, %c0_539] : memref<1x80x5x3xf32, #tpu.memory_space<vmem>>, vector<1x3x3x3xf32>
    %297 = vector.shape_cast %296 : vector<1x3x3x3xf32> to vector<3x3x3xf32>
    %c0_540 = arith.constant 0 : index
    %c2_541 = arith.constant 2 : index
    %c1_542 = arith.constant 1 : index
    %c0_543 = arith.constant 0 : index
    %298 = vector.load %arg1[%c0_540, %c2_541, %c1_542, %c0_543] : memref<1x80x5x3xf32, #tpu.memory_space<vmem>>, vector<1x3x3x3xf32>
    %299 = vector.shape_cast %298 : vector<1x3x3x3xf32> to vector<3x3x3xf32>
    %c0_544 = arith.constant 0 : index
    %c7_545 = arith.constant 7 : index
    %c1_546 = arith.constant 1 : index
    %c0_547 = arith.constant 0 : index
    %300 = vector.load %arg1[%c0_544, %c7_545, %c1_546, %c0_547] : memref<1x80x5x3xf32, #tpu.memory_space<vmem>>, vector<1x3x3x3xf32>
    %301 = vector.shape_cast %300 : vector<1x3x3x3xf32> to vector<3x3x3xf32>
    %c0_548 = arith.constant 0 : index
    %c12_549 = arith.constant 12 : index
    %c1_550 = arith.constant 1 : index
    %c0_551 = arith.constant 0 : index
    %302 = vector.load %arg1[%c0_548, %c12_549, %c1_550, %c0_551] : memref<1x80x5x3xf32, #tpu.memory_space<vmem>>, vector<1x3x3x3xf32>
    %303 = vector.shape_cast %302 : vector<1x3x3x3xf32> to vector<3x3x3xf32>
    %304 = tpu.concatenate %207, %209, %211, %213, %215, %217, %219, %221, %223, %225, %227, %229, %231, %233, %235, %237 in 2 : vector<3x3x3xf32>, vector<3x3x3xf32>, vector<3x3x3xf32>, vector<3x3x3xf32>, vector<3x3x3xf32>, vector<3x3x3xf32>, vector<3x3x3xf32>, vector<3x3x3xf32>, vector<3x3x3xf32>, vector<3x3x3xf32>, vector<3x3x3xf32>, vector<3x3x3xf32>, vector<3x3x3xf32>, vector<3x3x3xf32>, vector<3x3x3xf32>, vector<3x3x3xf32> -> vector<3x3x48xf32>
    %305 = tpu.concatenate %239, %241, %243, %245, %247, %249, %251, %253, %255, %257, %259, %261, %263, %265, %267, %269 in 2 : vector<3x3x3xf32>, vector<3x3x3xf32>, vector<3x3x3xf32>, vector<3x3x3xf32>, vector<3x3x3xf32>, vector<3x3x3xf32>, vector<3x3x3xf32>, vector<3x3x3xf32>, vector<3x3x3xf32>, vector<3x3x3xf32>, vector<3x3x3xf32>, vector<3x3x3xf32>, vector<3x3x3xf32>, vector<3x3x3xf32>, vector<3x3x3xf32>, vector<3x3x3xf32> -> vector<3x3x48xf32>
    %306 = tpu.concatenate %271, %273, %275, %277, %279, %281, %283, %285, %287, %289, %291, %293, %295, %297, %299, %301 in 2 : vector<3x3x3xf32>, vector<3x3x3xf32>, vector<3x3x3xf32>, vector<3x3x3xf32>, vector<3x3x3xf32>, vector<3x3x3xf32>, vector<3x3x3xf32>, vector<3x3x3xf32>, vector<3x3x3xf32>, vector<3x3x3xf32>, vector<3x3x3xf32>, vector<3x3x3xf32>, vector<3x3x3xf32>, vector<3x3x3xf32>, vector<3x3x3xf32>, vector<3x3x3xf32> -> vector<3x3x48xf32>
    %307 = tpu.concatenate %304, %305, %306, %303 in 2 : vector<3x3x48xf32>, vector<3x3x48xf32>, vector<3x3x48xf32>, vector<3x3x3xf32> -> vector<3x3x147xf32>
    %308 = vector.shape_cast %307 : vector<3x3x147xf32> to vector<9x147xf32>
    %c0_552 = arith.constant 0 : index
    %c50_553 = arith.constant 50 : index
    %c0_554 = arith.constant 0 : index
    %c0_555 = arith.constant 0 : index
    %309 = vector.load %arg1[%c0_552, %c50_553, %c0_554, %c0_555] : memref<1x80x5x3xf32, #tpu.memory_space<vmem>>, vector<1x3x3x3xf32>
    %310 = vector.shape_cast %309 : vector<1x3x3x3xf32> to vector<3x3x3xf32>
    %c0_556 = arith.constant 0 : index
    %c55_557 = arith.constant 55 : index
    %c0_558 = arith.constant 0 : index
    %c0_559 = arith.constant 0 : index
    %311 = vector.load %arg1[%c0_556, %c55_557, %c0_558, %c0_559] : memref<1x80x5x3xf32, #tpu.memory_space<vmem>>, vector<1x3x3x3xf32>
    %312 = vector.shape_cast %311 : vector<1x3x3x3xf32> to vector<3x3x3xf32>
    %c0_560 = arith.constant 0 : index
    %c40_561 = arith.constant 40 : index
    %c1_562 = arith.constant 1 : index
    %c0_563 = arith.constant 0 : index
    %313 = vector.load %arg1[%c0_560, %c40_561, %c1_562, %c0_563] : memref<1x80x5x3xf32, #tpu.memory_space<vmem>>, vector<1x3x3x3xf32>
    %314 = vector.shape_cast %313 : vector<1x3x3x3xf32> to vector<3x3x3xf32>
    %c0_564 = arith.constant 0 : index
    %c45_565 = arith.constant 45 : index
    %c1_566 = arith.constant 1 : index
    %c0_567 = arith.constant 0 : index
    %315 = vector.load %arg1[%c0_564, %c45_565, %c1_566, %c0_567] : memref<1x80x5x3xf32, #tpu.memory_space<vmem>>, vector<1x3x3x3xf32>
    %316 = vector.shape_cast %315 : vector<1x3x3x3xf32> to vector<3x3x3xf32>
    %c0_568 = arith.constant 0 : index
    %c50_569 = arith.constant 50 : index
    %c1_570 = arith.constant 1 : index
    %c0_571 = arith.constant 0 : index
    %317 = vector.load %arg1[%c0_568, %c50_569, %c1_570, %c0_571] : memref<1x80x5x3xf32, #tpu.memory_space<vmem>>, vector<1x3x3x3xf32>
    %318 = vector.shape_cast %317 : vector<1x3x3x3xf32> to vector<3x3x3xf32>
    %c0_572 = arith.constant 0 : index
    %c55_573 = arith.constant 55 : index
    %c1_574 = arith.constant 1 : index
    %c0_575 = arith.constant 0 : index
    %319 = vector.load %arg1[%c0_572, %c55_573, %c1_574, %c0_575] : memref<1x80x5x3xf32, #tpu.memory_space<vmem>>, vector<1x3x3x3xf32>
    %320 = vector.shape_cast %319 : vector<1x3x3x3xf32> to vector<3x3x3xf32>
    %c0_576 = arith.constant 0 : index
    %c40_577 = arith.constant 40 : index
    %c2_578 = arith.constant 2 : index
    %c0_579 = arith.constant 0 : index
    %321 = vector.load %arg1[%c0_576, %c40_577, %c2_578, %c0_579] : memref<1x80x5x3xf32, #tpu.memory_space<vmem>>, vector<1x3x3x3xf32>
    %322 = vector.shape_cast %321 : vector<1x3x3x3xf32> to vector<3x3x3xf32>
    %c0_580 = arith.constant 0 : index
    %c70_581 = arith.constant 70 : index
    %c0_582 = arith.constant 0 : index
    %c0_583 = arith.constant 0 : index
    %323 = vector.load %arg1[%c0_580, %c70_581, %c0_582, %c0_583] : memref<1x80x5x3xf32, #tpu.memory_space<vmem>>, vector<1x3x3x3xf32>
    %324 = vector.shape_cast %323 : vector<1x3x3x3xf32> to vector<3x3x3xf32>
    %c0_584 = arith.constant 0 : index
    %c75_585 = arith.constant 75 : index
    %c0_586 = arith.constant 0 : index
    %c0_587 = arith.constant 0 : index
    %325 = vector.load %arg1[%c0_584, %c75_585, %c0_586, %c0_587] : memref<1x80x5x3xf32, #tpu.memory_space<vmem>>, vector<1x3x3x3xf32>
    %326 = vector.shape_cast %325 : vector<1x3x3x3xf32> to vector<3x3x3xf32>
    %c0_588 = arith.constant 0 : index
    %c60_589 = arith.constant 60 : index
    %c1_590 = arith.constant 1 : index
    %c0_591 = arith.constant 0 : index
    %327 = vector.load %arg1[%c0_588, %c60_589, %c1_590, %c0_591] : memref<1x80x5x3xf32, #tpu.memory_space<vmem>>, vector<1x3x3x3xf32>
    %328 = vector.shape_cast %327 : vector<1x3x3x3xf32> to vector<3x3x3xf32>
    %c0_592 = arith.constant 0 : index
    %c65_593 = arith.constant 65 : index
    %c1_594 = arith.constant 1 : index
    %c0_595 = arith.constant 0 : index
    %329 = vector.load %arg1[%c0_592, %c65_593, %c1_594, %c0_595] : memref<1x80x5x3xf32, #tpu.memory_space<vmem>>, vector<1x3x3x3xf32>
    %330 = vector.shape_cast %329 : vector<1x3x3x3xf32> to vector<3x3x3xf32>
    %c0_596 = arith.constant 0 : index
    %c70_597 = arith.constant 70 : index
    %c1_598 = arith.constant 1 : index
    %c0_599 = arith.constant 0 : index
    %331 = vector.load %arg1[%c0_596, %c70_597, %c1_598, %c0_599] : memref<1x80x5x3xf32, #tpu.memory_space<vmem>>, vector<1x3x3x3xf32>
    %332 = vector.shape_cast %331 : vector<1x3x3x3xf32> to vector<3x3x3xf32>
    %c0_600 = arith.constant 0 : index
    %c75_601 = arith.constant 75 : index
    %c1_602 = arith.constant 1 : index
    %c0_603 = arith.constant 0 : index
    %333 = vector.load %arg1[%c0_600, %c75_601, %c1_602, %c0_603] : memref<1x80x5x3xf32, #tpu.memory_space<vmem>>, vector<1x3x3x3xf32>
    %334 = vector.shape_cast %333 : vector<1x3x3x3xf32> to vector<3x3x3xf32>
    %c0_604 = arith.constant 0 : index
    %c60_605 = arith.constant 60 : index
    %c2_606 = arith.constant 2 : index
    %c0_607 = arith.constant 0 : index
    %335 = vector.load %arg1[%c0_604, %c60_605, %c2_606, %c0_607] : memref<1x80x5x3xf32, #tpu.memory_space<vmem>>, vector<1x3x3x3xf32>
    %336 = vector.shape_cast %335 : vector<1x3x3x3xf32> to vector<3x3x3xf32>
    %c0_608 = arith.constant 0 : index
    %c11_609 = arith.constant 11 : index
    %c0_610 = arith.constant 0 : index
    %c0_611 = arith.constant 0 : index
    %337 = vector.load %arg1[%c0_608, %c11_609, %c0_610, %c0_611] : memref<1x80x5x3xf32, #tpu.memory_space<vmem>>, vector<1x3x3x3xf32>
    %338 = vector.shape_cast %337 : vector<1x3x3x3xf32> to vector<3x3x3xf32>
    %c0_612 = arith.constant 0 : index
    %c16_613 = arith.constant 16 : index
    %c0_614 = arith.constant 0 : index
    %c0_615 = arith.constant 0 : index
    %339 = vector.load %arg1[%c0_612, %c16_613, %c0_614, %c0_615] : memref<1x80x5x3xf32, #tpu.memory_space<vmem>>, vector<1x3x3x3xf32>
    %340 = vector.shape_cast %339 : vector<1x3x3x3xf32> to vector<3x3x3xf32>
    %c0_616 = arith.constant 0 : index
    %c1_617 = arith.constant 1 : index
    %c1_618 = arith.constant 1 : index
    %c0_619 = arith.constant 0 : index
    %341 = vector.load %arg1[%c0_616, %c1_617, %c1_618, %c0_619] : memref<1x80x5x3xf32, #tpu.memory_space<vmem>>, vector<1x3x3x3xf32>
    %342 = vector.shape_cast %341 : vector<1x3x3x3xf32> to vector<3x3x3xf32>
    %c0_620 = arith.constant 0 : index
    %c6_621 = arith.constant 6 : index
    %c1_622 = arith.constant 1 : index
    %c0_623 = arith.constant 0 : index
    %343 = vector.load %arg1[%c0_620, %c6_621, %c1_622, %c0_623] : memref<1x80x5x3xf32, #tpu.memory_space<vmem>>, vector<1x3x3x3xf32>
    %344 = vector.shape_cast %343 : vector<1x3x3x3xf32> to vector<3x3x3xf32>
    %c0_624 = arith.constant 0 : index
    %c11_625 = arith.constant 11 : index
    %c1_626 = arith.constant 1 : index
    %c0_627 = arith.constant 0 : index
    %345 = vector.load %arg1[%c0_624, %c11_625, %c1_626, %c0_627] : memref<1x80x5x3xf32, #tpu.memory_space<vmem>>, vector<1x3x3x3xf32>
    %346 = vector.shape_cast %345 : vector<1x3x3x3xf32> to vector<3x3x3xf32>
    %c0_628 = arith.constant 0 : index
    %c16_629 = arith.constant 16 : index
    %c1_630 = arith.constant 1 : index
    %c0_631 = arith.constant 0 : index
    %347 = vector.load %arg1[%c0_628, %c16_629, %c1_630, %c0_631] : memref<1x80x5x3xf32, #tpu.memory_space<vmem>>, vector<1x3x3x3xf32>
    %348 = vector.shape_cast %347 : vector<1x3x3x3xf32> to vector<3x3x3xf32>
    %c0_632 = arith.constant 0 : index
    %c1_633 = arith.constant 1 : index
    %c2_634 = arith.constant 2 : index
    %c0_635 = arith.constant 0 : index
    %349 = vector.load %arg1[%c0_632, %c1_633, %c2_634, %c0_635] : memref<1x80x5x3xf32, #tpu.memory_space<vmem>>, vector<1x3x3x3xf32>
    %350 = vector.shape_cast %349 : vector<1x3x3x3xf32> to vector<3x3x3xf32>
    %c0_636 = arith.constant 0 : index
    %c31_637 = arith.constant 31 : index
    %c0_638 = arith.constant 0 : index
    %c0_639 = arith.constant 0 : index
    %351 = vector.load %arg1[%c0_636, %c31_637, %c0_638, %c0_639] : memref<1x80x5x3xf32, #tpu.memory_space<vmem>>, vector<1x3x3x3xf32>
    %352 = vector.shape_cast %351 : vector<1x3x3x3xf32> to vector<3x3x3xf32>
    %c0_640 = arith.constant 0 : index
    %c36_641 = arith.constant 36 : index
    %c0_642 = arith.constant 0 : index
    %c0_643 = arith.constant 0 : index
    %353 = vector.load %arg1[%c0_640, %c36_641, %c0_642, %c0_643] : memref<1x80x5x3xf32, #tpu.memory_space<vmem>>, vector<1x3x3x3xf32>
    %354 = vector.shape_cast %353 : vector<1x3x3x3xf32> to vector<3x3x3xf32>
    %c0_644 = arith.constant 0 : index
    %c21_645 = arith.constant 21 : index
    %c1_646 = arith.constant 1 : index
    %c0_647 = arith.constant 0 : index
    %355 = vector.load %arg1[%c0_644, %c21_645, %c1_646, %c0_647] : memref<1x80x5x3xf32, #tpu.memory_space<vmem>>, vector<1x3x3x3xf32>
    %356 = vector.shape_cast %355 : vector<1x3x3x3xf32> to vector<3x3x3xf32>
    %c0_648 = arith.constant 0 : index
    %c26_649 = arith.constant 26 : index
    %c1_650 = arith.constant 1 : index
    %c0_651 = arith.constant 0 : index
    %357 = vector.load %arg1[%c0_648, %c26_649, %c1_650, %c0_651] : memref<1x80x5x3xf32, #tpu.memory_space<vmem>>, vector<1x3x3x3xf32>
    %358 = vector.shape_cast %357 : vector<1x3x3x3xf32> to vector<3x3x3xf32>
    %c0_652 = arith.constant 0 : index
    %c31_653 = arith.constant 31 : index
    %c1_654 = arith.constant 1 : index
    %c0_655 = arith.constant 0 : index
    %359 = vector.load %arg1[%c0_652, %c31_653, %c1_654, %c0_655] : memref<1x80x5x3xf32, #tpu.memory_space<vmem>>, vector<1x3x3x3xf32>
    %360 = vector.shape_cast %359 : vector<1x3x3x3xf32> to vector<3x3x3xf32>
    %c0_656 = arith.constant 0 : index
    %c36_657 = arith.constant 36 : index
    %c1_658 = arith.constant 1 : index
    %c0_659 = arith.constant 0 : index
    %361 = vector.load %arg1[%c0_656, %c36_657, %c1_658, %c0_659] : memref<1x80x5x3xf32, #tpu.memory_space<vmem>>, vector<1x3x3x3xf32>
    %362 = vector.shape_cast %361 : vector<1x3x3x3xf32> to vector<3x3x3xf32>
    %c0_660 = arith.constant 0 : index
    %c21_661 = arith.constant 21 : index
    %c2_662 = arith.constant 2 : index
    %c0_663 = arith.constant 0 : index
    %363 = vector.load %arg1[%c0_660, %c21_661, %c2_662, %c0_663] : memref<1x80x5x3xf32, #tpu.memory_space<vmem>>, vector<1x3x3x3xf32>
    %364 = vector.shape_cast %363 : vector<1x3x3x3xf32> to vector<3x3x3xf32>
    %c0_664 = arith.constant 0 : index
    %c51_665 = arith.constant 51 : index
    %c0_666 = arith.constant 0 : index
    %c0_667 = arith.constant 0 : index
    %365 = vector.load %arg1[%c0_664, %c51_665, %c0_666, %c0_667] : memref<1x80x5x3xf32, #tpu.memory_space<vmem>>, vector<1x3x3x3xf32>
    %366 = vector.shape_cast %365 : vector<1x3x3x3xf32> to vector<3x3x3xf32>
    %c0_668 = arith.constant 0 : index
    %c56_669 = arith.constant 56 : index
    %c0_670 = arith.constant 0 : index
    %c0_671 = arith.constant 0 : index
    %367 = vector.load %arg1[%c0_668, %c56_669, %c0_670, %c0_671] : memref<1x80x5x3xf32, #tpu.memory_space<vmem>>, vector<1x3x3x3xf32>
    %368 = vector.shape_cast %367 : vector<1x3x3x3xf32> to vector<3x3x3xf32>
    %c0_672 = arith.constant 0 : index
    %c41_673 = arith.constant 41 : index
    %c1_674 = arith.constant 1 : index
    %c0_675 = arith.constant 0 : index
    %369 = vector.load %arg1[%c0_672, %c41_673, %c1_674, %c0_675] : memref<1x80x5x3xf32, #tpu.memory_space<vmem>>, vector<1x3x3x3xf32>
    %370 = vector.shape_cast %369 : vector<1x3x3x3xf32> to vector<3x3x3xf32>
    %c0_676 = arith.constant 0 : index
    %c46_677 = arith.constant 46 : index
    %c1_678 = arith.constant 1 : index
    %c0_679 = arith.constant 0 : index
    %371 = vector.load %arg1[%c0_676, %c46_677, %c1_678, %c0_679] : memref<1x80x5x3xf32, #tpu.memory_space<vmem>>, vector<1x3x3x3xf32>
    %372 = vector.shape_cast %371 : vector<1x3x3x3xf32> to vector<3x3x3xf32>
    %c0_680 = arith.constant 0 : index
    %c51_681 = arith.constant 51 : index
    %c1_682 = arith.constant 1 : index
    %c0_683 = arith.constant 0 : index
    %373 = vector.load %arg1[%c0_680, %c51_681, %c1_682, %c0_683] : memref<1x80x5x3xf32, #tpu.memory_space<vmem>>, vector<1x3x3x3xf32>
    %374 = vector.shape_cast %373 : vector<1x3x3x3xf32> to vector<3x3x3xf32>
    %c0_684 = arith.constant 0 : index
    %c56_685 = arith.constant 56 : index
    %c1_686 = arith.constant 1 : index
    %c0_687 = arith.constant 0 : index
    %375 = vector.load %arg1[%c0_684, %c56_685, %c1_686, %c0_687] : memref<1x80x5x3xf32, #tpu.memory_space<vmem>>, vector<1x3x3x3xf32>
    %376 = vector.shape_cast %375 : vector<1x3x3x3xf32> to vector<3x3x3xf32>
    %c0_688 = arith.constant 0 : index
    %c41_689 = arith.constant 41 : index
    %c2_690 = arith.constant 2 : index
    %c0_691 = arith.constant 0 : index
    %377 = vector.load %arg1[%c0_688, %c41_689, %c2_690, %c0_691] : memref<1x80x5x3xf32, #tpu.memory_space<vmem>>, vector<1x3x3x3xf32>
    %378 = vector.shape_cast %377 : vector<1x3x3x3xf32> to vector<3x3x3xf32>
    %c0_692 = arith.constant 0 : index
    %c71_693 = arith.constant 71 : index
    %c0_694 = arith.constant 0 : index
    %c0_695 = arith.constant 0 : index
    %379 = vector.load %arg1[%c0_692, %c71_693, %c0_694, %c0_695] : memref<1x80x5x3xf32, #tpu.memory_space<vmem>>, vector<1x3x3x3xf32>
    %380 = vector.shape_cast %379 : vector<1x3x3x3xf32> to vector<3x3x3xf32>
    %c0_696 = arith.constant 0 : index
    %c76_697 = arith.constant 76 : index
    %c0_698 = arith.constant 0 : index
    %c0_699 = arith.constant 0 : index
    %381 = vector.load %arg1[%c0_696, %c76_697, %c0_698, %c0_699] : memref<1x80x5x3xf32, #tpu.memory_space<vmem>>, vector<1x3x3x3xf32>
    %382 = vector.shape_cast %381 : vector<1x3x3x3xf32> to vector<3x3x3xf32>
    %c0_700 = arith.constant 0 : index
    %c61_701 = arith.constant 61 : index
    %c1_702 = arith.constant 1 : index
    %c0_703 = arith.constant 0 : index
    %383 = vector.load %arg1[%c0_700, %c61_701, %c1_702, %c0_703] : memref<1x80x5x3xf32, #tpu.memory_space<vmem>>, vector<1x3x3x3xf32>
    %384 = vector.shape_cast %383 : vector<1x3x3x3xf32> to vector<3x3x3xf32>
    %c0_704 = arith.constant 0 : index
    %c66_705 = arith.constant 66 : index
    %c1_706 = arith.constant 1 : index
    %c0_707 = arith.constant 0 : index
    %385 = vector.load %arg1[%c0_704, %c66_705, %c1_706, %c0_707] : memref<1x80x5x3xf32, #tpu.memory_space<vmem>>, vector<1x3x3x3xf32>
    %386 = vector.shape_cast %385 : vector<1x3x3x3xf32> to vector<3x3x3xf32>
    %c0_708 = arith.constant 0 : index
    %c71_709 = arith.constant 71 : index
    %c1_710 = arith.constant 1 : index
    %c0_711 = arith.constant 0 : index
    %387 = vector.load %arg1[%c0_708, %c71_709, %c1_710, %c0_711] : memref<1x80x5x3xf32, #tpu.memory_space<vmem>>, vector<1x3x3x3xf32>
    %388 = vector.shape_cast %387 : vector<1x3x3x3xf32> to vector<3x3x3xf32>
    %c0_712 = arith.constant 0 : index
    %c76_713 = arith.constant 76 : index
    %c1_714 = arith.constant 1 : index
    %c0_715 = arith.constant 0 : index
    %389 = vector.load %arg1[%c0_712, %c76_713, %c1_714, %c0_715] : memref<1x80x5x3xf32, #tpu.memory_space<vmem>>, vector<1x3x3x3xf32>
    %390 = vector.shape_cast %389 : vector<1x3x3x3xf32> to vector<3x3x3xf32>
    %c0_716 = arith.constant 0 : index
    %c61_717 = arith.constant 61 : index
    %c2_718 = arith.constant 2 : index
    %c0_719 = arith.constant 0 : index
    %391 = vector.load %arg1[%c0_716, %c61_717, %c2_718, %c0_719] : memref<1x80x5x3xf32, #tpu.memory_space<vmem>>, vector<1x3x3x3xf32>
    %392 = vector.shape_cast %391 : vector<1x3x3x3xf32> to vector<3x3x3xf32>
    %c0_720 = arith.constant 0 : index
    %c12_721 = arith.constant 12 : index
    %c0_722 = arith.constant 0 : index
    %c0_723 = arith.constant 0 : index
    %393 = vector.load %arg1[%c0_720, %c12_721, %c0_722, %c0_723] : memref<1x80x5x3xf32, #tpu.memory_space<vmem>>, vector<1x3x3x3xf32>
    %394 = vector.shape_cast %393 : vector<1x3x3x3xf32> to vector<3x3x3xf32>
    %c0_724 = arith.constant 0 : index
    %c17_725 = arith.constant 17 : index
    %c0_726 = arith.constant 0 : index
    %c0_727 = arith.constant 0 : index
    %395 = vector.load %arg1[%c0_724, %c17_725, %c0_726, %c0_727] : memref<1x80x5x3xf32, #tpu.memory_space<vmem>>, vector<1x3x3x3xf32>
    %396 = vector.shape_cast %395 : vector<1x3x3x3xf32> to vector<3x3x3xf32>
    %c0_728 = arith.constant 0 : index
    %c2_729 = arith.constant 2 : index
    %c1_730 = arith.constant 1 : index
    %c0_731 = arith.constant 0 : index
    %397 = vector.load %arg1[%c0_728, %c2_729, %c1_730, %c0_731] : memref<1x80x5x3xf32, #tpu.memory_space<vmem>>, vector<1x3x3x3xf32>
    %398 = vector.shape_cast %397 : vector<1x3x3x3xf32> to vector<3x3x3xf32>
    %c0_732 = arith.constant 0 : index
    %c7_733 = arith.constant 7 : index
    %c1_734 = arith.constant 1 : index
    %c0_735 = arith.constant 0 : index
    %399 = vector.load %arg1[%c0_732, %c7_733, %c1_734, %c0_735] : memref<1x80x5x3xf32, #tpu.memory_space<vmem>>, vector<1x3x3x3xf32>
    %400 = vector.shape_cast %399 : vector<1x3x3x3xf32> to vector<3x3x3xf32>
    %c0_736 = arith.constant 0 : index
    %c12_737 = arith.constant 12 : index
    %c1_738 = arith.constant 1 : index
    %c0_739 = arith.constant 0 : index
    %401 = vector.load %arg1[%c0_736, %c12_737, %c1_738, %c0_739] : memref<1x80x5x3xf32, #tpu.memory_space<vmem>>, vector<1x3x3x3xf32>
    %402 = vector.shape_cast %401 : vector<1x3x3x3xf32> to vector<3x3x3xf32>
    %c0_740 = arith.constant 0 : index
    %c17_741 = arith.constant 17 : index
    %c1_742 = arith.constant 1 : index
    %c0_743 = arith.constant 0 : index
    %403 = vector.load %arg1[%c0_740, %c17_741, %c1_742, %c0_743] : memref<1x80x5x3xf32, #tpu.memory_space<vmem>>, vector<1x3x3x3xf32>
    %404 = vector.shape_cast %403 : vector<1x3x3x3xf32> to vector<3x3x3xf32>
    %c0_744 = arith.constant 0 : index
    %c2_745 = arith.constant 2 : index
    %c2_746 = arith.constant 2 : index
    %c0_747 = arith.constant 0 : index
    %405 = vector.load %arg1[%c0_744, %c2_745, %c2_746, %c0_747] : memref<1x80x5x3xf32, #tpu.memory_space<vmem>>, vector<1x3x3x3xf32>
    %406 = vector.shape_cast %405 : vector<1x3x3x3xf32> to vector<3x3x3xf32>
    %407 = tpu.concatenate %310, %312, %314, %316, %318, %320, %322, %324, %326, %328, %330, %332, %334, %336, %338, %340 in 2 : vector<3x3x3xf32>, vector<3x3x3xf32>, vector<3x3x3xf32>, vector<3x3x3xf32>, vector<3x3x3xf32>, vector<3x3x3xf32>, vector<3x3x3xf32>, vector<3x3x3xf32>, vector<3x3x3xf32>, vector<3x3x3xf32>, vector<3x3x3xf32>, vector<3x3x3xf32>, vector<3x3x3xf32>, vector<3x3x3xf32>, vector<3x3x3xf32>, vector<3x3x3xf32> -> vector<3x3x48xf32>
    %408 = tpu.concatenate %342, %344, %346, %348, %350, %352, %354, %356, %358, %360, %362, %364, %366, %368, %370, %372 in 2 : vector<3x3x3xf32>, vector<3x3x3xf32>, vector<3x3x3xf32>, vector<3x3x3xf32>, vector<3x3x3xf32>, vector<3x3x3xf32>, vector<3x3x3xf32>, vector<3x3x3xf32>, vector<3x3x3xf32>, vector<3x3x3xf32>, vector<3x3x3xf32>, vector<3x3x3xf32>, vector<3x3x3xf32>, vector<3x3x3xf32>, vector<3x3x3xf32>, vector<3x3x3xf32> -> vector<3x3x48xf32>
    %409 = tpu.concatenate %374, %376, %378, %380, %382, %384, %386, %388, %390, %392, %394, %396, %398, %400, %402, %404 in 2 : vector<3x3x3xf32>, vector<3x3x3xf32>, vector<3x3x3xf32>, vector<3x3x3xf32>, vector<3x3x3xf32>, vector<3x3x3xf32>, vector<3x3x3xf32>, vector<3x3x3xf32>, vector<3x3x3xf32>, vector<3x3x3xf32>, vector<3x3x3xf32>, vector<3x3x3xf32>, vector<3x3x3xf32>, vector<3x3x3xf32>, vector<3x3x3xf32>, vector<3x3x3xf32> -> vector<3x3x48xf32>
    %410 = tpu.concatenate %407, %408, %409, %406 in 2 : vector<3x3x48xf32>, vector<3x3x48xf32>, vector<3x3x48xf32>, vector<3x3x3xf32> -> vector<3x3x147xf32>
    %411 = vector.shape_cast %410 : vector<3x3x147xf32> to vector<9x147xf32>
    %412 = tpu.concatenate %102, %205, %308, %411 in 0 : vector<9x147xf32>, vector<9x147xf32>, vector<9x147xf32>, vector<9x147xf32> -> vector<36x147xf32>
    %c0_748 = arith.constant 0 : index
    %c0_749 = arith.constant 0 : index
    %413 = vector.load %arg2[%c0_748, %c0_749] : memref<147x32xf32, #tpu.memory_space<vmem>>, vector<147x32xf32>
    %cst = arith.constant dense<0.000000e+00> : vector<36x32xf32>
    %414 = tpu.matmul %412, %413, %cst {dimension_numbers = #tpu.dot_dimension_numbers<[1], [0], [0], [1], [0, 0, 1, 1], [], []>} : vector<36x147xf32>, vector<147x32xf32>, vector<36x32xf32> -> vector<36x32xf32>
    %c0_750 = arith.constant 0 : index
    %c0_751 = arith.constant 0 : index
    %415 = vector.load %arg3[%c0_750, %c0_751] : memref<1x32xf32, #tpu.memory_space<vmem>>, vector<1x32xf32>
    %416 = vector.broadcast %415 : vector<1x32xf32> to vector<36x32xf32>
    %417 = arith.addf %414, %416 : vector<36x32xf32>
    %cst_752 = arith.constant 0.000000e+00 : f32
    %418 = vector.broadcast %cst_752 : f32 to vector<36x32xf32>
    %419 = arith.maximumf %417, %418 : vector<36x32xf32>
    %420 = vector.extract_strided_slice %419 {offsets = [0, 0], sizes = [9, 32], strides = [1, 1]} : vector<36x32xf32> to vector<9x32xf32>
    %421 = vector.shape_cast %420 : vector<9x32xf32> to vector<3x3x32xf32>
    %422 = vector.extract_strided_slice %419 {offsets = [9, 0], sizes = [9, 32], strides = [1, 1]} : vector<36x32xf32> to vector<9x32xf32>
    %423 = vector.shape_cast %422 : vector<9x32xf32> to vector<3x3x32xf32>
    %424 = vector.extract_strided_slice %419 {offsets = [18, 0], sizes = [9, 32], strides = [1, 1]} : vector<36x32xf32> to vector<9x32xf32>
    %425 = vector.shape_cast %424 : vector<9x32xf32> to vector<3x3x32xf32>
    %426 = vector.extract_strided_slice %419 {offsets = [27, 0], sizes = [9, 32], strides = [1, 1]} : vector<36x32xf32> to vector<9x32xf32>
    %427 = vector.shape_cast %426 : vector<9x32xf32> to vector<3x3x32xf32>
    %cst_753 = arith.constant 0.000000e+00 : f32
    %428 = vector.broadcast %cst_753 : f32 to vector<1x3x32xf32>
    %cst_754 = arith.constant 0.000000e+00 : f32
    %429 = vector.broadcast %cst_754 : f32 to vector<3x1x32xf32>
    %430 = vector.extract_strided_slice %427 {offsets = [0, 0, 0], sizes = [2, 3, 32], strides = [1, 1, 1]} : vector<3x3x32xf32> to vector<2x3x32xf32>
    %431 = tpu.concatenate %428, %430 in 0 : vector<1x3x32xf32>, vector<2x3x32xf32> -> vector<3x3x32xf32>
    %432 = vector.extract_strided_slice %431 {offsets = [0, 0, 0], sizes = [3, 2, 32], strides = [1, 1, 1]} : vector<3x3x32xf32> to vector<3x2x32xf32>
    %433 = tpu.concatenate %429, %432 in 1 : vector<3x1x32xf32>, vector<3x2x32xf32> -> vector<3x3x32xf32>
    %434 = vector.extract_strided_slice %425 {offsets = [0, 0, 0], sizes = [2, 3, 32], strides = [1, 1, 1]} : vector<3x3x32xf32> to vector<2x3x32xf32>
    %435 = tpu.concatenate %428, %434 in 0 : vector<1x3x32xf32>, vector<2x3x32xf32> -> vector<3x3x32xf32>
    %436 = vector.extract_strided_slice %427 {offsets = [0, 0, 0], sizes = [2, 3, 32], strides = [1, 1, 1]} : vector<3x3x32xf32> to vector<2x3x32xf32>
    %437 = tpu.concatenate %428, %436 in 0 : vector<1x3x32xf32>, vector<2x3x32xf32> -> vector<3x3x32xf32>
    %438 = vector.extract_strided_slice %423 {offsets = [0, 0, 0], sizes = [3, 2, 32], strides = [1, 1, 1]} : vector<3x3x32xf32> to vector<3x2x32xf32>
    %439 = tpu.concatenate %429, %438 in 1 : vector<3x1x32xf32>, vector<3x2x32xf32> -> vector<3x3x32xf32>
    %440 = vector.extract_strided_slice %427 {offsets = [0, 0, 0], sizes = [3, 2, 32], strides = [1, 1, 1]} : vector<3x3x32xf32> to vector<3x2x32xf32>
    %441 = tpu.concatenate %429, %440 in 1 : vector<3x1x32xf32>, vector<3x2x32xf32> -> vector<3x3x32xf32>
    %442 = tpu.concatenate %433, %435, %437, %439, %421, %423, %441, %425, %427 in 2 : vector<3x3x32xf32>, vector<3x3x32xf32>, vector<3x3x32xf32>, vector<3x3x32xf32>, vector<3x3x32xf32>, vector<3x3x32xf32>, vector<3x3x32xf32>, vector<3x3x32xf32>, vector<3x3x32xf32> -> vector<3x3x288xf32>
    %443 = vector.shape_cast %442 : vector<3x3x288xf32> to vector<9x288xf32>
    %c0_755 = arith.constant 0 : index
    %c0_756 = arith.constant 0 : index
    %444 = vector.load %arg4[%c0_755, %c0_756] : memref<288x32xf32, #tpu.memory_space<vmem>>, vector<288x32xf32>
    %cst_757 = arith.constant dense<0.000000e+00> : vector<9x32xf32>
    %445 = tpu.matmul %443, %444, %cst_757 {dimension_numbers = #tpu.dot_dimension_numbers<[1], [0], [0], [1], [0, 0, 1, 1], [], []>} : vector<9x288xf32>, vector<288x32xf32>, vector<9x32xf32> -> vector<9x32xf32>
    %c0_758 = arith.constant 0 : index
    %c0_759 = arith.constant 0 : index
    %446 = vector.load %arg5[%c0_758, %c0_759] : memref<1x32xf32, #tpu.memory_space<vmem>>, vector<1x32xf32>
    %447 = vector.broadcast %446 : vector<1x32xf32> to vector<9x32xf32>
    %448 = arith.addf %445, %447 : vector<9x32xf32>
    %cst_760 = arith.constant 0.000000e+00 : f32
    %449 = vector.broadcast %cst_760 : f32 to vector<9x32xf32>
    %450 = arith.maximumf %448, %449 : vector<9x32xf32>
    %cst_761 = arith.constant dense<0.000000e+00> : vector<32xf32>
    %451 = vector.multi_reduction <add>, %450, %cst_761 [0] : vector<9x32xf32> to vector<32xf32>
    %452 = vector.shape_cast %451 : vector<32xf32> to vector<1x32xf32>
    %453 = arith.mulf %450, %450 : vector<9x32xf32>
    %cst_762 = arith.constant dense<0.000000e+00> : vector<32xf32>
    %454 = vector.multi_reduction <add>, %453, %cst_762 [0] : vector<9x32xf32> to vector<32xf32>
    %455 = vector.shape_cast %454 : vector<32xf32> to vector<1x32xf32>
    %cst_763 = arith.constant 9.000000e+00 : f32
    %456 = vector.broadcast %cst_763 : f32 to vector<1x32xf32>
    %457 = arith.divf %452, %456 : vector<1x32xf32>
    %cst_764 = arith.constant 9.000000e+00 : f32
    %458 = vector.broadcast %cst_764 : f32 to vector<1x32xf32>
    %459 = arith.mulf %458, %457 : vector<1x32xf32>
    %460 = arith.mulf %459, %457 : vector<1x32xf32>
    %461 = arith.subf %455, %460 : vector<1x32xf32>
    %cst_765 = arith.constant 8.000000e+00 : f32
    %462 = vector.broadcast %cst_765 : f32 to vector<1x32xf32>
    %463 = arith.divf %461, %462 : vector<1x32xf32>
    %cst_766 = arith.constant 0.000000e+00 : f32
    %464 = vector.broadcast %cst_766 : f32 to vector<1x32xf32>
    %465 = arith.maximumf %463, %464 : vector<1x32xf32>
    %466 = math.sqrt %465 : vector<1x32xf32>
    %cst_767 = arith.constant dense<0xFF800000> : vector<32xf32>
    %467 = vector.multi_reduction <maximumf>, %450, %cst_767 [0] : vector<9x32xf32> to vector<32xf32>
    %468 = vector.shape_cast %467 : vector<32xf32> to vector<1x32xf32>
    %c0_768 = arith.constant 0 : index
    %c0_769 = arith.constant 0 : index
    %c0_770 = arith.constant 0 : index
    %469 = vector.load %arg6[%c0_768, %c0_769, %c0_770] : memref<1x1x96xf32, #tpu.memory_space<vmem>>, vector<1x1x32xf32>
    %470 = vector.shape_cast %469 : vector<1x1x32xf32> to vector<1x32xf32>
    %471 = vector.shape_cast %466 : vector<1x32xf32> to vector<1x1x32xf32>
    tpu.vector_store %arg6[%c0_768, %c0_769, %c0_770], %471 {strides = array<i32>} : memref<1x1x96xf32, #tpu.memory_space<vmem>>, vector<1x1x32xf32>,
    %c0_771 = arith.constant 0 : index
    %c0_772 = arith.constant 0 : index
    %c32 = arith.constant 32 : index
    %472 = vector.load %arg6[%c0_771, %c0_772, %c32] : memref<1x1x96xf32, #tpu.memory_space<vmem>>, vector<1x1x32xf32>
    %473 = vector.shape_cast %472 : vector<1x1x32xf32> to vector<1x32xf32>
    %474 = vector.shape_cast %457 : vector<1x32xf32> to vector<1x1x32xf32>
    tpu.vector_store %arg6[%c0_771, %c0_772, %c32], %474 {strides = array<i32>} : memref<1x1x96xf32, #tpu.memory_space<vmem>>, vector<1x1x32xf32>,
    %c0_773 = arith.constant 0 : index
    %c0_774 = arith.constant 0 : index
    %c64 = arith.constant 64 : index
    %475 = vector.load %arg6[%c0_773, %c0_774, %c64] : memref<1x1x96xf32, #tpu.memory_space<vmem>>, vector<1x1x32xf32>
    %476 = vector.shape_cast %475 : vector<1x1x32xf32> to vector<1x32xf32>
    %477 = vector.shape_cast %468 : vector<1x32xf32> to vector<1x1x32xf32>
    tpu.vector_store %arg6[%c0_773, %c0_774, %c64], %477 {strides = array<i32>} : memref<1x1x96xf32, #tpu.memory_space<vmem>>, vector<1x1x32xf32>,
    return
  }
  func.func @transform_0(%arg0: i32) -> (i32, i32, i32, i32) {
    %c0_i32 = arith.constant 0 : i32
    %c0_i32_0 = arith.constant 0 : i32
    %c0_i32_1 = arith.constant 0 : i32
    %c0_i32_2 = arith.constant 0 : i32
    return %arg0, %c0_i32, %c0_i32_0, %c0_i32_1 : i32, i32, i32, i32
  }
  func.func @transform_1(%arg0: i32) -> (i32, i32) {
    %c0_i32 = arith.constant 0 : i32
    %c0_i32_0 = arith.constant 0 : i32
    %c0_i32_1 = arith.constant 0 : i32
    return %c0_i32, %c0_i32_0 : i32, i32
  }
  func.func @transform_2(%arg0: i32) -> (i32, i32) {
    %c0_i32 = arith.constant 0 : i32
    %c0_i32_0 = arith.constant 0 : i32
    %c0_i32_1 = arith.constant 0 : i32
    return %c0_i32, %c0_i32_0 : i32, i32
  }
  func.func @transform_3(%arg0: i32) -> (i32, i32) {
    %c0_i32 = arith.constant 0 : i32
    %c0_i32_0 = arith.constant 0 : i32
    %c0_i32_1 = arith.constant 0 : i32
    return %c0_i32, %c0_i32_0 : i32, i32
  }
  func.func @transform_4(%arg0: i32) -> (i32, i32) {
    %c0_i32 = arith.constant 0 : i32
    %c0_i32_0 = arith.constant 0 : i32
    %c0_i32_1 = arith.constant 0 : i32
    return %c0_i32, %c0_i32_0 : i32, i32
  }
  func.func @transform_5(%arg0: i32) -> (i32, i32, i32) {
    %c0_i32 = arith.constant 0 : i32
    %c0_i32_0 = arith.constant 0 : i32
    %c0_i32_1 = arith.constant 0 : i32
    return %arg0, %c0_i32, %c0_i32_0 : i32, i32, i32
  }
}

</mosaic_0001>

<bundles_post_ra>
// kernel: forward.1
= control target key start
LH: loop header
LB: loop body
LE: loop exit
PB: predicated region body
PF: predicated region fallthrough
CT: control target
= control target key end

     0   :  { %s7959_s0 = inlined_call_operand.vmem [shape: f32[2,80,5,3], index: 0, kind: input, shape index: {}]   ;;  %s7960_s1 = inlined_call_operand.vmem [shape: f32[147,32], index: 1, kind: input, shape index: {}]   ;;  %s7961_s2 = inlined_call_operand.vmem [shape: f32[1,32], index: 2, kind: input, shape index: {}]   ;;  %s7962_s3 = inlined_call_operand.vmem [shape: f32[288,32], index: 3, kind: input, shape index: {}]   ;;  %s7963_s4 = inlined_call_operand.vmem [shape: f32[1,32], index: 4, kind: input, shape index: {}]   ;;  %s7964_s5 = inlined_call_operand.hbm [shape: f32[2,1,96], index: 5, kind: output, shape index: {}]  }
   0x1   :  { %8100 = sst [smem:[#allocation118_spill]] %s7959_s0 }
   0x2   :  { %8101 = sst [smem:[#allocation119_spill]] %s7960_s1 }
   0x3   :  { %10 = vsyncpa [#allocation3], 0 }
   0x4   :  { %12 = vsyncpa [#allocation3 + $0x1], 0  ;;  %s4391_s18 = smov 0   ;;  %s4393_s19 = smov 0  }
   0x5   :  { %s4395_s20 = smov 0   ;;  %s4397_s21 = smov 0  }
   0x6 LB: > { %s4412_s22 = sadd.s32 4294967295, %s4336_s21   ;;  %s3771_s23 = sadd.s32 4294967294, %s4336_s21   ;;  %s4336_s21 = sphi %s4397_s21, %s8837_s21   ;;  %s4332_s20 = sphi %s4395_s20, %s8836_s20   ;;  %s4328_s19 = sphi %s4393_s19, %s8835_s19   ;;  %s4324_s18 = sphi %s4391_s18, %s8834_s18  }
   0x7   : > { %s4416_s24 = sadd.s32 1, %s4336_s21   ;;  %s135_s25 = sadd.s32 1, %s4332_s20 }
   0x8   : > { %s132_s26 = ssub.s32 %s4336_s21, %s4416_s24  ;;  %p145_p0 = scmp.ne.s32.totalorder %s4332_s20, %s4328_s19 }
   0x9   : > { %p133_p1 = scmp.eq.s32.totalorder %s132_s26, 0  ;;  %p146_p2 = scmp.eq.s32.totalorder %s4412_s22, 1 }
   0xa   : > { %p151_p3 = scmp.ne.s32.totalorder %s4328_s19, %s4324_s18  ;;  %p152_p4 = scmp.eq.s32.totalorder %s3771_s23, 1 }
   0xb   : > { %s4427_s27 = scalar_select %p133_p1, %s4332_s20, %s135_s25  }
   0xc   : > { %p4429_p5 = por %p146_p2, %p145_p0  ;;  %p4433_p6 = por %p152_p4, %p151_p3 }
   0xd   : > { %8102 = sst [smem:[#allocation5_spill]] %s4427_s27  ;;  %p3774_p7 = scmp.ge.s32.totalorder %s4336_s21, 1 }
   0xe   : > { %p190_p8 = scmp.lt.s32.totalorder %s4336_s21, 3 }
  0x10   : > { %p191_p9 = pnand %p3774_p7, %p190_p8 }
  0x12   : > { %194 = sbr.rel (%p191_p9) target bundleno = 2460 (0x99c), region = 40 }
  0x17   : > { %p217_p10 = scmp.lt.s32.totalorder %s4412_s22, 1  ;;  %s8105_s0 = sld [smem:[#allocation118_spill]]  ;;  %vm576_vm0 = vcmask 23552   ;;  %vm580_vm1 = vcmask 48128   ;;  %vm584_vm2 = vcmask 72704   ;;  %vm588_vm3 = vcmask 97280  }
  0x18   : > { %s8092_s10 = smov 6   ;;  %s8096_s11 = smov 3   ;;  %vm8022_vm4 = vcmask 121856   ;;  %vm8026_vm5 = vcmask 146432   ;;  %vm8025_vm6 = vcmask 171008   ;;  %vm8027_vm7 = vcmask 195584  }
  0x19   : > { %s218_s30 = scalar_select %p217_p10, %s4412_s22, 1  ;;  %vm7997_vm8 = vcmask 220160   ;;  %vm612_vm9 = vcmask 244736   ;;  %vm8003_vm10 = vcmask 269312   ;;  %vm8002_vm11 = vcmask 293888  }
  0x1a   : > { %s8094_s12 = smov 9   ;;  %s8015_s13 = smov 12   ;;  %vm8004_vm12 = vcmask 318464   ;;  %vm628_vm13 = vcmask 343040   ;;  %vm632_vm14 = vcmask 367616   ;;  %vm1130_vm15 = vcmask 130048  }
  0x1b   : > { %s4020_s6 = smul.u32 640, %s218_s30  ;;  %s8011_s14 = smov 15  }
  0x1c   : > { %s8009_s15 = smov 18   ;;  %s8007_s16 = smov 21  }
  0x1d   : > { %s4444_s9 = scalar_lea.vmem %s8105_s0, %s4020_s6  ;;  %s8005_s17 = smov 24  }
  0x1e   : > { %v3780_v0 = vld [vmem:[%s4444_s9 + $0x58] sm:$0x7]  ;;  %v3776_v2 = vld [vmem:[%s4444_s9 + $0x28] sm:$0x7]  ;;  %v3781_v3 = vld [vmem:[%s4444_s9 + $0x60] sm:$0x7] }
  0x1f   : > { %v3778_v1 = vld [vmem:[%s4444_s9 + $0x38] sm:$0x7]  ;;  %413 = vrot.lane.b32.xlu2 %v3780_v0, %s8092_s10  ;;  %399 = vrot.lane.b32.xlu0 %v3776_v2, %s8096_s11  ;;  %v3779_v4 = vld [vmem:[%s4444_s9 + $0x50] sm:$0x7]  ;;  %s8013_s23 = smov 27   ;;  %s8088_s25 = smov 30  }
  0x20   : > { %403 = vrot.lane.b32.xlu1 %v3778_v1, %s8096_s11  ;;  %v3777_v5 = vld [vmem:[%s4444_s9 + $0x30] sm:$0x7]  ;;  %v4459_v6 = vld [vmem:[%s4444_s9 + $0x88] sm:$0x7]  ;;  %v3783_v7 = vld [vmem:[%s4444_s9 + $0x80] sm:$0x7] }
  0x21   : > { %v3782_v8 = vld [vmem:[%s4444_s9 + $0x78] sm:$0x7]  ;;  %v239_v9 = vld [vmem:[%s4444_s9 + $0x11] sm:$0x7]  ;;  %v238_v10 = vld [vmem:[%s4444_s9 + $0x9] sm:$0x7] }
  0x22   : > { %v237_v11 = vld [vmem:[%s4444_s9 + $0x1] sm:$0x7]  ;;  %v3787_v12 = vld [vmem:[%s4444_s9 + $0x39] sm:$0x7]  ;;  %v3786_v13 = vld [vmem:[%s4444_s9 + $0x31] sm:$0x7] }
  0x23   : > { %v3785_v14 = vld [vmem:[%s4444_s9 + $0x29] sm:$0x7]  ;;  %v3790_v15 = vld [vmem:[%s4444_s9 + $0x61] sm:$0x7]  ;;  %v3789_v16 = vld [vmem:[%s4444_s9 + $0x59] sm:$0x7] }
  0x24   : > { %v3788_v17 = vld [vmem:[%s4444_s9 + $0x51] sm:$0x7]  ;;  %v3792_v19 = vld [vmem:[%s4444_s9 + $0xa8] sm:$0x7]  ;;  %v3791_v20 = vld [vmem:[%s4444_s9 + $0xa0] sm:$0x7] }
  0x25   : > { %v3793_v18 = vld [vmem:[%s4444_s9 + $0xb0] sm:$0x7]  ;;  %v3796_v21 = vld [vmem:[%s4444_s9 + $0xd8] sm:$0x7]  ;;  %v3794_v23 = vld [vmem:[%s4444_s9 + $0xc8] sm:$0x7] }
  0x26   : > { %v3795_v22 = vld [vmem:[%s4444_s9 + $0xd0] sm:$0x7]  ;;  %v4498_v24 = vld [vmem:[%s4444_s9 + $0x100] sm:$0x7]  ;;  %v3798_v25 = vld [vmem:[%s4444_s9 + $0xf8] sm:$0x7] }
  0x27   : > { %415 = vrot.lane.b32.xlu2 %v3781_v3, %s8092_s10  ;;  %401 = vrot.lane.b32.xlu0 %v3777_v5, %s8096_s11  ;;  %v3797_v26 = vld [vmem:[%s4444_s9 + $0xf0] sm:$0x7]  ;;  %v4507_v27 = vld [vmem:[%s4444_s9 + $0x128] sm:$0x7]  ;;  %s8018_s26 = smov 33   ;;  %s8080_s30 = smov 36  }
  0x28   : > { %411 = vrot.lane.b32.xlu1 %v3779_v4, %s8092_s10  ;;  %v3801_v28 = vld [vmem:[%s4444_s9 + $0x120] sm:$0x7]  ;;  %v3800_v29 = vld [vmem:[%s4444_s9 + $0x118] sm:$0x7]  ;;  %v4516_v30 = vld [vmem:[%s4444_s9 + $0xb1] sm:$0x7] }
  0x29   : > { %v3804_v31 = vld [vmem:[%s4444_s9 + $0xa9] sm:$0x7]  ;;  %v3803_v32 = vld [vmem:[%s4444_s9 + $0xa1] sm:$0x7]  ;;  %v4525_v33 = vld [vmem:[%s4444_s9 + $0xd9] sm:$0x7] }
  0x2a   : > { %v3807_v34 = vld [vmem:[%s4444_s9 + $0xd1] sm:$0x7]  ;;  %v3806_v35 = vld [vmem:[%s4444_s9 + $0xc9] sm:$0x7]  ;;  %v4536_v37 = vld [vmem:[%s4444_s9 + $0x101] sm:$0x7] }
  0x2b   : > { %8107 = vst [vmem:[#allocation7_spill] sm:$0xff] %v4536_v37  ;;  %v3810_v38 = vld [vmem:[%s4444_s9 + $0xf9] sm:$0x7]  ;;  %v3809_v39 = vld [vmem:[%s4444_s9 + $0xf1] sm:$0x7]  ;;  %s8086_s6 = smov 39  }
  0x2c   : > { %v3814_v41 = vld [vmem:[%s4444_s9 + $0x150] sm:$0x7]  ;;  %v3813_v42 = vld [vmem:[%s4444_s9 + $0x148] sm:$0x7]  ;;  %v3812_v43 = vld [vmem:[%s4444_s9 + $0x140] sm:$0x7] }
  0x2d   : > { %s7990_s7 = smov 42   ;;  %v3817_v45 = vld [vmem:[%s4444_s9 + $0x178] sm:$0x7]  ;;  %v3816_v46 = vld [vmem:[%s4444_s9 + $0x170] sm:$0x7]  ;;  %s7968_s8 = smov 45  }
  0x2e   : > { %v3815_v47 = vld [vmem:[%s4444_s9 + $0x168] sm:$0x7]  ;;  %v3822_v52 = vld [vmem:[%s4444_s9 + $0x1c0] sm:$0x7]  ;;  %v3821_v53 = vld [vmem:[%s4444_s9 + $0x1b8] sm:$0x7] }
  0x2f   : > { %427 = vrot.lane.b32.xlu2 %v4459_v6, %s8094_s12  ;;  %423 = vrot.lane.b32.xlu0 %v3782_v8, %s8094_s12  ;;  %v3823_v51 = vld [vmem:[%s4444_s9 + $0x1c8] sm:$0x7]  ;;  %v3826_v57 = vld [vmem:[%s4444_s9 + $0x151] sm:$0x7]  ;;  %s8203_s1 = sld [smem:[#allocation119_spill]]  ;;  %s8482_s0 = smov 39  }
  0x30   : > { %425 = vrot.lane.b32.xlu1 %v3783_v7, %s8094_s12  ;;  %v3825_v58 = vld [vmem:[%s4444_s9 + $0x149] sm:$0x7]  ;;  %v3824_v59 = vld [vmem:[%s4444_s9 + $0x141] sm:$0x7]  ;;  %v3829_v63 = vld [vmem:[%s4444_s9 + $0x179] sm:$0x7] }
  0x31   : > { %v3828_v0 = vld [vmem:[%s4444_s9 + $0x171] sm:$0x7]  ;;  %v3827_v1 = vld [vmem:[%s4444_s9 + $0x169] sm:$0x7]  ;;  %v3832_v5 = vld [vmem:[%s4444_s9 + $0x1a1] sm:$0x7] }
  0x32   : > { %v3831_v7 = vld [vmem:[%s4444_s9 + $0x199] sm:$0x7]  ;;  %v3830_v8 = vld [vmem:[%s4444_s9 + $0x191] sm:$0x7]  ;;  %s8505_s27 = smov 6  }
  0x37   : > { %439 = vrot.lane.b32.xlu2 %v239_v9, %s8015_s13  ;;  %435 = vrot.lane.b32.xlu0 %v237_v11, %s8015_s13 }
  0x38   : > { %437 = vrot.lane.b32.xlu1 %v238_v10, %s8015_s13 }
  0x3f   : > { %451 = vrot.lane.b32.xlu2 %v3787_v12, %s8011_s14  ;;  %447 = vrot.lane.b32.xlu0 %v3785_v14, %s8011_s14  ;;  %v3835_v12 = vld [vmem:[%s4444_s9 + $0x1f0] sm:$0x7]  ;;  %v3833_v14 = vld [vmem:[%s4444_s9 + $0x1e0] sm:$0x7] }
  0x40   : > { %449 = vrot.lane.b32.xlu1 %v3786_v13, %s8011_s14  ;;  %v3834_v13 = vld [vmem:[%s4444_s9 + $0x1e8] sm:$0x7] }
  0x47   : > { %463 = vrot.lane.b32.xlu2 %v3790_v15, %s8009_s15  ;;  %459 = vrot.lane.b32.xlu0 %v3788_v17, %s8009_s15 }
  0x48   : > { %461 = vrot.lane.b32.xlu1 %v3789_v16, %s8009_s15 }
  0x4f   : > { %475 = vrot.lane.b32.xlu2 %v3793_v18, %s8007_s16  ;;  %471 = vrot.lane.b32.xlu0 %v3791_v20, %s8007_s16  ;;  %v3838_v18 = vld [vmem:[%s4444_s9 + $0x218] sm:$0x7]  ;;  %v3836_v20 = vld [vmem:[%s4444_s9 + $0x208] sm:$0x7] }
  0x50   : > { %473 = vrot.lane.b32.xlu1 %v3792_v19, %s8007_s16  ;;  %v3837_v19 = vld [vmem:[%s4444_s9 + $0x210] sm:$0x7] }
  0x57   : > { %487 = vrot.lane.b32.xlu2 %v3796_v21, %s8005_s17  ;;  %483 = vrot.lane.b32.xlu0 %v3794_v23, %s8005_s17 }
  0x58   : > { %485 = vrot.lane.b32.xlu1 %v3795_v22, %s8005_s17 }
  0x5f   : > { %499 = vrot.lane.b32.xlu2 %v4498_v24, %s8013_s23  ;;  %495 = vrot.lane.b32.xlu0 %v3797_v26, %s8013_s23  ;;  %v3840_v26 = vld [vmem:[%s4444_s9 + $0x238] sm:$0x7] }
  0x60   : > { %497 = vrot.lane.b32.xlu1 %v3798_v25, %s8013_s23  ;;  %v3841_v25 = vld [vmem:[%s4444_s9 + $0x240] sm:$0x7] }
  0x67   : > { %511 = vrot.lane.b32.xlu2 %v4507_v27, %s8088_s25  ;;  %507 = vrot.lane.b32.xlu0 %v3800_v29, %s8088_s25 }
  0x68   : > { %509 = vrot.lane.b32.xlu1 %v3801_v28, %s8088_s25  ;;  %v3839_v28 = vld [vmem:[%s4444_s9 + $0x230] sm:$0x7] }
  0x6f   : > { %523 = vrot.lane.b32.xlu2 %v4516_v30, %s8018_s26  ;;  %519 = vrot.lane.b32.xlu0 %v3803_v32, %s8018_s26 }
  0x70   : > { %521 = vrot.lane.b32.xlu1 %v3804_v31, %s8018_s26 }
  0x77   : > { %535 = vrot.lane.b32.xlu2 %v4525_v33, %s8080_s30  ;;  %531 = vrot.lane.b32.xlu0 %v3806_v35, %s8080_s30  ;;  %v3843_v35 = vld [vmem:[%s4444_s9 + $0x260] sm:$0x7] }
  0x78   : > { %533 = vrot.lane.b32.xlu1 %v3807_v34, %s8080_s30  ;;  %v3844_v34 = vld [vmem:[%s4444_s9 + $0x268] sm:$0x7] }
  0x79   : > { %v4533_v36 = vpop.permute.xlu2 %413 }
  0x7a   : > { %8106 = vst [vmem:[#allocation6_spill] sm:$0xff] %v4533_v36  ;;  %v3900_v36 = vld [vmem:[%s4444_s9 + $0x178] sm:$0x7] }
  0x7f   : > { %547 = vrot.lane.b32.xlu2 %v4536_v37, %s8086_s6  ;;  %543 = vrot.lane.b32.xlu0 %v3809_v39, %s8086_s6 }
  0x80   : > { %545 = vrot.lane.b32.xlu1 %v3810_v38, %s8086_s6  ;;  %v3842_v38 = vld [vmem:[%s4444_s9 + $0x258] sm:$0x7] }
  0x81   : > { %v4544_v40 = vpop.permute.xlu2 %415 }
  0x87   : > { %559 = vrot.lane.b32.xlu2 %v3814_v41, %s7990_s7  ;;  %555 = vrot.lane.b32.xlu0 %v3812_v43, %s7990_s7  ;;  %v3847_v43 = vld [vmem:[%s4444_s9 + $0x1f1] sm:$0x7] }
  0x88   : > { %557 = vrot.lane.b32.xlu1 %v3813_v42, %s7990_s7 }
  0x89   : > { %v4552_v44 = vpop.permute.xlu2 %427 }
  0x8f   : > { %571 = vrot.lane.b32.xlu2 %v3817_v45, %s7968_s8  ;;  %567 = vrot.lane.b32.xlu0 %v3815_v47, %s7968_s8  ;;  %v3846_v45 = vld [vmem:[%s4444_s9 + $0x1e9] sm:$0x7] }
  0x90   : > { %569 = vrot.lane.b32.xlu1 %v3816_v46, %s7968_s8  ;;  %v3845_v46 = vld [vmem:[%s4444_s9 + $0x1e1] sm:$0x7] }
  0x91   : > { %v4560_v48 = vpop.permute.xlu2 %439  ;;  %v4564_v50 = vpop.permute.xlu0 %399 }
  0x92   : > { %v4562_v49 = vpop.permute.xlu1 %403  ;;  %8108 = vst [vmem:[#allocation8_spill] sm:$0xff] %v4564_v50  ;;  %v3899_v50 = vld [vmem:[%s4444_s9 + $0x170] sm:$0x7] }
  0x97   : > { %643 = vrot.lane.b32.xlu2 %v3823_v51, %s8096_s11  ;;  %639 = vrot.lane.b32.xlu0 %v3821_v53, %s8096_s11  ;;  %v3850_v53 = vld [vmem:[%s4444_s9 + $0x219] sm:$0x7] }
  0x98   : > { %641 = vrot.lane.b32.xlu1 %v3822_v52, %s8096_s11 }
  0x99   : > { %v4572_v54 = vpop.permute.xlu2 %451  ;;  %v4576_v56 = vpop.permute.xlu0 %401 }
  0x9a   : > { %v4574_v55 = vpop.permute.xlu1 %411  ;;  %8110 = vst [vmem:[#allocation10_spill] sm:$0xff] %v4576_v56 }
  0x9b   : > { %8109 = vst [vmem:[#allocation9_spill] sm:$0xff] %v4574_v55  ;;  %v3901_v55 = vld [vmem:[%s4444_s9 + $0x180] sm:$0x7] }
  0x9f   : > { %655 = vrot.lane.b32.xlu2 %v3826_v57, %s8092_s10  ;;  %651 = vrot.lane.b32.xlu0 %v3824_v59, %s8092_s10  ;;  %v3849_v57 = vld [vmem:[%s4444_s9 + $0x211] sm:$0x7] }
  0xa0   : > { %653 = vrot.lane.b32.xlu1 %v3825_v58, %s8092_s10  ;;  %v3848_v58 = vld [vmem:[%s4444_s9 + $0x209] sm:$0x7] }
  0xa1   : > { %v4584_v60 = vpop.permute.xlu2 %463  ;;  %v4588_v62 = vpop.permute.xlu0 %423 }
  0xa2   : > { %v4586_v61 = vpop.permute.xlu1 %425  ;;  %8112 = vst [vmem:[#allocation12_spill] sm:$0xff] %v4588_v62  ;;  %v3897_v62 = vld [vmem:[%s4444_s9 + $0x150] sm:$0x7] }
  0xa3   : > { %8111 = vst [vmem:[#allocation11_spill] sm:$0xff] %v4586_v61  ;;  %v3896_v61 = vld [vmem:[%s4444_s9 + $0x148] sm:$0x7] }
  0xa7   : > { %667 = vrot.lane.b32.xlu2 %v3829_v63, %s8094_s12  ;;  %663 = vrot.lane.b32.xlu0 %v3827_v1, %s8094_s12  ;;  %v3853_v1 = vld [vmem:[%s4444_s9 + $0x241] sm:$0x7] }
  0xa8   : > { %665 = vrot.lane.b32.xlu1 %v3828_v0, %s8094_s12 }
  0xa9   : > { %v4596_v2 = vpop.permute.xlu2 %475  ;;  %v4600_v4 = vpop.permute.xlu0 %435 }
  0xaa   : > { %v4598_v3 = vpop.permute.xlu1 %437  ;;  %8114 = vst [vmem:[#allocation14_spill] sm:$0xff] %v4600_v4  ;;  %v3893_v4 = vld [vmem:[%s4444_s9 + $0xf9] sm:$0x7] }
  0xab   : > { %8113 = vst [vmem:[#allocation13_spill] sm:$0xff] %v4598_v3  ;;  %v3898_v3 = vld [vmem:[%s4444_s9 + $0x158] sm:$0x7] }
  0xaf   : > { %679 = vrot.lane.b32.xlu2 %v3832_v5, %s8015_s13  ;;  %675 = vrot.lane.b32.xlu0 %v3830_v8, %s8015_s13  ;;  %v3852_v5 = vld [vmem:[%s4444_s9 + $0x239] sm:$0x7] }
  0xb0   : > { %677 = vrot.lane.b32.xlu1 %v3831_v7, %s8015_s13  ;;  %v3851_v7 = vld [vmem:[%s4444_s9 + $0x231] sm:$0x7] }
  0xb1   : > { %v4608_v9 = vpop.permute.xlu2 %487  ;;  %v4612_v11 = vpop.permute.xlu0 %447 }
  0xb2   : > { %v4610_v10 = vpop.permute.xlu1 %449  ;;  %8116 = vst [vmem:[#allocation16_spill] sm:$0xff] %v4612_v11  ;;  %v3895_v11 = vld [vmem:[%s4444_s9 + $0x109] sm:$0x7] }
  0xb3   : > { %8115 = vst [vmem:[#allocation15_spill] sm:$0xff] %v4610_v10  ;;  %v3894_v10 = vld [vmem:[%s4444_s9 + $0x101] sm:$0x7] }
  0xb7   : > { %691 = vrot.lane.b32.xlu2 %v3835_v12, %s8011_s14  ;;  %687 = vrot.lane.b32.xlu0 %v3833_v14, %s8011_s14  ;;  %v3856_v14 = vld [vmem:[%s4444_s9 + $0x18] sm:$0x7] }
  0xb8   : > { %689 = vrot.lane.b32.xlu1 %v3834_v13, %s8011_s14 }
  0xb9   : > { %v4620_v15 = vpop.permute.xlu2 %499  ;;  %v4624_v17 = vpop.permute.xlu0 %459 }
  0xba   : > { %v4622_v16 = vpop.permute.xlu1 %461  ;;  %8118 = vst [vmem:[#allocation18_spill] sm:$0xff] %v4624_v17  ;;  %v3891_v17 = vld [vmem:[%s4444_s9 + $0xd9] sm:$0x7] }
  0xbb   : > { %8117 = vst [vmem:[#allocation17_spill] sm:$0xff] %v4622_v16  ;;  %v3890_v16 = vld [vmem:[%s4444_s9 + $0xd1] sm:$0x7] }
  0xbf   : > { %703 = vrot.lane.b32.xlu2 %v3838_v18, %s8009_s15  ;;  %699 = vrot.lane.b32.xlu0 %v3836_v20, %s8009_s15  ;;  %v3855_v18 = vld [vmem:[%s4444_s9 + $0x10] sm:$0x7] }
  0xc0   : > { %701 = vrot.lane.b32.xlu1 %v3837_v19, %s8009_s15  ;;  %v3854_v19 = vld [vmem:[%s4444_s9 + $0x8] sm:$0x7] }
  0xc1   : > { %v4632_v21 = vpop.permute.xlu2 %511  ;;  %v4636_v23 = vpop.permute.xlu0 %471 }
  0xc2   : > { %8119 = vst [vmem:[#allocation19_spill] sm:$0xff] %v4632_v21  ;;  %v4634_v22 = vpop.permute.xlu1 %473  ;;  %v4928_v21 = vld [vmem:[%s4444_s9 + $0x190] sm:$0x7] }
  0xc3   : > { %8120 = vst [vmem:[#allocation20_spill] sm:$0xff] %v4634_v22  ;;  %v3892_v22 = vld [vmem:[%s4444_s9 + $0xe1] sm:$0x7] }
  0xc4   : > { %8121 = vst [vmem:[#allocation21_spill] sm:$0xff] %v4636_v23  ;;  %v3887_v23 = vld [vmem:[%s4444_s9 + $0xa9] sm:$0x7] }
  0xc7   : > { %715 = vrot.lane.b32.xlu2 %v3841_v25, %s8007_s16  ;;  %711 = vrot.lane.b32.xlu0 %v3839_v28, %s8007_s16  ;;  %v3859_v28 = vld [vmem:[%s4444_s9 + $0x40] sm:$0x7] }
  0xc8   : > { %713 = vrot.lane.b32.xlu1 %v3840_v26, %s8007_s16 }
  0xc9   : > { %v4644_v29 = vpop.permute.xlu2 %523  ;;  %v4648_v32 = vpop.permute.xlu0 %483 }
  0xca   : > { %8122 = vst [vmem:[#allocation22_spill] sm:$0xff] %v4644_v29  ;;  %v4646_v31 = vpop.permute.xlu1 %485  ;;  %v3908_v29 = vld [vmem:[%s4444_s9 + $0x149] sm:$0x7] }
  0xcb   : > { %8123 = vst [vmem:[#allocation23_spill] sm:$0xff] %v4646_v31  ;;  %v3888_v31 = vld [vmem:[%s4444_s9 + $0xb1] sm:$0x7] }
  0xcc   : > { %8124 = vst [vmem:[#allocation24_spill] sm:$0xff] %v4648_v32  ;;  %v3889_v32 = vld [vmem:[%s4444_s9 + $0xb9] sm:$0x7] }
  0xcf   : > { %727 = vrot.lane.b32.xlu2 %v3844_v34, %s8005_s17  ;;  %723 = vrot.lane.b32.xlu0 %v3842_v38, %s8005_s17  ;;  %v3858_v34 = vld [vmem:[%s4444_s9 + $0x38] sm:$0x7] }
  0xd0   : > { %725 = vrot.lane.b32.xlu1 %v3843_v35, %s8005_s17  ;;  %v3857_v35 = vld [vmem:[%s4444_s9 + $0x30] sm:$0x7] }
  0xd1   : > { %v4656_v39 = vpop.permute.xlu2 %535  ;;  %v4660_v42 = vpop.permute.xlu0 %495 }
  0xd2   : > { %8125 = vst [vmem:[#allocation25_spill] sm:$0xff] %v4656_v39  ;;  %v4658_v41 = vpop.permute.xlu1 %497  ;;  %v3910_v39 = vld [vmem:[%s4444_s9 + $0x159] sm:$0x7] }
  0xd3   : > { %8126 = vst [vmem:[#allocation26_spill] sm:$0xff] %v4658_v41  ;;  %v3884_v41 = vld [vmem:[%s4444_s9 + $0x120] sm:$0x7] }
  0xd4   : > { %8127 = vst [vmem:[#allocation27_spill] sm:$0xff] %v4660_v42  ;;  %v3885_v42 = vld [vmem:[%s4444_s9 + $0x128] sm:$0x7] }
  0xd7   : > { %739 = vrot.lane.b32.xlu2 %v3847_v43, %s8013_s23  ;;  %735 = vrot.lane.b32.xlu0 %v3845_v46, %s8013_s23  ;;  %v3862_v46 = vld [vmem:[%s4444_s9 + $0x68] sm:$0x7] }
  0xd8   : > { %737 = vrot.lane.b32.xlu1 %v3846_v45, %s8013_s23 }
  0xd9   : > { %v4668_v47 = vpop.permute.xlu2 %547  ;;  %v4672_v52 = vpop.permute.xlu0 %507 }
  0xda   : > { %8128 = vst [vmem:[#allocation28_spill] sm:$0xff] %v4668_v47  ;;  %v4670_v51 = vpop.permute.xlu1 %509 }
  0xdb   : > { %8129 = vst [vmem:[#allocation29_spill] sm:$0xff] %v4670_v51  ;;  %v3886_v51 = vld [vmem:[%s4444_s9 + $0x130] sm:$0x7] }
  0xdc   : > { %8130 = vst [vmem:[#allocation30_spill] sm:$0xff] %v4672_v52  ;;  %v3881_v52 = vld [vmem:[%s4444_s9 + $0xf8] sm:$0x7] }
  0xdf   : > { %751 = vrot.lane.b32.xlu2 %v3850_v53, %s8088_s25  ;;  %747 = vrot.lane.b32.xlu0 %v3848_v58, %s8088_s25  ;;  %v3861_v53 = vld [vmem:[%s4444_s9 + $0x60] sm:$0x7] }
  0xe0   : > { %749 = vrot.lane.b32.xlu1 %v3849_v57, %s8088_s25  ;;  %v3860_v57 = vld [vmem:[%s4444_s9 + $0x58] sm:$0x7] }
  0xe1   : > { %v4680_v59 = vpop.permute.xlu2 %559  ;;  %v4684_v0 = vpop.permute.xlu0 %519 }
  0xe2   : > { %8131 = vst [vmem:[#allocation31_spill] sm:$0xff] %v4680_v59  ;;  %v4682_v63 = vpop.permute.xlu1 %521  ;;  %v3903_v59 = vld [vmem:[%s4444_s9 + $0x1a0] sm:$0x7] }
  0xe3   : > { %8132 = vst [vmem:[#allocation32_spill] sm:$0xff] %v4682_v63  ;;  %v3882_v63 = vld [vmem:[%s4444_s9 + $0x100] sm:$0x7] }
  0xe4   : > { %8133 = vst [vmem:[#allocation33_spill] sm:$0xff] %v4684_v0  ;;  %v3883_v0 = vld [vmem:[%s4444_s9 + $0x108] sm:$0x7] }
  0xe7   : > { %763 = vrot.lane.b32.xlu2 %v3853_v1, %s8018_s26  ;;  %759 = vrot.lane.b32.xlu0 %v3851_v7, %s8018_s26  ;;  %v3865_v7 = vld [vmem:[%s4444_s9 + $0x90] sm:$0x7] }
  0xe8   : > { %761 = vrot.lane.b32.xlu1 %v3852_v5, %s8018_s26 }
  0xe9   : > { %v4692_v8 = vpop.permute.xlu2 %571  ;;  %v4696_v13 = vpop.permute.xlu0 %531 }
  0xea   : > { %8134 = vst [vmem:[#allocation34_spill] sm:$0xff] %v4692_v8  ;;  %v4694_v12 = vpop.permute.xlu1 %533 }
  0xeb   : > { %8135 = vst [vmem:[#allocation35_spill] sm:$0xff] %v4694_v12  ;;  %v3878_v12 = vld [vmem:[%s4444_s9 + $0xd0] sm:$0x7] }
  0xec   : > { %8136 = vst [vmem:[#allocation36_spill] sm:$0xff] %v4696_v13  ;;  %v3879_v13 = vld [vmem:[%s4444_s9 + $0xd8] sm:$0x7] }
  0xef   : > { %775 = vrot.lane.b32.xlu2 %v3856_v14, %s8080_s30  ;;  %771 = vrot.lane.b32.xlu0 %v3854_v19, %s8080_s30  ;;  %v3864_v14 = vld [vmem:[%s4444_s9 + $0x88] sm:$0x7] }
  0xf0   : > { %773 = vrot.lane.b32.xlu1 %v3855_v18, %s8080_s30  ;;  %v3863_v18 = vld [vmem:[%s4444_s9 + $0x80] sm:$0x7] }
  0xf1   : > { %v4704_v20 = vpop.permute.xlu2 %643  ;;  %v4708_v26 = vpop.permute.xlu0 %543 }
  0xf2   : > { %v4706_v25 = vpop.permute.xlu1 %545  ;;  %8138 = vst [vmem:[#allocation38_spill] sm:$0xff] %v4708_v26  ;;  %v3875_v26 = vld [vmem:[%s4444_s9 + $0xa8] sm:$0x7] }
  0xf3   : > { %8137 = vst [vmem:[#allocation37_spill] sm:$0xff] %v4706_v25  ;;  %v3880_v25 = vld [vmem:[%s4444_s9 + $0xe0] sm:$0x7] }
  0xf7   : > { %787 = vrot.lane.b32.xlu2 %v3859_v28, %s8086_s6  ;;  %783 = vrot.lane.b32.xlu0 %v3857_v35, %s8086_s6  ;;  %v3871_v35 = vld [vmem:[%s4444_s9 + $0x41] sm:$0x7] }
  0xf8   : > { %785 = vrot.lane.b32.xlu1 %v3858_v34, %s8086_s6 }
  0xf9   : > { %v4716_v38 = vpop.permute.xlu2 %655  ;;  %v4720_v45 = vpop.permute.xlu0 %555 }
  0xfa   : > { %v4718_v43 = vpop.permute.xlu1 %557  ;;  %8140 = vst [vmem:[#allocation40_spill] sm:$0xff] %v4720_v45  ;;  %v3877_v45 = vld [vmem:[%s4444_s9 + $0xb8] sm:$0x7] }
  0xfb   : > { %8139 = vst [vmem:[#allocation39_spill] sm:$0xff] %v4718_v43  ;;  %v3876_v43 = vld [vmem:[%s4444_s9 + $0xb0] sm:$0x7] }
  0xff   : > { %799 = vrot.lane.b32.xlu2 %v3862_v46, %s7990_s7  ;;  %795 = vrot.lane.b32.xlu0 %v3860_v57, %s7990_s7  ;;  %v3870_v46 = vld [vmem:[%s4444_s9 + $0x39] sm:$0x7] }
 0x100   : > { %797 = vrot.lane.b32.xlu1 %v3861_v53, %s7990_s7  ;;  %v3869_v53 = vld [vmem:[%s4444_s9 + $0x31] sm:$0x7] }
 0x101   : > { %v4728_v58 = vpop.permute.xlu2 %667  ;;  %v4732_v5 = vpop.permute.xlu0 %567 }
 0x102   : > { %v4730_v1 = vpop.permute.xlu1 %569  ;;  %8142 = vst [vmem:[#allocation42_spill] sm:$0xff] %v4732_v5  ;;  %v3873_v5 = vld [vmem:[%s4444_s9 + $0x61] sm:$0x7] }
 0x103   : > { %8141 = vst [vmem:[#allocation41_spill] sm:$0xff] %v4730_v1  ;;  %v3872_v1 = vld [vmem:[%s4444_s9 + $0x59] sm:$0x7] }
 0x107   : > { %811 = vrot.lane.b32.xlu2 %v3865_v7, %s7968_s8  ;;  %807 = vrot.lane.b32.xlu0 %v3863_v18, %s7968_s8  ;;  %v3874_v18 = vld [vmem:[%s4444_s9 + $0x69] sm:$0x7] }
 0x108   : > { %809 = vrot.lane.b32.xlu1 %v3864_v14, %s7968_s8 }
 0x109   : > { %v4740_v19 = vpop.permute.xlu2 %679  ;;  %v4744_v34 = vpop.permute.xlu0 %639 }
 0x10a   : > { %v4742_v28 = vpop.permute.xlu1 %641 }
 0x10f   : > { %868 = vrot.lane.b32.xlu2 %v3871_v35, %s8096_s11  ;;  %864 = vrot.lane.b32.xlu0 %v3869_v53, %s8096_s11 }
 0x110   : > { %866 = vrot.lane.b32.xlu1 %v3870_v46, %s8096_s11 }
 0x111   : > { %v4752_v57 = vpop.permute.xlu2 %691  ;;  %v4756_v14 = vpop.permute.xlu0 %651 }
 0x112   : > { %v4754_v7 = vpop.permute.xlu1 %653 }
 0x117   : > { %880 = vrot.lane.b32.xlu2 %v3874_v18, %s8092_s10  ;;  %876 = vrot.lane.b32.xlu0 %v3872_v1, %s8092_s10 }
 0x118   : > { %878 = vrot.lane.b32.xlu1 %v3873_v5, %s8092_s10 }
 0x119   : > { %v4764_v35 = vpop.permute.xlu2 %703  ;;  %v4768_v53 = vpop.permute.xlu0 %663 }
 0x11a   : > { %v4766_v46 = vpop.permute.xlu1 %665 }
 0x11f   : > { %892 = vrot.lane.b32.xlu2 %v3877_v45, %s8094_s12  ;;  %888 = vrot.lane.b32.xlu0 %v3875_v26, %s8094_s12 }
 0x120   : > { %890 = vrot.lane.b32.xlu1 %v3876_v43, %s8094_s12 }
 0x121   : > { %v4776_v5 = vpop.permute.xlu2 %715  ;;  %v4780_v18 = vpop.permute.xlu0 %675 }
 0x122   : > { %8143 = vst [vmem:[#allocation43_spill] sm:$0xff] %v4776_v5  ;;  %v4778_v1 = vpop.permute.xlu1 %677 }
 0x127   : > { %904 = vrot.lane.b32.xlu2 %v3880_v25, %s8015_s13  ;;  %900 = vrot.lane.b32.xlu0 %v3878_v12, %s8015_s13 }
 0x128   : > { %902 = vrot.lane.b32.xlu1 %v3879_v13, %s8015_s13 }
 0x129   : > { %v4788_v43 = vpop.permute.xlu2 %727  ;;  %v4792_v45 = vpop.permute.xlu0 %687 }
 0x12a   : > { %8144 = vst [vmem:[#allocation44_spill] sm:$0xff] %v4788_v43  ;;  %v4790_v26 = vpop.permute.xlu1 %689 }
 0x12f   : > { %916 = vrot.lane.b32.xlu2 %v3883_v0, %s8011_s14  ;;  %912 = vrot.lane.b32.xlu0 %v3881_v52, %s8011_s14 }
 0x130   : > { %914 = vrot.lane.b32.xlu1 %v3882_v63, %s8011_s14 }
 0x131   : > { %v4800_v13 = vpop.permute.xlu2 %739  ;;  %v4804_v25 = vpop.permute.xlu0 %699 }
 0x132   : > { %8145 = vst [vmem:[#allocation45_spill] sm:$0xff] %v4800_v13  ;;  %v4802_v12 = vpop.permute.xlu1 %701 }
 0x137   : > { %928 = vrot.lane.b32.xlu2 %v3886_v51, %s8009_s15  ;;  %924 = vrot.lane.b32.xlu0 %v3884_v41, %s8009_s15 }
 0x138   : > { %926 = vrot.lane.b32.xlu1 %v3885_v42, %s8009_s15 }
 0x139   : > { %v4812_v63 = vpop.permute.xlu2 %751  ;;  %v4816_v0 = vpop.permute.xlu0 %711 }
 0x13a   : > { %8146 = vst [vmem:[#allocation46_spill] sm:$0xff] %v4812_v63  ;;  %v4814_v52 = vpop.permute.xlu1 %713 }
 0x13b   : > { %8147 = vst [vmem:[#allocation47_spill] sm:$0xff] %v4814_v52 }
 0x13c   : > { %8148 = vst [vmem:[#allocation48_spill] sm:$0xff] %v4816_v0 }
 0x13f   : > { %940 = vrot.lane.b32.xlu2 %v3889_v32, %s8007_s16  ;;  %936 = vrot.lane.b32.xlu0 %v3887_v23, %s8007_s16 }
 0x140   : > { %938 = vrot.lane.b32.xlu1 %v3888_v31, %s8007_s16 }
 0x141   : > { %v4824_v42 = vpop.permute.xlu2 %763  ;;  %v4828_v51 = vpop.permute.xlu0 %723 }
 0x142   : > { %8149 = vst [vmem:[#allocation49_spill] sm:$0xff] %v4824_v42  ;;  %v4826_v41 = vpop.permute.xlu1 %725 }
 0x143   : > { %8150 = vst [vmem:[#allocation50_spill] sm:$0xff] %v4826_v41 }
 0x144   : > { %8151 = vst [vmem:[#allocation51_spill] sm:$0xff] %v4828_v51 }
 0x147   : > { %952 = vrot.lane.b32.xlu2 %v3892_v22, %s8005_s17  ;;  %948 = vrot.lane.b32.xlu0 %v3890_v16, %s8005_s17 }
 0x148   : > { %950 = vrot.lane.b32.xlu1 %v3891_v17, %s8005_s17 }
 0x149   : > { %v4836_v31 = vpop.permute.xlu2 %775  ;;  %v4840_v32 = vpop.permute.xlu0 %735 }
 0x14a   : > { %v4838_v23 = vpop.permute.xlu1 %737  ;;  %8153 = vst [vmem:[#allocation53_spill] sm:$0xff] %v4840_v32 }
 0x14b   : > { %8152 = vst [vmem:[#allocation52_spill] sm:$0xff] %v4838_v23 }
 0x14f   : > { %964 = vrot.lane.b32.xlu2 %v3895_v11, %s8013_s23  ;;  %960 = vrot.lane.b32.xlu0 %v3893_v4, %s8013_s23 }
 0x150   : > { %962 = vrot.lane.b32.xlu1 %v3894_v10, %s8013_s23 }
 0x151   : > { %v4848_v17 = vpop.permute.xlu2 %787  ;;  %v4852_v22 = vpop.permute.xlu0 %747 }
 0x152   : > { %v4850_v16 = vpop.permute.xlu1 %749  ;;  %8155 = vst [vmem:[#allocation55_spill] sm:$0xff] %v4852_v22 }
 0x153   : > { %8154 = vst [vmem:[#allocation54_spill] sm:$0xff] %v4850_v16 }
 0x157   : > { %976 = vrot.lane.b32.xlu2 %v3898_v3, %s8088_s25  ;;  %972 = vrot.lane.b32.xlu0 %v3896_v61, %s8088_s25 }
 0x158   : > { %974 = vrot.lane.b32.xlu1 %v3897_v62, %s8088_s25  ;;  %v4873_v62 = vld [vmem:[%s4444_s9 + $0x1a0] sm:$0x7] }
 0x159   : > { %v4860_v10 = vpop.permute.xlu2 %799  ;;  %v4864_v11 = vpop.permute.xlu0 %759  ;;  %8159 = vst [vmem:[#allocation59_spill] sm:$0xff] %v4873_v62  ;;  %v818_v8 = vsel %vm576_vm0, %v4873_v62, %v4704_v20 }
 0x15a   : > { %8156 = vst [vmem:[#allocation56_spill] sm:$0xff] %v4860_v10  ;;  %v4862_v4 = vpop.permute.xlu1 %761 }
 0x15b   : > { %8157 = vst [vmem:[#allocation57_spill] sm:$0xff] %v4862_v4 }
 0x15c   : > { %8158 = vst [vmem:[#allocation58_spill] sm:$0xff] %v4864_v11 }
 0x15f   : > { %988 = vrot.lane.b32.xlu2 %v3901_v55, %s8018_s26  ;;  %984 = vrot.lane.b32.xlu0 %v3899_v50, %s8018_s26  ;;  %v3904_v55 = vld [vmem:[%s4444_s9 + $0x1a8] sm:$0x7]  ;;  %v821_v50 = vsel %vm580_vm1, %v818_v8, %v4716_v38  ;;  %v3907_v8 = vld [vmem:[%s4444_s9 + $0x1d0] sm:$0x7] }
 0x160   : > { %986 = vrot.lane.b32.xlu1 %v3900_v36, %s8018_s26  ;;  %v3902_v36 = vld [vmem:[%s4444_s9 + $0x198] sm:$0x7]  ;;  %v824_v20 = vsel %vm584_vm2, %v821_v50, %v4728_v58  ;;  %v3906_v38 = vld [vmem:[%s4444_s9 + $0x1c8] sm:$0x7] }
 0x161   : > { %v4875_v61 = vpop.permute.xlu2 %811  ;;  %v4879_v56 = vpop.permute.xlu0 %771 }
 0x162   : > { %8160 = vst [vmem:[#allocation60_spill] sm:$0xff] %v4875_v61  ;;  %v4877_v3 = vpop.permute.xlu1 %773 }
 0x167   : > { %1000 = vrot.lane.b32.xlu2 %v3904_v55, %s8080_s30  ;;  %996 = vrot.lane.b32.xlu0 %v3902_v36, %s8080_s30  ;;  %v3905_v55 = vld [vmem:[%s4444_s9 + $0x1c0] sm:$0x7] }
 0x168   : > { %998 = vrot.lane.b32.xlu1 %v3903_v59, %s8080_s30  ;;  %v4904_v59 = vsel %vm588_vm3, %v824_v20, %v4740_v19 }
 0x169   : > { %v4892_v47 = vpop.permute.xlu2 %868  ;;  %v4898_v62 = vpop.permute.xlu0 %783  ;;  %8161 = vst [vmem:[#allocation61_spill] sm:$0xff] %v4904_v59  ;;  %v830_v58 = vsel %vm8022_vm4, %v4904_v59, %v4752_v57 }
 0x16a   : > { %v4894_v37 = vpop.permute.xlu1 %785  ;;  %v833_v20 = vsel %vm8026_vm5, %v830_v58, %v4764_v35 }
 0x16b   : > { %v836_v57 = vsel %vm8025_vm6, %v833_v20, %v4776_v5 }
 0x16f   : > { %1012 = vrot.lane.b32.xlu2 %v3907_v8, %s8086_s6  ;;  %1008 = vrot.lane.b32.xlu0 %v3905_v55, %s8086_s6  ;;  %v3909_v8 = vld [vmem:[%s4444_s9 + $0x151] sm:$0x7]  ;;  %v816_v55 = vsel %vm576_vm0, %v4928_v21, %v4744_v34 }
 0x170   : > { %1010 = vrot.lane.b32.xlu1 %v3906_v38, %s8086_s6  ;;  %v4924_v38 = vld [vmem:[%s4444_s9 + $0x198] sm:$0x7] }
 0x171   : > { %v4913_v36 = vpop.permute.xlu2 %880  ;;  %v4917_v19 = vpop.permute.xlu0 %795  ;;  %v817_v35 = vsel %vm576_vm0, %v4924_v38, %v4742_v28  ;;  %v819_v28 = vsel %vm580_vm1, %v816_v55, %v4756_v14  ;;  %v3912_v55 = vld [vmem:[%s4444_s9 + $0x179] sm:$0x7] }
 0x172   : > { %v4915_v50 = vpop.permute.xlu1 %797  ;;  %8163 = vst [vmem:[#allocation63_spill] sm:$0xff] %v4917_v19  ;;  %v820_v58 = vsel %vm580_vm1, %v817_v35, %v4754_v7  ;;  %v822_v34 = vsel %vm584_vm2, %v819_v28, %v4768_v53  ;;  %v3913_v35 = vld [vmem:[%s4444_s9 + $0x181] sm:$0x7] }
 0x173   : > { %8162 = vst [vmem:[#allocation62_spill] sm:$0xff] %v4915_v50 }
 0x177   : > { %1024 = vrot.lane.b32.xlu2 %v3910_v39, %s7990_s7  ;;  %1020 = vrot.lane.b32.xlu0 %v3908_v29, %s7990_s7  ;;  %v839_v39 = vsel %vm8027_vm7, %v836_v57, %v4788_v43  ;;  %v823_v29 = vsel %vm584_vm2, %v820_v58, %v4766_v46  ;;  %v4963_v57 = vsel %vm588_vm3, %v822_v34, %v4780_v18  ;;  %v3911_v58 = vld [vmem:[%s4444_s9 + $0x171] sm:$0x7] }
 0x178   : > { %1022 = vrot.lane.b32.xlu1 %v3909_v8, %s7990_s7  ;;  %v4959_v7 = vsel %vm588_vm3, %v823_v29, %v4778_v1  ;;  %8167 = vst [vmem:[#allocation67_spill] sm:$0xff] %v4963_v57  ;;  %v842_v46 = vsel %vm7997_vm8, %v839_v39, %v4800_v13  ;;  %v828_v53 = vsel %vm8022_vm4, %v4963_v57, %v4792_v45  ;;  %s7998_s7 = smov 16  }
 0x179   : > { %v4945_v20 = vpop.permute.xlu2 %892  ;;  %v4953_v5 = vpop.permute.xlu0 %807  ;;  %8166 = vst [vmem:[#allocation66_spill] sm:$0xff] %v4959_v7  ;;  %v829_v14 = vsel %vm8022_vm4, %v4959_v7, %v4790_v26  ;;  %v831_v18 = vsel %vm8026_vm5, %v828_v53, %v4804_v25  ;;  %v845_v39 = vsel %vm612_vm9, %v842_v46, %v4812_v63 }
 0x17a   : > { %v4947_v8 = vpop.permute.xlu1 %809  ;;  %8165 = vst [vmem:[#allocation65_spill] sm:$0xff] %v4953_v5  ;;  %v832_v1 = vsel %vm8026_vm5, %v829_v14, %v4802_v12  ;;  %v834_v28 = vsel %vm8025_vm6, %v831_v18, %v4816_v0 }
 0x17b   : > { %8164 = vst [vmem:[#allocation64_spill] sm:$0xff] %v4947_v8  ;;  %v835_v26 = vsel %vm8025_vm6, %v832_v1, %v4814_v52  ;;  %v837_v12 = vsel %vm8027_vm7, %v834_v28, %v4828_v51 }
 0x17c   : > { %v838_v45 = vsel %vm8027_vm7, %v835_v26, %v4826_v41  ;;  %v840_v29 = vsel %vm7997_vm8, %v837_v12, %v4840_v32 }
 0x17d   : > { %v841_v25 = vsel %vm7997_vm8, %v838_v45, %v4838_v23 }
 0x17e   : > { %v844_v34 = vsel %vm612_vm9, %v841_v25, %v4850_v16 }
 0x17f   : > { %1036 = vrot.lane.b32.xlu2 %v3913_v35, %s7968_s8  ;;  %1032 = vrot.lane.b32.xlu0 %v3911_v58, %s7968_s8  ;;  %v848_v35 = vsel %vm8003_vm10, %v845_v39, %v4824_v42  ;;  %v847_v53 = vsel %vm8003_vm10, %v844_v34, %v4862_v4 }
 0x180   : > { %1034 = vrot.lane.b32.xlu1 %v3912_v55, %s7968_s8  ;;  %v843_v55 = vsel %vm612_vm9, %v840_v29, %v4852_v22  ;;  %v851_v58 = vsel %vm8002_vm11, %v848_v35, %v4836_v31  ;;  %v850_v26 = vsel %vm8002_vm11, %v847_v53, %v4877_v3  ;;  %s7988_s8 = smov 48  }
 0x181   : > { %v905_v14 = vpop.permute.xlu2 %904  ;;  %v5007_v1 = vpop.permute.xlu0 %864  ;;  %v846_v18 = vsel %vm8003_vm10, %v843_v55, %v4864_v11  ;;  %v854_v39 = vsel %vm8004_vm12, %v851_v58, %v4848_v17  ;;  %v853_v45 = vsel %vm8004_vm12, %v850_v26, %v4894_v37 }
 0x182   : > { %v4999_v46 = vpop.permute.xlu1 %866  ;;  %v849_v28 = vsel %vm8002_vm11, %v846_v18, %v4879_v56  ;;  %v857_v31 = vsel %vm628_vm13, %v854_v39, %v4860_v10  ;;  %v856_v3 = vsel %vm628_vm13, %v853_v45, %v4915_v50 }
 0x183   : > { %v852_v12 = vsel %vm8004_vm12, %v849_v28, %v4898_v62  ;;  %v860_v17 = vsel %vm632_vm14, %v857_v31, %v4875_v61  ;;  %v859_v56 = vsel %vm632_vm14, %v856_v3, %v4947_v8 }
 0x184   : > { %v855_v25 = vsel %vm628_vm13, %v852_v12, %v4917_v19 }
 0x185   : > { %v858_v37 = vsel %vm632_vm14, %v855_v25, %v4953_v5 }
 0x187   : > { %1093 = vrot.lane.b32.xlu2 %v860_v17, %s7988_s8  ;;  %1089 = vrot.lane.b32.xlu0 %v858_v37, %s7988_s8  ;;  %v5061_v37 = vld [vmem:[%s4444_s9 + $0x19] sm:$0x7] }
 0x188   : > { %1091 = vrot.lane.b32.xlu1 %v859_v56, %s7988_s8  ;;  %v1043_v61 = vsel %vm576_vm0, %v5061_v37, %v4892_v47  ;;  %s8000_s8 = smov 96  }
 0x189   : > { %v5038_v62 = vpop.permute.xlu2 %916  ;;  %v877_v34 = vpop.permute.xlu0 %876  ;;  %v5072_v13 = vsel %vm580_vm1, %v1043_v61, %v4913_v36 }
 0x18a   : > { %8168 = vst [vmem:[#allocation68_spill] sm:$0xff] %v5038_v62  ;;  %v879_v29 = vpop.permute.xlu1 %878  ;;  %v1049_v43 = vsel %vm584_vm2, %v5072_v13, %v4945_v20 }
 0x18b   : > { %8181 = vst [vmem:[#allocation81_spill] sm:$0xff] %v5072_v13  ;;  %v1052_v59 = vsel %vm588_vm3, %v1049_v43, %v905_v14  ;;  %v3936_v13 = vld [vmem:[%s4444_s9 + $0x1ea] sm:$0x7] }
 0x18c   : > { %v1055_v19 = vsel %vm8022_vm4, %v1052_v59, %v5038_v62  ;;  %v5622_v62 = vld [vmem:[%s4444_s9 + $0x90] sm:$0x7] }
 0x191   : > { %v5040_v35 = vpop.permute.xlu2 %928  ;;  %v889_v53 = vpop.permute.xlu0 %888 }
 0x192   : > { %8169 = vst [vmem:[#allocation69_spill] sm:$0xff] %v5040_v35  ;;  %v891_v55 = vpop.permute.xlu1 %890  ;;  %v1058_v50 = vsel %vm8026_vm5, %v1055_v19, %v5040_v35  ;;  %v3932_v35 = vld [vmem:[%s4444_s9 + $0x259] sm:$0x7] }
 0x199   : > { %v5042_v58 = vpop.permute.xlu2 %940  ;;  %v901_v26 = vpop.permute.xlu0 %900 }
 0x19a   : > { %8170 = vst [vmem:[#allocation70_spill] sm:$0xff] %v5042_v58  ;;  %v903_v18 = vpop.permute.xlu1 %902  ;;  %v1061_v20 = vsel %vm8025_vm6, %v1058_v50, %v5042_v58  ;;  %v3933_v58 = vld [vmem:[%s4444_s9 + $0x261] sm:$0x7] }
 0x1a1   : > { %v5044_v39 = vpop.permute.xlu2 %952  ;;  %v5048_v45 = vpop.permute.xlu0 %912 }
 0x1a2   : > { %8171 = vst [vmem:[#allocation71_spill] sm:$0xff] %v5044_v39  ;;  %v5046_v28 = vpop.permute.xlu1 %914  ;;  %v1064_v43 = vsel %vm8027_vm7, %v1061_v20, %v5044_v39 }
 0x1a3   : > { %8172 = vst [vmem:[#allocation72_spill] sm:$0xff] %v5046_v28 }
 0x1a4   : > { %8173 = vst [vmem:[#allocation73_spill] sm:$0xff] %v5048_v45 }
 0x1a9   : > { %v5050_v31 = vpop.permute.xlu2 %964  ;;  %v5054_v3 = vpop.permute.xlu0 %924 }
 0x1aa   : > { %8174 = vst [vmem:[#allocation74_spill] sm:$0xff] %v5050_v31  ;;  %v5052_v12 = vpop.permute.xlu1 %926  ;;  %v1067_v14 = vsel %vm7997_vm8, %v1064_v43, %v5050_v31  ;;  %v4135_v31 = vld [vmem:[%s4444_s9 + $0x239] sm:$0x7] }
 0x1ab   : > { %8175 = vst [vmem:[#allocation75_spill] sm:$0xff] %v5052_v12 }
 0x1ac   : > { %8176 = vst [vmem:[#allocation76_spill] sm:$0xff] %v5054_v3 }
 0x1b1   : > { %v977_v25 = vpop.permute.xlu2 %976  ;;  %v5058_v56 = vpop.permute.xlu0 %936 }
 0x1b2   : > { %v5056_v17 = vpop.permute.xlu1 %938  ;;  %8178 = vst [vmem:[#allocation78_spill] sm:$0xff] %v5058_v56  ;;  %v1070_v22 = vsel %vm612_vm9, %v1067_v14, %v977_v25  ;;  %v5124_v14 = vld [vmem:[%s4444_s9 + $0x9] sm:$0x7] }
 0x1b3   : > { %8177 = vst [vmem:[#allocation77_spill] sm:$0xff] %v5056_v17 }
 0x1b9   : > { %v989_v10 = vpop.permute.xlu2 %988  ;;  %v5068_v63 = vpop.permute.xlu0 %948 }
 0x1ba   : > { %v5066_v42 = vpop.permute.xlu1 %950  ;;  %8180 = vst [vmem:[#allocation80_spill] sm:$0xff] %v5068_v63  ;;  %v1073_v16 = vsel %vm8003_vm10, %v1070_v22, %v989_v10  ;;  %v5116_v22 = vld [vmem:[%s4444_s9 + $0x1a9] sm:$0x7] }
 0x1bb   : > { %8179 = vst [vmem:[#allocation79_spill] sm:$0xff] %v5066_v42 }
 0x1c1   : > { %v5078_v5 = vpop.permute.xlu2 %1000  ;;  %v5082_v47 = vpop.permute.xlu0 %960 }
 0x1c2   : > { %8182 = vst [vmem:[#allocation82_spill] sm:$0xff] %v5078_v5  ;;  %v5080_v8 = vpop.permute.xlu1 %962  ;;  %v1076_v50 = vsel %vm8002_vm11, %v1073_v16, %v5078_v5  ;;  %v5119_v16 = vld [vmem:[%s4444_s9 + $0x11] sm:$0x7]  ;;  %v4134_v5 = vld [vmem:[%s4444_s9 + $0x68] sm:$0x7] }
 0x1c3   : > { %8183 = vst [vmem:[#allocation83_spill] sm:$0xff] %v5080_v8 }
 0x1c4   : > { %8184 = vst [vmem:[#allocation84_spill] sm:$0xff] %v5082_v47 }
 0x1c9   : > { %v5088_v61 = vpop.permute.xlu2 %1012  ;;  %v973_v11 = vpop.permute.xlu0 %972 }
 0x1ca   : > { %8185 = vst [vmem:[#allocation85_spill] sm:$0xff] %v5088_v61  ;;  %v975_v36 = vpop.permute.xlu1 %974  ;;  %v1079_v20 = vsel %vm8004_vm12, %v1076_v50, %v5088_v61 }
 0x1d1   : > { %v5096_v4 = vpop.permute.xlu2 %1024  ;;  %v985_v19 = vpop.permute.xlu0 %984 }
 0x1d2   : > { %8186 = vst [vmem:[#allocation86_spill] sm:$0xff] %v5096_v4  ;;  %v987_v59 = vpop.permute.xlu1 %986  ;;  %v1082_v32 = vsel %vm628_vm13, %v1079_v20, %v5096_v4  ;;  %v1041_v20 = vsel %vm576_vm0, %v5124_v14, %v5007_v1  ;;  %v4132_v4 = vld [vmem:[%s4444_s9 + $0x211] sm:$0x7] }
 0x1d3   : > { %v5140_v41 = vsel %vm580_vm1, %v1041_v20, %v877_v34 }
 0x1d4   : > { %8193 = vst [vmem:[#allocation93_spill] sm:$0xff] %v5140_v41  ;;  %v1047_v52 = vsel %vm584_vm2, %v5140_v41, %v889_v53 }
 0x1d9   : > { %v5106_v43 = vpop.permute.xlu2 %1036  ;;  %v5110_v51 = vpop.permute.xlu0 %996 }
 0x1da   : > { %8187 = vst [vmem:[#allocation87_spill] sm:$0xff] %v5106_v43  ;;  %v5108_v23 = vpop.permute.xlu1 %998  ;;  %v1085_v25 = vsel %vm632_vm14, %v1082_v32, %v5106_v43  ;;  %v1042_v32 = vsel %vm576_vm0, %v5119_v16, %v4999_v46  ;;  %v1050_v46 = vsel %vm588_vm3, %v1047_v52, %v901_v26  ;;  %v3937_v43 = vld [vmem:[%s4444_s9 + $0x1f2] sm:$0x7] }
 0x1db   : > { %8188 = vst [vmem:[#allocation88_spill] sm:$0xff] %v5108_v23  ;;  %1105 = vrot.lane.b32.xlu2 %v1085_v25, %s8000_s8  ;;  %v5137_v25 = vsel %vm580_vm1, %v1042_v32, %v879_v29  ;;  %v1053_v1 = vsel %vm8022_vm4, %v1050_v46, %v5048_v45 }
 0x1dc   : > { %8189 = vst [vmem:[#allocation89_spill] sm:$0xff] %v5110_v51  ;;  %v1048_v0 = vsel %vm584_vm2, %v5137_v25, %v891_v55  ;;  %v1056_v55 = vsel %vm8026_vm5, %v1053_v1, %v5054_v3  ;;  %v5664_v3 = vld [vmem:[%s4444_s9 + $0x88] sm:$0x7] }
 0x1dd   : > { %8192 = vst [vmem:[#allocation92_spill] sm:$0xff] %v5137_v25  ;;  %v1051_v57 = vsel %vm588_vm3, %v1048_v0, %v903_v18  ;;  %v1059_v52 = vsel %vm8025_vm6, %v1056_v55, %v5058_v56 }
 0x1de   : > { %v1054_v7 = vsel %vm8022_vm4, %v1051_v57, %v5046_v28  ;;  %v3943_v28 = vld [vmem:[%s4444_s9 + $0x1a] sm:$0x7] }
 0x1df   : > { %v1057_v29 = vsel %vm8026_vm5, %v1054_v7, %v5052_v12  ;;  %v1062_v7 = vsel %vm8027_vm7, %v1059_v52, %v5068_v63  ;;  %v5647_v63 = vld [vmem:[%s4444_s9 + $0x41] sm:$0x7] }
 0x1e0   : > { %v1060_v53 = vsel %vm8025_vm6, %v1057_v29, %v5056_v17  ;;  %v1065_v26 = vsel %vm7997_vm8, %v1062_v7, %v5082_v47  ;;  %v3935_v47 = vld [vmem:[%s4444_s9 + $0x1e2] sm:$0x7]  ;;  %v3940_v17 = vld [vmem:[%s4444_s9 + $0x91] sm:$0x7] }
 0x1e1   : > { %v5126_v50 = vpop.permute.xlu0 %1008  ;;  %v1063_v57 = vsel %vm8027_vm7, %v1060_v53, %v5066_v42  ;;  %v1068_v20 = vsel %vm612_vm9, %v1065_v26, %v973_v11  ;;  %v5206_v26 = vld [vmem:[%s4444_s9 + $0x199] sm:$0x7]  ;;  %v4139_v42 = vld [vmem:[%s4444_s9 + $0x60] sm:$0x7] }
 0x1e2   : > { %v5121_v10 = vpop.permute.xlu1 %1010  ;;  %8191 = vst [vmem:[#allocation91_spill] sm:$0xff] %v5126_v50  ;;  %v1066_v18 = vsel %vm7997_vm8, %v1063_v57, %v5080_v8  ;;  %v1071_v1 = vsel %vm8003_vm10, %v1068_v20, %v985_v19  ;;  %v4091_v57 = vld [vmem:[%s4444_s9 + $0x11] sm:$0x7]  ;;  %v4093_v20 = vld [vmem:[%s4444_s9 + $0x61] sm:$0x7] }
 0x1e3   : > { %8190 = vst [vmem:[#allocation90_spill] sm:$0xff] %v5121_v10  ;;  %1117 = vrot.lane.b32.xlu2 %v5116_v22, %s7998_s7  ;;  %v1069_v32 = vsel %vm612_vm9, %v1066_v18, %v975_v36  ;;  %v1074_v29 = vsel %vm8002_vm11, %v1071_v1, %v5110_v51  ;;  %v5203_v18 = vld [vmem:[%s4444_s9 + $0x1a1] sm:$0x7]  ;;  %v4095_v1 = vld [vmem:[%s4444_s9 + $0x78] sm:$0x7] }
 0x1e4   : > { %v1072_v46 = vsel %vm8003_vm10, %v1069_v32, %v987_v59  ;;  %v1077_v36 = vsel %vm8004_vm12, %v1074_v29, %v5126_v50  ;;  %v4092_v32 = vld [vmem:[%s4444_s9 + $0x39] sm:$0x7]  ;;  %v4096_v29 = vld [vmem:[%s4444_s9 + $0x9] sm:$0x7] }
 0x1e5   : > { %v4130_v51 = vld [vmem:[%s4444_s9 + $0x1e9] sm:$0x7] }
 0x1e9   : > { %v5160_v0 = vpop.permute.xlu0 %1020 }
 0x1ea   : > { %v5154_v34 = vpop.permute.xlu1 %1022  ;;  %8195 = vst [vmem:[#allocation95_spill] sm:$0xff] %v5160_v0  ;;  %v1080_v19 = vsel %vm628_vm13, %v1077_v36, %v5160_v0  ;;  %v1166_v36 = vld [vmem:[%s4444_s9 + $0x12] sm:$0x7]  ;;  %v8231_v0 = vld [vmem:[#allocation32_spill] sm:$0xff] }
 0x1eb   : > { %8194 = vst [vmem:[#allocation94_spill] sm:$0xff] %v5154_v34  ;;  %1207 = vrot.lane.b32.xlu2 %v4459_v6, %s8096_s11  ;;  %v1075_v6 = vsel %vm8002_vm11, %v1072_v46, %v5108_v23  ;;  %v4094_v46 = vld [vmem:[%s4444_s9 + $0x80] sm:$0x7] }
 0x1ec   : > { %v1078_v55 = vsel %vm8004_vm12, %v1075_v6, %v5121_v10  ;;  %v3919_v6 = vld [vmem:[%s4444_s9 + $0x89] sm:$0x7] }
 0x1ed   : > { %v1081_v11 = vsel %vm628_vm13, %v1078_v55, %v5154_v34  ;;  %v4097_v55 = vld [vmem:[%s4444_s9 + $0x1] sm:$0x7]  ;;  %v3934_v10 = vld [vmem:[%s4444_s9 + $0x269] sm:$0x7] }
 0x1ee   : > { %v4128_v34 = vld [vmem:[%s4444_s9 + $0x260] sm:$0x7] }
 0x1f1   : > { %v5192_v53 = vpop.permute.xlu0 %1032 }
 0x1f2   : > { %v5188_v59 = vpop.permute.xlu1 %1034  ;;  %8197 = vst [vmem:[#allocation97_spill] sm:$0xff] %v5192_v53  ;;  %v1083_v7 = vsel %vm632_vm14, %v1080_v19, %v5192_v53  ;;  %v4099_v19 = vld [vmem:[%s4444_s9 + $0x29] sm:$0x7]  ;;  %v8227_v53 = vld [vmem:[#allocation27_spill] sm:$0xff] }
 0x1f3   : > { %8196 = vst [vmem:[#allocation96_spill] sm:$0xff] %v5188_v59  ;;  %v1084_v52 = vsel %vm632_vm14, %v1081_v11, %v5188_v59  ;;  %1216 = vrot.lane.b32.xlu2 %v4091_v57, %s8092_s10  ;;  %1101 = vrot.lane.b32.xlu0 %v1083_v7, %s8000_s8  ;;  %v4098_v11 = vld [vmem:[%s4444_s9 + $0x31] sm:$0x7]  ;;  %v3918_v7 = vld [vmem:[%s4444_s9 + $0x81] sm:$0x7] }
 0x1f4   : > { %1103 = vrot.lane.b32.xlu1 %v1084_v52, %s8000_s8  ;;  %v4100_v52 = vld [vmem:[%s4444_s9 + $0x59] sm:$0x7]  ;;  %v4101_v57 = vld [vmem:[%s4444_s9 + $0x51] sm:$0x7]  ;;  %s8263_s8 = smov 24  }
 0x1fb   : > { %1225 = vrot.lane.b32.xlu2 %v4092_v32, %s8094_s12  ;;  %1113 = vrot.lane.b32.xlu0 %v5206_v26, %s7998_s7  ;;  %v3917_v32 = vld [vmem:[%s4444_s9 + $0x79] sm:$0x7] }
 0x1fc   : > { %1115 = vrot.lane.b32.xlu1 %v5203_v18, %s7998_s7  ;;  %s8206_s7 = smov 42  }
 0x203   : > { %1234 = vrot.lane.b32.xlu2 %v4093_v20, %s8015_s13  ;;  %1203 = vrot.lane.b32.xlu0 %v4095_v1, %s8096_s11  ;;  %v224_v20 = vld [vmem:[%s4444_s9 + $0x10] sm:$0x7] }
 0x204   : > { %1205 = vrot.lane.b32.xlu1 %v4094_v46, %s8096_s11  ;;  %v1165_v46 = vld [vmem:[%s4444_s9 + $0xa] sm:$0x7]  ;;  %v579_v1 = vsel %vm576_vm0, %v224_v20, %v4562_v49  ;;  %v4102_v49 = vld [vmem:[%s4444_s9 + $0xf8] sm:$0x7]  ;;  %v4104_v20 = vld [vmem:[%s4444_s9 + $0x120] sm:$0x7] }
 0x20b   : > { %1246 = vrot.lane.b32.xlu2 %v3919_v6, %s8011_s14  ;;  %1212 = vrot.lane.b32.xlu0 %v4097_v55, %s8092_s10  ;;  %v1094_v6 = vpop.permute.xlu2 %1093 }
 0x20c   : > { %1214 = vrot.lane.b32.xlu1 %v4096_v29, %s8092_s10 }
 0x213   : > { %1258 = vrot.lane.b32.xlu2 %v1166_v36, %s8009_s15  ;;  %1221 = vrot.lane.b32.xlu0 %v4099_v19, %s8094_s12  ;;  %v4103_v36 = vld [vmem:[%s4444_s9 + $0xf0] sm:$0x7] }
 0x214   : > { %1223 = vrot.lane.b32.xlu1 %v4098_v11, %s8094_s12  ;;  %v8198_v19 = vld [vmem:[#allocation19_spill] sm:$0xff] }
 0x21b   : > { %1267 = vrot.lane.b32.xlu2 %v4498_v24, %s8007_s16  ;;  %1230 = vrot.lane.b32.xlu0 %v4101_v57, %s8015_s13  ;;  %v1164_v24 = vld [vmem:[%s4444_s9 + $0x2] sm:$0x7] }
 0x21c   : > { %1232 = vrot.lane.b32.xlu1 %v4100_v52, %s8015_s13  ;;  %v8199_v52 = vld [vmem:[#allocation22_spill] sm:$0xff]  ;;  %s8254_s13 = smov 15  }
 0x223   : > { %1276 = vrot.lane.b32.xlu2 %v4507_v27, %s8005_s17  ;;  %1242 = vrot.lane.b32.xlu0 %v3917_v32, %s8011_s14  ;;  %v583_v27 = vsel %vm580_vm1, %v579_v1, %v4544_v40 }
 0x224   : > { %1244 = vrot.lane.b32.xlu1 %v3918_v7, %s8011_s14  ;;  %v587_v29 = vsel %vm584_vm2, %v583_v27, %v4552_v44  ;;  %v8200_v7 = vld [vmem:[#allocation25_spill] sm:$0xff]  ;;  %s8272_s14 = smov 33  }
 0x225   : > { %v591_v55 = vsel %vm588_vm3, %v587_v29, %v4560_v48  ;;  %v8205_v29 = vld [vmem:[#allocation34_spill] sm:$0xff] }
 0x22b   : > { %1285 = vrot.lane.b32.xlu2 %v4516_v30, %s8013_s23  ;;  %1254 = vrot.lane.b32.xlu0 %v1164_v24, %s8009_s15  ;;  %v595_v30 = vsel %vm8022_vm4, %v591_v55, %v4572_v54  ;;  %v8204_v24 = vld [vmem:[#allocation31_spill] sm:$0xff] }
 0x22c   : > { %1256 = vrot.lane.b32.xlu1 %v1165_v46, %s8009_s15  ;;  %v599_v40 = vsel %vm8026_vm5, %v595_v30, %v4584_v60  ;;  %v8201_v60 = vld [vmem:[#allocation7_spill] sm:$0xff]  ;;  %s8251_s15 = smov 12  }
 0x22d   : > { %v603_v48 = vsel %vm8025_vm6, %v599_v40, %v4596_v2  ;;  %v8202_v2 = vld [vmem:[#allocation28_spill] sm:$0xff]  ;;  %v3085_v30 = vld [vmem:[%s8203_s1 + $0x70] sm:$0xff] }
 0x22e   : > { %v3086_v46 = vld [vmem:[%s8203_s1 + $0x78] sm:$0xff] }
 0x22f   : > { %3111 = vmatpush.msra.mxu0 %v3086_v46  ;;  %v4109_v46 = vld [vmem:[%s4444_s9 + $0xc9] sm:$0x7] }
 0x231   : > { %3112 = vmatpush.msra.mxu0 %v3085_v30  ;;  %v4111_v30 = vld [vmem:[%s4444_s9 + $0xf1] sm:$0x7] }
 0x233   : > { %1294 = vrot.lane.b32.xlu2 %v4525_v33, %s8088_s25  ;;  %1263 = vrot.lane.b32.xlu0 %v4103_v36, %s8007_s16  ;;  %v607_v33 = vsel %vm8027_vm7, %v603_v48, %v4608_v9  ;;  %v3084_v36 = vld [vmem:[%s8203_s1 + $0x68] sm:$0xff] }
 0x234   : > { %1265 = vrot.lane.b32.xlu1 %v4102_v49, %s8007_s16  ;;  %v611_v11 = vsel %vm7997_vm8, %v607_v33, %v4620_v15  ;;  %vm8091_vm8 = vcmask 392192   ;;  %v4105_v15 = vld [vmem:[%s4444_s9 + $0x118] sm:$0x7]  ;;  %3113 = vmatpush.msra.mxu0 %v3084_v36  ;;  %s8266_s16 = smov 27  }
 0x235   : > { %v1106_v44 = vpop.permute.xlu2 %1105  ;;  %v615_v54 = vsel %vm612_vm9, %v611_v11, %v8198_v19  ;;  %v3922_v11 = vld [vmem:[%s4444_s9 + $0x129] sm:$0x7] }
 0x236   : > { %v619_v57 = vsel %vm8003_vm10, %v615_v54, %v8199_v52  ;;  %vm8085_vm10 = vcmask 1040384  }
 0x237   : > { %v623_v32 = vsel %vm8002_vm11, %v619_v57, %v8200_v7  ;;  %vm8090_vm11 = vcmask 785408   ;;  %v4107_v57 = vld [vmem:[%s4444_s9 + $0xa1] sm:$0x7]  ;;  %v3082_v7 = vld [vmem:[%s8203_s1 + $0x58] sm:$0xff] }
 0x238   : > { %v627_v9 = vsel %vm8004_vm12, %v623_v32, %v8202_v2  ;;  %vm8017_vm12 = vcmask 1041409   ;;  %v3925_v2 = vld [vmem:[%s4444_s9 + $0xb2] sm:$0x7] }
 0x239   : > { %v631_v1 = vsel %vm628_vm13, %v627_v9, %v8204_v24  ;;  %v3079_v9 = vld [vmem:[%s8203_s1 + $0x40] sm:$0xff]  ;;  %v3078_v24 = vld [vmem:[%s8203_s1 + $0x38] sm:$0xff] }
 0x23a   : > { %v635_v55 = vsel %vm632_vm14, %v631_v1, %v8205_v29  ;;  %v8207_v29 = vld [vmem:[#allocation59_spill] sm:$0xff] }
 0x23b   : > { %1303 = vrot.lane.b32.xlu2 %v8201_v60, %s8018_s26  ;;  %1272 = vrot.lane.b32.xlu0 %v4105_v15, %s8005_s17  ;;  %v1125_v40 = vsel %vm8091_vm8, %v635_v55, %v1094_v6  ;;  %v3083_v6 = vld [vmem:[%s8203_s1 + $0x60] sm:$0xff]  ;;  %v3081_v60 = vld [vmem:[%s8203_s1 + $0x50] sm:$0xff] }
 0x23c   : > { %1274 = vrot.lane.b32.xlu1 %v4104_v20, %s8005_s17  ;;  %v5307_v33 = vsel %vm8090_vm11, %v1125_v40, %v1106_v44  ;;  %3114 = vmatpush.msra.mxu0 %v3083_v6  ;;  %v3080_v20 = vld [vmem:[%s8203_s1 + $0x48] sm:$0xff]  ;;  %v4108_v15 = vld [vmem:[%s4444_s9 + $0xd1] sm:$0x7]  ;;  %v4110_v55 = vld [vmem:[%s4444_s9 + $0xf9] sm:$0x7]  ;;  %s8208_s17 = smov 45  }
 0x23d   : > { %v1118_v27 = vpop.permute.xlu2 %1117  ;;  %v3075_v40 = vld [vmem:[%s8203_s1 + $0x20] sm:$0xff]  ;;  %v3073_v6 = vld [vmem:[%s8203_s1 + $0x10] sm:$0xff] }
 0x23e   : > { %v1133_v49 = vsel %vm1130_vm15, %v1106_v44, %v1118_v27  ;;  %v4106_v44 = vld [vmem:[%s4444_s9 + $0xa9] sm:$0x7]  ;;  %3115 = vmatpush.msra.mxu0 %v3082_v7  ;;  %v3077_v27 = vld [vmem:[%s8203_s1 + $0x30] sm:$0xff] }
 0x23f   : > { %v5304_v48 = vrot.slane %v1133_v49, 7  ;;  %v3076_v49 = vld [vmem:[%s8203_s1 + $0x28] sm:$0xff] }
 0x240   : > { %3116 = vmatpush.msra.mxu0 %v3081_v60  ;;  %v3072_v7 = vld [vmem:[%s8203_s1 + $0x8] sm:$0xff] }
 0x241   : > { %v1156_v19 = vsel %vm8085_vm10, %v5307_v33, %v5304_v48  ;;  %v1157_v54 = vsel %vm8017_vm12, %v5307_v33, %v5304_v48  ;;  %vm8020_vm12 = vcmask 1042432   ;;  %v3088_v60 = vld [vmem:[%s8203_s1 + $0x88] sm:$0xff] }
 0x242   : > { %v1158_v52 = vrot.slane %v1157_v54, 1  ;;  %2981 = vst [vmem:[#allocation1 + $0x6] ss:$9 sm:$0xff] %v1156_v19  ;;  %3117 = vmatpush.msra.mxu0 %v3080_v20  ;;  %v3921_v19 = vld [vmem:[%s4444_s9 + $0x121] sm:$0x7]  ;;  %v1092_v20 = vpop.permute.xlu1 %1091 }
 0x243   : > { %1315 = vrot.lane.b32.xlu2 %v3922_v11, %s8080_s30  ;;  %1281 = vrot.lane.b32.xlu0 %v4107_v57, %s8013_s23  ;;  %v3074_v11 = vld [vmem:[%s8203_s1 + $0x18] sm:$0xff]  ;;  %v5380_v57 = vld [vmem:[%s4444_s9 + $0x1c8] sm:$0x7] }
 0x244   : > { %1283 = vrot.lane.b32.xlu1 %v4106_v44, %s8013_s23  ;;  %2983 = vst [vmem:[#allocation1 + $0x7] ss:$9 sm:$0xff] %v1158_v52  ;;  %3118 = vmatpush.msra.mxu0 %v3079_v9  ;;  %v3920_v54 = vld [vmem:[%s4444_s9 + $0x119] sm:$0x7]  ;;  %v3089_v52 = vld [vmem:[%s8203_s1 + $0x90] sm:$0x7] }
 0x245   : > { %v5327_v32 = vpop.permute.xlu2 %1207  ;;  %v223_v44 = vld [vmem:[%s4444_s9 + $0x8] sm:$0x7]  ;;  %4010 = vmatpush.msk.msra.mxu1 %vm8020_vm12, %v3089_v52  ;;  %v3071_v9 = vld [vmem:[%s8203_s1] sm:$0xff]  ;;  %v8213_v52 = vld [vmem:[#allocation11_spill] sm:$0xff]  ;;  %vm8226_vm12 = vcmask 220160   ;;  %s8260_s23 = smov 21  }
 0x246   : > { %3119 = vmatpush.msra.mxu0 %v3078_v24  ;;  %v8209_v24 = vld [vmem:[#allocation10_spill] sm:$0xff] }
 0x247   : > { %3157 = vmatpush.msra.mxu1 %v3088_v60  ;;  %v8214_v60 = vld [vmem:[#allocation12_spill] sm:$0xff] }
 0x248   : > { %3120 = vmatpush.msra.mxu0 %v3077_v27  ;;  %v578_v27 = vsel %vm576_vm0, %v223_v44, %v8209_v24  ;;  %v8215_v24 = vld [vmem:[#allocation13_spill] sm:$0xff] }
 0x24a   : > { %3121 = vmatpush.msra.mxu0 %v3076_v49  ;;  %v8210_v49 = vld [vmem:[#allocation8_spill] sm:$0xff] }
 0x24b   : > { %1327 = vrot.lane.b32.xlu2 %v3925_v2, %s8086_s6  ;;  %1290 = vrot.lane.b32.xlu0 %v4109_v46, %s8088_s25  ;;  %v222_v46 = vld [vmem:[%s4444_s9] sm:$0x7] }
 0x24c   : > { %1292 = vrot.lane.b32.xlu1 %v4108_v15, %s8088_s25  ;;  %3122 = vmatpush.msra.mxu0 %v3075_v40  ;;  %v3087_v15 = vld [vmem:[%s8203_s1 + $0x80] sm:$0xff]  ;;  %v8211_v40 = vld [vmem:[#allocation6_spill] sm:$0xff]  ;;  %s8502_s1 = smov 3  }
 0x24d   : > { %v5347_v1 = vpop.permute.xlu2 %1216  ;;  %3158 = vmatpush.msra.mxu1 %v3087_v15  ;;  %v4113_v15 = vld [vmem:[%s4444_s9 + $0x179] sm:$0x7] }
 0x24e   : > { %3123 = vmatpush.msra.mxu0 %v3074_v11  ;;  %v582_v11 = vsel %vm580_vm1, %v578_v27, %v8211_v40  ;;  %v8218_v40 = vld [vmem:[#allocation16_spill] sm:$0xff] }
 0x250   : > { %3124 = vmatpush.msra.mxu0 %v3073_v6 }
 0x252   : > { %3125 = vmatpush.msra.mxu0 %v3072_v7  ;;  %v586_v7 = vsel %vm584_vm2, %v582_v11, %v8213_v52 }
 0x253   : > { %1339 = vrot.lane.b32.xlu2 %v8207_v29, %s8206_s7  ;;  %1299 = vrot.lane.b32.xlu0 %v4111_v30, %s8018_s26  ;;  %v1090_v29 = vpop.permute.xlu0 %1089  ;;  %v577_v30 = vsel %vm576_vm0, %v222_v46, %v8210_v49  ;;  %v8216_v46 = vld [vmem:[#allocation14_spill] sm:$0xff]  ;;  %v8217_v49 = vld [vmem:[#allocation15_spill] sm:$0xff] }
 0x254   : > { %1301 = vrot.lane.b32.xlu1 %v4110_v55, %s8018_s26  ;;  %3126 = vmatpush.msra.mxu0 %v3071_v9  ;;  %v3924_v55 = vld [vmem:[%s4444_s9 + $0xaa] sm:$0x7]  ;;  %v590_v9 = vsel %vm588_vm3, %v586_v7, %v8215_v24  ;;  %v8221_v24 = vld [vmem:[#allocation20_spill] sm:$0xff]  ;;  %s8257_s26 = smov 18  }
 0x255   : > { %v5361_v36 = vpop.permute.xlu2 %1225 }
 0x25b   : > { %1348 = vrot.lane.b32.xlu2 %v5380_v57, %s8208_s17  ;;  %1311 = vrot.lane.b32.xlu0 %v3920_v54, %s8080_s30  ;;  %v8212_v54 = vld [vmem:[#allocation9_spill] sm:$0xff] }
 0x25c   : > { %1313 = vrot.lane.b32.xlu1 %v3921_v19, %s8080_s30  ;;  %v3923_v19 = vld [vmem:[%s4444_s9 + $0xa2] sm:$0x7]  ;;  %v581_v6 = vsel %vm580_vm1, %v577_v30, %v8212_v54  ;;  %v594_v30 = vsel %vm8022_vm4, %v590_v9, %v8217_v49  ;;  %v8224_v49 = vld [vmem:[#allocation24_spill] sm:$0xff] }
 0x25d   : > { %v5392_v2 = vpop.permute.xlu2 %1234  ;;  %v585_v44 = vsel %vm584_vm2, %v581_v6, %v8214_v60  ;;  %v8219_v54 = vld [vmem:[#allocation17_spill] sm:$0xff]  ;;  %v8220_v60 = vld [vmem:[#allocation18_spill] sm:$0xff] }
 0x25e   : > { %v589_v27 = vsel %vm588_vm3, %v585_v44, %v8216_v46  ;;  %v598_v6 = vsel %vm8026_vm5, %v594_v30, %v8219_v54  ;;  %v8222_v9 = vld [vmem:[#allocation21_spill] sm:$0xff]  ;;  %v8223_v46 = vld [vmem:[#allocation23_spill] sm:$0xff] }
 0x25f   : > { %v593_v11 = vsel %vm8022_vm4, %v589_v27, %v8218_v40  ;;  %v602_v44 = vsel %vm8025_vm6, %v598_v6, %v8221_v24  ;;  %v8225_v40 = vld [vmem:[#allocation26_spill] sm:$0xff]  ;;  %vm8228_vm4 = vmmov %vm8226_vm12  ;;  %8278 = vst [vmem:[#allocation23_spill] sm:$0xff] %v5622_v62 }
 0x260   : > { %v606_v27 = vsel %vm8027_vm7, %v602_v44, %v8223_v46  ;;  %v8230_v6 = vld [vmem:[#allocation30_spill] sm:$0xff]  ;;  %v8235_v46 = vld [vmem:[#allocation35_spill] sm:$0xff] }
 0x261   : > { %v610_v54 = vsel %vm8226_vm12, %v606_v27, %v8225_v40  ;;  %vm8240_vm12 = vcmask 318464   ;;  %8283 = vst [vmem:[#allocation30_spill] sm:$0xff] %v5647_v63 }
 0x262   : > { %8286 = vst [vmem:[#allocation35_spill] sm:$0xff] %v5664_v3 }
 0x263   : > { %1402 = vrot.lane.b32.xlu2 %v4113_v15, %s8096_s11  ;;  %1323 = vrot.lane.b32.xlu0 %v3923_v19, %s8086_s6 }
 0x264   : > { %1325 = vrot.lane.b32.xlu1 %v3924_v55, %s8086_s6  ;;  %v597_v55 = vsel %vm8026_vm5, %v593_v11, %v8220_v60  ;;  %v8229_v11 = vld [vmem:[#allocation29_spill] sm:$0xff] }
 0x265   : > { %v5429_v52 = vpop.permute.xlu2 %1246  ;;  %v1102_v15 = vpop.permute.xlu0 %1101  ;;  %v601_v19 = vsel %vm8025_vm6, %v597_v55, %v8222_v9  ;;  %v614_v60 = vsel %vm612_vm9, %v610_v54, %v8229_v11  ;;  %vm8232_vm6 = vcmask 269312   ;;  %v8233_v9 = vld [vmem:[#allocation33_spill] sm:$0xff]  ;;  %v8243_v54 = vld [vmem:[#allocation39_spill] sm:$0xff] }
 0x266   : > { %v1104_v7 = vpop.permute.xlu1 %1103  ;;  %v605_v30 = vsel %vm8027_vm7, %v601_v19, %v8224_v49  ;;  %v618_v55 = vsel %vm8232_vm6, %v614_v60, %v8231_v0  ;;  %vm8234_vm5 = vmmov %vm8232_vm6  ;;  %vm8236_vm7 = vcmask 293888   ;;  %v4114_v49 = vld [vmem:[%s4444_s9 + $0x1a1] sm:$0x7]  ;;  %v8241_v0 = vld [vmem:[#allocation38_spill] sm:$0xff]  ;;  %vm8084_vm6 = vcmask 1042434  }
 0x267   : > { %v609_v59 = vsel %vm8228_vm4, %v605_v30, %v8227_v53  ;;  %v622_v19 = vsel %vm8236_vm7, %v618_v55, %v8235_v46  ;;  %v8237_v53 = vld [vmem:[#allocation36_spill] sm:$0xff]  ;;  %vm8238_vm4 = vmmov %vm8236_vm7  ;;  %v8239_v30 = vld [vmem:[#allocation37_spill] sm:$0xff]  ;;  %vm8247_vm7 = vcmask 1041409  }
 0x268   : > { %v613_v24 = vsel %vm612_vm9, %v609_v59, %v8230_v6  ;;  %v626_v59 = vsel %vm8240_vm12, %v622_v19, %v8239_v30  ;;  %v8245_v55 = vld [vmem:[#allocation41_spill] sm:$0xff] }
 0x269   : > { %v617_v44 = vsel %vm8234_vm5, %v613_v24, %v8233_v9  ;;  %vm8242_vm5 = vmmov %vm8240_vm12  ;;  %v630_v11 = vsel %vm628_vm13, %v626_v59, %v8243_v54  ;;  %vm8083_vm12 = vcmask 154624  }
 0x26a   : > { %v621_v27 = vsel %vm8238_vm4, %v617_v44, %v8237_v53  ;;  %v634_v9 = vsel %vm632_vm14, %v630_v11, %v8245_v55  ;;  %vm8248_vm4 = vmmov %vm8247_vm7 }
 0x26b   : > { %1411 = vrot.lane.b32.xlu2 %v4114_v49, %s8092_s10  ;;  %1335 = vrot.lane.b32.xlu0 %v4928_v21, %s8206_s7  ;;  %v625_v40 = vsel %vm8242_vm5, %v621_v27, %v8241_v0  ;;  %v8246_v21 = vld [vmem:[#allocation42_spill] sm:$0xff]  ;;  %v1124_v49 = vsel %vm8091_vm8, %v634_v9, %v1092_v20  ;;  %vm8309_vm5 = vcmask 121856  }
 0x26c   : > { %1337 = vrot.lane.b32.xlu1 %v4924_v38, %s8206_s7  ;;  %v8244_v38 = vld [vmem:[#allocation40_spill] sm:$0xff]  ;;  %v1128_v59 = vsel %vm8090_vm11, %v1124_v49, %v1104_v7 }
 0x26d   : > { %v5469_v60 = vpop.permute.xlu2 %1258  ;;  %v629_v24 = vsel %vm628_vm13, %v625_v40, %v8244_v38  ;;  %v1114_v46 = vpop.permute.xlu0 %1113  ;;  %v3928_v40 = vld [vmem:[%s4444_s9 + $0x1c9] sm:$0x7] }
 0x26e   : > { %v1116_v6 = vpop.permute.xlu1 %1115  ;;  %v633_v19 = vsel %vm632_vm14, %v629_v24, %v8246_v21  ;;  %v1131_v27 = vsel %vm1130_vm15, %v1102_v15, %v1114_v46  ;;  %v5497_v46 = vld [vmem:[%s4444_s9 + $0x1b8] sm:$0x7] }
 0x26f   : > { %v1132_v44 = vsel %vm1130_vm15, %v1104_v7, %v1116_v6  ;;  %v1123_v30 = vsel %vm8091_vm8, %v633_v19, %v1090_v29  ;;  %v1140_v0 = vrot.slane %v1131_v27, 7  ;;  %v1159_v27 = vsel %vm8084_vm6, %v5307_v33, %v5304_v48 }
 0x270   : > { %v1141_v53 = vrot.slane %v1132_v44, 7  ;;  %v1127_v54 = vsel %vm8090_vm11, %v1123_v30, %v1102_v15  ;;  %v5492_v15 = vld [vmem:[%s4444_s9 + $0x1c0] sm:$0x7]  ;;  %v4117_v30 = vld [vmem:[%s4444_s9 + $0x171] sm:$0x7]  ;;  %vm8355_vm11 = vcmask 195584  }
 0x271   : > { %v1144_v29 = vsel %vm8085_vm10, %v1127_v54, %v1140_v0  ;;  %v1146_v55 = vsel %vm8248_vm4, %v1127_v54, %v1140_v0  ;;  %v1149_v9 = vsel %vm8084_vm6, %v1127_v54, %v1140_v0  ;;  %v1160_v0 = vrot.slane %v1159_v27, 2  ;;  %vm8356_vm8 = vmmov %vm8355_vm11 }
 0x272   : > { %v1151_v11 = vsel %vm8085_vm10, %v1128_v59, %v1141_v53  ;;  %v1152_v6 = vsel %vm8247_vm7, %v1128_v59, %v1141_v53  ;;  %v1154_v20 = vsel %vm8084_vm6, %v1128_v59, %v1141_v53  ;;  %v1147_v7 = vrot.slane %v1146_v55, 1  ;;  %2969 = vst [vmem:[#allocation1] ss:$9 sm:$0xff] %v1144_v29  ;;  %v3931_v53 = vld [vmem:[%s4444_s9 + $0x152] sm:$0x7] }
 0x273   : > { %v1153_v38 = vrot.slane %v1152_v6, 1  ;;  %v1155_v24 = vrot.slane %v1154_v20, 2  ;;  %2975 = vst [vmem:[#allocation1 + $0x3] ss:$9 sm:$0xff] %v1151_v11  ;;  %1423 = vrot.lane.b32.xlu2 %v3928_v40, %s8094_s12  ;;  %v1150_v44 = vrot.slane %v1149_v9, 2  ;;  %1344 = vrot.lane.b32.xlu0 %v5497_v46, %s8208_s17  ;;  %vm8311_vm7 = vcmask 146432  }
 0x274   : > { %1346 = vrot.lane.b32.xlu1 %v5492_v15, %s8208_s17  ;;  %2971 = vst [vmem:[#allocation1 + $0x1] ss:$9 sm:$0xff] %v1147_v7  ;;  %v4118_v59 = vld [vmem:[%s4444_s9 + $0x169] sm:$0x7]  ;;  %v4119_v6 = vld [vmem:[%s4444_s9 + $0x240] sm:$0x7] }
 0x275   : > { %2977 = vst [vmem:[#allocation1 + $0x4] ss:$9 sm:$0xff] %v1153_v38  ;;  %v5501_v21 = vpop.permute.xlu2 %1267  ;;  %v5505_v49 = vpop.permute.xlu0 %1203  ;;  %v4120_v20 = vld [vmem:[%s4444_s9 + $0x199] sm:$0x7]  ;;  %v4121_v38 = vld [vmem:[%s4444_s9 + $0x191] sm:$0x7] }
 0x276   : > { %2979 = vst [vmem:[#allocation1 + $0x5] ss:$9 sm:$0xff] %v1155_v24  ;;  %v5503_v19 = vpop.permute.xlu1 %1205  ;;  %v3927_v7 = vld [vmem:[%s4444_s9 + $0x1c1] sm:$0x7]  ;;  %v3926_v9 = vld [vmem:[%s4444_s9 + $0x1b9] sm:$0x7] }
 0x277   : > { %8249 = vst [vmem:[#allocation19_spill] sm:$0xff] %v5503_v19  ;;  %v5847_v19 = vld [vmem:[%s4444_s9 + $0x151] sm:$0x7]  ;;  %vm8312_vm4 = vcmask 171008   ;;  %vm8327_vm6 = vcmask 171008  }
 0x278   : > { %8250 = vst [vmem:[#allocation22_spill] sm:$0xff] %v5505_v49  ;;  %vm8328_vm10 = vmmov %vm8327_vm6 }
 0x279   : > { %2973 = vst [vmem:[#allocation1 + $0x2] ss:$9 sm:$0xff] %v1150_v44  ;;  %v4122_v44 = vld [vmem:[%s4444_s9 + $0x268] sm:$0x7] }
 0x27b   : > { %1435 = vrot.lane.b32.xlu2 %v3931_v53, %s8251_s15  ;;  %1398 = vrot.lane.b32.xlu0 %v4118_v59, %s8096_s11  ;;  %v3930_v59 = vld [vmem:[%s4444_s9 + $0x14a] sm:$0x7] }
 0x27c   : > { %1400 = vrot.lane.b32.xlu1 %v4117_v30, %s8096_s11 }
 0x27d   : > { %v5516_v40 = vpop.permute.xlu2 %1276  ;;  %v5520_v33 = vpop.permute.xlu0 %1212 }
 0x27e   : > { %v5518_v54 = vpop.permute.xlu1 %1214  ;;  %8253 = vst [vmem:[#allocation7_spill] sm:$0xff] %v5520_v33  ;;  %v3944_v33 = vld [vmem:[%s4444_s9 + $0x121] sm:$0x7] }
 0x27f   : > { %8252 = vst [vmem:[#allocation25_spill] sm:$0xff] %v5518_v54  ;;  %v5836_v54 = vld [vmem:[%s4444_s9 + $0x1d0] sm:$0x7] }
 0x280   : > { %v2984_v11 = vld [vmem:[#allocation1] sm:$0xff]  ;;  %v2985_v48 = vld [vmem:[#allocation1 + $0x9] sm:$0xff]  ;;  %8306 = vst [vmem:[#allocation110_spill] sm:$0xff] %v5836_v54 }
 0x281   : > { %2986 = vst [vmem:[#allocation1] ss:$9 sm:$0xff] %v1160_v0  ;;  %3127 = vmatmul.f32.vlgmr.msra.gmra.mxu0 %v2984_v11  ;;  %4011 = vmatmul.msk.f32.vlgmr.msra.gmra.mxu1 %vm8083_vm12, %v2985_v48  ;;  %v3929_v0 = vld [vmem:[%s4444_s9 + $0x142] sm:$0x7]  ;;  %v4123_v11 = vld [vmem:[%s4444_s9 + $0x1f1] sm:$0x7] }
 0x283   : > { %1444 = vrot.lane.b32.xlu2 %v4119_v6, %s8254_s13  ;;  %1407 = vrot.lane.b32.xlu0 %v4121_v38, %s8092_s10  ;;  %v4124_v38 = vld [vmem:[%s4444_s9 + $0x219] sm:$0x7] }
 0x284   : > { %1409 = vrot.lane.b32.xlu1 %v4120_v20, %s8092_s10 }
 0x285   : > { %v5529_v24 = vpop.permute.xlu2 %1285  ;;  %v5533_v55 = vpop.permute.xlu0 %1221 }
 0x286   : > { %v5531_v29 = vpop.permute.xlu1 %1223  ;;  %8256 = vst [vmem:[#allocation31_spill] sm:$0xff] %v5533_v55 }
 0x287   : > { %8255 = vst [vmem:[#allocation28_spill] sm:$0xff] %v5531_v29 }
 0x28b   : > { %1453 = vrot.lane.b32.xlu2 %v4122_v44, %s8257_s26  ;;  %1419 = vrot.lane.b32.xlu0 %v3926_v9, %s8094_s12  ;;  %v4126_v9 = vld [vmem:[%s4444_s9 + $0x230] sm:$0x7] }
 0x28c   : > { %1421 = vrot.lane.b32.xlu1 %v3927_v7, %s8094_s12  ;;  %v4125_v7 = vld [vmem:[%s4444_s9 + $0x238] sm:$0x7] }
 0x28d   : > { %v5541_v53 = vpop.permute.xlu2 %1294  ;;  %v5545_v30 = vpop.permute.xlu0 %1230 }
 0x28e   : > { %v5543_v27 = vpop.permute.xlu1 %1232  ;;  %8259 = vst [vmem:[#allocation59_spill] sm:$0xff] %v5545_v30 }
 0x28f   : > { %8258 = vst [vmem:[#allocation34_spill] sm:$0xff] %v5543_v27  ;;  %v5820_v27 = vld [vmem:[%s4444_s9 + $0x101] sm:$0x7] }
 0x290   : > { %8304 = vst [vmem:[#allocation108_spill] sm:$0xff] %v5820_v27 }
 0x293   : > { %1462 = vrot.lane.b32.xlu2 %v4123_v11, %s8260_s23  ;;  %1431 = vrot.lane.b32.xlu0 %v3929_v0, %s8251_s15  ;;  %v4127_v11 = vld [vmem:[%s4444_s9 + $0x241] sm:$0x7] }
 0x294   : > { %1433 = vrot.lane.b32.xlu1 %v3930_v59, %s8251_s15 }
 0x295   : > { %v5553_v48 = vpop.permute.xlu2 %1303  ;;  %v5557_v20 = vpop.permute.xlu0 %1242 }
 0x296   : > { %v5555_v6 = vpop.permute.xlu1 %1244  ;;  %8262 = vst [vmem:[#allocation8_spill] sm:$0xff] %v5557_v20  ;;  %v5802_v20 = vld [vmem:[%s4444_s9 + $0xd9] sm:$0x7] }
 0x297   : > { %8261 = vst [vmem:[#allocation10_spill] sm:$0xff] %v5555_v6 }
 0x298   : > { %8302 = vst [vmem:[#allocation106_spill] sm:$0xff] %v5802_v20 }
 0x29b   : > { %1471 = vrot.lane.b32.xlu2 %v4124_v38, %s8263_s8  ;;  %1440 = vrot.lane.b32.xlu0 %v4126_v9, %s8254_s13  ;;  %v4129_v38 = vld [vmem:[%s4444_s9 + $0x258] sm:$0x7] }
 0x29c   : > { %1442 = vrot.lane.b32.xlu1 %v4125_v7, %s8254_s13 }
 0x29d   : > { %v5565_v44 = vpop.permute.xlu2 %1315  ;;  %v5569_v0 = vpop.permute.xlu0 %1254 }
 0x29e   : > { %v5567_v59 = vpop.permute.xlu1 %1256  ;;  %8265 = vst [vmem:[#allocation9_spill] sm:$0xff] %v5569_v0 }
 0x29f   : > { %8264 = vst [vmem:[#allocation6_spill] sm:$0xff] %v5567_v59 }
 0x2a3   : > { %1480 = vrot.lane.b32.xlu2 %v4127_v11, %s8266_s16  ;;  %1449 = vrot.lane.b32.xlu0 %v4129_v38, %s8257_s26  ;;  %v4131_v11 = vld [vmem:[%s4444_s9 + $0x1e1] sm:$0x7] }
 0x2a4   : > { %1451 = vrot.lane.b32.xlu1 %v4128_v34, %s8257_s26 }
 0x2a5   : > { %v5577_v7 = vpop.permute.xlu2 %1327  ;;  %v5581_v50 = vpop.permute.xlu0 %1263 }
 0x2a6   : > { %v5579_v9 = vpop.permute.xlu1 %1265  ;;  %8268 = vst [vmem:[#allocation12_spill] sm:$0xff] %v5581_v50 }
 0x2a7   : > { %8267 = vst [vmem:[#allocation11_spill] sm:$0xff] %v5579_v9  ;;  %v5784_v9 = vld [vmem:[%s4444_s9 + $0xb1] sm:$0x7] }
 0x2a8   : > { %8300 = vst [vmem:[#allocation104_spill] sm:$0xff] %v5784_v9 }
 0x2ab   : > { %1492 = vrot.lane.b32.xlu2 %v3934_v10, %s8088_s25  ;;  %1458 = vrot.lane.b32.xlu0 %v4131_v11, %s8260_s23 }
 0x2ac   : > { %1460 = vrot.lane.b32.xlu1 %v4130_v51, %s8260_s23  ;;  %v4133_v51 = vld [vmem:[%s4444_s9 + $0x209] sm:$0x7] }
 0x2ad   : > { %v5589_v34 = vpop.permute.xlu2 %1339  ;;  %v5593_v23 = vpop.permute.xlu0 %1272 }
 0x2ae   : > { %8269 = vst [vmem:[#allocation13_spill] sm:$0xff] %v5589_v34  ;;  %v5591_v38 = vpop.permute.xlu1 %1274 }
 0x2af   : > { %8270 = vst [vmem:[#allocation14_spill] sm:$0xff] %v5591_v38 }
 0x2b0   : > { %8271 = vst [vmem:[#allocation15_spill] sm:$0xff] %v5593_v23 }
 0x2b3   : > { %1504 = vrot.lane.b32.xlu2 %v3937_v43, %s8272_s14  ;;  %1467 = vrot.lane.b32.xlu0 %v4133_v51, %s8263_s8 }
 0x2b4   : > { %1469 = vrot.lane.b32.xlu1 %v4132_v4, %s8263_s8  ;;  %v4136_v4 = vld [vmem:[%s4444_s9 + $0x231] sm:$0x7] }
 0x2b5   : > { %v5601_v10 = vpop.permute.xlu2 %1348  ;;  %v5605_v61 = vpop.permute.xlu0 %1281 }
 0x2b6   : > { %8273 = vst [vmem:[#allocation16_spill] sm:$0xff] %v5601_v10  ;;  %v5603_v11 = vpop.permute.xlu1 %1283 }
 0x2b7   : > { %8274 = vst [vmem:[#allocation17_spill] sm:$0xff] %v5603_v11  ;;  %v5766_v11 = vld [vmem:[%s4444_s9 + $0x128] sm:$0x7] }
 0x2b8   : > { %8275 = vst [vmem:[#allocation18_spill] sm:$0xff] %v5605_v61 }
 0x2b9   : > { %8298 = vst [vmem:[#allocation102_spill] sm:$0xff] %v5766_v11 }
 0x2bb   : > { %1513 = vrot.lane.b32.xlu2 %v4134_v5, %s8080_s30  ;;  %1476 = vrot.lane.b32.xlu0 %v4136_v4, %s8266_s16 }
 0x2bc   : > { %1478 = vrot.lane.b32.xlu1 %v4135_v31, %s8266_s16 }
 0x2bd   : > { %v5613_v43 = vpop.permute.xlu2 %1402  ;;  %v5617_v39 = vpop.permute.xlu0 %1290 }
 0x2be   : > { %v5615_v51 = vpop.permute.xlu1 %1292  ;;  %8277 = vst [vmem:[#allocation21_spill] sm:$0xff] %v5617_v39  ;;  %v5743_v39 = vld [vmem:[%s4444_s9 + $0xe1] sm:$0x7] }
 0x2bf   : > { %8276 = vst [vmem:[#allocation20_spill] sm:$0xff] %v5615_v51  ;;  %v5748_v51 = vld [vmem:[%s4444_s9 + $0x100] sm:$0x7] }
 0x2c0   : > { %8295 = vst [vmem:[#allocation99_spill] sm:$0xff] %v5743_v39 }
 0x2c1   : > { %8296 = vst [vmem:[#allocation100_spill] sm:$0xff] %v5748_v51 }
 0x2c3   : > { %1522 = vrot.lane.b32.xlu2 %v5622_v62, %s8086_s6  ;;  %1488 = vrot.lane.b32.xlu0 %v3932_v35, %s8088_s25  ;;  %v1550_v62 = vsel %vm576_vm0, %v5847_v19, %v5613_v43 }
 0x2c4   : > { %1490 = vrot.lane.b32.xlu1 %v3933_v58, %s8088_s25 }
 0x2c5   : > { %v5628_v5 = vpop.permute.xlu2 %1411  ;;  %v5632_v4 = vpop.permute.xlu0 %1299 }
 0x2c6   : > { %v5630_v31 = vpop.permute.xlu1 %1301  ;;  %8280 = vst [vmem:[#allocation26_spill] sm:$0xff] %v5632_v4  ;;  %v5729_v4 = vld [vmem:[%s4444_s9 + $0xa] sm:$0x7] }
 0x2c7   : > { %8279 = vst [vmem:[#allocation24_spill] sm:$0xff] %v5630_v31  ;;  %v4147_v31 = vld [vmem:[%s4444_s9 + $0xb9] sm:$0x7] }
 0x2c8   : > { %8294 = vst [vmem:[#allocation98_spill] sm:$0xff] %v5729_v4 }
 0x2cb   : > { %1534 = vrot.lane.b32.xlu2 %v5061_v37, %s8206_s7  ;;  %1500 = vrot.lane.b32.xlu0 %v3935_v47, %s8272_s14 }
 0x2cc   : > { %1502 = vrot.lane.b32.xlu1 %v3936_v13, %s8272_s14  ;;  %v4140_v13 = vld [vmem:[%s4444_s9 + $0x58] sm:$0x7] }
 0x2cd   : > { %v5640_v58 = vpop.permute.xlu2 %1423  ;;  %v5644_v8 = vpop.permute.xlu0 %1311 }
 0x2ce   : > { %v5642_v35 = vpop.permute.xlu1 %1313  ;;  %8282 = vst [vmem:[#allocation29_spill] sm:$0xff] %v5644_v8 }
 0x2cf   : > { %8281 = vst [vmem:[#allocation27_spill] sm:$0xff] %v5642_v35  ;;  %v3942_v35 = vld [vmem:[%s4444_s9 + $0x12] sm:$0x7] }
 0x2d3   : > { %1543 = vrot.lane.b32.xlu2 %v5647_v63, %s8208_s17  ;;  %1509 = vrot.lane.b32.xlu0 %v4140_v13, %s8080_s30 }
 0x2d4   : > { %1511 = vrot.lane.b32.xlu1 %v4139_v42, %s8080_s30  ;;  %v5669_v42 = vld [vmem:[%s4444_s9 + $0x80] sm:$0x7] }
 0x2d5   : > { %v5655_v37 = vpop.permute.xlu2 %1435  ;;  %v5659_v56 = vpop.permute.xlu0 %1323 }
 0x2d6   : > { %v5657_v47 = vpop.permute.xlu1 %1325  ;;  %8285 = vst [vmem:[#allocation33_spill] sm:$0xff] %v5659_v56  ;;  %v4146_v56 = vld [vmem:[%s4444_s9 + $0x130] sm:$0x7] }
 0x2d7   : > { %8284 = vst [vmem:[#allocation32_spill] sm:$0xff] %v5657_v47 }
 0x2db   : > { %1600 = vrot.lane.b32.xlu2 %v3940_v17, %s8096_s11  ;;  %1518 = vrot.lane.b32.xlu0 %v5669_v42, %s8086_s6 }
 0x2dc   : > { %1520 = vrot.lane.b32.xlu1 %v5664_v3, %s8086_s6 }
 0x2dd   : > { %v5673_v13 = vpop.permute.xlu2 %1444  ;;  %v5677_v45 = vpop.permute.xlu0 %1335 }
 0x2de   : > { %v5675_v12 = vpop.permute.xlu1 %1337  ;;  %8288 = vst [vmem:[#allocation37_spill] sm:$0xff] %v5677_v45  ;;  %v5714_v45 = vld [vmem:[%s4444_s9 + $0x81] sm:$0x7] }
 0x2df   : > { %8287 = vst [vmem:[#allocation36_spill] sm:$0xff] %v5675_v12  ;;  %v5692_v12 = vld [vmem:[%s4444_s9 + $0x108] sm:$0x7] }
 0x2e0   : > { %8291 = vst [vmem:[#allocation40_spill] sm:$0xff] %v5692_v12 }
 0x2e1   : > { %8293 = vst [vmem:[#allocation42_spill] sm:$0xff] %v5714_v45 }
 0x2e3   : > { %1612 = vrot.lane.b32.xlu2 %v3943_v28, %s8092_s10  ;;  %1530 = vrot.lane.b32.xlu0 %v5124_v14, %s8206_s7  ;;  %v5697_v28 = vld [vmem:[%s4444_s9 + $0x39] sm:$0x7] }
 0x2e4   : > { %1532 = vrot.lane.b32.xlu1 %v5119_v16, %s8206_s7  ;;  %v5702_v16 = vld [vmem:[%s4444_s9 + $0x31] sm:$0x7] }
 0x2e5   : > { %v5685_v17 = vpop.permute.xlu2 %1453  ;;  %v5689_v41 = vpop.permute.xlu0 %1344  ;;  %8292 = vst [vmem:[#allocation41_spill] sm:$0xff] %v5702_v16 }
 0x2e6   : > { %v5687_v25 = vpop.permute.xlu1 %1346  ;;  %8290 = vst [vmem:[#allocation39_spill] sm:$0xff] %v5689_v41 }
 0x2e7   : > { %8289 = vst [vmem:[#allocation38_spill] sm:$0xff] %v5687_v25 }
 0x2eb   : > { %1621 = vrot.lane.b32.xlu2 %v5692_v12, %s8094_s12  ;;  %1539 = vrot.lane.b32.xlu0 %v5702_v16, %s8208_s17  ;;  %v3939_v12 = vld [vmem:[%s4444_s9 + $0x89] sm:$0x7]  ;;  %v3948_v16 = vld [vmem:[%s4444_s9 + $0xb2] sm:$0x7] }
 0x2ec   : > { %1541 = vrot.lane.b32.xlu1 %v5697_v28, %s8208_s17 }
 0x2ed   : > { %v5706_v14 = vpop.permute.xlu2 %1462  ;;  %v5710_v25 = vpop.permute.xlu0 %1398 }
 0x2ee   : > { %v5708_v41 = vpop.permute.xlu1 %1400 }
 0x2f3   : > { %1630 = vrot.lane.b32.xlu2 %v4146_v56, %s8251_s15  ;;  %1596 = vrot.lane.b32.xlu0 %v5714_v45, %s8096_s11 }
 0x2f4   : > { %1598 = vrot.lane.b32.xlu1 %v3939_v12, %s8096_s11 }
 0x2f5   : > { %v5721_v47 = vpop.permute.xlu2 %1471  ;;  %v5725_v63 = vpop.permute.xlu0 %1407 }
 0x2f6   : > { %v5723_v8 = vpop.permute.xlu1 %1409 }
 0x2fb   : > { %1639 = vrot.lane.b32.xlu2 %v4147_v31, %s8254_s13  ;;  %1608 = vrot.lane.b32.xlu0 %v5729_v4, %s8092_s10  ;;  %v5753_v31 = vld [vmem:[%s4444_s9 + $0xf8] sm:$0x7] }
 0x2fc   : > { %1610 = vrot.lane.b32.xlu1 %v3942_v35, %s8092_s10  ;;  %8297 = vst [vmem:[#allocation101_spill] sm:$0xff] %v5753_v31 }
 0x2fd   : > { %v5736_v12 = vpop.permute.xlu2 %1480  ;;  %v5740_v45 = vpop.permute.xlu0 %1419 }
 0x2fe   : > { %v5738_v56 = vpop.permute.xlu1 %1421 }
 0x303   : > { %1648 = vrot.lane.b32.xlu2 %v5743_v39, %s8257_s26  ;;  %1617 = vrot.lane.b32.xlu0 %v5753_v31, %s8094_s12  ;;  %v4151_v39 = vld [vmem:[%s4444_s9 + $0x109] sm:$0x7] }
 0x304   : > { %1619 = vrot.lane.b32.xlu1 %v5748_v51, %s8094_s12  ;;  %v5771_v51 = vld [vmem:[%s4444_s9 + $0x120] sm:$0x7]  ;;  %v3947_v31 = vld [vmem:[%s4444_s9 + $0xaa] sm:$0x7] }
 0x305   : > { %v5757_v35 = vpop.permute.xlu2 %1492  ;;  %v5761_v61 = vpop.permute.xlu0 %1431  ;;  %8299 = vst [vmem:[#allocation103_spill] sm:$0xff] %v5771_v51 }
 0x306   : > { %v5759_v4 = vpop.permute.xlu1 %1433 }
 0x30b   : > { %1657 = vrot.lane.b32.xlu2 %v4151_v39, %s8260_s23  ;;  %1626 = vrot.lane.b32.xlu0 %v5771_v51, %s8251_s15  ;;  %v3946_v39 = vld [vmem:[%s4444_s9 + $0x131] sm:$0x7] }
 0x30c   : > { %1628 = vrot.lane.b32.xlu1 %v5766_v11, %s8251_s15  ;;  %v5789_v11 = vld [vmem:[%s4444_s9 + $0xa9] sm:$0x7] }
 0x30d   : > { %v5775_v23 = vpop.permute.xlu2 %1504  ;;  %v5779_v50 = vpop.permute.xlu0 %1440  ;;  %8301 = vst [vmem:[#allocation105_spill] sm:$0xff] %v5789_v11 }
 0x30e   : > { %v5777_v38 = vpop.permute.xlu1 %1442 }
 0x313   : > { %1669 = vrot.lane.b32.xlu2 %v3946_v39, %s8263_s8  ;;  %1635 = vrot.lane.b32.xlu0 %v5789_v11, %s8254_s13  ;;  %v3949_v39 = vld [vmem:[%s4444_s9 + $0xba] sm:$0x7] }
 0x314   : > { %1637 = vrot.lane.b32.xlu1 %v5784_v9, %s8254_s13  ;;  %v5807_v9 = vld [vmem:[%s4444_s9 + $0xd1] sm:$0x7] }
 0x315   : > { %v5793_v51 = vpop.permute.xlu2 %1513  ;;  %v5797_v59 = vpop.permute.xlu0 %1449  ;;  %8303 = vst [vmem:[#allocation107_spill] sm:$0xff] %v5807_v9 }
 0x316   : > { %v5795_v0 = vpop.permute.xlu1 %1451 }
 0x31b   : > { %1681 = vrot.lane.b32.xlu2 %v3949_v39, %s8266_s16  ;;  %1644 = vrot.lane.b32.xlu0 %v5807_v9, %s8257_s26  ;;  %v4158_v39 = vld [vmem:[%s4444_s9 + $0x1a8] sm:$0x7] }
 0x31c   : > { %1646 = vrot.lane.b32.xlu1 %v5802_v20, %s8257_s26  ;;  %v5825_v20 = vld [vmem:[%s4444_s9 + $0xf9] sm:$0x7] }
 0x31d   : > { %v5811_v11 = vpop.permute.xlu2 %1522  ;;  %v5815_v30 = vpop.permute.xlu0 %1458  ;;  %8305 = vst [vmem:[#allocation109_spill] sm:$0xff] %v5825_v20 }
 0x31e   : > { %v5813_v6 = vpop.permute.xlu1 %1460 }
 0x323   : > { %1690 = vrot.lane.b32.xlu2 %v4158_v39, %s8088_s25  ;;  %1653 = vrot.lane.b32.xlu0 %v5825_v20, %s8260_s23  ;;  %v3945_v39 = vld [vmem:[%s4444_s9 + $0x129] sm:$0x7] }
 0x324   : > { %1655 = vrot.lane.b32.xlu1 %v5820_v27, %s8260_s23 }
 0x325   : > { %v1535_v9 = vpop.permute.xlu2 %1534  ;;  %v5831_v29 = vpop.permute.xlu0 %1467 }
 0x326   : > { %v5829_v55 = vpop.permute.xlu1 %1469 }
 0x32b   : > { %1699 = vrot.lane.b32.xlu2 %v5836_v54, %s8272_s14  ;;  %1665 = vrot.lane.b32.xlu0 %v3944_v33, %s8263_s8  ;;  %v4163_v33 = vld [vmem:[%s4444_s9 + $0x159] sm:$0x7] }
 0x32c   : > { %1667 = vrot.lane.b32.xlu1 %v3945_v39, %s8263_s8  ;;  %v1553_v39 = vsel %vm580_vm1, %v1550_v62, %v5628_v5  ;;  %v5871_v5 = vld [vmem:[%s4444_s9 + $0x181] sm:$0x7] }
 0x32d   : > { %v1544_v27 = vpop.permute.xlu2 %1543  ;;  %v5844_v49 = vpop.permute.xlu0 %1476  ;;  %v1556_v43 = vsel %vm584_vm2, %v1553_v39, %v5640_v58  ;;  %8307 = vst [vmem:[#allocation111_spill] sm:$0xff] %v5871_v5 }
 0x32e   : > { %v5842_v20 = vpop.permute.xlu1 %1478  ;;  %v1559_v62 = vsel %vm588_vm3, %v1556_v43, %v5655_v37 }
 0x32f   : > { %v1562_v58 = vsel %vm8309_vm5, %v1559_v62, %v5673_v13  ;;  %v5900_v13 = vld [vmem:[%s4444_s9 + $0x1c8] sm:$0x7]  ;;  %v5905_v62 = vld [vmem:[%s4444_s9 + $0x1c0] sm:$0x7]  ;;  %vm8315_vm5 = vcmask 195584  }
 0x330   : > { %v1565_v43 = vsel %vm8311_vm7, %v1562_v58, %v5685_v17  ;;  %8313 = vst [vmem:[#allocation114_spill] sm:$0xff] %v5900_v13  ;;  %vm8316_vm7 = vcmask 220160  }
 0x331   : > { %8314 = vst [vmem:[#allocation115_spill] sm:$0xff] %v5905_v62 }
 0x333   : > { %1708 = vrot.lane.b32.xlu2 %v4163_v33, %s8080_s30  ;;  %1677 = vrot.lane.b32.xlu0 %v3947_v31, %s8266_s16  ;;  %v5883_v31 = vld [vmem:[%s4444_s9 + $0x198] sm:$0x7] }
 0x334   : > { %1679 = vrot.lane.b32.xlu1 %v3948_v16, %s8266_s16  ;;  %v5876_v16 = vld [vmem:[%s4444_s9 + $0x1a0] sm:$0x7]  ;;  %8310 = vst [vmem:[#allocation113_spill] sm:$0xff] %v5883_v31 }
 0x335   : > { %v5860_v54 = vpop.permute.xlu2 %1600  ;;  %v5866_v10 = vpop.permute.xlu0 %1488  ;;  %8308 = vst [vmem:[#allocation112_spill] sm:$0xff] %v5876_v16 }
 0x336   : > { %v5862_v3 = vpop.permute.xlu1 %1490 }
 0x33b   : > { %1717 = vrot.lane.b32.xlu2 %v5871_v5, %s8086_s6  ;;  %1686 = vrot.lane.b32.xlu0 %v5883_v31, %s8088_s25  ;;  %v5920_v31 = vld [vmem:[%s4444_s9 + $0x1d1] sm:$0x7] }
 0x33c   : > { %1688 = vrot.lane.b32.xlu1 %v5876_v16, %s8088_s25  ;;  %v1568_v16 = vsel %vm8312_vm4, %v1565_v43, %v5706_v14  ;;  %8317 = vst [vmem:[#allocation116_spill] sm:$0xff] %v5920_v31  ;;  %vm8318_vm4 = vcmask 269312   ;;  %s8348_s25 = smov 16  }
 0x33d   : > { %v5887_v37 = vpop.permute.xlu2 %1612  ;;  %v5891_v33 = vpop.permute.xlu0 %1500  ;;  %v1571_v17 = vsel %vm8315_vm5, %v1568_v16, %v5721_v47  ;;  %v4169_v47 = vld [vmem:[%s4444_s9 + $0x151] sm:$0x7]  ;;  %v4170_v16 = vld [vmem:[%s4444_s9 + $0x149] sm:$0x7]  ;;  %vm8319_vm5 = vcmask 293888  }
 0x33e   : > { %v5889_v39 = vpop.permute.xlu1 %1502 }
 0x343   : > { %1726 = vrot.lane.b32.xlu2 %v5116_v22, %s8206_s7  ;;  %1695 = vrot.lane.b32.xlu0 %v5905_v62, %s8272_s14  ;;  %v1574_v22 = vsel %vm8316_vm7, %v1571_v17, %v5736_v12  ;;  %vm8320_vm7 = vcmask 318464  }
 0x344   : > { %1697 = vrot.lane.b32.xlu1 %v5900_v13, %s8272_s14  ;;  %v1577_v13 = vsel %vm612_vm9, %v1574_v22, %v5757_v35 }
 0x345   : > { %v5911_v58 = vpop.permute.xlu2 %1621  ;;  %v5915_v43 = vpop.permute.xlu0 %1509  ;;  %v1580_v12 = vsel %vm8318_vm4, %v1577_v13, %v5775_v23  ;;  %v5947_v23 = vld [vmem:[%s4444_s9 + $0x171] sm:$0x7]  ;;  %vm8323_vm4 = vcmask 121856  }
 0x346   : > { %v5913_v14 = vpop.permute.xlu1 %1511  ;;  %v1583_v35 = vsel %vm8319_vm5, %v1580_v12, %v5793_v51  ;;  %8322 = vst [vmem:[#allocation117_spill] sm:$0xff] %v5947_v23  ;;  %vm8324_vm5 = vmmov %vm8323_vm4 }
 0x347   : > { %v1586_v22 = vsel %vm8320_vm7, %v1583_v35, %v5811_v11  ;;  %vm8325_vm7 = vcmask 146432  }
 0x348   : > { %vm8326_vm12 = vmmov %vm8325_vm7 }
 0x34b   : > { %1738 = vrot.lane.b32.xlu2 %v5920_v31, %s8208_s17  ;;  %1704 = vrot.lane.b32.xlu0 %v4170_v16, %s8080_s30  ;;  %v5942_v16 = vld [vmem:[%s4444_s9 + $0x179] sm:$0x7] }
 0x34c   : > { %1706 = vrot.lane.b32.xlu1 %v4169_v47, %s8080_s30  ;;  %v1589_v47 = vsel %vm628_vm13, %v1586_v22, %v1535_v9  ;;  %s8321_s30 = smov 48  }
 0x34d   : > { %v5930_v62 = vpop.permute.xlu2 %1630  ;;  %v1519_v17 = vpop.permute.xlu0 %1518  ;;  %v1592_v31 = vsel %vm632_vm14, %v1589_v47, %v1544_v27  ;;  %v5956_v27 = vld [vmem:[%s4444_s9 + $0x149] sm:$0x7] }
 0x34e   : > { %v1521_v5 = vpop.permute.xlu1 %1520  ;;  %v1549_v9 = vsel %vm576_vm0, %v5956_v27, %v5708_v41 }
 0x353   : > { %1795 = vrot.lane.b32.xlu2 %v1592_v31, %s8321_s30  ;;  %1713 = vrot.lane.b32.xlu0 %v5947_v23, %s8086_s6  ;;  %v5964_v31 = vld [vmem:[%s4444_s9 + $0x141] sm:$0x7] }
 0x354   : > { %1715 = vrot.lane.b32.xlu1 %v5942_v16, %s8086_s6  ;;  %v1548_v12 = vsel %vm576_vm0, %v5964_v31, %v5710_v25  ;;  %s8347_s6 = smov 96  }
 0x355   : > { %v5951_v51 = vpop.permute.xlu2 %1639  ;;  %v1531_v11 = vpop.permute.xlu0 %1530  ;;  %v1551_v47 = vsel %vm580_vm1, %v1548_v12, %v5725_v63  ;;  %v5991_v12 = vld [vmem:[%s4444_s9 + $0x1c1] sm:$0x7] }
 0x356   : > { %v1533_v13 = vpop.permute.xlu1 %1532 }
 0x35b   : > { %1722 = vrot.lane.b32.xlu0 %v5206_v26, %s8206_s7  ;;  %v1554_v26 = vsel %vm584_vm2, %v1551_v47, %v5740_v45 }
 0x35c   : > { %1724 = vrot.lane.b32.xlu1 %v5203_v18, %s8206_s7  ;;  %v1552_v18 = vsel %vm580_vm1, %v1549_v9, %v5723_v8  ;;  %v1557_v25 = vsel %vm588_vm3, %v1554_v26, %v5761_v61  ;;  %v5984_v9 = vld [vmem:[%s4444_s9 + $0x1c9] sm:$0x7] }
 0x35d   : > { %v1649_v35 = vpop.permute.xlu2 %1648  ;;  %v1555_v41 = vsel %vm584_vm2, %v1552_v18, %v5738_v56  ;;  %v1540_v34 = vpop.permute.xlu0 %1539  ;;  %v1560_v63 = vsel %vm8324_vm5, %v1557_v25, %v5779_v50 }
 0x35e   : > { %v1542_v22 = vpop.permute.xlu1 %1541  ;;  %v1558_v23 = vsel %vm588_vm3, %v1555_v41, %v5759_v4  ;;  %v1563_v45 = vsel %vm8326_vm12, %v1560_v63, %v5797_v59 }
 0x35f   : > { %v1561_v8 = vsel %vm8323_vm4, %v1558_v23, %v5777_v38  ;;  %v1566_v61 = vsel %vm8328_vm10, %v1563_v45, %v5815_v30  ;;  %vm8329_vm4 = vcmask 195584   ;;  %vm8333_vm10 = vcmask 269312  }
 0x360   : > { %v1564_v56 = vsel %vm8325_vm7, %v1561_v8, %v5795_v0  ;;  %vm8330_vm5 = vmmov %vm8329_vm4  ;;  %vm8331_vm7 = vcmask 220160  }
 0x361   : > { %v1567_v4 = vsel %vm8327_vm6, %v1564_v56, %v5813_v6  ;;  %v1569_v50 = vsel %vm8330_vm5, %v1566_v61, %v5831_v29  ;;  %vm8332_vm6 = vmmov %vm8331_vm7 }
 0x362   : > { %v1570_v38 = vsel %vm8329_vm4, %v1567_v4, %v5829_v55  ;;  %v1572_v6 = vsel %vm8332_vm6, %v1569_v50, %v5844_v49  ;;  %vm8334_vm12 = vmmov %vm8333_vm10  ;;  %vm8335_vm4 = vcmask 293888  }
 0x363   : > { %v1573_v0 = vsel %vm8331_vm7, %v1570_v38, %v5842_v20  ;;  %1734 = vrot.lane.b32.xlu0 %v5991_v12, %s8208_s17  ;;  %v1575_v23 = vsel %vm612_vm9, %v1572_v6, %v5866_v10  ;;  %vm8336_vm5 = vmmov %vm8335_vm4  ;;  %vm8337_vm7 = vcmask 318464  }
 0x364   : > { %1736 = vrot.lane.b32.xlu1 %v5984_v9, %s8208_s17  ;;  %v1576_v30 = vsel %vm612_vm9, %v1573_v0, %v5862_v3  ;;  %v1578_v20 = vsel %vm8334_vm12, %v1575_v23, %v5891_v33  ;;  %vm8338_vm6 = vmmov %vm8337_vm7  ;;  %vm8340_vm12 = vcmask 146432  }
 0x365   : > { %v1658_v59 = vpop.permute.xlu2 %1657  ;;  %v1579_v29 = vsel %vm8333_vm10, %v1576_v30, %v5889_v39  ;;  %v6019_v18 = vpop.permute.xlu0 %1596  ;;  %v1581_v3 = vsel %vm8336_vm5, %v1578_v20, %v5915_v43  ;;  %vm8339_vm10 = vcmask 121856   ;;  %vm8342_vm5 = vcmask 195584  }
 0x366   : > { %v6013_v55 = vpop.permute.xlu1 %1598  ;;  %v1582_v49 = vsel %vm8335_vm4, %v1579_v29, %v5913_v14  ;;  %v1584_v41 = vsel %vm8338_vm6, %v1581_v3, %v1519_v17  ;;  %vm8341_vm4 = vcmask 171008   ;;  %vm8344_vm6 = vcmask 269312  }
 0x367   : > { %v1585_v47 = vsel %vm8337_vm7, %v1582_v49, %v1521_v5  ;;  %v1587_v39 = vsel %vm628_vm13, %v1584_v41, %v1531_v11  ;;  %vm8343_vm7 = vcmask 220160  }
 0x368   : > { %v1588_v10 = vsel %vm628_vm13, %v1585_v47, %v1533_v13  ;;  %v1590_v25 = vsel %vm632_vm14, %v1587_v39, %v1540_v34  ;;  %v6036_v13 = vld [vmem:[%s4444_s9 + $0x69] sm:$0x7] }
 0x369   : > { %v1591_v26 = vsel %vm632_vm14, %v1588_v10, %v1542_v22  ;;  %v1745_v11 = vsel %vm576_vm0, %v6036_v13, %v5860_v54 }
 0x36a   : > { %v1748_v61 = vsel %vm580_vm1, %v1745_v11, %v5887_v37  ;;  %v6061_v11 = vld [vmem:[%s4444_s9 + $0x15a] sm:$0x7] }
 0x36b   : > { %1791 = vrot.lane.b32.xlu0 %v1590_v25, %s8321_s30  ;;  %v1751_v38 = vsel %vm584_vm2, %v1748_v61, %v5911_v58 }
 0x36c   : > { %1793 = vrot.lane.b32.xlu1 %v1591_v26, %s8321_s30  ;;  %v1754_v50 = vsel %vm588_vm3, %v1751_v38, %v5930_v62 }
 0x36d   : > { %v1670_v33 = vpop.permute.xlu2 %1669  ;;  %v1609_v43 = vpop.permute.xlu0 %1608  ;;  %v1757_v23 = vsel %vm8339_vm10, %v1754_v50, %v5951_v51  ;;  %vm8345_vm10 = vcmask 293888   ;;  %v4176_v50 = vld [vmem:[%s4444_s9 + $0x178] sm:$0x7] }
 0x36e   : > { %v1611_v14 = vpop.permute.xlu1 %1610  ;;  %v1760_v54 = vsel %vm8340_vm12, %v1757_v23, %v1649_v35  ;;  %vm8346_vm12 = vcmask 318464  }
 0x36f   : > { %v1763_v49 = vsel %vm8341_vm4, %v1760_v54, %v1658_v59  ;;  %v4177_v54 = vld [vmem:[%s4444_s9 + $0x1a0] sm:$0x7]  ;;  %vm8349_vm4 = vcmask 121856  }
 0x370   : > { %v1766_v37 = vsel %vm8342_vm5, %v1763_v49, %v1670_v33  ;;  %vm8350_vm5 = vmmov %vm8349_vm4 }
 0x375   : > { %v1682_v8 = vpop.permute.xlu2 %1681  ;;  %v1618_v63 = vpop.permute.xlu0 %1617 }
 0x376   : > { %v1620_v5 = vpop.permute.xlu1 %1619  ;;  %v1769_v58 = vsel %vm8343_vm7, %v1766_v37, %v1682_v8  ;;  %v6072_v37 = vld [vmem:[%s4444_s9 + $0x61] sm:$0x7]  ;;  %vm8351_vm7 = vcmask 146432  }
 0x37d   : > { %v1691_v17 = vpop.permute.xlu2 %1690  ;;  %v1627_v45 = vpop.permute.xlu0 %1626 }
 0x37e   : > { %v1629_v56 = vpop.permute.xlu1 %1628  ;;  %v1772_v10 = vsel %vm612_vm9, %v1769_v58, %v1691_v17  ;;  %v1744_v58 = vsel %vm576_vm0, %v6072_v37, %v6013_v55 }
 0x385   : > { %v1700_v34 = vpop.permute.xlu2 %1699  ;;  %v1636_v4 = vpop.permute.xlu0 %1635 }
 0x386   : > { %v1638_v22 = vpop.permute.xlu1 %1637  ;;  %v1775_v51 = vsel %vm8344_vm6, %v1772_v10, %v1700_v34  ;;  %vm8352_vm6 = vmmov %vm8351_vm7 }
 0x38d   : > { %v1709_v0 = vpop.permute.xlu2 %1708  ;;  %v1645_v30 = vpop.permute.xlu0 %1644 }
 0x38e   : > { %v1647_v6 = vpop.permute.xlu1 %1646  ;;  %v1778_v35 = vsel %vm8345_vm10, %v1775_v51, %v1709_v0  ;;  %v1747_v51 = vsel %vm580_vm1, %v1744_v58, %v1611_v14  ;;  %vm8353_vm10 = vcmask 171008   ;;  %v4182_v58 = vld [vmem:[%s4444_s9 + $0x60] sm:$0x7] }
 0x395   : > { %v1718_v29 = vpop.permute.xlu2 %1717  ;;  %v1654_v3 = vpop.permute.xlu0 %1653 }
 0x396   : > { %v1656_v20 = vpop.permute.xlu1 %1655  ;;  %v1781_v39 = vsel %vm8346_vm12, %v1778_v35, %v1718_v29  ;;  %vm8354_vm12 = vmmov %vm8353_vm10 }
 0x39d   : > { %v1727_v47 = vpop.permute.xlu2 %1726  ;;  %v1666_v41 = vpop.permute.xlu0 %1665 }
 0x39e   : > { %v1668_v62 = vpop.permute.xlu1 %1667  ;;  %v1784_v59 = vsel %vm628_vm13, %v1781_v39, %v1727_v47  ;;  %v6078_v47 = vld [vmem:[%s4444_s9 + $0x59] sm:$0x7]  ;;  %v1750_v39 = vsel %vm584_vm2, %v1747_v51, %v1620_v5  ;;  %v4183_v51 = vld [vmem:[%s4444_s9 + $0x168] sm:$0x7] }
 0x39f   : > { %v1743_v10 = vsel %vm576_vm0, %v6078_v47, %v6019_v18 }
 0x3a0   : > { %v1746_v35 = vsel %vm580_vm1, %v1743_v10, %v1609_v43  ;;  %v1355_v10 = vsel %vm576_vm0, %v4182_v58, %v5327_v32  ;;  %v4191_v58 = vld [vmem:[%s4444_s9 + $0xb0] sm:$0x7] }
 0x3a5   : > { %v1739_v26 = vpop.permute.xlu2 %1738  ;;  %v1678_v8 = vpop.permute.xlu0 %1677 }
 0x3a6   : > { %v1680_v25 = vpop.permute.xlu1 %1679  ;;  %v1787_v33 = vsel %vm632_vm14, %v1784_v59, %v1739_v26  ;;  %v1753_v59 = vsel %vm588_vm3, %v1750_v39, %v1629_v56 }
 0x3a7   : > { %1807 = vrot.lane.b32.xlu2 %v1787_v33, %s8347_s6  ;;  %v1756_v55 = vsel %vm8349_vm4, %v1753_v59, %v1638_v22  ;;  %vm8357_vm4 = vcmask 220160   ;;  %v4185_v59 = vld [vmem:[%s4444_s9 + $0x190] sm:$0x7] }
 0x3ad   : > { %v1687_v34 = vpop.permute.xlu0 %1686 }
 0x3ae   : > { %v1689_v17 = vpop.permute.xlu1 %1688 }
 0x3af   : > { %1819 = vrot.lane.b32.xlu2 %v6061_v11, %s8348_s25 }
 0x3b5   : > { %v1696_v38 = vpop.permute.xlu0 %1695 }
 0x3b6   : > { %v1698_v61 = vpop.permute.xlu1 %1697 }
 0x3b7   : > { %1911 = vrot.lane.b32.xlu2 %v4176_v50, %s8096_s11  ;;  %v1759_v50 = vsel %vm8351_vm7, %v1756_v55, %v1647_v6  ;;  %vm8359_vm7 = vcmask 269312   ;;  %v8374_v55 = vld [vmem:[#allocation16_spill] sm:$0xff] }
 0x3b8   : > { %v1762_v14 = vsel %vm8353_vm10, %v1759_v50, %v1656_v20 }
 0x3bd   : > { %v1705_v23 = vpop.permute.xlu0 %1704 }
 0x3be   : > { %v1707_v0 = vpop.permute.xlu1 %1706 }
 0x3bf   : > { %1920 = vrot.lane.b32.xlu2 %v4177_v54, %s8092_s10 }
 0x3c5   : > { %v1714_v49 = vpop.permute.xlu0 %1713 }
 0x3c6   : > { %v1716_v29 = vpop.permute.xlu1 %1715 }
 0x3c7   : > { %1929 = vrot.lane.b32.xlu2 %v5380_v57, %s8094_s12  ;;  %v1749_v57 = vsel %vm584_vm2, %v1746_v35, %v1618_v63  ;;  %v1765_v63 = vsel %vm8355_vm11, %v1762_v14, %v1668_v62  ;;  %vm8361_vm11 = vcmask 293888   ;;  %v1358_v35 = vsel %vm580_vm1, %v1355_v10, %v5347_v1  ;;  %v4192_v10 = vld [vmem:[%s4444_s9 + $0xa8] sm:$0x7] }
 0x3c8   : > { %v1752_v26 = vsel %vm588_vm3, %v1749_v57, %v1627_v45  ;;  %v1768_v45 = vsel %vm8357_vm4, %v1765_v63, %v1680_v25  ;;  %vm8362_vm10 = vmmov %vm8361_vm11  ;;  %v1361_v39 = vsel %vm584_vm2, %v1358_v35, %v5361_v36  ;;  %v4184_v57 = vld [vmem:[%s4444_s9 + $0x198] sm:$0x7]  ;;  %v1796_v36 = vpop.permute.xlu2 %1795  ;;  %v6271_v35 = vld [vmem:[%s4444_s9 + $0x268] sm:$0x7] }
 0x3c9   : > { %v1755_v33 = vsel %vm8350_vm5, %v1752_v26, %v1636_v4  ;;  %vm8358_vm5 = vmmov %vm8357_vm4  ;;  %v1771_v4 = vsel %vm612_vm9, %v1768_v45, %v1689_v17  ;;  %v1364_v32 = vsel %vm588_vm3, %v1361_v39, %v5392_v2  ;;  %vm8365_vm4 = vcmask 121856   ;;  %v4186_v63 = vld [vmem:[%s4444_s9 + $0xd8] sm:$0x7]  ;;  %v4194_v39 = vld [vmem:[%s4444_s9 + $0xd0] sm:$0x7] }
 0x3ca   : > { %v1758_v18 = vsel %vm8352_vm6, %v1755_v33, %v1645_v30  ;;  %v1774_v30 = vsel %vm8359_vm7, %v1771_v4, %v1698_v61  ;;  %vm8360_vm6 = vmmov %vm8359_vm7  ;;  %v1367_v26 = vsel %vm8365_vm4, %v1364_v32, %v5429_v52  ;;  %vm8367_vm7 = vcmask 171008   ;;  %v8380_v45 = vld [vmem:[#allocation35_spill] sm:$0xff]  ;;  %v8382_v4 = vld [vmem:[#allocation101_spill] sm:$0xff] }
 0x3cb   : > { %v1761_v5 = vsel %vm8354_vm12, %v1758_v18, %v1654_v3  ;;  %v1777_v3 = vsel %vm8361_vm11, %v1774_v30, %v1707_v0  ;;  %v6118_v0 = vld [vmem:[%s4444_s9 + $0x152] sm:$0x7]  ;;  %vm8369_vm11 = vcmask 220160   ;;  %vm8375_vm4 = vcmask 392192   ;;  %v6204_v18 = vld [vmem:[#allocation1 + $0x9] sm:$0xff] }
 0x3cc   : > { %v1764_v56 = vsel %vm8356_vm8, %v1761_v5, %v1666_v41  ;;  %vm8363_vm8 = vcmask 318464   ;;  %v4189_v30 = vld [vmem:[%s4444_s9 + $0x9] sm:$0x7] }
 0x3cd   : > { %v1723_v43 = vpop.permute.xlu0 %1722  ;;  %v1767_v22 = vsel %vm8358_vm5, %v1764_v56, %v1678_v8  ;;  %v1780_v62 = vsel %vm8363_vm8, %v1777_v3, %v1716_v29  ;;  %vm8364_vm12 = vmmov %vm8363_vm8  ;;  %v6124_v29 = vld [vmem:[%s4444_s9 + $0x1a1] sm:$0x7]  ;;  %vm8366_vm5 = vcmask 146432   ;;  %vm8371_vm8 = vcmask 293888   ;;  %v6216_v56 = vld [vmem:[%s4444_s9 + $0x199] sm:$0x7] }
 0x3ce   : > { %v1725_v54 = vpop.permute.xlu1 %1724  ;;  %v1770_v6 = vsel %vm612_vm9, %v1767_v22, %v1687_v34  ;;  %v1370_v1 = vsel %vm8366_vm5, %v1367_v26, %v5469_v60  ;;  %vm8376_vm5 = vcmask 785408   ;;  %v6233_v3 = vld [vmem:[%s4444_s9 + $0x219] sm:$0x7] }
 0x3cf   : > { %1938 = vrot.lane.b32.xlu2 %v5847_v19, %s8251_s15  ;;  %v1773_v20 = vsel %vm8360_vm6, %v1770_v6, %v1696_v38  ;;  %v1783_v25 = vsel %vm628_vm13, %v1780_v62, %v1725_v54  ;;  %v1373_v2 = vsel %vm8367_vm7, %v1370_v1, %v5501_v21  ;;  %vm8368_vm6 = vcmask 195584   ;;  %v6181_v21 = vld [vmem:[%s4444_s9 + $0x260] sm:$0x7]  ;;  %v4188_v6 = vld [vmem:[%s4444_s9 + $0x11] sm:$0x7] }
 0x3d0   : > { %v1776_v19 = vsel %vm8362_vm10, %v1773_v20, %v1705_v23  ;;  %v6121_v23 = vld [vmem:[%s4444_s9 + $0x14a] sm:$0x7]  ;;  %v1376_v52 = vsel %vm8368_vm6, %v1373_v2, %v5516_v40  ;;  %vm8370_vm10 = vcmask 269312   ;;  %vm8377_vm7 = vcmask 1040384   ;;  %v8384_v62 = vld [vmem:[#allocation41_spill] sm:$0xff]  ;;  %v8391_v1 = vld [vmem:[#allocation19_spill] sm:$0xff] }
 0x3d1   : > { %v1779_v41 = vsel %vm8364_vm12, %v1776_v19, %v1714_v49  ;;  %v4181_v49 = vld [vmem:[%s4444_s9 + $0x170] sm:$0x7]  ;;  %v1379_v60 = vsel %vm8369_vm11, %v1376_v52, %v5529_v24  ;;  %vm8378_vm6 = vcmask 1041409   ;;  %vm8379_vm11 = vcmask 1042434   ;;  %v4195_v26 = vld [vmem:[%s4444_s9 + $0x58] sm:$0x7] }
 0x3d2   : > { %v1782_v17 = vsel %vm628_vm13, %v1779_v41, %v1723_v43  ;;  %v3957_v19 = vld [vmem:[%s4444_s9 + $0x1f0] sm:$0x7]  ;;  %v3958_v2 = vld [vmem:[%s4444_s9 + $0x1f8] sm:$0x7] }
 0x3d3   : > { %v6286_v52 = vld [vmem:[%s4444_s9 + $0x1f1] sm:$0x7] }
 0x3d5   : > { %v1735_v61 = vpop.permute.xlu0 %1734 }
 0x3d6   : > { %v1737_v8 = vpop.permute.xlu1 %1736  ;;  %v1785_v38 = vsel %vm632_vm14, %v1782_v17, %v1735_v61  ;;  %v8386_v17 = vld [vmem:[#allocation111_spill] sm:$0xff] }
 0x3d7   : > { %v1786_v34 = vsel %vm632_vm14, %v1783_v25, %v1737_v8  ;;  %2087 = vrot.lane.b32.xlu2 %v5669_v42, %s8096_s11  ;;  %1803 = vrot.lane.b32.xlu0 %v1785_v38, %s8347_s6  ;;  %v3956_v42 = vld [vmem:[%s4444_s9 + $0x1e8] sm:$0x7]  ;;  %v3960_v25 = vld [vmem:[%s4444_s9 + $0x218] sm:$0x7] }
 0x3d8   : > { %1805 = vrot.lane.b32.xlu1 %v1786_v34, %s8347_s6  ;;  %v3959_v8 = vld [vmem:[%s4444_s9 + $0x210] sm:$0x7]  ;;  %v6252_v61 = vld [vmem:[%s4444_s9 + $0x238] sm:$0x7] }
 0x3d9   : > { %v8388_v38 = vld [vmem:[#allocation23_spill] sm:$0xff] }
 0x3dd   : > { %v1792_v32 = vpop.permute.xlu0 %1791 }
 0x3df   : > { %2278 = vrot.lane.b32.xlu2 %v6124_v29, %s8092_s10  ;;  %1815 = vrot.lane.b32.xlu0 %v6121_v23, %s8348_s25 }
 0x3e0   : > { %1817 = vrot.lane.b32.xlu1 %v6118_v0, %s8348_s25 }
 0x3e7   : > { %2288 = vrot.lane.b32.xlu2 %v3956_v42, %s8094_s12  ;;  %1907 = vrot.lane.b32.xlu0 %v4183_v51, %s8096_s11 }
 0x3e8   : > { %1909 = vrot.lane.b32.xlu1 %v4181_v49, %s8096_s11  ;;  %v4190_v49 = vld [vmem:[%s4444_s9 + $0x1a9] sm:$0x7] }
 0x3ef   : > { %2107 = vrot.lane.b32.xlu2 %v5697_v28, %s8094_s12  ;;  %1916 = vrot.lane.b32.xlu0 %v4185_v59, %s8092_s10  ;;  %v6166_v28 = vld [vmem:[%s4444_s9 + $0x240] sm:$0x7] }
 0x3f0   : > { %1918 = vrot.lane.b32.xlu1 %v4184_v57, %s8092_s10  ;;  %v1794_v57 = vpop.permute.xlu1 %1793 }
 0x3f7   : > { %2114 = vrot.lane.b32.xlu2 %v6078_v47, %s8251_s15  ;;  %1925 = vrot.lane.b32.xlu0 %v5497_v46, %s8094_s12  ;;  %v1382_v46 = vsel %vm612_vm9, %v1379_v60, %v5541_v53  ;;  %v8372_v53 = vld [vmem:[#allocation117_spill] sm:$0xff]  ;;  %v4196_v60 = vld [vmem:[%s4444_s9 + $0x50] sm:$0x7] }
 0x3f8   : > { %1927 = vrot.lane.b32.xlu1 %v5492_v15, %s8094_s12  ;;  %v1385_v40 = vsel %vm8370_vm10, %v1382_v46, %v5553_v48  ;;  %vm8400_vm10 = vcmask 121856  }
 0x3f9   : > { %v1388_v47 = vsel %vm8371_vm8, %v1385_v40, %v5565_v44  ;;  %v8393_v40 = vld [vmem:[#allocation25_spill] sm:$0xff]  ;;  %vm8402_vm8 = vmmov %vm8400_vm10 }
 0x3fa   : > { %v1391_v24 = vsel %vm8364_vm12, %v1388_v47, %v5577_v7  ;;  %v6202_v7 = vld [vmem:[#allocation1] sm:$0xff]  ;;  %vm8404_vm12 = vcmask 146432  }
 0x3ff   : > { %2314 = vrot.lane.b32.xlu2 %v6166_v28, %s8254_s13  ;;  %1934 = vrot.lane.b32.xlu0 %v5964_v31, %s8251_s15 }
 0x400   : > { %1936 = vrot.lane.b32.xlu1 %v5956_v27, %s8251_s15  ;;  %v8373_v27 = vld [vmem:[#allocation13_spill] sm:$0xff] }
 0x401   : > { %v1808_v15 = vpop.permute.xlu2 %1807  ;;  %v1394_v48 = vsel %vm628_vm13, %v1391_v24, %v8373_v27  ;;  %v6294_v24 = vld [vmem:[%s4444_s9 + $0x1e9] sm:$0x7] }
 0x402   : > { %v1397_v44 = vsel %vm632_vm14, %v1394_v48, %v8374_v55  ;;  %v8395_v48 = vld [vmem:[#allocation28_spill] sm:$0xff]  ;;  %v8396_v55 = vld [vmem:[#allocation31_spill] sm:$0xff] }
 0x403   : > { %v1826_v50 = vsel %vm8375_vm4, %v1397_v44, %v1796_v36  ;;  %v1354_v36 = vsel %vm576_vm0, %v4195_v26, %v8391_v1  ;;  %vm8407_vm4 = vmmov %vm8404_vm12  ;;  %v8414_v26 = vld [vmem:[#allocation15_spill] sm:$0xff] }
 0x404   : > { %v1829_v54 = vsel %vm8376_vm5, %v1826_v50, %v1808_v15  ;;  %v1357_v47 = vsel %vm580_vm1, %v1354_v36, %v8393_v40  ;;  %vm8409_vm5 = vcmask 171008   ;;  %v8416_v36 = vld [vmem:[#allocation17_spill] sm:$0xff]  ;;  %v8420_v40 = vld [vmem:[#allocation20_spill] sm:$0xff] }
 0x407   : > { %2324 = vrot.lane.b32.xlu2 %v6181_v21, %s8257_s26  ;;  %2267 = vrot.lane.b32.xlu0 %v8372_v53, %s8096_s11  ;;  %v8394_v53 = vld [vmem:[#allocation7_spill] sm:$0xff] }
 0x408   : > { %2269 = vrot.lane.b32.xlu1 %v5942_v16, %s8096_s11 }
 0x409   : > { %v1820_v31 = vpop.permute.xlu2 %1819 }
 0x40a   : > { %v1832_v33 = vsel %vm1130_vm15, %v1808_v15, %v1820_v31  ;;  %v8392_v15 = vld [vmem:[#allocation22_spill] sm:$0xff]  ;;  %v1360_v31 = vsel %vm584_vm2, %v1357_v47, %v8395_v48  ;;  %v8422_v48 = vld [vmem:[#allocation24_spill] sm:$0xff] }
 0x40b   : > { %v1841_v16 = vrot.slane %v1832_v33, 7  ;;  %v1353_v46 = vsel %vm576_vm0, %v4196_v60, %v8392_v15  ;;  %v8397_v33 = vld [vmem:[#allocation34_spill] sm:$0xff] }
 0x40c   : > { %v1356_v27 = vsel %vm580_vm1, %v1353_v46, %v8394_v53  ;;  %v1363_v50 = vsel %vm588_vm3, %v1360_v31, %v8397_v33  ;;  %v6332_v60 = vld [vmem:[%s4444_s9 + $0x211] sm:$0x7]  ;;  %v8421_v53 = vld [vmem:[#allocation21_spill] sm:$0xff] }
 0x40d   : > { %v1852_v14 = vsel %vm8377_vm7, %v1829_v54, %v1841_v16  ;;  %v6208_v43 = vsel %vm8378_vm6, %v1829_v54, %v1841_v16  ;;  %v6211_v5 = vsel %vm8379_vm11, %v1829_v54, %v1841_v16  ;;  %v1359_v44 = vsel %vm584_vm2, %v1356_v27, %v8396_v55  ;;  %v8398_v16 = vld [vmem:[#allocation59_spill] sm:$0xff]  ;;  %vm8411_vm7 = vmmov %vm8409_vm5  ;;  %v8418_v15 = vld [vmem:[#allocation18_spill] sm:$0xff] }
 0x40e   : > { %3005 = vst [vmem:[#allocation1 + $0x7] ss:$9 sm:$0xff] %v1852_v14  ;;  %v1362_v54 = vsel %vm588_vm3, %v1359_v44, %v8398_v16  ;;  %v8399_v14 = vld [vmem:[#allocation10_spill] sm:$0xff]  ;;  %vm8413_vm6 = vcmask 195584   ;;  %v8426_v33 = vld [vmem:[#allocation27_spill] sm:$0xff] }
 0x40f   : > { %2134 = vrot.lane.b32.xlu2 %v4186_v63, %s8257_s26  ;;  %2089 = vrot.lane.b32.xlu0 %v8380_v45, %s8096_s11  ;;  %v1366_v63 = vsel %vm8400_vm10, %v1363_v50, %v8399_v14  ;;  %v8401_v45 = vld [vmem:[#allocation8_spill] sm:$0xff]  ;;  %vm8415_vm11 = vmmov %vm8413_vm6  ;;  %vm8417_vm10 = vcmask 220160   ;;  %v8424_v55 = vld [vmem:[#allocation26_spill] sm:$0xff] }
 0x410   : > { %2276 = vrot.lane.b32.xlu1 %v6216_v56, %s8092_s10  ;;  %v8428_v16 = vld [vmem:[#allocation30_spill] sm:$0xff] }
 0x411   : > { %v6222_v22 = vpop.permute.xlu2 %1911 }
 0x412   : > { %8381 = vst [vmem:[#allocation117_spill] sm:$0xff] %v6222_v22 }
 0x417   : > { %2141 = vrot.lane.b32.xlu2 %v8382_v4, %s8260_s23  ;;  %2096 = vrot.lane.b32.xlu0 %v4189_v30, %s8092_s10  ;;  %v1365_v4 = vsel %vm8402_vm8, %v1362_v54, %v8401_v45  ;;  %vm8419_vm8 = vmmov %vm8417_vm10  ;;  %v8429_v54 = vld [vmem:[#allocation29_spill] sm:$0xff] }
 0x418   : > { %2098 = vrot.lane.b32.xlu1 %v4188_v6, %s8092_s10  ;;  %v8403_v6 = vld [vmem:[#allocation6_spill] sm:$0xff] }
 0x419   : > { %v6230_v20 = vpop.permute.xlu2 %1920  ;;  %v1369_v30 = vsel %vm8404_vm12, %v1366_v63, %v8403_v6  ;;  %vm8423_vm12 = vcmask 269312   ;;  %v8431_v63 = vld [vmem:[#allocation32_spill] sm:$0xff]  ;;  %v8434_v6 = vld [vmem:[#allocation33_spill] sm:$0xff] }
 0x41a   : > { %8383 = vst [vmem:[#allocation13_spill] sm:$0xff] %v6230_v20 }
 0x41f   : > { %2350 = vrot.lane.b32.xlu2 %v6233_v3, %s8263_s8  ;;  %2290 = vrot.lane.b32.xlu0 %v3957_v19, %s8094_s12 }
 0x420   : > { %2105 = vrot.lane.b32.xlu1 %v8384_v62, %s8094_s12 }
 0x421   : > { %v6241_v41 = vpop.permute.xlu2 %1929 }
 0x422   : > { %8385 = vst [vmem:[#allocation16_spill] sm:$0xff] %v6241_v41  ;;  %v4201_v41 = vld [vmem:[%s4444_s9 + $0x178] sm:$0x7] }
 0x427   : > { %2271 = vrot.lane.b32.xlu2 %v8386_v17, %s8096_s11  ;;  %2300 = vrot.lane.b32.xlu0 %v3959_v8, %s8251_s15  ;;  %v8408_v17 = vld [vmem:[#allocation11_spill] sm:$0xff] }
 0x428   : > { %2302 = vrot.lane.b32.xlu1 %v3960_v25, %s8251_s15  ;;  %v8406_v25 = vld [vmem:[#allocation9_spill] sm:$0xff] }
 0x429   : > { %v6249_v34 = vpop.permute.xlu2 %1938  ;;  %v1368_v8 = vsel %vm8407_vm4, %v1365_v4, %v8406_v25  ;;  %vm8425_vm4 = vmmov %vm8423_vm12  ;;  %v8433_v4 = vld [vmem:[#allocation100_spill] sm:$0xff] }
 0x42a   : > { %8387 = vst [vmem:[#allocation35_spill] sm:$0xff] %v6249_v34  ;;  %v8436_v25 = vld [vmem:[#allocation36_spill] sm:$0xff] }
 0x42b   : > { %v3979_v34 = vld [vmem:[%s4444_s9 + $0x20] sm:$0x7] }
 0x42f   : > { %2091 = vrot.lane.b32.xlu2 %v8388_v38, %s8096_s11  ;;  %2116 = vrot.lane.b32.xlu0 %v6072_v37, %s8251_s15  ;;  %v4193_v37 = vld [vmem:[%s4444_s9 + $0x19] sm:$0x7]  ;;  %v1372_v38 = vsel %vm8409_vm5, %v1369_v30, %v8408_v17  ;;  %vm8427_vm5 = vcmask 293888  }
 0x430   : > { %2312 = vrot.lane.b32.xlu1 %v6252_v61, %s8254_s13 }
 0x431   : > { %v6260_v42 = vpop.permute.xlu2 %2087 }
 0x432   : > { %8389 = vst [vmem:[#allocation101_spill] sm:$0xff] %v6260_v42  ;;  %v4205_v42 = vld [vmem:[%s4444_s9 + $0x109] sm:$0x7] }
 0x437   : > { %2280 = vrot.lane.b32.xlu2 %v4190_v49, %s8092_s10  ;;  %2123 = vrot.lane.b32.xlu0 %v4192_v10, %s8254_s13 }
 0x438   : > { %2125 = vrot.lane.b32.xlu1 %v4191_v58, %s8254_s13  ;;  %v8410_v58 = vld [vmem:[#allocation12_spill] sm:$0xff] }
 0x439   : > { %v6268_v51 = vpop.permute.xlu2 %2278  ;;  %v1371_v10 = vsel %vm8411_vm7, %v1368_v8, %v8410_v58  ;;  %vm8430_vm7 = vmmov %vm8427_vm5  ;;  %v8438_v58 = vld [vmem:[#allocation37_spill] sm:$0xff] }
 0x43a   : > { %v1374_v1 = vsel %vm8415_vm11, %v1371_v10, %v8414_v26 }
 0x43b   : > { %v1377_v46 = vsel %vm8419_vm8, %v1374_v1, %v8418_v15 }
 0x43c   : > { %v1380_v27 = vsel %vm612_vm9, %v1377_v46, %v8421_v53 }
 0x43d   : > { %v1383_v44 = vsel %vm8425_vm4, %v1380_v27, %v8424_v55 }
 0x43e   : > { %v1386_v14 = vsel %vm8430_vm7, %v1383_v44, %v8429_v54  ;;  %vm8446_vm7 = vcmask 1041409  }
 0x43f   : > { %2100 = vrot.lane.b32.xlu2 %v4193_v37, %s8092_s10  ;;  %2326 = vrot.lane.b32.xlu0 %v6271_v35, %s8257_s26  ;;  %v8412_v37 = vld [vmem:[#allocation14_spill] sm:$0xff]  ;;  %s8466_s10 = smov 30  }
 0x440   : > { %2132 = vrot.lane.b32.xlu1 %v4194_v39, %s8257_s26  ;;  %v1375_v39 = vsel %vm8413_vm6, %v1372_v38, %v8412_v37  ;;  %vm8432_vm6 = vcmask 318464   ;;  %v8439_v37 = vld [vmem:[#allocation38_spill] sm:$0xff] }
 0x441   : > { %v6279_v59 = vpop.permute.xlu2 %2288  ;;  %vm8435_vm11 = vmmov %vm8432_vm6 }
 0x442   : > { %8390 = vst [vmem:[#allocation41_spill] sm:$0xff] %v6279_v59  ;;  %v1389_v30 = vsel %vm8435_vm11, %v1386_v14, %v8434_v6  ;;  %v4002_v59 = vld [vmem:[%s4444_s9 + $0x1f2] sm:$0x7] }
 0x443   : > { %v1392_v10 = vsel %vm628_vm13, %v1389_v30, %v8438_v58  ;;  %v6393_v30 = vld [vmem:[%s4444_s9 + $0x241] sm:$0x7] }
 0x447   : > { %2292 = vrot.lane.b32.xlu2 %v3958_v2, %s8094_s12  ;;  %2336 = vrot.lane.b32.xlu0 %v6294_v24, %s8260_s23  ;;  %v1378_v2 = vsel %vm8417_vm10, %v1375_v39, %v8416_v36  ;;  %v8440_v36 = vld [vmem:[#allocation39_spill] sm:$0xff]  ;;  %vm8441_vm10 = vcmask 392192  }
 0x448   : > { %2338 = vrot.lane.b32.xlu1 %v6286_v52, %s8260_s23  ;;  %v1381_v47 = vsel %vm612_vm9, %v1378_v2, %v8420_v40  ;;  %v1395_v2 = vsel %vm632_vm14, %v1392_v10, %v8440_v36  ;;  %vm8442_vm8 = vmmov %vm8441_vm10  ;;  %v1856_v10 = vrot.slane %v6211_v5, 2  ;;  %v8461_v5 = vld [vmem:[#allocation104_spill] sm:$0xff]  ;;  %v8462_v36 = vld [vmem:[#allocation105_spill] sm:$0xff] }
 0x449   : > { %v6317_v19 = vpop.permute.xlu2 %2107  ;;  %v1804_v49 = vpop.permute.xlu0 %1803  ;;  %v1384_v31 = vsel %vm8423_vm12, %v1381_v47, %v8422_v48  ;;  %v1824_v47 = vsel %vm8442_vm8, %v1395_v2, %v1792_v32  ;;  %vm8443_vm12 = vcmask 785408   ;;  %v3961_v48 = vld [vmem:[%s4444_s9 + $0x220] sm:$0x7] }
 0x44a   : > { %8405 = vst [vmem:[#allocation111_spill] sm:$0xff] %v6317_v19  ;;  %v1806_v62 = vpop.permute.xlu1 %1805  ;;  %v1387_v50 = vsel %vm8427_vm5, %v1384_v31, %v8426_v33  ;;  %vm8444_vm4 = vmmov %vm8443_vm12  ;;  %vm8445_vm5 = vcmask 1040384   ;;  %v6610_v19 = vld [vmem:[%s4444_s9 + $0x249] sm:$0x7] }
 0x44b   : > { %v1390_v45 = vsel %vm8432_vm6, %v1387_v50, %v8431_v63  ;;  %v1827_v31 = vsel %vm8444_vm4, %v1824_v47, %v1804_v49  ;;  %vm8447_vm6 = vcmask 1042434   ;;  %vm8448_vm11 = vmmov %vm8445_vm5  ;;  %v8452_v63 = vld [vmem:[#allocation103_spill] sm:$0xff] }
 0x44c   : > { %v1393_v8 = vsel %vm628_vm13, %v1390_v45, %v8436_v25  ;;  %vm8450_vm8 = vmmov %vm8447_vm6  ;;  %v6396_v25 = vld [vmem:[%s4444_s9 + $0x239] sm:$0x7] }
 0x44d   : > { %v1396_v39 = vsel %vm632_vm14, %v1393_v8, %v8439_v37  ;;  %v1854_v8 = vrot.slane %v6208_v43, 1  ;;  %vm8459_vm4 = vmmov %vm8445_vm5 }
 0x44e   : > { %v1825_v15 = vsel %vm8441_vm10, %v1396_v39, %v1794_v57  ;;  %vm8449_vm10 = vmmov %vm8446_vm7 }
 0x44f   : > { %2109 = vrot.lane.b32.xlu2 %v8428_v16, %s8094_s12  ;;  %2143 = vrot.lane.b32.xlu0 %v8433_v4, %s8260_s23  ;;  %v1828_v53 = vsel %vm8443_vm12, %v1825_v15, %v1806_v62  ;;  %vm8458_vm12 = vmmov %vm8445_vm5  ;;  %v3978_v15 = vld [vmem:[%s4444_s9 + $0x18] sm:$0x7]  ;;  %s8479_s12 = smov 36  }
 0x450   : > { %2348 = vrot.lane.b32.xlu1 %v6332_v60, %s8263_s8 }
 0x451   : > { %v6360_v17 = vpop.permute.xlu2 %2114  ;;  %v1816_v1 = vpop.permute.xlu0 %1815 }
 0x452   : > { %8437 = vst [vmem:[#allocation23_spill] sm:$0xff] %v6360_v17  ;;  %v1818_v38 = vpop.permute.xlu1 %1817  ;;  %v1830_v40 = vsel %vm1130_vm15, %v1804_v49, %v1816_v1  ;;  %v8451_v49 = vld [vmem:[#allocation102_spill] sm:$0xff] }
 0x453   : > { %v1831_v26 = vsel %vm1130_vm15, %v1806_v62, %v1818_v38  ;;  %v1839_v27 = vrot.slane %v1830_v40, 7  ;;  %v6418_v1 = vld [vmem:[%s4444_s9 + $0x248] sm:$0x7]  ;;  %v4197_v40 = vld [vmem:[%s4444_s9 + $0xb8] sm:$0x7] }
 0x454   : > { %v1840_v46 = vrot.slane %v1831_v26, 7 }
 0x455   : > { %v1842_v57 = vsel %vm8448_vm11, %v1827_v31, %v1839_v27  ;;  %v1843_v32 = vsel %vm8449_vm10, %v1827_v31, %v1839_v27  ;;  %v1845_v54 = vsel %vm8450_vm8, %v1827_v31, %v1839_v27  ;;  %v8470_v31 = vld [vmem:[#allocation106_spill] sm:$0xff]  ;;  %vm8532_vm10 = vcmask 146432  }
 0x456   : > { %v1847_v55 = vsel %vm8445_vm5, %v1828_v53, %v1840_v46  ;;  %v1848_v44 = vsel %vm8446_vm7, %v1828_v53, %v1840_v46  ;;  %v1850_v33 = vsel %vm8447_vm6, %v1828_v53, %v1840_v46  ;;  %v1844_v62 = vrot.slane %v1843_v32, 1  ;;  %2993 = vst [vmem:[#allocation1 + $0x1] ss:$9 sm:$0xff] %v1842_v57  ;;  %v3977_v46 = vld [vmem:[%s4444_s9 + $0x10] sm:$0x7] }
 0x457   : > { %v1849_v50 = vrot.slane %v1848_v44, 1  ;;  %v1851_v16 = vrot.slane %v1850_v33, 2  ;;  %2999 = vst [vmem:[#allocation1 + $0x4] ss:$9 sm:$0xff] %v1847_v55  ;;  %2304 = vrot.lane.b32.xlu2 %v3961_v48, %s8251_s15  ;;  %v1846_v14 = vrot.slane %v1845_v54, 2  ;;  %2150 = vrot.lane.b32.xlu0 %v8452_v63, %s8263_s8  ;;  %vm8460_vm5 = vcmask 154624  }
 0x458   : > { %2152 = vrot.lane.b32.xlu1 %v8451_v49, %s8263_s8  ;;  %2995 = vst [vmem:[#allocation1 + $0x2] ss:$9 sm:$0xff] %v1844_v62  ;;  %v6445_v48 = vld [vmem:[%s4444_s9 + $0x270] sm:$0x7]  ;;  %v3980_v57 = vld [vmem:[%s4444_s9 + $0x38] sm:$0x7] }
 0x459   : > { %3001 = vst [vmem:[#allocation1 + $0x5] ss:$9 sm:$0xff] %v1849_v50  ;;  %v6386_v45 = vpop.permute.xlu2 %2314  ;;  %v6390_v6 = vpop.permute.xlu0 %1907  ;;  %v8471_v55 = vld [vmem:[#allocation107_spill] sm:$0xff]  ;;  %v4198_v32 = vld [vmem:[%s4444_s9 + $0xe0] sm:$0x7]  ;;  %vm8529_vm7 = vcmask 121856  }
 0x45a   : > { %3003 = vst [vmem:[#allocation1 + $0x6] ss:$9 sm:$0xff] %v1851_v16  ;;  %v6388_v4 = vpop.permute.xlu1 %1909  ;;  %v3981_v16 = vld [vmem:[%s4444_s9 + $0x40] sm:$0x7]  ;;  %vm8530_vm6 = vmmov %vm8529_vm7  ;;  %vm8533_vm8 = vcmask 171008  }
 0x45b   : > { %8453 = vst [vmem:[#allocation19_spill] sm:$0xff] %v6388_v4  ;;  %v8474_v63 = vld [vmem:[#allocation108_spill] sm:$0xff]  ;;  %vm8531_vm11 = vmmov %vm8530_vm6 }
 0x45c   : > { %8454 = vst [vmem:[#allocation22_spill] sm:$0xff] %v6390_v6 }
 0x45d   : > { %2997 = vst [vmem:[#allocation1 + $0x3] ss:$9 sm:$0xff] %v1846_v14  ;;  %v6472_v14 = vld [vmem:[%s4444_s9 + $0x1f9] sm:$0x7] }
 0x45f   : > { %2118 = vrot.lane.b32.xlu2 %v6036_v13, %s8251_s15  ;;  %2360 = vrot.lane.b32.xlu0 %v6396_v25, %s8266_s16 }
 0x460   : > { %2362 = vrot.lane.b32.xlu1 %v6393_v30, %s8266_s16 }
 0x461   : > { %v6405_v38 = vpop.permute.xlu2 %2324  ;;  %v6410_v13 = vpop.permute.xlu0 %1916 }
 0x462   : > { %8455 = vst [vmem:[#allocation25_spill] sm:$0xff] %v6405_v38  ;;  %v6407_v58 = vpop.permute.xlu1 %1918  ;;  %v6743_v38 = vld [vmem:[%s4444_s9 + $0x69] sm:$0x7] }
 0x463   : > { %8456 = vst [vmem:[#allocation7_spill] sm:$0xff] %v6407_v58  ;;  %v6553_v58 = vld [vmem:[%s4444_s9 + $0x11] sm:$0x7] }
 0x464   : > { %v3006_v37 = vld [vmem:[#allocation1] sm:$0xff]  ;;  %v3007_v39 = vld [vmem:[#allocation1 + $0x9] sm:$0xff]  ;;  %8457 = vst [vmem:[#allocation28_spill] sm:$0xff] %v6410_v13 }
 0x465   : > { %3008 = vst [vmem:[#allocation1] ss:$9 sm:$0xff] %v1854_v8  ;;  %v3063_v26 = vsel %vm8458_vm12, %v6202_v7, %v3006_v37  ;;  %v3064_v43 = vsel %vm8459_vm4, %v6204_v18, %v3007_v39  ;;  %v8475_v8 = vld [vmem:[#allocation109_spill] sm:$0xff]  ;;  %vm8534_vm12 = vmmov %vm8532_vm10  ;;  %vm8535_vm4 = vcmask 195584  }
 0x466   : > { %3009 = vst [vmem:[#allocation1 + $0x1] ss:$9 sm:$0xff] %v1856_v10  ;;  %3130 = vmatmul.f32.gmra.mxu0 %v3063_v26  ;;  %4012 = vmatmul.msk.f32.gmra.mxu1 %vm8460_vm5, %v3064_v43  ;;  %v6487_v26 = vld [vmem:[%s4444_s9 + $0x68] sm:$0x7]  ;;  %v6490_v43 = vld [vmem:[%s4444_s9 + $0x60] sm:$0x7]  ;;  %vm8536_vm5 = vmmov %vm8533_vm8 }
 0x467   : > { %2316 = vrot.lane.b32.xlu2 %v6418_v1, %s8254_s13  ;;  %2159 = vrot.lane.b32.xlu0 %v8462_v36, %s8266_s16 }
 0x468   : > { %2161 = vrot.lane.b32.xlu1 %v8461_v5, %s8266_s16  ;;  %v8478_v5 = vld [vmem:[#allocation40_spill] sm:$0xff] }
 0x469   : > { %v6426_v7 = vpop.permute.xlu2 %2134  ;;  %v6430_v18 = vpop.permute.xlu0 %1925 }
 0x46a   : > { %8463 = vst [vmem:[#allocation31_spill] sm:$0xff] %v6426_v7  ;;  %v6428_v2 = vpop.permute.xlu1 %1927  ;;  %v6583_v7 = vld [vmem:[%s4444_s9 + $0x39] sm:$0x7] }
 0x46b   : > { %8464 = vst [vmem:[#allocation34_spill] sm:$0xff] %v6428_v2  ;;  %v6550_v2 = vld [vmem:[%s4444_s9 + $0x19] sm:$0x7] }
 0x46c   : > { %8465 = vst [vmem:[#allocation59_spill] sm:$0xff] %v6430_v18 }
 0x46f   : > { %2127 = vrot.lane.b32.xlu2 %v4197_v40, %s8254_s13  ;;  %2372 = vrot.lane.b32.xlu0 %v3977_v46, %s8466_s10  ;;  %v6505_v40 = vld [vmem:[%s4444_s9 + $0x221] sm:$0x7] }
 0x470   : > { %2374 = vrot.lane.b32.xlu1 %v3978_v15, %s8466_s10 }
 0x471   : > { %v6438_v47 = vpop.permute.xlu2 %2141  ;;  %v6442_v27 = vpop.permute.xlu0 %1934 }
 0x472   : > { %8467 = vst [vmem:[#allocation10_spill] sm:$0xff] %v6438_v47  ;;  %v6440_v53 = vpop.permute.xlu1 %1936  ;;  %v6580_v47 = vld [vmem:[%s4444_s9 + $0x41] sm:$0x7] }
 0x473   : > { %8468 = vst [vmem:[#allocation8_spill] sm:$0xff] %v6440_v53 }
 0x474   : > { %8469 = vst [vmem:[#allocation6_spill] sm:$0xff] %v6442_v27  ;;  %v8490_v27 = vld [vmem:[#allocation112_spill] sm:$0xff] }
 0x475   : > { %8519 = vst [vmem:[#allocation112_spill] sm:$0xff] %v6743_v38 }
 0x477   : > { %2328 = vrot.lane.b32.xlu2 %v6445_v48, %s8257_s26  ;;  %2168 = vrot.lane.b32.xlu0 %v8471_v55, %s8466_s10  ;;  %v4200_v55 = vld [vmem:[%s4444_s9 + $0x148] sm:$0x7] }
 0x478   : > { %2170 = vrot.lane.b32.xlu1 %v8470_v31, %s8466_s10  ;;  %v4199_v31 = vld [vmem:[%s4444_s9 + $0x150] sm:$0x7] }
 0x479   : > { %v6453_v44 = vpop.permute.xlu2 %2350  ;;  %v6457_v50 = vpop.permute.xlu0 %2267 }
 0x47a   : > { %v6455_v33 = vpop.permute.xlu1 %2269 }
 0x47f   : > { %2136 = vrot.lane.b32.xlu2 %v4198_v32, %s8257_s26  ;;  %2384 = vrot.lane.b32.xlu0 %v3980_v57, %s8272_s14 }
 0x480   : > { %2386 = vrot.lane.b32.xlu1 %v3981_v16, %s8272_s14 }
 0x481   : > { %v6465_v62 = vpop.permute.xlu2 %2271  ;;  %v6469_v49 = vpop.permute.xlu0 %2089 }
 0x482   : > { %v6467_v54 = vpop.permute.xlu1 %2276  ;;  %8473 = vst [vmem:[#allocation11_spill] sm:$0xff] %v6469_v49 }
 0x483   : > { %8472 = vst [vmem:[#allocation9_spill] sm:$0xff] %v6467_v54 }
 0x487   : > { %2340 = vrot.lane.b32.xlu2 %v6472_v14, %s8260_s23  ;;  %2177 = vrot.lane.b32.xlu0 %v8475_v8, %s8272_s14  ;;  %v6523_v8 = vld [vmem:[%s4444_s9 + $0x88] sm:$0x7] }
 0x488   : > { %2179 = vrot.lane.b32.xlu1 %v8474_v63, %s8272_s14  ;;  %v6520_v63 = vld [vmem:[%s4444_s9 + $0x90] sm:$0x7] }
 0x489   : > { %v6480_v10 = vpop.permute.xlu2 %2091  ;;  %v6484_v39 = vpop.permute.xlu0 %2096 }
 0x48a   : > { %v6482_v37 = vpop.permute.xlu1 %2098  ;;  %8477 = vst [vmem:[#allocation14_spill] sm:$0xff] %v6484_v39  ;;  %v6664_v39 = vld [vmem:[%s4444_s9 + $0x70] sm:$0x7] }
 0x48b   : > { %8476 = vst [vmem:[#allocation12_spill] sm:$0xff] %v6482_v37  ;;  %v8509_v37 = vld [vmem:[#allocation110_spill] sm:$0xff] }
 0x48f   : > { %2145 = vrot.lane.b32.xlu2 %v8478_v5, %s8260_s23  ;;  %2396 = vrot.lane.b32.xlu0 %v6490_v43, %s8479_s12 }
 0x490   : > { %2398 = vrot.lane.b32.xlu1 %v6487_v26, %s8479_s12 }
 0x491   : > { %v6498_v36 = vpop.permute.xlu2 %2280  ;;  %v6502_v46 = vpop.permute.xlu0 %2290 }
 0x492   : > { %v6500_v15 = vpop.permute.xlu1 %2105 }
 0x493   : > { %8480 = vst [vmem:[#allocation15_spill] sm:$0xff] %v6500_v15 }
 0x497   : > { %2352 = vrot.lane.b32.xlu2 %v6505_v40, %s8263_s8  ;;  %2186 = vrot.lane.b32.xlu0 %v4200_v55, %s8479_s12 }
 0x498   : > { %2188 = vrot.lane.b32.xlu1 %v4199_v31, %s8479_s12 }
 0x499   : > { %v6513_v16 = vpop.permute.xlu2 %2100  ;;  %v6517_v32 = vpop.permute.xlu0 %2300 }
 0x49a   : > { %v6515_v57 = vpop.permute.xlu1 %2302  ;;  %8481 = vst [vmem:[#allocation17_spill] sm:$0xff] %v6517_v32 }
 0x49f   : > { %2711 = vrot.lane.b32.xlu2 %v5991_v12, %s8096_s11  ;;  %2408 = vrot.lane.b32.xlu0 %v6523_v8, %s8482_s0  ;;  %v4202_v12 = vld [vmem:[%s4444_s9 + $0x170] sm:$0x7]  ;;  %s8489_s11 = smov 9  }
 0x4a0   : > { %2410 = vrot.lane.b32.xlu1 %v6520_v63, %s8482_s0 }
 0x4a1   : > { %v6531_v5 = vpop.permute.xlu2 %2292  ;;  %v6535_v55 = vpop.permute.xlu0 %2116 }
 0x4a2   : > { %v6533_v31 = vpop.permute.xlu1 %2312  ;;  %8484 = vst [vmem:[#allocation20_spill] sm:$0xff] %v6535_v55 }
 0x4a3   : > { %8483 = vst [vmem:[#allocation18_spill] sm:$0xff] %v6533_v31 }
 0x4a7   : > { %2376 = vrot.lane.b32.xlu2 %v3979_v34, %s8466_s10  ;;  %2195 = vrot.lane.b32.xlu0 %v4202_v12, %s8482_s0  ;;  %v8487_v34 = vld [vmem:[#allocation99_spill] sm:$0xff] }
 0x4a8   : > { %2197 = vrot.lane.b32.xlu1 %v4201_v41, %s8482_s0 }
 0x4a9   : > { %v6543_v20 = vpop.permute.xlu2 %2109  ;;  %v6547_v53 = vpop.permute.xlu0 %2123 }
 0x4aa   : > { %v6545_v22 = vpop.permute.xlu1 %2125  ;;  %8486 = vst [vmem:[#allocation24_spill] sm:$0xff] %v6547_v53  ;;  %v8496_v53 = vld [vmem:[#allocation114_spill] sm:$0xff] }
 0x4ab   : > { %8485 = vst [vmem:[#allocation21_spill] sm:$0xff] %v6545_v22 }
 0x4af   : > { %2172 = vrot.lane.b32.xlu2 %v8487_v34, %s8466_s10  ;;  %2420 = vrot.lane.b32.xlu0 %v6553_v58, %s8206_s7  ;;  %v8491_v34 = vld [vmem:[#allocation113_spill] sm:$0xff] }
 0x4b0   : > { %2422 = vrot.lane.b32.xlu1 %v6550_v2, %s8206_s7 }
 0x4b1   : > { %v6561_v41 = vpop.permute.xlu2 %2304  ;;  %v6565_v4 = vpop.permute.xlu0 %2326 }
 0x4b2   : > { %v6563_v12 = vpop.permute.xlu1 %2132 }
 0x4b3   : > { %8488 = vst [vmem:[#allocation26_spill] sm:$0xff] %v6563_v12  ;;  %v8493_v12 = vld [vmem:[#allocation42_spill] sm:$0xff] }
 0x4b7   : > { %2731 = vrot.lane.b32.xlu2 %v6166_v28, %s8489_s11  ;;  %2204 = vrot.lane.b32.xlu0 %v8491_v34, %s8206_s7 }
 0x4b8   : > { %2206 = vrot.lane.b32.xlu1 %v8490_v27, %s8206_s7 }
 0x4b9   : > { %v6573_v18 = vpop.permute.xlu2 %2118  ;;  %v6577_v6 = vpop.permute.xlu0 %2336 }
 0x4ba   : > { %v6575_v13 = vpop.permute.xlu1 %2338  ;;  %8492 = vst [vmem:[#allocation27_spill] sm:$0xff] %v6577_v6 }
 0x4bf   : > { %2636 = vrot.lane.b32.xlu2 %v8493_v12, %s8489_s11  ;;  %2432 = vrot.lane.b32.xlu0 %v6583_v7, %s8208_s17  ;;  %v8497_v12 = vld [vmem:[#allocation115_spill] sm:$0xff] }
 0x4c0   : > { %2434 = vrot.lane.b32.xlu1 %v6580_v47, %s8208_s17 }
 0x4c1   : > { %v6591_v28 = vpop.permute.xlu2 %2316  ;;  %v6595_v34 = vpop.permute.xlu0 %2143 }
 0x4c2   : > { %v6593_v27 = vpop.permute.xlu1 %2348  ;;  %8495 = vst [vmem:[#allocation29_spill] sm:$0xff] %v6595_v34  ;;  %v8500_v34 = vld [vmem:[#allocation98_spill] sm:$0xff] }
 0x4c3   : > { %8494 = vst [vmem:[#allocation30_spill] sm:$0xff] %v6593_v27  ;;  %v6718_v27 = vld [vmem:[%s4444_s9 + $0x21] sm:$0x7] }
 0x4c7   : > { %2740 = vrot.lane.b32.xlu2 %v6271_v35, %s8251_s15  ;;  %2213 = vrot.lane.b32.xlu0 %v8497_v12, %s8208_s17  ;;  %v4203_v35 = vld [vmem:[%s4444_s9 + $0x130] sm:$0x7] }
 0x4c8   : > { %2215 = vrot.lane.b32.xlu1 %v8496_v53, %s8208_s17 }
 0x4c9   : > { %v6603_v17 = vpop.permute.xlu2 %2127  ;;  %v6607_v55 = vpop.permute.xlu0 %2150 }
 0x4ca   : > { %v6605_v22 = vpop.permute.xlu1 %2152  ;;  %8499 = vst [vmem:[#allocation100_spill] sm:$0xff] %v6607_v55  ;;  %v4204_v55 = vld [vmem:[%s4444_s9 + $0xb9] sm:$0x7] }
 0x4cb   : > { %8498 = vst [vmem:[#allocation32_spill] sm:$0xff] %v6605_v22 }
 0x4cf   : > { %2645 = vrot.lane.b32.xlu2 %v8500_v34, %s8251_s15  ;;  %2154 = vrot.lane.b32.xlu0 %v4203_v35, %s8263_s8 }
 0x4d0   : > { %2364 = vrot.lane.b32.xlu1 %v6610_v19, %s8266_s16 }
 0x4d1   : > { %v6618_v53 = vpop.permute.xlu2 %2328  ;;  %v6622_v22 = vpop.permute.xlu0 %2360 }
 0x4d2   : > { %v6620_v12 = vpop.permute.xlu1 %2362  ;;  %8501 = vst [vmem:[#allocation33_spill] sm:$0xff] %v6622_v22  ;;  %v6691_v22 = vld [vmem:[%s4444_s9 + $0x98] sm:$0x7] }
 0x4d7   : > { %2749 = vrot.lane.b32.xlu2 %v6286_v52, %s8254_s13  ;;  %2713 = vrot.lane.b32.xlu0 %v5984_v9, %s8502_s1 }
 0x4d8   : > { %2163 = vrot.lane.b32.xlu1 %v4204_v55, %s8266_s16 }
 0x4d9   : > { %v6630_v34 = vpop.permute.xlu2 %2136  ;;  %v6634_v15 = vpop.permute.xlu0 %2159 }
 0x4da   : > { %v6632_v35 = vpop.permute.xlu1 %2161  ;;  %8504 = vst [vmem:[#allocation37_spill] sm:$0xff] %v6634_v15  ;;  %v3982_v15 = vld [vmem:[%s4444_s9 + $0x48] sm:$0x7] }
 0x4db   : > { %8503 = vst [vmem:[#allocation36_spill] sm:$0xff] %v6632_v35  ;;  %v6649_v35 = vld [vmem:[%s4444_s9 + $0x49] sm:$0x7] }
 0x4df   : > { %2756 = vrot.lane.b32.xlu2 %v6332_v60, %s8257_s26  ;;  %2720 = vrot.lane.b32.xlu0 %v6121_v23, %s8505_s27 }
 0x4e0   : > { %2722 = vrot.lane.b32.xlu1 %v6118_v0, %s8505_s27 }
 0x4e1   : > { %v6642_v52 = vpop.permute.xlu2 %2340  ;;  %v6646_v55 = vpop.permute.xlu0 %2372 }
 0x4e2   : > { %v6644_v9 = vpop.permute.xlu1 %2374  ;;  %8506 = vst [vmem:[#allocation38_spill] sm:$0xff] %v6646_v55 }
 0x4e7   : > { %2436 = vrot.lane.b32.xlu2 %v6649_v35, %s8208_s17  ;;  %2388 = vrot.lane.b32.xlu0 %v3982_v15, %s8272_s14 }
 0x4e8   : > { %2729 = vrot.lane.b32.xlu1 %v6252_v61, %s8489_s11 }
 0x4e9   : > { %v6657_v0 = vpop.permute.xlu2 %2145  ;;  %v6661_v60 = vpop.permute.xlu0 %2168 }
 0x4ea   : > { %v6659_v23 = vpop.permute.xlu1 %2170  ;;  %8508 = vst [vmem:[#allocation102_spill] sm:$0xff] %v6661_v60  ;;  %v4001_v60 = vld [vmem:[%s4444_s9 + $0x1ea] sm:$0x7] }
 0x4eb   : > { %8507 = vst [vmem:[#allocation39_spill] sm:$0xff] %v6659_v23 }
 0x4ef   : > { %2217 = vrot.lane.b32.xlu2 %v8509_v37, %s8208_s17  ;;  %2181 = vrot.lane.b32.xlu0 %v4205_v42, %s8272_s14  ;;  %v4206_v37 = vld [vmem:[%s4444_s9 + $0x89] sm:$0x7] }
 0x4f0   : > { %2400 = vrot.lane.b32.xlu1 %v6664_v39, %s8479_s12 }
 0x4f1   : > { %v6672_v61 = vpop.permute.xlu2 %2352  ;;  %v6676_v23 = vpop.permute.xlu0 %2384 }
 0x4f2   : > { %v6674_v15 = vpop.permute.xlu1 %2386  ;;  %8510 = vst [vmem:[#allocation103_spill] sm:$0xff] %v6676_v23 }
 0x4f7   : > { %2789 = vrot.lane.b32.xlu2 %v4001_v60, %s8266_s16  ;;  %2638 = vrot.lane.b32.xlu0 %v4206_v37, %s8489_s11 }
 0x4f8   : > { %2738 = vrot.lane.b32.xlu1 %v6181_v21, %s8251_s15  ;;  %v4207_v21 = vld [vmem:[%s4444_s9 + $0x158] sm:$0x7] }
 0x4f9   : > { %v6684_v49 = vpop.permute.xlu2 %2711  ;;  %v6688_v42 = vpop.permute.xlu0 %2177 }
 0x4fa   : > { %v6686_v55 = vpop.permute.xlu1 %2179  ;;  %8512 = vst [vmem:[#allocation105_spill] sm:$0xff] %v6688_v42 }
 0x4fb   : > { %8511 = vst [vmem:[#allocation104_spill] sm:$0xff] %v6686_v55 }
 0x4ff   : > { %2800 = vrot.lane.b32.xlu2 %v6487_v26, %s8466_s10  ;;  %2190 = vrot.lane.b32.xlu0 %v4207_v21, %s8479_s12  ;;  %v4208_v26 = vld [vmem:[%s4444_s9 + $0x12] sm:$0x7] }
 0x500   : > { %2412 = vrot.lane.b32.xlu1 %v6691_v22, %s8482_s0 }
 0x501   : > { %v6699_v60 = vpop.permute.xlu2 %2376  ;;  %v6703_v55 = vpop.permute.xlu0 %2396 }
 0x502   : > { %v6701_v37 = vpop.permute.xlu1 %2398  ;;  %8513 = vst [vmem:[#allocation106_spill] sm:$0xff] %v6703_v55  ;;  %v4209_v55 = vld [vmem:[%s4444_s9 + $0xb2] sm:$0x7] }
 0x507   : > { %2807 = vrot.lane.b32.xlu2 %v6523_v8, %s8272_s14  ;;  %2647 = vrot.lane.b32.xlu0 %v4208_v26, %s8251_s15 }
 0x508   : > { %2747 = vrot.lane.b32.xlu1 %v6294_v24, %s8254_s13  ;;  %v4210_v24 = vld [vmem:[%s4444_s9 + $0x180] sm:$0x7] }
 0x509   : > { %v6711_v42 = vpop.permute.xlu2 %2172  ;;  %v6715_v21 = vpop.permute.xlu0 %2186 }
 0x50a   : > { %v6713_v23 = vpop.permute.xlu1 %2188  ;;  %8515 = vst [vmem:[#allocation108_spill] sm:$0xff] %v6715_v21  ;;  %v4211_v21 = vld [vmem:[%s4444_s9 + $0x1a8] sm:$0x7] }
 0x50b   : > { %8514 = vst [vmem:[#allocation107_spill] sm:$0xff] %v6713_v23 }
 0x50f   : > { %2665 = vrot.lane.b32.xlu2 %v4209_v55, %s8272_s14  ;;  %2199 = vrot.lane.b32.xlu0 %v4210_v24, %s8482_s0 }
 0x510   : > { %2424 = vrot.lane.b32.xlu1 %v6718_v27, %s8206_s7 }
 0x511   : > { %v6726_v8 = vpop.permute.xlu2 %2731  ;;  %v6730_v23 = vpop.permute.xlu0 %2408 }
 0x512   : > { %v6728_v26 = vpop.permute.xlu1 %2410  ;;  %8516 = vst [vmem:[#allocation109_spill] sm:$0xff] %v6730_v23  ;;  %v8521_v23 = vld [vmem:[#allocation116_spill] sm:$0xff] }
 0x517   : > { %2825 = vrot.lane.b32.xlu2 %v6583_v7, %s8482_s0  ;;  %2758 = vrot.lane.b32.xlu0 %v6233_v3, %s8257_s26 }
 0x518   : > { %2208 = vrot.lane.b32.xlu1 %v4211_v21, %s8206_s7 }
 0x519   : > { %v2637_v55 = vpop.permute.xlu2 %2636  ;;  %v6740_v24 = vpop.permute.xlu0 %2195 }
 0x51a   : > { %v6738_v6 = vpop.permute.xlu1 %2197  ;;  %8518 = vst [vmem:[#allocation99_spill] sm:$0xff] %v6740_v24  ;;  %v3999_v24 = vld [vmem:[%s4444_s9 + $0x269] sm:$0x7] }
 0x51b   : > { %8517 = vst [vmem:[#allocation40_spill] sm:$0xff] %v6738_v6  ;;  %v3998_v6 = vld [vmem:[%s4444_s9 + $0x261] sm:$0x7] }
 0x51f   : > { %2836 = vrot.lane.b32.xlu2 %v6743_v38, %s8206_s7  ;;  %2765 = vrot.lane.b32.xlu0 %v6396_v25, %s8260_s23 }
 0x520   : > { %2767 = vrot.lane.b32.xlu1 %v6393_v30, %s8260_s23  ;;  %v8522_v30 = vld [vmem:[#allocation93_spill] sm:$0xff] }
 0x521   : > { %v6751_v7 = vpop.permute.xlu2 %2740  ;;  %v6755_v21 = vpop.permute.xlu0 %2420  ;;  %v2672_v38 = vsel %vm584_vm2, %v8522_v30, %v2637_v55  ;;  %v4214_v30 = vld [vmem:[%s4444_s9 + $0x121] sm:$0x7] }
 0x522   : > { %v6753_v3 = vpop.permute.xlu1 %2422  ;;  %8520 = vst [vmem:[#allocation113_spill] sm:$0xff] %v6755_v21 }
 0x527   : > { %2715 = vrot.lane.b32.xlu2 %v8521_v23, %s8502_s1  ;;  %2777 = vrot.lane.b32.xlu0 %v3998_v6, %s8263_s8  ;;  %v4212_v23 = vld [vmem:[%s4444_s9 + $0x91] sm:$0x7] }
 0x528   : > { %2779 = vrot.lane.b32.xlu1 %v3999_v24, %s8263_s8 }
 0x529   : > { %v2646_v25 = vpop.permute.xlu2 %2645  ;;  %v6770_v21 = vpop.permute.xlu0 %2204 }
 0x52a   : > { %v6765_v31 = vpop.permute.xlu1 %2206  ;;  %v6768_v32 = vsel %vm588_vm3, %v2672_v38, %v2646_v25  ;;  %8524 = vst [vmem:[#allocation114_spill] sm:$0xff] %v6770_v21  ;;  %v4213_v38 = vld [vmem:[%s4444_s9 + $0x129] sm:$0x7] }
 0x52b   : > { %8523 = vst [vmem:[#allocation42_spill] sm:$0xff] %v6765_v31  ;;  %v6812_v31 = vld [vmem:[%s4444_s9 + $0x61] sm:$0x7] }
 0x52c   : > { %8528 = vst [vmem:[#allocation116_spill] sm:$0xff] %v6812_v31 }
 0x52f   : > { %2640 = vrot.lane.b32.xlu2 %v4212_v23, %s8489_s11  ;;  %2791 = vrot.lane.b32.xlu0 %v4002_v59, %s8266_s16  ;;  %v4000_v59 = vld [vmem:[%s4444_s9 + $0x271] sm:$0x7] }
 0x530   : > { %2798 = vrot.lane.b32.xlu1 %v6490_v43, %s8466_s10 }
 0x531   : > { %v2750_v55 = vpop.permute.xlu2 %2749  ;;  %v6780_v24 = vpop.permute.xlu0 %2432 }
 0x532   : > { %v6778_v6 = vpop.permute.xlu1 %2434  ;;  %8525 = vst [vmem:[#allocation115_spill] sm:$0xff] %v6780_v24  ;;  %v4218_v24 = vld [vmem:[%s4444_s9 + $0x68] sm:$0x7] }
 0x533   : > { %v2224_v54 = vsel %vm576_vm0, %v4218_v24, %v6480_v10 }
 0x537   : > { %2751 = vrot.lane.b32.xlu2 %v6472_v14, %s8254_s13  ;;  %2654 = vrot.lane.b32.xlu0 %v4214_v30, %s8466_s10  ;;  %v4215_v14 = vld [vmem:[%s4444_s9 + $0xaa] sm:$0x7] }
 0x538   : > { %2656 = vrot.lane.b32.xlu1 %v4213_v38, %s8466_s10 }
 0x539   : > { %v6790_v43 = vpop.permute.xlu0 %2213  ;;  %v6793_v23 = vpop.permute.xlu2 %2756 }
 0x53a   : > { %v6788_v25 = vpop.permute.xlu1 %2215  ;;  %8527 = vst [vmem:[#allocation110_spill] sm:$0xff] %v6790_v43  ;;  %v4216_v43 = vld [vmem:[%s4444_s9 + $0x131] sm:$0x7] }
 0x53b   : > { %8526 = vst [vmem:[#allocation98_spill] sm:$0xff] %v6788_v25 }
 0x53f   : > { %2781 = vrot.lane.b32.xlu2 %v4000_v59, %s8263_s8  ;;  %2809 = vrot.lane.b32.xlu0 %v6520_v63, %s8272_s14 }
 0x540   : > { %2663 = vrot.lane.b32.xlu1 %v4215_v14, %s8272_s14  ;;  %v4217_v14 = vld [vmem:[%s4444_s9 + $0x159] sm:$0x7] }
 0x541   : > { %v2155_v30 = vpop.permute.xlu0 %2154  ;;  %v6800_v25 = vpop.permute.xlu2 %2436  ;;  %v2443_v63 = vsel %vm576_vm0, %v4217_v14, %v6465_v62 }
 0x542   : > { %v2365_v38 = vpop.permute.xlu1 %2364 }
 0x547   : > { %2658 = vrot.lane.b32.xlu2 %v4216_v43, %s8466_s10  ;;  %2816 = vrot.lane.b32.xlu0 %v6553_v58, %s8479_s12  ;;  %v2446_v43 = vsel %vm580_vm1, %v2443_v63, %v6498_v36  ;;  %v2227_v58 = vsel %vm580_vm1, %v2224_v54, %v6513_v16  ;;  %v4004_v16 = vld [vmem:[%s4444_s9 + $0x89] sm:$0x7] }
 0x548   : > { %2818 = vrot.lane.b32.xlu1 %v6550_v2, %s8479_s12  ;;  %v4219_v2 = vld [vmem:[%s4444_s9 + $0x171] sm:$0x7]  ;;  %v2449_v10 = vsel %vm584_vm2, %v2446_v43, %v6531_v5 }
 0x549   : > { %v2714_v21 = vpop.permute.xlu0 %2713  ;;  %v6827_v62 = vpop.permute.xlu2 %2217  ;;  %v2452_v54 = vsel %vm588_vm3, %v2449_v10, %v6561_v41  ;;  %v4220_v43 = vld [vmem:[%s4444_s9 + $0x191] sm:$0x7] }
 0x54a   : > { %v2164_v59 = vpop.permute.xlu1 %2163  ;;  %v2856_v36 = vsel %vm576_vm0, %v6124_v29, %v2714_v21 }
 0x54f   : > { %1945 = vrot.lane.b32.xlu2 %v4219_v2, %s8254_s13  ;;  %2827 = vrot.lane.b32.xlu0 %v6580_v47, %s8482_s0  ;;  %v2230_v2 = vsel %vm584_vm2, %v2227_v58, %v6543_v20  ;;  %v2455_v20 = vsel %vm8530_vm6, %v2452_v54, %v6591_v28  ;;  %vm8538_vm6 = vmmov %vm8535_vm4 }
 0x550   : > { %2834 = vrot.lane.b32.xlu1 %v6812_v31, %s8206_s7  ;;  %v4005_v31 = vld [vmem:[%s4444_s9 + $0x91] sm:$0x7]  ;;  %v2233_v21 = vsel %vm588_vm3, %v2230_v2, %v6573_v18 }
 0x551   : > { %v2721_v63 = vpop.permute.xlu0 %2720  ;;  %v2236_v41 = vsel %vm8531_vm11, %v2233_v21, %v6603_v17  ;;  %v4224_v21 = vld [vmem:[%s4444_s9 + $0x230] sm:$0x7] }
 0x552   : > { %v2723_v24 = vpop.permute.xlu1 %2722 }
 0x553   : > { %v2859_v14 = vsel %vm580_vm1, %v2856_v36, %v2723_v24  ;;  %v4221_v36 = vld [vmem:[%s4444_s9 + $0x1e0] sm:$0x7] }
 0x554   : > { %v2862_v47 = vsel %vm584_vm2, %v2859_v14, %v6726_v8 }
 0x555   : > { %v2865_v5 = vsel %vm588_vm3, %v2862_v47, %v6751_v7  ;;  %v2458_v7 = vsel %vm8532_vm10, %v2455_v20, %v6618_v53  ;;  %vm8540_vm10 = vcmask 269312   ;;  %v4225_v20 = vld [vmem:[%s4444_s9 + $0x260] sm:$0x7] }
 0x556   : > { %v6845_v29 = vsel %vm8529_vm7, %v2865_v5, %v2750_v55  ;;  %v6859_v55 = vpop.permute.xlu2 %2789  ;;  %v2461_v58 = vsel %vm8533_vm8, %v2458_v7, %v6642_v52  ;;  %vm8537_vm7 = vcmask 220160   ;;  %vm8541_vm8 = vcmask 293888  }
 0x557   : > { %1952 = vrot.lane.b32.xlu2 %v4220_v43, %s8257_s26  ;;  %2846 = vrot.lane.b32.xlu0 %v4004_v16, %s8208_s17  ;;  %v2464_v28 = vsel %vm8535_vm4, %v2461_v58, %v6672_v61  ;;  %vm8539_vm11 = vmmov %vm8537_vm7  ;;  %vm8543_vm4 = vcmask 318464   ;;  %v4003_v43 = vld [vmem:[%s4444_s9 + $0x1fa] sm:$0x7] }
 0x558   : > { %2848 = vrot.lane.b32.xlu1 %v4005_v31, %s8208_s17  ;;  %v2239_v31 = vsel %vm8534_vm12, %v2236_v41, %v6630_v34  ;;  %v2467_v17 = vsel %vm8537_vm7, %v2464_v28, %v2365_v38  ;;  %vm8542_vm12 = vmmov %vm8540_vm10  ;;  %v8545_v41 = vld [vmem:[#allocation92_spill] sm:$0xff]  ;;  %vm8546_vm7 = vcmask 121856   ;;  %v4226_v28 = vld [vmem:[%s4444_s9 + $0x209] sm:$0x7] }
 0x559   : > { %v2389_v18 = vpop.permute.xlu0 %2388  ;;  %v2242_v10 = vsel %vm8536_vm5, %v2239_v31, %v6657_v0  ;;  %v2470_v52 = vsel %vm612_vm9, %v2467_v17, %v6699_v60  ;;  %v2855_v60 = vsel %vm576_vm0, %v6216_v56, %v6684_v49  ;;  %vm8544_vm5 = vmmov %vm8541_vm8 }
 0x55a   : > { %v2730_v8 = vpop.permute.xlu1 %2729  ;;  %v2245_v53 = vsel %vm8538_vm6, %v2242_v10, %v2155_v30  ;;  %v2473_v0 = vsel %vm8540_vm10, %v2470_v52, %v2389_v18  ;;  %vm8547_vm6 = vcmask 146432   ;;  %v4228_v52 = vld [vmem:[%s4444_s9 + $0x231] sm:$0x7] }
 0x55b   : > { %v2248_v34 = vsel %vm8539_vm11, %v2245_v53, %v2164_v59  ;;  %v4222_v59 = vld [vmem:[%s4444_s9 + $0x208] sm:$0x7]  ;;  %vm8548_vm11 = vmmov %vm8543_vm4 }
 0x55c   : > { %v2251_v30 = vsel %vm612_vm9, %v2248_v34, %v6711_v42  ;;  %v2858_v42 = vsel %vm580_vm1, %v2855_v60, %v2721_v63  ;;  %vm8549_vm10 = vmmov %vm8547_vm6  ;;  %v4231_v60 = vld [vmem:[%s4444_s9 + $0x8] sm:$0x7] }
 0x55d   : > { %v2861_v2 = vsel %vm584_vm2, %v2858_v42, %v2730_v8 }
 0x55e   : > { %v6885_v14 = vpop.permute.xlu2 %2800 }
 0x55f   : > { %1961 = vrot.lane.b32.xlu2 %v4221_v36, %s8260_s23  ;;  %2724 = vrot.lane.b32.xlu0 %v6061_v11, %s8505_s27  ;;  %v4223_v11 = vld [vmem:[%s4444_s9 + $0x1a] sm:$0x7]  ;;  %s4356_s27 = smov 32  }
 0x560   : > { %2733 = vrot.lane.b32.xlu1 %v6418_v1, %s8489_s11 }
 0x561   : > { %v2182_v24 = vpop.permute.xlu0 %2181 }
 0x562   : > { %v2401_v61 = vpop.permute.xlu1 %2400  ;;  %v2254_v1 = vsel %vm8542_vm12, %v2251_v30, %v2182_v24  ;;  %vm8551_vm12 = vmmov %vm8547_vm6 }
 0x563   : > { %v2476_v38 = vsel %vm8541_vm8, %v2473_v0, %v2401_v61  ;;  %v4230_v0 = vld [vmem:[%s4444_s9 + $0x151] sm:$0x7]  ;;  %vm8550_vm8 = vmmov %vm8546_vm7 }
 0x564   : > { %v2442_v61 = vsel %vm576_vm0, %v4230_v0, %v6455_v33  ;;  %v4238_v0 = vld [vmem:[%s4444_s9 + $0x238] sm:$0x7] }
 0x566   : > { %v6899_v5 = vpop.permute.xlu2 %2807 }
 0x567   : > { %1970 = vrot.lane.b32.xlu2 %v4222_v59, %s8263_s8  ;;  %2742 = vrot.lane.b32.xlu0 %v6445_v48, %s8251_s15 }
 0x568   : > { %2649 = vrot.lane.b32.xlu1 %v4223_v11, %s8251_s15  ;;  %s3712_s15 = scalar_lea.hbm %s7964_s5, %s4412_s22 }
 0x569   : > { %v2639_v16 = vpop.permute.xlu0 %2638 }
 0x56a   : > { %v2739_v47 = vpop.permute.xlu1 %2738  ;;  %v2673_v8 = vsel %vm584_vm2, %v8545_v41, %v2639_v16  ;;  %v4233_v16 = vld [vmem:[%s4444_s9 + $0x30] sm:$0x7]  ;;  %v8563_v41 = vld [vmem:[#allocation73_spill] sm:$0xff] }
 0x56b   : > { %v2864_v54 = vsel %vm588_vm3, %v2861_v2, %v2739_v47 }
 0x56f   : > { %1979 = vrot.lane.b32.xlu2 %v4224_v21, %s8266_s16  ;;  %2760 = vrot.lane.b32.xlu0 %v6505_v40, %s8257_s26 }
 0x570   : > { %2769 = vrot.lane.b32.xlu1 %v6610_v19, %s8260_s23  ;;  %v6915_v19 = vpop.permute.xlu2 %2665 }
 0x571   : > { %v2191_v49 = vpop.permute.xlu0 %2190 }
 0x572   : > { %v2413_v56 = vpop.permute.xlu1 %2412  ;;  %v2257_v63 = vsel %vm8544_vm5, %v2254_v1, %v2191_v49 }
 0x573   : > { %v2479_v48 = vsel %vm8543_vm4, %v2476_v38, %v2413_v56  ;;  %vm8552_vm4 = vcmask 171008  }
 0x574   : > { %vm8553_vm5 = vmmov %vm8552_vm4 }
 0x577   : > { %1990 = vrot.lane.b32.xlu2 %v4225_v20, %s8466_s10  ;;  %2793 = vrot.lane.b32.xlu0 %v4003_v43, %s8266_s16  ;;  %v4006_v43 = vld [vmem:[%s4444_s9 + $0x99] sm:$0x7] }
 0x578   : > { %2802 = vrot.lane.b32.xlu1 %v6664_v39, %s8466_s10  ;;  %v4227_v39 = vld [vmem:[%s4444_s9 + $0x169] sm:$0x7]  ;;  %v6929_v17 = vpop.permute.xlu2 %2825 }
 0x579   : > { %v2648_v18 = vpop.permute.xlu0 %2647 }
 0x57a   : > { %v2748_v40 = vpop.permute.xlu1 %2747  ;;  %v2676_v58 = vsel %vm588_vm3, %v2673_v8, %v2648_v18 }
 0x57b   : > { %v2867_v7 = vsel %vm8546_vm7, %v2864_v54, %v2748_v40  ;;  %vm8554_vm7 = vmmov %vm8552_vm4 }
 0x57c   : > { %v2870_v31 = vsel %vm8547_vm6, %v2867_v7, %v6793_v23  ;;  %vm8555_vm6 = vcmask 195584   ;;  %v8567_v7 = vld [vmem:[#allocation76_spill] sm:$0xff] }
 0x57f   : > { %2006 = vrot.lane.b32.xlu2 %v4226_v28, %s8479_s12  ;;  %2811 = vrot.lane.b32.xlu0 %v6691_v22, %s8272_s14  ;;  %v4229_v22 = vld [vmem:[%s4444_s9 + $0xba] sm:$0x7]  ;;  %v8570_v28 = vld [vmem:[#allocation77_spill] sm:$0xff] }
 0x580   : > { %1943 = vrot.lane.b32.xlu1 %v4227_v39, %s8254_s13  ;;  %v6955_v59 = vpop.permute.xlu2 %2836 }
 0x581   : > { %v2200_v36 = vpop.permute.xlu0 %2199 }
 0x582   : > { %v2425_v10 = vpop.permute.xlu1 %2424  ;;  %v2260_v34 = vsel %vm8548_vm11, %v2257_v63, %v2200_v36  ;;  %vm8556_vm11 = vcmask 220160   ;;  %v4236_v36 = vld [vmem:[%s4444_s9 + $0x258] sm:$0x7] }
 0x583   : > { %v2482_v53 = vsel %vm628_vm13, %v2479_v48, %v2425_v10  ;;  %v8572_v10 = vld [vmem:[#allocation78_spill] sm:$0xff] }
 0x584   : > { %v6935_v23 = vsel %vm632_vm14, %v2482_v53, %v6800_v25 }
 0x587   : > { %2015 = vrot.lane.b32.xlu2 %v4228_v52, %s8482_s0  ;;  %2667 = vrot.lane.b32.xlu0 %v4229_v22, %s8272_s14  ;;  %v8574_v52 = vld [vmem:[#allocation79_spill] sm:$0xff] }
 0x588   : > { %2820 = vrot.lane.b32.xlu1 %v6718_v27, %s8479_s12  ;;  %v2445_v27 = vsel %vm580_vm1, %v2442_v61, %v6268_v51  ;;  %v8576_v61 = vld [vmem:[#allocation80_spill] sm:$0xff] }
 0x589   : > { %v2759_v25 = vpop.permute.xlu0 %2758  ;;  %v2448_v33 = vsel %vm584_vm2, %v2445_v27, %v6502_v46 }
 0x58a   : > { %v2209_v38 = vpop.permute.xlu1 %2208  ;;  %v2871_v24 = vsel %vm8549_vm10, %v6845_v29, %v2759_v25  ;;  %v2451_v11 = vsel %vm588_vm3, %v2448_v33, %v6515_v57  ;;  %vm8557_vm10 = vcmask 269312   ;;  %v8578_v25 = vld [vmem:[#allocation83_spill] sm:$0xff] }
 0x58b   : > { %v2263_v30 = vsel %vm628_vm13, %v2260_v34, %v2209_v38  ;;  %v2454_v51 = vsel %vm8550_vm8, %v2451_v11, %v6386_v45  ;;  %v6982_v45 = vpop.permute.xlu2 %2715  ;;  %vm8558_vm8 = vcmask 293888   ;;  %v4237_v34 = vld [vmem:[%s4444_s9 + $0x218] sm:$0x7] }
 0x58c   : > { %v6951_v1 = vsel %vm632_vm14, %v2263_v30, %v6827_v62  ;;  %v4232_v62 = vld [vmem:[%s4444_s9 + $0x199] sm:$0x7]  ;;  %v2457_v46 = vsel %vm8551_vm12, %v2454_v51, %v6565_v4  ;;  %vm8559_vm12 = vmmov %vm8555_vm6 }
 0x58d   : > { %v2460_v2 = vsel %vm8553_vm5, %v2457_v46, %v6575_v13  ;;  %v4234_v13 = vld [vmem:[%s4444_s9 + $0x1e8] sm:$0x7]  ;;  %vm8562_vm5 = vcmask 121856   ;;  %v8580_v11 = vld [vmem:[#allocation84_spill] sm:$0xff] }
 0x58e   : > { %v2463_v54 = vsel %vm8555_vm6, %v2460_v2, %v6453_v44  ;;  %vm8566_vm6 = vcmask 146432   ;;  %v4239_v46 = vld [vmem:[%s4444_s9 + $0x1e9] sm:$0x7] }
 0x58f   : > { %2024 = vrot.lane.b32.xlu2 %v4231_v60, %s8206_s7  ;;  %1954 = vrot.lane.b32.xlu0 %v4232_v62, %s8257_s26  ;;  %v2466_v4 = vsel %vm8556_vm11, %v2463_v54, %v6620_v12  ;;  %vm8568_vm11 = vmmov %vm8566_vm6 }
 0x590   : > { %2829 = vrot.lane.b32.xlu1 %v6649_v35, %s8482_s0  ;;  %v6978_v35 = vld [vmem:[%s4444_s9 + $0x71] sm:$0x7]  ;;  %v2469_v21 = vsel %vm612_vm9, %v2466_v4, %v6644_v9 }
 0x591   : > { %v2766_v42 = vpop.permute.xlu0 %2765  ;;  %v2472_v44 = vsel %vm8557_vm10, %v2469_v21, %v6674_v15  ;;  %v8561_v15 = vld [vmem:[#allocation72_spill] sm:$0xff]  ;;  %vm8569_vm10 = vcmask 220160  }
 0x592   : > { %v2768_v29 = vpop.permute.xlu1 %2767  ;;  %v6975_v47 = vsel %vm8554_vm7, %v2870_v31, %v2766_v42  ;;  %v2475_v48 = vsel %vm8558_vm8, %v2472_v44, %v6701_v37  ;;  %v2679_v40 = vsel %vm8562_vm5, %v2676_v58, %v8561_v15  ;;  %vm8564_vm7 = vmmov %vm8562_vm5  ;;  %vm8571_vm8 = vcmask 171008   ;;  %v4241_v42 = vld [vmem:[%s4444_s9 + $0x1e1] sm:$0x7]  ;;  %v4242_v21 = vld [vmem:[%s4444_s9 + $0x179] sm:$0x7] }
 0x593   : > { %v2874_v57 = vsel %vm8552_vm4, %v2871_v24, %v2768_v29  ;;  %vm8560_vm4 = vcmask 318464   ;;  %v2678_v37 = vsel %vm8564_vm7, %v6768_v32, %v8563_v41  ;;  %vm8579_vm7 = vmmov %vm8569_vm10  ;;  %v4243_v44 = vld [vmem:[%s4444_s9 + $0x219] sm:$0x7]  ;;  %v4247_v41 = vld [vmem:[%s4444_s9 + $0x1c1] sm:$0x7] }
 0x594   : > { %v2478_v12 = vsel %vm8560_vm4, %v2475_v48, %v6728_v26  ;;  %v4235_v26 = vld [vmem:[%s4444_s9 + $0x210] sm:$0x7]  ;;  %v2681_v18 = vsel %vm8568_vm11, %v2678_v37, %v8567_v7  ;;  %vm8575_vm4 = vcmask 195584   ;;  %vm8582_vm11 = vcmask 269312   ;;  %v8587_v37 = vld [vmem:[#allocation41_spill] sm:$0xff] }
 0x595   : > { %v2481_v20 = vsel %vm628_vm13, %v2478_v12, %v6753_v3  ;;  %v8565_v3 = vld [vmem:[#allocation75_spill] sm:$0xff]  ;;  %vm8577_vm5 = vmmov %vm8575_vm4  ;;  %v4245_v12 = vld [vmem:[%s4444_s9 + $0x149] sm:$0x7] }
 0x596   : > { %v2484_v9 = vsel %vm632_vm14, %v2481_v20, %v6778_v6  ;;  %v2682_v8 = vsel %vm8566_vm6, %v2679_v40, %v8565_v3  ;;  %v7019_v6 = vpop.permute.xlu2 %2640  ;;  %vm8581_vm6 = vmmov %vm8579_vm7  ;;  %v8586_v20 = vld [vmem:[#allocation9_spill] sm:$0xff]  ;;  %v4248_v3 = vld [vmem:[%s4444_s9 + $0x239] sm:$0x7] }
 0x597   : > { %2033 = vrot.lane.b32.xlu2 %v4233_v16, %s8208_s17  ;;  %1963 = vrot.lane.b32.xlu0 %v4234_v13, %s8260_s23  ;;  %v2685_v39 = vsel %vm8571_vm8, %v2682_v8, %v8570_v28  ;;  %v4246_v40 = vld [vmem:[%s4444_s9 + $0x1a1] sm:$0x7]  ;;  %v8589_v7 = vld [vmem:[#allocation18_spill] sm:$0xff] }
 0x598   : > { %2838 = vrot.lane.b32.xlu1 %v6978_v35, %s8206_s7  ;;  %v2688_v22 = vsel %vm8575_vm4, %v2685_v39, %v8574_v52  ;;  %vm8590_vm4 = vcmask 121856   ;;  %v8592_v39 = vld [vmem:[#allocation25_spill] sm:$0xff] }
 0x599   : > { %v6999_v63 = vpop.permute.xlu0 %2777  ;;  %v2691_v24 = vsel %vm8579_vm7, %v2688_v22, %v8578_v25  ;;  %vm8593_vm7 = vcmask 146432   ;;  %v4249_v22 = vld [vmem:[%s4444_s9 + $0x1f0] sm:$0x7] }
 0x59a   : > { %v2780_v56 = vpop.permute.xlu1 %2779  ;;  %v8600_v25 = vld [vmem:[#allocation38_spill] sm:$0xff] }
 0x59b   : > { %v2877_v49 = vsel %vm8559_vm12, %v2874_v57, %v2780_v56  ;;  %vm8573_vm12 = vmmov %vm8571_vm8  ;;  %v4240_v57 = vld [vmem:[%s4444_s9 + $0x240] sm:$0x7]  ;;  %v4244_v56 = vld [vmem:[%s4444_s9 + $0x211] sm:$0x7] }
 0x59c   : > { %v2684_v53 = vsel %vm8573_vm12, %v2681_v18, %v8572_v10  ;;  %vm8585_vm12 = vcmask 293888  }
 0x59d   : > { %v2687_v38 = vsel %vm8577_vm5, %v2684_v53, %v8576_v61  ;;  %vm8591_vm5 = vcmask 318464   ;;  %v8594_v53 = vld [vmem:[#allocation27_spill] sm:$0xff]  ;;  %v8598_v61 = vld [vmem:[#allocation33_spill] sm:$0xff] }
 0x59e   : > { %v7042_v27 = vpop.permute.xlu2 %2751  ;;  %v2690_v60 = vsel %vm8581_vm6, %v2687_v38, %v8580_v11  ;;  %vm8595_vm6 = vcmask 171008   ;;  %v8601_v11 = vld [vmem:[#allocation103_spill] sm:$0xff] }
 0x59f   : > { %2503 = vrot.lane.b32.xlu2 %v2484_v9, %s8347_s6  ;;  %1972 = vrot.lane.b32.xlu0 %v4235_v26, %s8263_s8 }
 0x5a0   : > { %2850 = vrot.lane.b32.xlu1 %v4006_v43, %s8208_s17  ;;  %v2441_v43 = vsel %vm576_vm0, %v4245_v12, %v6457_v50  ;;  %v8588_v50 = vld [vmem:[#allocation17_spill] sm:$0xff] }
 0x5a1   : > { %v2792_v31 = vpop.permute.xlu0 %2791  ;;  %v2444_v9 = vsel %vm580_vm1, %v2441_v43, %v8586_v20  ;;  %v8608_v43 = vld [vmem:[#allocation113_spill] sm:$0xff] }
 0x5a2   : > { %v7023_v58 = vpop.permute.xlu1 %2798  ;;  %v2880_v32 = vsel %vm8569_vm10, %v2877_v49, %v2792_v31  ;;  %vm8583_vm10 = vmmov %vm8582_vm11  ;;  %v2447_v26 = vsel %vm584_vm2, %v2444_v9, %v8587_v37  ;;  %v8609_v9 = vld [vmem:[#allocation14_spill] sm:$0xff] }
 0x5a3   : > { %vm8584_vm8 = vmmov %vm8583_vm10  ;;  %v2450_v8 = vsel %vm588_vm3, %v2447_v26, %v8588_v50  ;;  %v8611_v26 = vld [vmem:[#allocation15_spill] sm:$0xff] }
 0x5a4   : > { %v2453_v18 = vsel %vm8590_vm4, %v2450_v8, %v8589_v7  ;;  %vm8605_vm4 = vmmov %vm8591_vm5  ;;  %v8612_v50 = vld [vmem:[#allocation111_spill] sm:$0xff] }
 0x5a5   : > { %v2456_v10 = vsel %vm8593_vm7, %v2453_v18, %v8592_v39  ;;  %v4254_v7 = vld [vmem:[%s4444_s9 + $0x38] sm:$0x7]  ;;  %v8615_v39 = vld [vmem:[#allocation21_spill] sm:$0xff]  ;;  %vm8616_vm7 = vcmask 121856  }
 0x5a6   : > { %v7064_v13 = vpop.permute.xlu2 %2781  ;;  %v8613_v18 = vld [vmem:[#allocation20_spill] sm:$0xff] }
 0x5a7   : > { %1974 = vrot.lane.b32.xlu2 %v4237_v34, %s8263_s8  ;;  %1981 = vrot.lane.b32.xlu0 %v4238_v0, %s8266_s16  ;;  %v8596_v34 = vld [vmem:[#allocation30_spill] sm:$0xff] }
 0x5a8   : > { %1988 = vrot.lane.b32.xlu1 %v4236_v36, %s8466_s10  ;;  %v2459_v36 = vsel %vm8595_vm6, %v2456_v10, %v8594_v53  ;;  %v4250_v0 = vld [vmem:[%s4444_s9 + $0x14a] sm:$0x7]  ;;  %v8617_v53 = vld [vmem:[#allocation23_spill] sm:$0xff]  ;;  %vm8619_vm6 = vmmov %vm8616_vm7 }
 0x5a9   : > { %v2655_v62 = vpop.permute.xlu0 %2654 }
 0x5aa   : > { %v2657_v30 = vpop.permute.xlu1 %2656  ;;  %v2693_v29 = vsel %vm612_vm9, %v2690_v60, %v2655_v62 }
 0x5ab   : > { %v2694_v33 = vsel %vm612_vm9, %v2691_v24, %v2657_v30  ;;  %v4251_v30 = vld [vmem:[%s4444_s9 + $0x10] sm:$0x7] }
 0x5ac   : > { %v7049_v51 = vsel %vm8582_vm11, %v2694_v33, %v6915_v19  ;;  %v2883_v19 = vsel %vm612_vm9, %v2880_v32, %v6885_v14  ;;  %vm8597_vm11 = vcmask 195584  }
 0x5ad   : > { %v2462_v52 = vsel %vm8597_vm11, %v2459_v36, %v8596_v34  ;;  %v8618_v34 = vld [vmem:[#allocation24_spill] sm:$0xff] }
 0x5ae   : > { %v7080_v15 = vpop.permute.xlu2 %2658 }
 0x5af   : > { %1983 = vrot.lane.b32.xlu2 %v4240_v57, %s8266_s16  ;;  %1997 = vrot.lane.b32.xlu0 %v4241_v42, %s8272_s14 }
 0x5b0   : > { %1999 = vrot.lane.b32.xlu1 %v4239_v46, %s8272_s14  ;;  %v8602_v46 = vld [vmem:[#allocation106_spill] sm:$0xff] }
 0x5b1   : > { %v2810_v16 = vpop.permute.xlu0 %2809 }
 0x5b2   : > { %v2664_v2 = vpop.permute.xlu1 %2663  ;;  %v2886_v4 = vsel %vm8584_vm8, %v2883_v19, %v2810_v16  ;;  %v4252_v19 = vld [vmem:[%s4444_s9 + $0x60] sm:$0x7]  ;;  %v8603_v16 = vld [vmem:[#allocation11_spill] sm:$0xff] }
 0x5b3   : > { %v7059_v54 = vsel %vm8583_vm10, %v2693_v29, %v2664_v2  ;;  %vm8599_vm10 = vcmask 220160  }
 0x5b4   : > { %v2465_v38 = vsel %vm8599_vm10, %v2462_v52, %v8598_v61 }
 0x5b5   : > { %v2468_v24 = vsel %vm612_vm9, %v2465_v38, %v8600_v25 }
 0x5b6   : > { %v7113_v33 = vpop.permute.xlu2 %1945  ;;  %v2471_v60 = vsel %vm8584_vm8, %v2468_v24, %v8601_v11  ;;  %v8622_v24 = vld [vmem:[#allocation31_spill] sm:$0xff] }
 0x5b7   : > { %2010 = vrot.lane.b32.xlu2 %v4243_v44, %s8479_s12  ;;  %2008 = vrot.lane.b32.xlu0 %v4244_v56, %s8479_s12  ;;  %v2474_v57 = vsel %vm8585_vm12, %v2471_v60, %v8602_v46  ;;  %v4253_v56 = vld [vmem:[%s4444_s9 + $0x58] sm:$0x7] }
 0x5b8   : > { %1947 = vrot.lane.b32.xlu1 %v4242_v21, %s8254_s13  ;;  %v8604_v21 = vld [vmem:[#allocation109_spill] sm:$0xff]  ;;  %v8626_v46 = vld [vmem:[#allocation32_spill] sm:$0xff] }
 0x5b9   : > { %v7073_v49 = vpop.permute.xlu0 %2816  ;;  %v2477_v44 = vsel %vm8605_vm4, %v2474_v57, %v8604_v21  ;;  %v8631_v21 = vld [vmem:[#allocation100_spill] sm:$0xff] }
 0x5ba   : > { %v2819_v48 = vpop.permute.xlu1 %2818  ;;  %v2480_v20 = vsel %vm628_vm13, %v2477_v44, %v8608_v43  ;;  %v8633_v44 = vld [vmem:[#allocation36_spill] sm:$0xff]  ;;  %v8639_v43 = vld [vmem:[#allocation39_spill] sm:$0xff] }
 0x5bb   : > { %v2889_v14 = vsel %vm8585_vm12, %v2886_v4, %v2819_v48  ;;  %v2223_v4 = vsel %vm576_vm0, %v4252_v19, %v8603_v16  ;;  %v8606_v48 = vld [vmem:[#allocation101_spill] sm:$0xff]  ;;  %vm8625_vm12 = vcmask 171008   ;;  %v8628_v19 = vld [vmem:[#allocation10_spill] sm:$0xff] }
 0x5be   : > { %v7165_v61 = vpop.permute.xlu2 %1952 }
 0x5bf   : > { %2569 = vrot.lane.b32.xlu2 %v4247_v41, %s8254_s13  ;;  %2017 = vrot.lane.b32.xlu0 %v4248_v3, %s8482_s0  ;;  %v8610_v41 = vld [vmem:[#allocation115_spill] sm:$0xff] }
 0x5c0   : > { %1956 = vrot.lane.b32.xlu1 %v4246_v40, %s8257_s26  ;;  %v2483_v37 = vsel %vm632_vm14, %v2480_v20, %v8610_v41 }
 0x5c1   : > { %v2828_v32 = vpop.permute.xlu0 %2827 }
 0x5c2   : > { %v7094_v31 = vpop.permute.xlu1 %2834  ;;  %v2892_v28 = vsel %vm8591_vm5, %v2889_v14, %v2828_v32  ;;  %v8607_v14 = vld [vmem:[#allocation12_spill] sm:$0xff]  ;;  %vm8614_vm5 = vmmov %vm8597_vm11  ;;  %vm8621_vm11 = vcmask 146432  }
 0x5c3   : > { %v2895_v29 = vsel %vm628_vm13, %v2892_v28, %v6955_v59  ;;  %v2222_v59 = vsel %vm576_vm0, %v4253_v56, %v8606_v48  ;;  %v2226_v12 = vsel %vm580_vm1, %v2223_v4, %v8607_v14  ;;  %v2876_v28 = vsel %vm8614_vm5, %v6975_v47, %v6999_v63  ;;  %vm8623_vm8 = vmmov %vm8621_vm11  ;;  %v8630_v4 = vld [vmem:[#allocation112_spill] sm:$0xff]  ;;  %v8637_v14 = vld [vmem:[#allocation37_spill] sm:$0xff] }
 0x5c4   : > { %v2225_v40 = vsel %vm580_vm1, %v2222_v59, %v8609_v9  ;;  %v2229_v8 = vsel %vm584_vm2, %v2226_v12, %v8612_v50  ;;  %v2879_v63 = vsel %vm8599_vm10, %v2876_v28, %v6859_v55  ;;  %vm8627_vm4 = vmmov %vm8614_vm5  ;;  %v4256_v55 = vld [vmem:[%s4444_s9 + $0x261] sm:$0x7] }
 0x5c5   : > { %v2228_v3 = vsel %vm584_vm2, %v2225_v40, %v8611_v26  ;;  %v2232_v32 = vsel %vm588_vm3, %v2229_v8, %v8613_v18  ;;  %v2882_v60 = vsel %vm612_vm9, %v2879_v63, %v7023_v58  ;;  %vm8629_vm5 = vmmov %vm8625_vm12  ;;  %v8636_v59 = vld [vmem:[#allocation116_spill] sm:$0xff]  ;;  %v8641_v40 = vld [vmem:[#allocation102_spill] sm:$0xff] }
 0x5c6   : > { %v2235_v10 = vsel %vm8616_vm7, %v2232_v32, %v8615_v39  ;;  %vm8632_vm7 = vmmov %vm8627_vm4  ;;  %v8646_v8 = vld [vmem:[#allocation107_spill] sm:$0xff]  ;;  %v8648_v32 = vld [vmem:[#allocation108_spill] sm:$0xff] }
 0x5c7   : > { %2578 = vrot.lane.b32.xlu2 %v4250_v0, %s8257_s26  ;;  %2026 = vrot.lane.b32.xlu0 %v4251_v30, %s8206_s7  ;;  %v8620_v30 = vld [vmem:[#allocation26_spill] sm:$0xff]  ;;  %v2238_v11 = vsel %vm8623_vm8, %v2235_v10, %v8622_v24  ;;  %vm8640_vm8 = vcmask 293888   ;;  %v8650_v39 = vld [vmem:[#allocation40_spill] sm:$0xff] }
 0x5c8   : > { %1965 = vrot.lane.b32.xlu1 %v4249_v22, %s8260_s23  ;;  %v4255_v22 = vld [vmem:[%s4444_s9 + $0x1a9] sm:$0x7] }
 0x5c9   : > { %v7124_v2 = vpop.permute.xlu0 %2846  ;;  %v2857_v0 = vsel %vm576_vm0, %v4255_v22, %v6982_v45  ;;  %v8624_v45 = vld [vmem:[#allocation29_spill] sm:$0xff]  ;;  %v1962_v22 = vpop.permute.xlu2 %1961  ;;  %v8659_v24 = vld [vmem:[#allocation110_spill] sm:$0xff] }
 0x5ca   : > { %v2849_v62 = vpop.permute.xlu1 %2848 }
 0x5cb   : > { %v7122_v42 = vsel %vm632_vm14, %v2895_v29, %v2849_v62  ;;  %v2241_v29 = vsel %vm8625_vm12, %v2238_v11, %v8624_v45 }
 0x5cc   : > { %v2244_v57 = vsel %vm8627_vm4, %v2241_v29, %v8626_v46  ;;  %v4257_v46 = vld [vmem:[%s4444_s9 + $0x1f1] sm:$0x7] }
 0x5cf   : > { %2517 = vrot.lane.b32.xlu2 %v6978_v35, %s8348_s25  ;;  %2035 = vrot.lane.b32.xlu0 %v4254_v7, %s8208_s17  ;;  %v2231_v35 = vsel %vm588_vm3, %v2228_v3, %v8617_v53 }
 0x5d0   : > { %2501 = vrot.lane.b32.xlu1 %v2483_v37, %s8347_s6  ;;  %v2234_v52 = vsel %vm8619_vm6, %v2231_v35, %v8618_v34  ;;  %vm8634_vm6 = vmmov %vm8599_vm10  ;;  %v8642_v37 = vld [vmem:[#allocation104_spill] sm:$0xff]  ;;  %v8653_v35 = vld [vmem:[#allocation99_spill] sm:$0xff] }
 0x5d1   : > { %v2725_v38 = vpop.permute.xlu0 %2724  ;;  %v2237_v47 = vsel %vm8621_vm11, %v2234_v52, %v8620_v30  ;;  %v2247_v56 = vsel %vm8634_vm6, %v2244_v57, %v8633_v44  ;;  %vm8635_vm11 = vcmask 269312   ;;  %vm8638_vm10 = vmmov %vm8634_vm6  ;;  %vm8651_vm6 = vcmask 318464   ;;  %v8655_v34 = vld [vmem:[#allocation42_spill] sm:$0xff]  ;;  %v7242_v29 = vpop.permute.xlu2 %1970  ;;  %v8663_v57 = vld [vmem:[#allocation81_spill] sm:$0xff] }
 0x5d2   : > { %v2734_v36 = vpop.permute.xlu1 %2733  ;;  %v2860_v25 = vsel %vm580_vm1, %v2857_v0, %v2725_v38  ;;  %v2240_v16 = vsel %vm8629_vm5, %v2237_v47, %v8628_v19  ;;  %v2885_v48 = vsel %vm8635_vm11, %v2882_v60, %v6899_v5  ;;  %v2250_v20 = vsel %vm612_vm9, %v2247_v56, %v8639_v43  ;;  %vm8643_vm12 = vmmov %vm8635_vm11  ;;  %v8644_v5 = vld [vmem:[#allocation105_spill] sm:$0xff]  ;;  %v8657_v30 = vld [vmem:[#allocation114_spill] sm:$0xff] }
 0x5d3   : > { %v2863_v62 = vsel %vm584_vm2, %v2860_v25, %v2734_v36  ;;  %v2243_v58 = vsel %vm8632_vm7, %v2240_v16, %v8631_v21  ;;  %v2888_v9 = vsel %vm8640_vm8, %v2885_v48, %v7073_v49  ;;  %v2253_v26 = vsel %vm8643_vm12, %v2250_v20, %v8642_v37  ;;  %vm8645_vm4 = vmmov %vm8635_vm11  ;;  %v8658_v47 = vld [vmem:[#allocation98_spill] sm:$0xff]  ;;  %v8664_v21 = vld [vmem:[#allocation68_spill] sm:$0xff] }
 0x5d4   : > { %v2246_v12 = vsel %vm8638_vm10, %v2243_v58, %v8637_v14  ;;  %vm8647_vm5 = vmmov %vm8640_vm8  ;;  %vm8656_vm8 = vcmask 121856   ;;  %vm8660_vm12 = vcmask 146432   ;;  %v2674_v19 = vsel %vm584_vm2, %v8663_v57, %v7019_v6  ;;  %v4258_v16 = vld [vmem:[%s4444_s9 + $0x268] sm:$0x7]  ;;  %v4259_v44 = vld [vmem:[%s4444_s9 + $0x140] sm:$0x7] }
 0x5d5   : > { %v2249_v41 = vsel %vm612_vm9, %v2246_v12, %v8641_v40  ;;  %v2256_v7 = vsel %vm8647_vm5, %v2253_v26, %v8646_v8  ;;  %vm8649_vm7 = vmmov %vm8647_vm5  ;;  %vm8662_vm5 = vcmask 195584   ;;  %v8666_v56 = vld [vmem:[#allocation22_spill] sm:$0xff]  ;;  %v4260_v6 = vld [vmem:[%s4444_s9 + $0x1b9] sm:$0x7] }
 0x5d6   : > { %v2252_v50 = vsel %vm8645_vm4, %v2249_v41, %v8644_v5  ;;  %v2259_v49 = vsel %vm8651_vm6, %v2256_v7, %v8650_v39  ;;  %vm8652_vm11 = vmmov %vm8651_vm6  ;;  %vm8661_vm4 = vcmask 171008   ;;  %v2042_v48 = vsel %vm576_vm0, %v4259_v44, %v8666_v56  ;;  %v4261_v12 = vld [vmem:[%s4444_s9 + $0x1c9] sm:$0x7]  ;;  %v8669_v43 = vld [vmem:[#allocation28_spill] sm:$0xff] }
 0x5d7   : > { %2587 = vrot.lane.b32.xlu2 %v4256_v55, %s8479_s12  ;;  %2513 = vrot.lane.b32.xlu0 %v8636_v59, %s8348_s25  ;;  %v2255_v28 = vsel %vm8649_vm7, %v2252_v50, %v8648_v32  ;;  %v2891_v10 = vsel %vm8652_vm11, %v2888_v9, %v6929_v17  ;;  %vm8654_vm10 = vmmov %vm8651_vm6  ;;  %v2262_v52 = vsel %vm628_vm13, %v2259_v49, %v8655_v34  ;;  %v8667_v59 = vld [vmem:[#allocation69_spill] sm:$0xff]  ;;  %v8670_v40 = vld [vmem:[#allocation59_spill] sm:$0xff] }
 0x5d8   : > { %2515 = vrot.lane.b32.xlu1 %v8630_v4, %s8348_s25  ;;  %v2258_v36 = vsel %vm8654_vm10, %v2255_v28, %v8653_v35  ;;  %v2894_v0 = vsel %vm628_vm13, %v2891_v10, %v7094_v31  ;;  %v2265_v63 = vsel %vm632_vm14, %v2262_v52, %v8658_v47  ;;  %vm8665_vm7 = vmmov %vm8656_vm8  ;;  %v2045_v20 = vsel %vm580_vm1, %v2042_v48, %v8669_v43  ;;  %v4262_v9 = vld [vmem:[%s4444_s9 + $0x241] sm:$0x7]  ;;  %v8671_v26 = vld [vmem:[#allocation6_spill] sm:$0xff] }
 0x5d9   : > { %v2743_v18 = vpop.permute.xlu0 %2742  ;;  %v2261_v17 = vsel %vm628_vm13, %v2258_v36, %v8657_v30  ;;  %v2897_v25 = vsel %vm632_vm14, %v2894_v0, %v7124_v2  ;;  %vm8668_vm6 = vmmov %vm8660_vm12  ;;  %v2048_v41 = vsel %vm584_vm2, %v2045_v20, %v8670_v40  ;;  %v7274_v37 = vpop.permute.xlu2 %1979  ;;  %v8672_v5 = vld [vmem:[#allocation70_spill] sm:$0xff]  ;;  %v8677_v39 = vld [vmem:[#allocation71_spill] sm:$0xff] }
 0x5da   : > { %v2650_v3 = vpop.permute.xlu1 %2649  ;;  %v2866_v53 = vsel %vm588_vm3, %v2863_v62, %v2743_v18  ;;  %v2264_v11 = vsel %vm632_vm14, %v2261_v17, %v8659_v24  ;;  %v4008_v62 = vld [vmem:[%s4444_s9 + $0x1a] sm:$0x7]  ;;  %vm8673_vm11 = vmmov %vm8661_vm4  ;;  %v4263_v10 = vld [vmem:[%s4444_s9 + $0x142] sm:$0x7] }
 0x5db   : > { %v2869_v38 = vsel %vm8656_vm8, %v2866_v53, %v7042_v27  ;;  %v2677_v55 = vsel %vm588_vm3, %v2674_v19, %v2650_v3  ;;  %v2051_v3 = vsel %vm588_vm3, %v2048_v41, %v8671_v26  ;;  %vm8674_vm10 = vmmov %vm8665_vm7  ;;  %v4264_v53 = vld [vmem:[%s4444_s9 + $0x1f2] sm:$0x7]  ;;  %v4265_v35 = vld [vmem:[%s4444_s9 + $0x18] sm:$0x7] }
 0x5dc   : > { %v2680_v58 = vsel %vm8665_vm7, %v2677_v55, %v8664_v21  ;;  %vm8675_vm8 = vmmov %vm8668_vm6  ;;  %v8679_v36 = vld [vmem:[#allocation74_spill] sm:$0xff]  ;;  %vm8681_vm7 = vcmask 269312   ;;  %v8684_v47 = vld [vmem:[#allocation85_spill] sm:$0xff] }
 0x5dd   : > { %v2683_v14 = vsel %vm8668_vm6, %v2680_v58, %v8667_v59  ;;  %v8682_v30 = vld [vmem:[#allocation82_spill] sm:$0xff]  ;;  %vm8683_vm6 = vcmask 293888   ;;  %v8686_v24 = vld [vmem:[#allocation19_spill] sm:$0xff]  ;;  %v8692_v40 = vld [vmem:[#allocation88_spill] sm:$0xff] }
 0x5de   : > { %v2686_v50 = vsel %vm8673_vm11, %v2683_v14, %v8672_v5  ;;  %vm8685_vm11 = vcmask 318464   ;;  %v8690_v57 = vld [vmem:[#allocation34_spill] sm:$0xff]  ;;  %v4268_v48 = vld [vmem:[%s4444_s9 + $0x259] sm:$0x7]  ;;  %v8694_v26 = vld [vmem:[#allocation89_spill] sm:$0xff] }
 0x5df   : > { %2915 = vrot.lane.b32.xlu2 %v2897_v25, %s8347_s6  ;;  %2489 = vrot.lane.b32.xlu0 %v2264_v11, %s8321_s30  ;;  %v4266_v25 = vld [vmem:[%s4444_s9 + $0x148] sm:$0x7] }
 0x5e0   : > { %2491 = vrot.lane.b32.xlu1 %v2265_v63, %s8321_s30  ;;  %v2043_v11 = vsel %vm576_vm0, %v4266_v25, %v8686_v24 }
 0x5e1   : > { %v2761_v31 = vpop.permute.xlu0 %2760  ;;  %v7300_v52 = vpop.permute.xlu2 %1990 }
 0x5e2   : > { %v2770_v27 = vpop.permute.xlu1 %2769  ;;  %v2872_v60 = vsel %vm8660_vm12, %v2869_v38, %v2761_v31  ;;  %vm8676_vm12 = vmmov %vm8661_vm4  ;;  %v8688_v31 = vld [vmem:[#allocation7_spill] sm:$0xff] }
 0x5e3   : > { %v2875_v45 = vsel %vm8661_vm4, %v2872_v60, %v2770_v27  ;;  %vm8678_vm4 = vmmov %vm8662_vm5  ;;  %v8687_v27 = vld [vmem:[#allocation86_spill] sm:$0xff]  ;;  %v2046_v60 = vsel %vm580_vm1, %v2043_v11, %v8688_v31 }
 0x5e4   : > { %v7240_v2 = vsel %vm8662_vm5, %v2875_v45, %v7064_v13  ;;  %v2689_v49 = vsel %vm8678_vm4, %v2686_v50, %v8677_v39  ;;  %vm8680_vm5 = vcmask 220160   ;;  %v8689_v45 = vld [vmem:[#allocation87_spill] sm:$0xff]  ;;  %v2049_v19 = vsel %vm584_vm2, %v2046_v60, %v8690_v57  ;;  %vm8695_vm4 = vmmov %vm8683_vm6  ;;  %v8700_v39 = vld [vmem:[#allocation94_spill] sm:$0xff] }
 0x5e5   : > { %v8698_v50 = vld [vmem:[#allocation91_spill] sm:$0xff] }
 0x5e7   : > { %2929 = vrot.lane.b32.xlu2 %v4008_v62, %s8348_s25  ;;  %1992 = vrot.lane.b32.xlu0 %v4258_v16, %s8466_s10  ;;  %v4267_v62 = vld [vmem:[%s4444_s9 + $0x40] sm:$0x7] }
 0x5e8   : > { %2001 = vrot.lane.b32.xlu1 %v4257_v46, %s8272_s14 }
 0x5e9   : > { %v7255_v4 = vpop.permute.xlu0 %2793  ;;  %v7332_v56 = vpop.permute.xlu2 %2006 }
 0x5ea   : > { %v7253_v13 = vpop.permute.xlu1 %2802 }
 0x5ef   : > { %2571 = vrot.lane.b32.xlu2 %v4261_v12, %s8254_s13  ;;  %2019 = vrot.lane.b32.xlu0 %v4262_v9, %s8482_s0  ;;  %v4269_v12 = vld [vmem:[%s4444_s9 + $0x1ea] sm:$0x7]  ;;  %v4007_v9 = vld [vmem:[%s4444_s9 + $0x12] sm:$0x7] }
 0x5f0   : > { %2567 = vrot.lane.b32.xlu1 %v4260_v6, %s8254_s13 }
 0x5f1   : > { %v7281_v18 = vpop.permute.xlu0 %2811  ;;  %v7338_v6 = vpop.permute.xlu2 %2015 }
 0x5f2   : > { %v1944_v8 = vpop.permute.xlu1 %1943 }
 0x5f3   : > { %v2054_v7 = vsel %vm8674_vm10, %v2051_v3, %v1944_v8  ;;  %v8696_v3 = vld [vmem:[#allocation90_spill] sm:$0xff] }
 0x5f4   : > { %v2057_v32 = vsel %vm8675_vm8, %v2054_v7, %v7165_v61  ;;  %v2692_v61 = vsel %vm8680_vm5, %v2689_v49, %v8679_v36  ;;  %vm8697_vm5 = vmmov %vm8685_vm11 }
 0x5f5   : > { %v7286_v28 = vsel %vm8676_vm12, %v2057_v32, %v1962_v22  ;;  %v2695_v22 = vsel %vm612_vm9, %v2692_v61, %v7080_v15  ;;  %vm8693_vm12 = vmmov %vm8683_vm6 }
 0x5f6   : > { %v2700_v41 = vsel %vm8693_vm12, %v7049_v51, %v8692_v40  ;;  %vm8708_vm12 = vcmask 195584  }
 0x5f7   : > { %2598 = vrot.lane.b32.xlu2 %v4264_v53, %s8482_s0  ;;  %2028 = vrot.lane.b32.xlu0 %v4265_v35, %s8206_s7  ;;  %v2703_v5 = vsel %vm8697_vm5, %v2700_v41, %v8696_v3  ;;  %v8702_v53 = vld [vmem:[#allocation96_spill] sm:$0xff]  ;;  %v8703_v35 = vld [vmem:[#allocation97_spill] sm:$0xff] }
 0x5f8   : > { %2576 = vrot.lane.b32.xlu1 %v4263_v10, %s8257_s26  ;;  %v2706_v49 = vsel %vm628_vm13, %v2703_v5, %v8700_v39 }
 0x5f9   : > { %v2668_v0 = vpop.permute.xlu0 %2667  ;;  %v2025_v7 = vpop.permute.xlu2 %2024 }
 0x5fa   : > { %v7298_v34 = vpop.permute.xlu1 %2820  ;;  %v2698_v38 = vsel %vm8681_vm7, %v2695_v22, %v2668_v0  ;;  %vm8699_vm7 = vmmov %vm8697_vm5 }
 0x5fb   : > { %v2701_v17 = vsel %vm8683_vm6, %v2698_v38, %v8682_v30  ;;  %vm8704_vm6 = vcmask 220160   ;;  %v4271_v30 = vld [vmem:[%s4444_s9 + $0x269] sm:$0x7] }
 0x5fc   : > { %v2704_v63 = vsel %vm8685_vm11, %v2701_v17, %v8684_v47  ;;  %v2881_v38 = vsel %vm8704_vm6, %v7240_v2, %v7255_v4  ;;  %v4272_v17 = vld [vmem:[%s4444_s9 + $0x152] sm:$0x7]  ;;  %vm8705_vm11 = vcmask 269312  }
 0x5fd   : > { %v2707_v15 = vsel %vm628_vm13, %v2704_v63, %v8687_v27  ;;  %v2884_v47 = vsel %vm612_vm9, %v2881_v38, %v7253_v13  ;;  %v4009_v27 = vld [vmem:[%s4444_s9 + $0x22] sm:$0x7] }
 0x5fe   : > { %v2710_v46 = vsel %vm632_vm14, %v2707_v15, %v8689_v45  ;;  %v2887_v25 = vsel %vm8705_vm11, %v2884_v47, %v7281_v18  ;;  %v8727_v47 = vld [vmem:[#allocation117_spill] sm:$0xff] }
 0x5ff   : > { %2037 = vrot.lane.b32.xlu0 %v4267_v62, %s8208_s17  ;;  %2907 = vrot.lane.b32.xlu2 %v2710_v46, %s8321_s30  ;;  %v2063_v46 = vsel %vm8708_vm12, %v7286_v28, %v7242_v29 }
 0x600   : > { %2505 = vrot.lane.b32.xlu1 %v6935_v23, %s8347_s6  ;;  %v8691_v23 = vld [vmem:[#allocation8_spill] sm:$0xff] }
 0x601   : > { %v2052_v16 = vsel %vm588_vm3, %v2049_v19, %v8691_v23  ;;  %v1955_v58 = vpop.permute.xlu0 %1954  ;;  %v2034_v22 = vpop.permute.xlu2 %2033 }
 0x602   : > { %v2830_v55 = vpop.permute.xlu1 %2829  ;;  %v2055_v21 = vsel %vm8674_vm10, %v2052_v16, %v7113_v33  ;;  %v4270_v33 = vld [vmem:[%s4444_s9 + $0x1e2] sm:$0x7]  ;;  %vm8706_vm10 = vmmov %vm8695_vm4 }
 0x603   : > { %v7330_v44 = vsel %vm8675_vm8, %v2055_v21, %v1955_v58  ;;  %v2890_v11 = vsel %vm8706_vm10, %v2887_v25, %v7298_v34  ;;  %vm8707_vm8 = vmmov %vm8697_vm5 }
 0x604   : > { %v2893_v4 = vsel %vm8707_vm8, %v2890_v11, %v2830_v55  ;;  %vm8710_vm5 = vmmov %vm8705_vm11  ;;  %v8728_v11 = vld [vmem:[#allocation13_spill] sm:$0xff] }
 0x607   : > { %2493 = vrot.lane.b32.xlu0 %v6951_v1, %s8321_s30  ;;  %v2699_v1 = vsel %vm8695_vm4, %v7059_v54, %v8694_v26  ;;  %v8701_v54 = vld [vmem:[#allocation95_spill] sm:$0xff]  ;;  %vm8709_vm4 = vmmov %vm8704_vm6 }
 0x608   : > { %2585 = vrot.lane.b32.xlu1 %v4268_v48, %s8479_s12  ;;  %v2702_v8 = vsel %vm8699_vm7, %v2699_v1, %v8698_v50  ;;  %v2066_v23 = vsel %vm8709_vm4, %v2063_v46, %v7274_v37  ;;  %vm8711_vm7 = vcmask 171008   ;;  %vm8712_vm6 = vmmov %vm8708_vm12  ;;  %v8730_v46 = vld [vmem:[#allocation16_spill] sm:$0xff] }
 0x609   : > { %v1964_v14 = vpop.permute.xlu0 %1963  ;;  %v2705_v10 = vsel %vm628_vm13, %v2702_v8, %v8701_v54  ;;  %v2504_v2 = vpop.permute.xlu2 %2503  ;;  %vm8713_vm11 = vmmov %vm8709_vm4 }
 0x60a   : > { %v2839_v59 = vpop.permute.xlu1 %2838  ;;  %v2708_v36 = vsel %vm632_vm14, %v2705_v10, %v8703_v35  ;;  %v2061_v21 = vsel %vm8711_vm7, %v7330_v44, %v1964_v14  ;;  %vm8714_vm12 = vmmov %vm8710_vm5  ;;  %vm8717_vm7 = vcmask 392192  }
 0x60b   : > { %v2896_v15 = vsel %vm628_vm13, %v2893_v4, %v2839_v59  ;;  %vm8715_vm4 = vmmov %vm8706_vm10 }
 0x60f   : > { %2594 = vrot.lane.b32.xlu0 %v4270_v33, %s8482_s0 }
 0x610   : > { %2596 = vrot.lane.b32.xlu1 %v4269_v12, %s8482_s0  ;;  %s4294_s0 = scalar_lea.hbm %s7964_s5, 2 }
 0x611   : > { %v1973_v20 = vpop.permute.xlu0 %1972  ;;  %v7391_v18 = vpop.permute.xlu2 %1974 }
 0x612   : > { %v2851_v43 = vpop.permute.xlu1 %2850  ;;  %v2064_v58 = vsel %vm8712_vm6, %v2061_v21, %v1973_v20  ;;  %vm8718_vm6 = vcmask 785408  }
 0x613   : > { %v2899_v31 = vsel %vm632_vm14, %v2896_v15, %v2851_v43 }
 0x617   : > { %2917 = vrot.lane.b32.xlu0 %v7122_v42, %s8347_s6  ;;  %v2709_v42 = vsel %vm632_vm14, %v2706_v49, %v8702_v53 }
 0x618   : > { %2927 = vrot.lane.b32.xlu1 %v4007_v9, %s8348_s25 }
 0x619   : > { %v1982_v51 = vpop.permute.xlu0 %1981  ;;  %v7395_v45 = vpop.permute.xlu2 %1983 }
 0x61a   : > { %v1989_v32 = vpop.permute.xlu1 %1988  ;;  %v2067_v48 = vsel %vm8713_vm11, %v2064_v58, %v1982_v51  ;;  %vm8719_vm11 = vmmov %vm8717_vm7 }
 0x61b   : > { %v2069_v16 = vsel %vm612_vm9, %v2066_v23, %v1989_v32  ;;  %v2070_v37 = vsel %vm612_vm9, %v2067_v48, %v7300_v52  ;;  %v3010_v32 = vld [vmem:[#allocation1] sm:$0xff] }
 0x61f   : > { %2903 = vrot.lane.b32.xlu0 %v2708_v36, %s8321_s30 }
 0x620   : > { %2905 = vrot.lane.b32.xlu1 %v2709_v42, %s8321_s30 }
 0x621   : > { %v1998_v0 = vpop.permute.xlu0 %1997  ;;  %v7410_v28 = vpop.permute.xlu2 %2010 }
 0x622   : > { %v2000_v61 = vpop.permute.xlu1 %1999  ;;  %v2072_v55 = vsel %vm8710_vm5, %v2069_v16, %v1998_v0  ;;  %vm8716_vm5 = vmmov %vm8707_vm8 }
 0x623   : > { %v2075_v59 = vsel %vm8706_vm10, %v2072_v55, %v7332_v56  ;;  %v2073_v43 = vsel %vm8714_vm12, %v2070_v37, %v2000_v61  ;;  %vm8720_vm10 = vcmask 1040384   ;;  %vm8722_vm12 = vcmask 1042434  }
 0x624   : > { %v2078_v33 = vsel %vm8707_vm8, %v2075_v59, %v7338_v6  ;;  %vm8721_vm8 = vcmask 1041409  }
 0x625   : > { %v2081_v56 = vsel %vm628_vm13, %v2078_v33, %v2025_v7  ;;  %v3011_v7 = vld [vmem:[#allocation1 + $0x9] sm:$0xff] }
 0x626   : > { %v2084_v1 = vsel %vm632_vm14, %v2081_v56, %v2034_v22 }
 0x627   : > { %2580 = vrot.lane.b32.xlu0 %v4272_v17, %s8257_s26  ;;  %v4273_v17 = vld [vmem:[%s4444_s9 + $0x150] sm:$0x7]  ;;  %s4357_s9 = smov 64   ;;  %s3716_s26 = sshll.u32 %s3712_s15, 4  ;;  %s3717_s26 = int_to_ptr.hbm [resolvable:$true] %s3716_s26 }
 0x628   : > { %2589 = vrot.lane.b32.xlu1 %v4271_v30, %s8479_s12  ;;  %v2044_v25 = vsel %vm576_vm0, %v4273_v17, %v8727_v47  ;;  %vm8732_vm0 = vcmask 121856   ;;  %v8763_v47 = vld [vmem:[#allocation54_spill] sm:$0xff]  ;;  %s4288_s8 = sshra.s32 %s3717_s26, 4  ;;  %s4289_s8 = int_to_ptr.hbm [resolvable:$true] %s4288_s8 }
 0x629   : > { %v2009_v24 = vpop.permute.xlu0 %2008  ;;  %v2570_v51 = vpop.permute.xlu2 %2569  ;;  %s4290_s16 = scalar_lea.hbm %s4289_s8, 1  ;;  %p4295_p0 = scmp.lt.s32.totalorder %s4289_s8, %s7964_s5 }
 0x62a   : > { %v7377_v63 = vpop.permute.xlu1 %1947  ;;  %v2076_v44 = vsel %vm8715_vm4, %v2073_v43, %v2009_v24  ;;  %vm8723_vm4 = vmmov %vm8718_vm6  ;;  %p4291_p11 = scmp.ne.s32.totalorder %s4289_s8, %s4290_s16  ;;  %p4296_p1 = scmp.lt.s32.totalorder %s4294_s0, %s4290_s16 }
 0x62c   : > { %p4292_p12 = pnand %p4291_p11, %p4429_p5  ;;  %p4297_p2 = por %p4296_p1, %p4295_p0 }
 0x62e   : > { %p4293_p13 = pneg %p4292_p12 }
 0x62f   : > { %2919 = vrot.lane.b32.xlu0 %v2899_v31, %s8347_s6 }
 0x630   : > { %2931 = vrot.lane.b32.xlu1 %v4009_v27, %s8348_s25  ;;  %v2047_v27 = vsel %vm580_vm1, %v2044_v25, %v8728_v11  ;;  %vm8733_vm1 = vcmask 146432   ;;  %v8764_v11 = vld [vmem:[#allocation55_spill] sm:$0xff]  ;;  %p4298_p3 = pnand %p4297_p2, %p4293_p13 }
 0x631   : > { %v2018_v60 = vpop.permute.xlu0 %2017  ;;  %v2579_v24 = vpop.permute.xlu2 %2578 }
 0x632   : > { %v7389_v13 = vpop.permute.xlu1 %1956  ;;  %v2079_v14 = vsel %vm8716_vm5, %v2076_v44, %v2018_v60  ;;  %vm8724_vm5 = vmmov %vm8720_vm10 }
 0x639   : > { %v2027_v34 = vpop.permute.xlu0 %2026  ;;  %v2518_v55 = vpop.permute.xlu2 %2517 }
 0x63a   : > { %v7393_v62 = vpop.permute.xlu1 %1965  ;;  %v2082_v9 = vsel %vm628_vm13, %v2079_v14, %v2027_v34 }
 0x641   : > { %v2036_v19 = vpop.permute.xlu0 %2035  ;;  %v2588_v43 = vpop.permute.xlu2 %2587 }
 0x642   : > { %v2502_v57 = vpop.permute.xlu1 %2501  ;;  %v2085_v41 = vsel %vm632_vm14, %v2082_v9, %v2036_v19  ;;  %v8731_v19 = vld [vmem:[#allocation35_spill] sm:$0xff] }
 0x649   : > { %v2514_v12 = vpop.permute.xlu0 %2513 }
 0x64a   : > { %v2516_v29 = vpop.permute.xlu1 %2515  ;;  %v2528_v40 = vsel %vm1130_vm15, %v2502_v57, %v2514_v12 }
 0x64b   : > { %v2529_v20 = vsel %vm1130_vm15, %v2504_v2, %v2516_v29  ;;  %v2537_v5 = vrot.slane %v2528_v40, 7  ;;  %v8743_v40 = vld [vmem:[#allocation67_spill] sm:$0xff] }
 0x64c   : > { %v2538_v26 = vrot.slane %v2529_v20, 7  ;;  %v8740_v20 = vld [vmem:[#allocation66_spill] sm:$0xff] }
 0x651   : > { %v2490_v3 = vpop.permute.xlu0 %2489 }
 0x652   : > { %v2492_v52 = vpop.permute.xlu1 %2491  ;;  %v2522_v8 = vsel %vm8719_vm11, %v2084_v1, %v2490_v3  ;;  %vm3065_vm11 = vcmask 1041408   ;;  %v2916_v3 = vpop.permute.xlu2 %2915 }
 0x653   : > { %v2523_v6 = vsel %vm8717_vm7, %v2085_v41, %v2492_v52  ;;  %v2525_v10 = vsel %vm8723_vm4, %v2522_v8, %v2502_v57  ;;  %vm8725_vm7 = vmmov %vm8721_vm8  ;;  %v2050_v57 = vsel %vm584_vm2, %v2047_v27, %v8730_v46  ;;  %vm8736_vm2 = vcmask 220160  }
 0x654   : > { %v2526_v50 = vsel %vm8718_vm6, %v2523_v6, %v2504_v2  ;;  %v2540_v35 = vsel %vm8724_vm5, %v2525_v10, %v2537_v5  ;;  %v2541_v36 = vsel %vm8725_vm7, %v2525_v10, %v2537_v5  ;;  %vm8726_vm6 = vmmov %vm8722_vm12  ;;  %v2053_v23 = vsel %vm588_vm3, %v2050_v57, %v8731_v19 }
 0x655   : > { %v2545_v39 = vsel %vm8720_vm10, %v2526_v50, %v2538_v26  ;;  %v2546_v49 = vsel %vm8721_vm8, %v2526_v50, %v2538_v26  ;;  %v2548_v54 = vsel %vm8722_vm12, %v2526_v50, %v2538_v26  ;;  %v2542_v61 = vrot.slane %v2541_v36, 1  ;;  %3017 = vst [vmem:[#allocation1 + $0x2] ss:$9 sm:$0xff] %v2540_v35  ;;  %vm8741_vm7 = vmmov %vm8732_vm0  ;;  %v8748_v50 = vld [vmem:[#allocation47_spill] sm:$0xff] }
 0x656   : > { %v2547_v53 = vrot.slane %v2546_v49, 1  ;;  %v2549_v42 = vrot.slane %v2548_v54, 2  ;;  %3023 = vst [vmem:[#allocation1 + $0x5] ss:$9 sm:$0xff] %v2545_v39  ;;  %v2543_v22 = vsel %vm8726_vm6, %v2525_v10, %v2537_v5  ;;  %vm8729_vm10 = vcmask 154624   ;;  %vm8742_vm6 = vmmov %vm8733_vm1  ;;  %v8753_v39 = vld [vmem:[#allocation48_spill] sm:$0xff] }
 0x657   : > { %v2544_v0 = vrot.slane %v2543_v22, 2  ;;  %3019 = vst [vmem:[#allocation1 + $0x3] ss:$9 sm:$0xff] %v2542_v61  ;;  %v2056_v16 = vsel %vm8732_vm0, %v2053_v23, %v7377_v63  ;;  %vm8734_vm8 = vcmask 171008   ;;  %vm8735_vm12 = vcmask 195584   ;;  %v8757_v35 = vld [vmem:[#allocation51_spill] sm:$0xff] }
 0x658   : > { %3025 = vst [vmem:[#allocation1 + $0x6] ss:$9 sm:$0xff] %v2547_v53  ;;  %v2059_v21 = vsel %vm8733_vm1, %v2056_v16, %v7389_v13  ;;  %vm8737_vm3 = vcmask 269312   ;;  %vm8738_vm4 = vcmask 293888   ;;  %vm8739_vm5 = vcmask 318464   ;;  %v8755_v53 = vld [vmem:[#allocation50_spill] sm:$0xff] }
 0x659   : > { %3027 = vst [vmem:[#allocation1 + $0x7] ss:$9 sm:$0xff] %v2549_v42  ;;  %v1993_v30 = vpop.permute.xlu0 %1992  ;;  %v2062_v48 = vsel %vm8734_vm8, %v2059_v21, %v7393_v62  ;;  %vm8747_vm8 = vcmask 785408   ;;  %v8773_v16 = vld [vmem:[#allocation62_spill] sm:$0xff]  ;;  %v8774_v21 = vld [vmem:[#allocation63_spill] sm:$0xff] }
 0x65a   : > { %v2002_v38 = vpop.permute.xlu1 %2001  ;;  %3021 = vst [vmem:[#allocation1 + $0x4] ss:$9 sm:$0xff] %v2544_v0  ;;  %v2065_v29 = vsel %vm8735_vm12, %v2062_v48, %v7391_v18  ;;  %v2604_v18 = vsel %vm8741_vm7, %v8740_v20, %v2570_v51  ;;  %vm8749_vm12 = vcmask 171008   ;;  %vm8756_vm7 = vcmask 195584   ;;  %v8759_v0 = vld [vmem:[#allocation52_spill] sm:$0xff] }
 0x65b   : > { %v2068_v12 = vsel %vm8736_vm2, %v2065_v29, %v7395_v45  ;;  %v2607_v9 = vsel %vm8742_vm6, %v2604_v18, %v2579_v24  ;;  %vm8750_vm2 = vcmask 1040384   ;;  %vm8758_vm6 = vmmov %vm8756_vm7  ;;  %v2930_v24 = vpop.permute.xlu2 %2929 }
 0x65c   : > { %v2071_v37 = vsel %vm612_vm9, %v2068_v12, %v1993_v30  ;;  %v2610_v8 = vsel %vm8749_vm12, %v2607_v9, %v8748_v50  ;;  %v8761_v30 = vld [vmem:[#allocation53_spill] sm:$0xff]  ;;  %v8775_v12 = vld [vmem:[#allocation64_spill] sm:$0xff] }
 0x65d   : > { %v2074_v44 = vsel %vm8737_vm3, %v2071_v37, %v2002_v38  ;;  %vm8751_vm3 = vcmask 1041409   ;;  %v2613_v42 = vsel %vm8756_vm7, %v2610_v8, %v8755_v53  ;;  %vm8778_vm7 = vcmask 785408   ;;  %v8786_v8 = vld [vmem:[#allocation61_spill] sm:$0xff] }
 0x65e   : > { %v2077_v13 = vsel %vm8738_vm4, %v2074_v44, %v7410_v28  ;;  %vm8752_vm4 = vcmask 1042434   ;;  %v8777_v44 = vld [vmem:[#allocation65_spill] sm:$0xff] }
 0x661   : > { %v3029_v2 = vld [vmem:[#allocation1 + $0x9] sm:$0xff]  ;;  %v3028_v4 = vld [vmem:[#allocation1] sm:$0xff]  ;;  %v2020_v34 = vpop.permute.xlu0 %2019 }
 0x662   : > { %v2568_v15 = vpop.permute.xlu1 %2567  ;;  %v3066_v31 = vsel %vm3065_vm11, %v3010_v32, %v3028_v4  ;;  %v3067_v60 = vsel %vm3065_vm11, %v3011_v7, %v3029_v2  ;;  %v2080_v14 = vsel %vm8739_vm5, %v2077_v13, %v2020_v34  ;;  %vm8754_vm5 = vmmov %vm8749_vm12  ;;  %v8765_v2 = vld [vmem:[#allocation57_spill] sm:$0xff] }
 0x663   : > { %3133 = vmatmul.f32.gmra.mxu0 %v3066_v31  ;;  %4013 = vmatmul.msk.f32.gmra.mxu1 %vm8729_vm10, %v3067_v60  ;;  %vm8744_vm10 = vmmov %vm8732_vm0  ;;  %v8768_v60 = vld [vmem:[#allocation58_spill] sm:$0xff] }
 0x664   : > { %v2603_v41 = vsel %vm8744_vm10, %v8743_v40, %v2568_v15  ;;  %vm8745_vm0 = vmmov %vm8733_vm1  ;;  %vm8746_vm1 = vcmask 392192   ;;  %vm8760_vm10 = vcmask 220160  }
 0x665   : > { %v2616_v38 = vsel %vm8760_vm10, %v2613_v42, %v8759_v0  ;;  %v7527_v42 = vpop.f32.mrf.mxu0 }
 0x666   : > { %v2619_v25 = vsel %vm612_vm9, %v2616_v38, %v8763_v47  ;;  %v8797_v38 = vld [vmem:[#allocation49_spill] sm:$0xff] }
 0x669   : > { %v2029_v59 = vpop.permute.xlu0 %2028 }
 0x66a   : > { %v2577_v58 = vpop.permute.xlu1 %2576  ;;  %v2083_v56 = vsel %vm628_vm13, %v2080_v14, %v2029_v59  ;;  %v2572_v59 = vpop.permute.xlu2 %2571 }
 0x66b   : > { %v2606_v28 = vsel %vm8745_vm0, %v2603_v41, %v2577_v58  ;;  %vm8762_vm0 = vmmov %vm8760_vm10  ;;  %vm8780_vm10 = vcmask 1040384  }
 0x66c   : > { %v2609_v49 = vsel %vm8754_vm5, %v2606_v28, %v8753_v39  ;;  %vm8776_vm5 = vcmask 392192  }
 0x66d   : > { %v2612_v36 = vsel %vm8758_vm6, %v2609_v49, %v8757_v35  ;;  %vm8779_vm6 = vmmov %vm8776_vm5  ;;  %v8790_v49 = vld [vmem:[#allocation43_spill] sm:$0xff]  ;;  %v8794_v35 = vld [vmem:[#allocation45_spill] sm:$0xff] }
 0x66e   : > { %v2615_v17 = vsel %vm8762_vm0, %v2612_v36, %v8761_v30  ;;  %vm8781_vm0 = vcmask 1041409  }
 0x66f   : > { %v2618_v27 = vsel %vm612_vm9, %v2615_v17, %v8764_v11 }
 0x671   : > { %v2038_v63 = vpop.permute.xlu0 %2037 }
 0x672   : > { %v2506_v33 = vpop.permute.xlu1 %2505  ;;  %v2086_v52 = vsel %vm632_vm14, %v2083_v56, %v2038_v63 }
 0x673   : > { %v2530_v62 = vsel %vm1130_vm15, %v2506_v33, %v2518_v55 }
 0x674   : > { %v2539_v6 = vrot.slane %v2530_v62, 7 }
 0x679   : > { %v2494_v26 = vpop.permute.xlu0 %2493 }
 0x67a   : > { %v2586_v45 = vpop.permute.xlu1 %2585  ;;  %v2524_v1 = vsel %vm8746_vm1, %v2086_v52, %v2494_v26  ;;  %vm8766_vm1 = vcmask 269312  }
 0x67b   : > { %v2527_v5 = vsel %vm8747_vm8, %v2524_v1, %v2506_v33  ;;  %v2622_v4 = vsel %vm8766_vm1, %v2619_v25, %v8765_v2  ;;  %vm8767_vm8 = vcmask 293888   ;;  %vm8769_vm12 = vmmov %vm8766_vm1 }
 0x67c   : > { %v2550_v32 = vsel %vm8750_vm2, %v2527_v5, %v2539_v6  ;;  %v2551_v7 = vsel %vm8751_vm3, %v2527_v5, %v2539_v6  ;;  %v2553_v51 = vsel %vm8752_vm4, %v2527_v5, %v2539_v6  ;;  %v2625_v31 = vsel %vm8767_vm8, %v2622_v4, %v2588_v43  ;;  %vm8770_vm2 = vmmov %vm8767_vm8 }
 0x67d   : > { %v2552_v54 = vrot.slane %v2551_v7, 1  ;;  %v2554_v10 = vrot.slane %v2553_v51, 2  ;;  %3030 = vst [vmem:[#allocation1] ss:$9 sm:$0xff] %v2550_v32  ;;  %v2621_v34 = vsel %vm8769_vm12, %v2618_v27, %v8768_v60  ;;  %vm8771_vm3 = vcmask 318464   ;;  %vm8782_vm1 = vmmov %vm8778_vm7  ;;  %v2599_v32 = vpop.permute.xlu2 %2598 }
 0x67e   : > { %v2624_v57 = vsel %vm8770_vm2, %v2621_v34, %v2586_v45  ;;  %vm8772_vm4 = vmmov %vm8771_vm3  ;;  %vm8785_vm2 = vcmask 1042434   ;;  %v7543_v34 = vpop.f32.mrf.mxu1 }
 0x67f   : > { %3032 = vst [vmem:[#allocation1 + $0x1] ss:$9 sm:$0xff] %v2552_v54  ;;  %vm8783_vm8 = vmmov %vm8780_vm10 }
 0x680   : > { %3033 = vst [vmem:[#allocation1 + $0x2] ss:$9 sm:$0xff] %v2554_v10  ;;  %vm8784_vm12 = vmmov %vm8781_vm0  ;;  %v8792_v10 = vld [vmem:[#allocation44_spill] sm:$0xff] }
 0x681   : > { %v2595_v22 = vpop.permute.xlu0 %2594 }
 0x682   : > { %v2597_v61 = vpop.permute.xlu1 %2596  ;;  %v2627_v23 = vsel %vm8772_vm4, %v2624_v57, %v2595_v22  ;;  %vm8788_vm4 = vcmask 146432   ;;  %v8796_v22 = vld [vmem:[#allocation46_spill] sm:$0xff]  ;;  %v8805_v57 = vld [vmem:[#allocation60_spill] sm:$0xff] }
 0x683   : > { %v2628_v19 = vsel %vm8771_vm3, %v2625_v31, %v2597_v61  ;;  %v2630_v58 = vsel %vm628_vm13, %v2627_v23, %v8774_v21  ;;  %vm8787_vm3 = vcmask 121856  }
 0x684   : > { %v2631_v55 = vsel %vm628_vm13, %v2628_v19, %v8773_v16  ;;  %v2633_v13 = vsel %vm632_vm14, %v2630_v58, %v8777_v44  ;;  %v7552_v58 = vld [vmem:[%s7961_s2] ss:$0 sm:$0xff] }
 0x685   : > { %v2634_v37 = vsel %vm632_vm14, %v2631_v55, %v8775_v12  ;;  %v3131_v55 = vpop.f32.mrf.mxu0 }
 0x687   : > { %v3034_v40 = vld [vmem:[#allocation1] sm:$0xff]  ;;  %v3035_v41 = vld [vmem:[#allocation1 + $0x9] sm:$0xff] }
 0x689   : > { %v2918_v46 = vpop.permute.xlu0 %2917 }
 0x68a   : > { %v2928_v15 = vpop.permute.xlu1 %2927  ;;  %v2943_v48 = vsel %vm1130_vm15, %v2918_v46, %v2930_v24 }
 0x68b   : > { %v2942_v29 = vsel %vm1130_vm15, %v2916_v3, %v2928_v15  ;;  %v2952_v43 = vrot.slane %v2943_v48, 7  ;;  %v8804_v15 = vld [vmem:[#allocation56_spill] sm:$0xff] }
 0x68c   : > { %v2951_v62 = vrot.slane %v2942_v29, 7 }
 0x691   : > { %v2904_v14 = vpop.permute.xlu0 %2903 }
 0x692   : > { %v2906_v33 = vpop.permute.xlu1 %2905  ;;  %v2936_v18 = vsel %vm8779_vm6, %v2633_v13, %v2904_v14  ;;  %vm8793_vm6 = vcmask 195584  }
 0x693   : > { %v2937_v63 = vsel %vm8776_vm5, %v2634_v37, %v2906_v33  ;;  %v2939_v9 = vsel %vm8782_vm1, %v2936_v18, %v2916_v3  ;;  %v2605_v3 = vsel %vm8787_vm3, %v8786_v8, %v2572_v59  ;;  %vm8789_vm5 = vmmov %vm8785_vm2  ;;  %vm8799_vm1 = vcmask 1042432  }
 0x694   : > { %v2940_v20 = vsel %vm8778_vm7, %v2937_v63, %v2918_v46  ;;  %v2954_v26 = vsel %vm8783_vm8, %v2939_v9, %v2951_v62  ;;  %v2955_v28 = vsel %vm8784_vm12, %v2939_v9, %v2951_v62  ;;  %v2957_v1 = vsel %vm8785_vm2, %v2939_v9, %v2951_v62  ;;  %vm8800_vm8 = vmmov %vm8799_vm1  ;;  %v2908_v46 = vpop.permute.xlu2 %2907 }
 0x695   : > { %v2959_v56 = vsel %vm8780_vm10, %v2940_v20, %v2952_v43  ;;  %v2960_v45 = vsel %vm8781_vm0, %v2940_v20, %v2952_v43  ;;  %v2956_v6 = vrot.slane %v2955_v28, 1  ;;  %3041 = vst [vmem:[#allocation1 + $0x3] ss:$9 sm:$0xff] %v2954_v26  ;;  %v2958_v5 = vrot.slane %v2957_v1, 2 }
 0x696   : > { %v2961_v52 = vrot.slane %v2960_v45, 1  ;;  %3047 = vst [vmem:[#allocation1 + $0x6] ss:$9 sm:$0xff] %v2959_v56  ;;  %v2962_v39 = vsel %vm8789_vm5, %v2940_v20, %v2952_v43  ;;  %vm8791_vm7 = vcmask 171008   ;;  %vm8795_vm10 = vcmask 220160   ;;  %v3163_v43 = vpop.f32.mrf.mxu1 }
 0x697   : > { %3043 = vst [vmem:[#allocation1 + $0x4] ss:$9 sm:$0xff] %v2956_v6  ;;  %v2963_v61 = vrot.slane %v2962_v39, 2  ;;  %vm8798_vm0 = vcmask 269312   ;;  %vm8801_vm12 = vcmask 293888   ;;  %vm8802_vm2 = vcmask 154624  }
 0x698   : > { %3049 = vst [vmem:[#allocation1 + $0x7] ss:$9 sm:$0xff] %v2961_v52  ;;  %vm8803_vm3 = vcmask 318464   ;;  %v3132_v33 = vadd.f32 %v7552_v58, %v3131_v55 }
 0x699   : > { %3045 = vst [vmem:[#allocation1 + $0x5] ss:$9 sm:$0xff] %v2958_v5  ;;  %v2581_v7 = vpop.permute.xlu0 %2580 }
 0x69a   : > { %v2590_v50 = vpop.permute.xlu1 %2589  ;;  %v2608_v51 = vsel %vm8788_vm4, %v2605_v3, %v2581_v7  ;;  %vm8807_vm4 = vcmask 785408   ;;  %v7558_v63 = vadd.f32 %v3163_v43, %v3132_v33 }
 0x69b   : > { %v2611_v54 = vsel %vm8791_vm7, %v2608_v51, %v8790_v49 }
 0x69c   : > { %v2614_v53 = vsel %vm8793_vm6, %v2611_v54, %v8792_v10  ;;  %v3176_v44 = vmax.f32 %v7558_v63, 0.0 }
 0x69d   : > { %v2617_v36 = vsel %vm8795_vm10, %v2614_v53, %v8794_v35 }
 0x69e   : > { %v2620_v0 = vsel %vm612_vm9, %v2617_v36, %v8796_v22  ;;  %vm8806_vm9 = vcmask 392192  }
 0x69f   : > { %v2623_v30 = vsel %vm8798_vm0, %v2620_v0, %v8797_v38 }
 0x6a0   : > { %v3050_v17 = vld [vmem:[#allocation1] sm:$0xff]  ;;  %v3051_v47 = vld [vmem:[#allocation1 + $0x9] sm:$0xff]  ;;  %v2626_v27 = vsel %vm8801_vm12, %v2623_v30, %v2590_v50  ;;  %vm3429_vm12 = vcmask 261120  }
 0x6a1   : > { %v3069_v25 = vsel %vm8799_vm1, %v3034_v40, %v3050_v17  ;;  %3052 = vst [vmem:[#allocation1] ss:$9 sm:$0xff] %v2963_v61  ;;  %v3070_v24 = vsel %vm8800_vm8, %v3035_v41, %v3051_v47  ;;  %v2629_v2 = vsel %vm8803_vm3, %v2626_v27, %v2599_v32  ;;  %v2920_v4 = vpop.permute.xlu0 %2919  ;;  %vm8817_vm3 = vmmov %vm8807_vm4 }
 0x6a2   : > { %v2932_v11 = vpop.permute.xlu1 %2931  ;;  %3136 = vmatmul.f32.gmra.mxu0 %v3069_v25  ;;  %4014 = vmatmul.msk.f32.gmra.mxu1 %vm8802_vm2, %v3070_v24  ;;  %v2632_v31 = vsel %vm628_vm13, %v2629_v2, %v8804_v15  ;;  %vm8808_vm13 = vcmask 1040384  }
 0x6a3   : > { %v2944_v60 = vsel %vm1130_vm15, %v2920_v4, %v2932_v11  ;;  %v2635_v19 = vsel %vm632_vm14, %v2632_v31, %v8805_v57  ;;  %vm8809_vm15 = vcmask 1041409   ;;  %vm8810_vm14 = vmmov %vm8802_vm2  ;;  %vm3433_vm2 = vcmask 523264  }
 0x6a4   : > { %v2953_v23 = vrot.slane %v2944_v60, 7  ;;  %v2938_v16 = vsel %vm8806_vm9, %v2635_v19, %v2908_v46  ;;  %vm8811_vm7 = vmmov %vm8808_vm13 }
 0x6a5   : > { %v2941_v21 = vsel %vm8807_vm4, %v2938_v16, %v2920_v4  ;;  %vm8812_vm6 = vmmov %vm8811_vm7 }
 0x6a6   : > { %v2964_v48 = vsel %vm8808_vm13, %v2941_v21, %v2953_v23  ;;  %v2965_v59 = vsel %vm8809_vm15, %v2941_v21, %v2953_v23  ;;  %v2967_v29 = vsel %vm8789_vm5, %v2941_v21, %v2953_v23  ;;  %v3129_v21 = vadd.f32 %v7552_v58, %v7527_v42  ;;  %vm8813_vm10 = vmmov %vm8812_vm6 }
 0x6a7   : > { %v2966_v12 = vrot.slane %v2965_v59, 1  ;;  %v2968_v37 = vrot.slane %v2967_v29, 2  ;;  %3054 = vst [vmem:[#allocation1 + $0x1] ss:$9 sm:$0xff] %v2964_v48  ;;  %vm8814_vm0 = vmmov %vm8812_vm6  ;;  %vm3464_vm13 = vcmask 1042433  }
 0x6a8   : > { %v3161_v59 = vadd.f32 %v7543_v34, %v3129_v21  ;;  %vm8815_vm1 = vmmov %vm8814_vm0  ;;  %v3493_v21 = vld [vmem:[%s7962_s3 + $0x30] sm:$0xff] }
 0x6a9   : > { %3056 = vst [vmem:[#allocation1 + $0x2] ss:$9 sm:$0xff] %v2966_v12  ;;  %vm8816_vm8 = vmmov %vm8814_vm0 }
 0x6aa   : > { %3057 = vst [vmem:[#allocation1 + $0x3] ss:$9 sm:$0xff] %v2968_v37  ;;  %v3175_v29 = vmax.f32 %v3161_v59, 0.0  ;;  %v3492_v59 = vld [vmem:[%s7962_s3 + $0x28] sm:$0xff]  ;;  %vm8818_vm9 = vmmov %vm8814_vm0 }
 0x6ab   : > { %vm8819_vm4 = vmmov %vm8814_vm0 }
 0x6ac   : > { %v3182_v12 = vrot.slane %v3175_v29, 1  ;;  %v3183_v33 = vrot.slane %v3175_v29, 2  ;;  %v3184_v43 = vrot.slane %v3175_v29, 3  ;;  %v3187_v42 = vrot.slane %v3175_v29, 6  ;;  %vm8820_vm15 = vmmov %vm8817_vm3 }
 0x6ad   : > { %v3188_v34 = vrot.slane %v3175_v29, 7  ;;  %vm8821_vm5 = vmmov %vm8817_vm3 }
 0x6b1   : > { %v3058_v13 = vld [vmem:[#allocation1] sm:$0xff]  ;;  %v3059_v14 = vld [vmem:[#allocation1 + $0x9] sm:$0xff] }
 0x6b2   : > { %3139 = vmatmul.f32.gmra.mxu0 %v3058_v13  ;;  %3190 = vst [vmem:[#allocation1] sm:$0xff] %v3176_v44  ;;  %4015 = vmatmul.msk.f32.gmra.mxu1 %vm8810_vm14, %v3059_v14  ;;  %v3185_v13 = vrot.slane %v3175_v29, 4  ;;  %vm8822_vm14 = vmmov %vm8814_vm0 }
 0x6b9   : > { %v7565_v45 = vld [vmem:[#allocation1 + $0x1] ss:$9 sm:$0xff]  ;;  %v7569_v41 = vld [vmem:[#allocation1 + $0x3] ss:$9 sm:$0xff] }
 0x6ba   : > { %v7567_v9 = vld [vmem:[#allocation1 + $0x2] ss:$9 sm:$0xff]  ;;  %v7571_v52 = vld [vmem:[#allocation1 + $0x4] ss:$9 sm:$0xff] }
 0x6bb   : > { %v7573_v26 = vld [vmem:[#allocation1 + $0x5] ss:$9 sm:$0xff]  ;;  %v7577_v6 = vld [vmem:[#allocation1 + $0x7] ss:$9 sm:$0xff] }
 0x6bc   : > { %v7575_v28 = vld [vmem:[#allocation1 + $0x6] ss:$9 sm:$0xff] }
 0x6e0   : > { %v3134_v62 = vpop.f32.mrf.mxu0  ;;  %v3166_v18 = vpop.f32.mrf.mxu1 }
 0x6e1   : > { %v3135_v20 = vadd.f32 %v7552_v58, %v3134_v62  ;;  %v3186_v62 = vrot.slane %v3175_v29, 5 }
 0x6e3   : > { %v3167_v56 = vadd.f32 %v3166_v18, %v3135_v20 }
 0x6e5   : > { %v3177_v40 = vmax.f32 %v3167_v56, 0.0  ;;  %v4358_v56 = vmov 0.0  }
 0x6e7   : > { %3205 = vst [vmem:[#allocation1] sm:$0xff] %v3177_v40 }
 0x6ee   : > { %v7579_v1 = vld [vmem:[#allocation1] ss:$9 sm:$0xff] }
 0x6ef   : > { %v7581_v5 = vld [vmem:[#allocation1 + $0x1] ss:$9 sm:$0xff] }
 0x6f0   : > { %3209 = vst [vmem:[#allocation1] sm:$0xff] %v3177_v40 }
 0x6f7   : > { %v7584_v7 = vld [vmem:[#allocation1 + $0x2] ss:$9 sm:$0xff]  ;;  %v7588_v39 = vld [vmem:[#allocation1 + $0x4] ss:$9 sm:$0xff] }
 0x6f8   : > { %v7586_v51 = vld [vmem:[#allocation1 + $0x3] ss:$9 sm:$0xff]  ;;  %v7590_v54 = vld [vmem:[#allocation1 + $0x5] ss:$9 sm:$0xff] }
 0x6f9   : > { %v7592_v10 = vld [vmem:[#allocation1 + $0x6] ss:$9 sm:$0xff] }
 0x6fa   : > { %v7594_v53 = vld [vmem:[#allocation1 + $0x7] ss:$9 sm:$0xff] }
 0x71f   : > { %v3137_v50 = vpop.f32.mrf.mxu0  ;;  %v3169_v3 = vpop.f32.mrf.mxu1 }
 0x720   : > { %v3138_v8 = vadd.f32 %v7552_v58, %v3137_v50 }
 0x722   : > { %v3170_v32 = vadd.f32 %v3169_v3, %v3138_v8 }
 0x724   : > { %v3178_v49 = vmax.f32 %v3170_v32, 0.0 }
 0x726   : > { %3222 = vst [vmem:[#allocation1] sm:$0xff] %v3178_v49 }
 0x72d   : > { %v7596_v35 = vld [vmem:[#allocation1] ss:$9 sm:$0xff]  ;;  %v7600_v61 = vld [vmem:[#allocation1 + $0x2] ss:$9 sm:$0xff] }
 0x72e   : > { %v7598_v36 = vld [vmem:[#allocation1 + $0x1] ss:$9 sm:$0xff] }
 0x72f   : > { %3228 = vst [vmem:[#allocation1] sm:$0xff] %v3178_v49  ;;  %v3140_v22 = vpop.f32.mrf.mxu0  ;;  %v3172_v38 = vpop.f32.mrf.mxu1 }
 0x730   : > { %v3141_v0 = vadd.f32 %v7552_v58, %v3140_v22  ;;  %v3516_v22 = vld [vmem:[%s7962_s3 + $0xe8] sm:$0xff] }
 0x732   : > { %v3173_v30 = vadd.f32 %v3172_v38, %v3141_v0  ;;  %v3499_v0 = vld [vmem:[%s7962_s3 + $0x60] sm:$0xff] }
 0x733   : > { %v3515_v38 = vld [vmem:[%s7962_s3 + $0xe0] sm:$0xff] }
 0x734   : > { %v3179_v27 = vmax.f32 %v3173_v30, 0.0 }
 0x736   : > { %v7603_v17 = vld [vmem:[#allocation1 + $0x3] ss:$9 sm:$0xff]  ;;  %v7607_v25 = vld [vmem:[#allocation1 + $0x5] ss:$9 sm:$0xff] }
 0x737   : > { %v7605_v47 = vld [vmem:[#allocation1 + $0x4] ss:$9 sm:$0xff]  ;;  %v7609_v24 = vld [vmem:[#allocation1 + $0x6] ss:$9 sm:$0xff] }
 0x738   : > { %v7611_v11 = vld [vmem:[#allocation1 + $0x7] ss:$9 sm:$0xff] }
 0x739   : > { %3239 = vst [vmem:[#allocation1] sm:$0xff] %v3179_v27  ;;  %v3513_v27 = vld [vmem:[%s7962_s3 + $0xd0] sm:$0xff] }
 0x740   : > { %v7613_v2 = vld [vmem:[#allocation1] ss:$9 sm:$0xff]  ;;  %v7617_v15 = vld [vmem:[#allocation1 + $0x2] ss:$9 sm:$0xff] }
 0x741   : > { %v7615_v4 = vld [vmem:[#allocation1 + $0x1] ss:$9 sm:$0xff]  ;;  %3246 = vst [vmem:[#allocation1] ss:$9 sm:$0xff] %v7603_v17  ;;  %v3245_v8 = vld [vmem:[#allocation1 + $0x3] ss:$9 sm:$0xff] }
 0x742   : > { %3248 = vst [vmem:[#allocation1 + $0x1] ss:$9 sm:$0xff] %v7605_v47 }
 0x743   : > { %3250 = vst [vmem:[#allocation1 + $0x2] ss:$9 sm:$0xff] %v7607_v25 }
 0x74a   : > { %v7622_v31 = vld [vmem:[#allocation1] sm:$0xff] }
 0x74b   : > { %3252 = vst [vmem:[#allocation1] ss:$9 sm:$0xff] %v7609_v24 }
 0x74c   : > { %3253 = vst [vmem:[#allocation1 + $0x1] ss:$9 sm:$0xff] %v7611_v11 }
 0x74d   : > { %3254 = vst [vmem:[#allocation1 + $0x2] ss:$9 sm:$0xff] %v7613_v2 }
 0x754   : > { %v7627_v60 = vld [vmem:[#allocation1] sm:$0xff] }
 0x755   : > { %3266 = vst [vmem:[#allocation1] ss:$9 sm:$0xff] %v7584_v7 }
 0x756   : > { %3268 = vst [vmem:[#allocation1 + $0x1] ss:$9 sm:$0xff] %v7586_v51 }
 0x757   : > { %3270 = vst [vmem:[#allocation1 + $0x2] ss:$9 sm:$0xff] %v7588_v39 }
 0x75e   : > { %v7632_v46 = vld [vmem:[#allocation1] sm:$0xff] }
 0x75f   : > { %3272 = vst [vmem:[#allocation1] ss:$9 sm:$0xff] %v7590_v54 }
 0x760   : > { %3273 = vst [vmem:[#allocation1 + $0x1] ss:$9 sm:$0xff] %v7592_v10 }
 0x761   : > { %3274 = vst [vmem:[#allocation1 + $0x2] ss:$9 sm:$0xff] %v7594_v53 }
 0x768   : > { %v7637_v57 = vld [vmem:[#allocation1] sm:$0xff] }
 0x769   : > { %3277 = vst [vmem:[#allocation1 + $0x1] ss:$9 sm:$0xff] %v7565_v45 }
 0x76a   : > { %3279 = vst [vmem:[#allocation1 + $0x2] ss:$9 sm:$0xff] %v7567_v9 }
 0x771   : > { %v7641_v19 = vld [vmem:[#allocation1] sm:$0xff] }
 0x772   : > { %3281 = vst [vmem:[#allocation1 + $0x1] ss:$9 sm:$0xff] %v7571_v52 }
 0x773   : > { %3282 = vst [vmem:[#allocation1 + $0x2] ss:$9 sm:$0xff] %v7573_v26 }
 0x77a   : > { %v7645_v23 = vld [vmem:[#allocation1] sm:$0xff] }
 0x77b   : > { %3284 = vst [vmem:[#allocation1 + $0x1] ss:$9 sm:$0xff] %v7577_v6 }
 0x77c   : > { %3285 = vst [vmem:[#allocation1 + $0x2] ss:$9 sm:$0xff] %v7579_v1 }
 0x783   : > { %v7649_v16 = vld [vmem:[#allocation1] sm:$0xff] }
 0x784   : > { %3294 = vst [vmem:[#allocation1 + $0x1] ss:$9 sm:$0xff] %v7603_v17 }
 0x785   : > { %3296 = vst [vmem:[#allocation1 + $0x2] ss:$9 sm:$0xff] %v7605_v47 }
 0x78c   : > { %v3297_v55 = vld [vmem:[#allocation1] sm:$0xff] }
 0x78d   : > { %3298 = vst [vmem:[#allocation1 + $0x1] ss:$9 sm:$0xff] %v7609_v24  ;;  %v3307_v63 = vsel %vm8811_vm7, 0.0, %v3297_v55  ;;  %vm8823_vm7 = vcmask 1041409  }
 0x78e   : > { %3299 = vst [vmem:[#allocation1 + $0x2] ss:$9 sm:$0xff] %v7611_v11 }
 0x795   : > { %v3300_v48 = vld [vmem:[#allocation1] sm:$0xff] }
 0x796   : > { %3301 = vst [vmem:[#allocation1 + $0x1] ss:$9 sm:$0xff] %v7615_v4 }
 0x797   : > { %3302 = vst [vmem:[#allocation1 + $0x2] ss:$9 sm:$0xff] %v7617_v15 }
 0x79e   : > { %v3303_v37 = vld [vmem:[#allocation1] sm:$0xff] }
 0x79f   : > { %3340 = vst [vmem:[#allocation1] ss:$9 sm:$0xff] %v3175_v29  ;;  %v3309_v40 = vsel %vm8813_vm10, 0.0, %v3303_v37  ;;  %v3508_v29 = vld [vmem:[%s7962_s3 + $0xa8] sm:$0xff]  ;;  %vm3468_vm10 = vcmask 1043458  }
 0x7a0   : > { %3342 = vst [vmem:[#allocation1 + $0x1] ss:$9 sm:$0xff] %v3182_v12  ;;  %v3520_v12 = vld [vmem:[%s7962_s3 + $0x108] sm:$0xff] }
 0x7a1   : > { %3344 = vst [vmem:[#allocation1 + $0x2] ss:$9 sm:$0xff] %v3183_v33  ;;  %v3491_v33 = vld [vmem:[%s7962_s3 + $0x20] sm:$0xff] }
 0x7a8   : > { %v7660_v14 = vld [vmem:[#allocation1] sm:$0xff] }
 0x7a9   : > { %3346 = vst [vmem:[#allocation1] ss:$9 sm:$0xff] %v3184_v43  ;;  %v3507_v43 = vld [vmem:[%s7962_s3 + $0xa0] sm:$0xff] }
 0x7aa   : > { %3347 = vst [vmem:[#allocation1 + $0x1] ss:$9 sm:$0xff] %v3185_v13  ;;  %v3259_v13 = vrot.slane %v7627_v60, 7 }
 0x7ab   : > { %3348 = vst [vmem:[#allocation1 + $0x2] ss:$9 sm:$0xff] %v3186_v62  ;;  %v3490_v62 = vld [vmem:[%s7962_s3 + $0x18] sm:$0xff] }
 0x7b2   : > { %v7662_v58 = vld [vmem:[#allocation1] sm:$0xff] }
 0x7b3   : > { %3350 = vst [vmem:[#allocation1] ss:$9 sm:$0xff] %v3187_v42  ;;  %v3506_v42 = vld [vmem:[%s7962_s3 + $0x98] sm:$0xff] }
 0x7b4   : > { %3351 = vst [vmem:[#allocation1 + $0x1] ss:$9 sm:$0xff] %v3188_v34  ;;  %v3519_v34 = vld [vmem:[%s7962_s3 + $0x100] sm:$0xff] }
 0x7b5   : > { %3352 = vst [vmem:[#allocation1 + $0x2] ss:$9 sm:$0xff] %v3176_v44 }
 0x7bc   : > { %v7666_v20 = vld [vmem:[#allocation1] sm:$0xff] }
 0x7bd   : > { %3357 = vst [vmem:[#allocation1] ss:$9 sm:$0xff] %v7565_v45  ;;  %v3308_v45 = vsel %vm8812_vm6, 0.0, %v3300_v48  ;;  %v3509_v48 = vld [vmem:[%s7962_s3 + $0xb0] sm:$0xff]  ;;  %vm8824_vm6 = vmmov %vm8817_vm3 }
 0x7be   : > { %3359 = vst [vmem:[#allocation1 + $0x1] ss:$9 sm:$0xff] %v7567_v9 }
 0x7bf   : > { %3361 = vst [vmem:[#allocation1 + $0x2] ss:$9 sm:$0xff] %v7569_v41 }
 0x7c6   : > { %v3362_v18 = vld [vmem:[#allocation1] sm:$0xff] }
 0x7c7   : > { %3371 = vrot.lane.b32.xlu0 %v3362_v18, %s4356_s27  ;;  %3363 = vst [vmem:[#allocation1] ss:$9 sm:$0xff] %v7571_v52  ;;  %v3257_v18 = vrot.slane %v4358_v56, 7 }
 0x7c8   : > { %3364 = vst [vmem:[#allocation1 + $0x1] ss:$9 sm:$0xff] %v7573_v26  ;;  %v3290_v26 = vsel %vm8814_vm0, 0.0, %v7641_v19  ;;  %v3494_v19 = vld [vmem:[%s7962_s3 + $0x38] sm:$0xff] }
 0x7c9   : > { %3365 = vst [vmem:[#allocation1 + $0x2] ss:$9 sm:$0xff] %v7575_v28 }
 0x7cf   : > { %3383 = vrot.lane.b32.xlu0 %v3307_v63, %s4357_s9 }
 0x7d0   : > { %v3366_v44 = vld [vmem:[#allocation1] sm:$0xff] }
 0x7d1   : > { %3373 = vrot.lane.b32.xlu1 %v3366_v44, %s4356_s27  ;;  %3367 = vst [vmem:[#allocation1] ss:$9 sm:$0xff] %v7577_v6  ;;  %v3291_v6 = vsel %vm8815_vm1, 0.0, %v7645_v23  ;;  %v3510_v23 = vld [vmem:[%s7962_s3 + $0xb8] sm:$0xff]  ;;  %vm8825_vm1 = vmmov %vm8823_vm7 }
 0x7d2   : > { %3368 = vst [vmem:[#allocation1 + $0x1] ss:$9 sm:$0xff] %v7579_v1 }
 0x7d3   : > { %3369 = vst [vmem:[#allocation1 + $0x2] ss:$9 sm:$0xff] %v7581_v5  ;;  %v3292_v5 = vsel %vm8816_vm8, 0.0, %v7649_v16  ;;  %vm8826_vm8 = vcmask 1042434  }
 0x7d7   : > { %3310 = vrot.lane.b32.xlu0 %v4358_v56, %s4356_s27 }
 0x7d9   : > { %3385 = vrot.lane.b32.xlu1 %v3308_v45, %s4357_s9  ;;  %v3489_v45 = vld [vmem:[%s7962_s3 + $0x10] sm:$0xff] }
 0x7da   : > { %v3370_v9 = vld [vmem:[#allocation1] sm:$0xff] }
 0x7db   : > { %3375 = vrot.lane.b32.xlu2 %v3370_v9, %s4356_s27  ;;  %3392 = vst [vmem:[#allocation1] ss:$9 sm:$0xff] %v7584_v7  ;;  %v3502_v7 = vld [vmem:[%s7962_s3 + $0x78] sm:$0xff]  ;;  %v3505_v9 = vld [vmem:[%s7962_s3 + $0x90] sm:$0xff] }
 0x7dc   : > { %3394 = vst [vmem:[#allocation1 + $0x1] ss:$9 sm:$0xff] %v7586_v51  ;;  %v3518_v51 = vld [vmem:[%s7962_s3 + $0xf8] sm:$0xff]  ;;  %3557 = vmatpush.msra.mxu2 %v3502_v7 }
 0x7dd   : > { %3396 = vst [vmem:[#allocation1 + $0x2] ss:$9 sm:$0xff] %v7588_v39  ;;  %v3522_v39 = vld [vmem:[%s7962_s3 + $0x118] sm:$0xff]  ;;  %3580 = vmatpush.msra.mxu3 %v3518_v51 }
 0x7de   : > { %3615 = vmatpush.msrb.mxu1 %v3522_v39  ;;  %v3487_v39 = vld [vmem:[%s7962_s3] sm:$0xff] }
 0x7e1   : > { %3312 = vrot.lane.b32.xlu1 %v7632_v46, %s4356_s27  ;;  %v3495_v46 = vld [vmem:[%s7962_s3 + $0x40] sm:$0xff] }
 0x7e3   : > { %3387 = vrot.lane.b32.xlu2 %v3309_v40, %s4357_s9 }
 0x7e4   : > { %v3397_v41 = vld [vmem:[#allocation1] sm:$0xff] }
 0x7e5   : > { %3406 = vrot.lane.b32.xlu0 %v3397_v41, %s8347_s6  ;;  %3398 = vst [vmem:[#allocation1] ss:$9 sm:$0xff] %v7590_v54 }
 0x7e6   : > { %3399 = vst [vmem:[#allocation1 + $0x1] ss:$9 sm:$0xff] %v7592_v10 }
 0x7e7   : > { %3400 = vst [vmem:[#allocation1 + $0x2] ss:$9 sm:$0xff] %v7594_v53 }
 0x7eb   : > { %3314 = vrot.lane.b32.xlu2 %v7637_v57, %s4356_s27  ;;  %v3511_v57 = vld [vmem:[%s7962_s3 + $0xc0] sm:$0xff] }
 0x7ed   : > { %3319 = vrot.lane.b32.xlu0 %v4358_v56, %s4357_s9 }
 0x7ee   : > { %v3401_v52 = vld [vmem:[#allocation1] sm:$0xff] }
 0x7ef   : > { %3408 = vrot.lane.b32.xlu1 %v3401_v52, %s8347_s6  ;;  %3402 = vst [vmem:[#allocation1] ss:$9 sm:$0xff] %v7596_v35  ;;  %v3501_v35 = vld [vmem:[%s7962_s3 + $0x70] sm:$0xff]  ;;  %v3488_v52 = vld [vmem:[%s7962_s3 + $0x8] sm:$0xff] }
 0x7f0   : > { %3403 = vst [vmem:[#allocation1 + $0x1] ss:$9 sm:$0xff] %v7598_v36  ;;  %v3517_v36 = vld [vmem:[%s7962_s3 + $0xf0] sm:$0xff]  ;;  %3558 = vmatpush.msra.mxu2 %v3501_v35 }
 0x7f1   : > { %3404 = vst [vmem:[#allocation1 + $0x2] ss:$9 sm:$0xff] %v7600_v61  ;;  %v3500_v61 = vld [vmem:[%s7962_s3 + $0x68] sm:$0xff]  ;;  %3581 = vmatpush.msra.mxu3 %v3517_v36 }
 0x7f2   : > { %3559 = vmatpush.msra.mxu2 %v3500_v61 }
 0x7f3   : > { %3582 = vmatpush.msra.mxu3 %v3516_v22 }
 0x7f4   : > { %3560 = vmatpush.msra.mxu2 %v3499_v0 }
 0x7f5   : > { %3331 = vrot.lane.b32.xlu0 %v3290_v26, %s8347_s6  ;;  %3583 = vmatpush.msra.mxu3 %v3515_v38  ;;  %v3504_v26 = vld [vmem:[%s7962_s3 + $0x88] sm:$0xff] }
 0x7f7   : > { %3321 = vrot.lane.b32.xlu1 %v7622_v31, %s4357_s9 }
 0x7f8   : > { %v3405_v28 = vld [vmem:[#allocation1] sm:$0xff] }
 0x7f9   : > { %3415 = vst [vmem:[#allocation1] ss:$9 sm:$0xff] %v7603_v17  ;;  %3410 = vrot.lane.b32.xlu2 %v3405_v28, %s8347_s6 }
 0x7fa   : > { %3417 = vst [vmem:[#allocation1 + $0x1] ss:$9 sm:$0xff] %v7605_v47  ;;  %v3498_v47 = vld [vmem:[%s7962_s3 + $0x58] sm:$0xff] }
 0x7fb   : > { %3419 = vst [vmem:[#allocation1 + $0x2] ss:$9 sm:$0xff] %v7607_v25  ;;  %v3514_v25 = vld [vmem:[%s7962_s3 + $0xd8] sm:$0xff]  ;;  %3561 = vmatpush.msra.mxu2 %v3498_v47 }
 0x7fc   : > { %3584 = vmatpush.msra.mxu3 %v3514_v25 }
 0x7fe   : > { %3585 = vmatpush.msra.mxu3 %v3513_v27 }
 0x7ff   : > { %3333 = vrot.lane.b32.xlu1 %v3291_v6, %s8347_s6 }
 0x801   : > { %3323 = vrot.lane.b32.xlu2 %v7627_v60, %s4357_s9 }
 0x802   : > { %v7719_v1 = vld [vmem:[#allocation1] sm:$0xff] }
 0x803   : > { %3421 = vst [vmem:[#allocation1] ss:$9 sm:$0xff] %v7609_v24  ;;  %v3521_v24 = vld [vmem:[%s7962_s3 + $0x110] sm:$0xff] }
 0x804   : > { %3422 = vst [vmem:[#allocation1 + $0x1] ss:$9 sm:$0xff] %v7611_v11  ;;  %v3497_v11 = vld [vmem:[%s7962_s3 + $0x50] sm:$0xff]  ;;  %3616 = vmatpush.msrb.mxu1 %v3521_v24 }
 0x805   : > { %3423 = vst [vmem:[#allocation1 + $0x2] ss:$9 sm:$0xff] %v7613_v2  ;;  %v3496_v2 = vld [vmem:[%s7962_s3 + $0x48] sm:$0xff]  ;;  %3562 = vmatpush.msra.mxu2 %v3497_v11  ;;  %v3456_v11 = vrot.slane %v7719_v1, 6 }
 0x806   : > { %3617 = vmatpush.msrb.mxu1 %v3520_v12 }
 0x807   : > { %3563 = vmatpush.msra.mxu2 %v3496_v2 }
 0x808   : > { %3618 = vmatpush.msrb.mxu1 %v3519_v34 }
 0x809   : > { %3335 = vrot.lane.b32.xlu2 %v3292_v5, %s8347_s6  ;;  %3564 = vmatpush.msra.mxu2 %v3495_v46  ;;  %v3263_v5 = vsel %vm8819_vm4, 0.0, %v3257_v18  ;;  %vm8828_vm4 = vmmov %vm8817_vm3 }
 0x80b   : > { %3565 = vmatpush.msra.mxu2 %v3494_v19  ;;  %v3258_v19 = vrot.slane %v7622_v31, 7 }
 0x80c   : > { %v7727_v50 = vld [vmem:[#allocation1] sm:$0xff] }
 0x80d   : > { %3425 = vst [vmem:[#allocation1] ss:$9 sm:$0xff] %v7615_v4  ;;  %v3512_v4 = vld [vmem:[%s7962_s3 + $0xc8] sm:$0xff]  ;;  %3566 = vmatpush.msra.mxu2 %v3493_v21 }
 0x80e   : > { %3426 = vst [vmem:[#allocation1 + $0x1] ss:$9 sm:$0xff] %v7617_v15  ;;  %3586 = vmatpush.msra.mxu3 %v3512_v4 }
 0x80f   : > { %3427 = vst [vmem:[#allocation1 + $0x2] ss:$9 sm:$0xff] %v3245_v8  ;;  %3567 = vmatpush.msra.mxu2 %v3492_v59 }
 0x810   : > { %3587 = vmatpush.msra.mxu3 %v3511_v57 }
 0x811   : > { %3568 = vmatpush.msra.mxu2 %v3491_v33 }
 0x812   : > { %3588 = vmatpush.msra.mxu3 %v3510_v23 }
 0x813   : > { %3569 = vmatpush.msra.mxu2 %v3490_v62 }
 0x814   : > { %3589 = vmatpush.msra.mxu3 %v3509_v48 }
 0x815   : > { %3570 = vmatpush.msra.mxu2 %v3489_v45 }
 0x816   : > { %3590 = vmatpush.msra.mxu3 %v3508_v29  ;;  %v3428_v41 = vld [vmem:[#allocation1] sm:$0xff] }
 0x817   : > { %3571 = vmatpush.msra.mxu2 %v3488_v52 }
 0x818   : > { %3591 = vmatpush.msra.mxu3 %v3507_v43 }
 0x819   : > { %3572 = vmatpush.msra.mxu2 %v3487_v39 }
 0x81a   : > { %3592 = vmatpush.msra.mxu3 %v3506_v42 }
 0x81c   : > { %3593 = vmatpush.msra.mxu3 %v3505_v9 }
 0x81e   : > { %3594 = vmatpush.msra.mxu3 %v3504_v26 }
 0x835   : > { %v7731_v3 = vpop.permute.xlu2 %3375 }
 0x836   : > { %v3442_v63 = vsel %vm3429_vm12, %v7666_v20, %v7731_v3  ;;  %v3265_v20 = vsel %vm8818_vm9, 0.0, %v3259_v13  ;;  %vm8827_vm9 = vmmov %vm8814_vm0 }
 0x837   : > { %v3264_v59 = vsel %vm8827_vm9, 0.0, %v3258_v19 }
 0x839   : > { %v7733_v32 = vpop.permute.xlu0 %3371 }
 0x83a   : > { %v3440_v28 = vsel %vm3429_vm12, %v7660_v14, %v7733_v32  ;;  %v3503_v14 = vld [vmem:[%s7962_s3 + $0x80] sm:$0xff] }
 0x83b   : > { %3595 = vmatpush.msra.mxu3 %v3503_v14 }
 0x83d   : > { %v7744_v49 = vpop.permute.xlu2 %3387 }
 0x83e   : > { %v3445_v60 = vsel %vm3433_vm2, %v3442_v63, %v7744_v49  ;;  %v3460_v49 = vrot.slane %v3428_v41, 6 }
 0x841   : > { %v7746_v54 = vpop.permute.xlu0 %3383 }
 0x842   : > { %v3443_v8 = vsel %vm3433_vm2, %v3440_v28, %v7746_v54 }
 0x843   : > { %v7748_v10 = vpop.permute.xlu1 %3373 }
 0x844   : > { %v3441_v1 = vsel %vm3429_vm12, %v7662_v58, %v7748_v10  ;;  %v3458_v58 = vrot.slane %v7727_v50, 6 }
 0x845   : > { %v7750_v53 = vpop.permute.xlu2 %3314 }
 0x846   : > { %v3432_v6 = vsel %vm3429_vm12, %v3265_v20, %v7750_v53 }
 0x849   : > { %v7770_v30 = vpop.permute.xlu0 %3310 }
 0x84a   : > { %v3430_v36 = vsel %vm3429_vm12, %v3263_v5, %v7770_v30  ;;  %v4359_v5 = vmov 9.0  }
 0x84b   : > { %v7772_v17 = vpop.permute.xlu1 %3385  ;;  %4085 = vrcp.f32 %v4359_v5 }
 0x84c   : > { %v3444_v21 = vsel %vm3433_vm2, %v3441_v1, %v7772_v17 }
 0x853   : > { %v3411_v15 = vpop.permute.xlu2 %3410  ;;  %v7807_v16 = vpop.permute.xlu1 %3312 }
 0x854   : > { %v3448_v56 = vsel %vm8817_vm3, %v3445_v60, %v3411_v15  ;;  %v3431_v29 = vsel %vm3429_vm12, %v3264_v59, %v7807_v16 }
 0x855   : > { %v3459_v3 = vrot.slane %v3448_v56, 7 }
 0x857   : > { %v3407_v55 = vpop.permute.xlu0 %3406 }
 0x858   : > { %v3446_v32 = vsel %vm8820_vm15, %v3443_v8, %v3407_v55  ;;  %vm8829_vm15 = vmmov %vm8814_vm0 }
 0x859   : > { %v3455_v0 = vrot.slane %v3446_v32, 7 }
 0x85b   : > { %v3324_v37 = vpop.permute.xlu2 %3323 }
 0x85c   : > { %v3436_v7 = vsel %vm3433_vm2, %v3432_v6, %v3324_v37 }
 0x85f   : > { %v3320_v44 = vpop.permute.xlu0 %3319 }
 0x860   : > { %v3434_v38 = vsel %vm3433_vm2, %v3430_v36, %v3320_v44 }
 0x861   : > { %v3409_v40 = vpop.permute.xlu1 %3408 }
 0x862   : > { %v3447_v48 = vsel %vm8817_vm3, %v3444_v21, %v3409_v40  ;;  %v4084_v40 = vld [vmem:[%s7963_s4] ss:$0 sm:$0xff] }
 0x863   : > { %v3336_v51 = vpop.permute.xlu2 %3335  ;;  %v3457_v31 = vrot.slane %v3447_v48, 7 }
 0x864   : > { %v3439_v53 = vsel %vm8821_vm5, %v3436_v7, %v3336_v51  ;;  %vm8830_vm5 = vmmov %vm8825_vm1  ;;  %v4086_v7 = vpop.eup %4085 }
 0x865   : > { %v3479_v54 = vsel %vm8822_vm14, %v3439_v53, %v3459_v3  ;;  %v3481_v35 = vsel %vm8823_vm7, %v3439_v53, %v3459_v3  ;;  %vm8831_vm14 = vmmov %vm8826_vm8 }
 0x866   : > { %v3480_v61 = vsel %vm3065_vm11, %v3479_v54, %v3460_v49  ;;  %v3482_v22 = vsel %vm3464_vm13, %v3481_v35, %v3460_v49  ;;  %v4360_v54 = vmov 8.0  }
 0x867   : > { %v3483_v47 = vrot.slane %v3482_v22, 1  ;;  %3539 = vst [vmem:[#allocation1 + $0x6] ss:$9 sm:$0xff] %v3480_v61  ;;  %v3332_v25 = vpop.permute.xlu0 %3331  ;;  %4087 = vrcp.f32 %v4360_v54 }
 0x868   : > { %v3437_v24 = vsel %vm8824_vm6, %v3434_v38, %v3332_v25 }
 0x869   : > { %3541 = vst [vmem:[#allocation1 + $0x7] ss:$9 sm:$0xff] %v3483_v47  ;;  %v3461_v30 = vsel %vm8814_vm0, %v3437_v24, %v3455_v0  ;;  %v3463_v27 = vsel %vm8825_vm1, %v3437_v24, %v3455_v0  ;;  %v3467_v2 = vsel %vm8826_vm8, %v3437_v24, %v3455_v0  ;;  %v3322_v4 = vpop.permute.xlu1 %3321  ;;  %vm3701_vm0 = vcmask 778752  }
 0x86a   : > { %v3462_v15 = vsel %vm3065_vm11, %v3461_v30, %v3456_v11  ;;  %v3465_v46 = vsel %vm3464_vm13, %v3463_v27, %v3456_v11  ;;  %v3469_v57 = vsel %vm3468_vm10, %v3467_v2, %v3456_v11  ;;  %v3435_v12 = vsel %vm3433_vm2, %v3431_v29, %v3322_v4  ;;  %vm8832_vm2 = vmmov %vm8826_vm8 }
 0x86b   : > { %v3466_v23 = vrot.slane %v3465_v46, 1  ;;  %v3470_v55 = vrot.slane %v3469_v57, 2  ;;  %3527 = vst [vmem:[#allocation1] ss:$9 sm:$0xff] %v3462_v15  ;;  %v3484_v18 = vsel %vm8832_vm2, %v3439_v53, %v3459_v3  ;;  %v3650_v53 = vmul.f32 9.0, %v4086_v7 }
 0x86c   : > { %v3485_v50 = vsel %vm3468_vm10, %v3484_v18, %v3460_v49 }
 0x86d   : > { %3529 = vst [vmem:[#allocation1 + $0x1] ss:$9 sm:$0xff] %v3466_v23  ;;  %v3486_v63 = vrot.slane %v3485_v50, 2  ;;  %v3651_v0 = vsub.f32 1.0, %v3650_v53  ;;  %v4088_v11 = vpop.eup %4087 }
 0x86e   : > { %3531 = vst [vmem:[#allocation1 + $0x2] ss:$9 sm:$0xff] %v3470_v55  ;;  %v3661_v23 = vmul.f32 8.0, %v4088_v11 }
 0x86f   : > { %v3652_v19 = vmul.f32 %v4086_v7, %v3651_v0 }
 0x871   : > { %v3334_v37 = vpop.permute.xlu1 %3333 }
 0x872   : > { %v3438_v33 = vsel %vm8828_vm4, %v3435_v12, %v3334_v37  ;;  %v3662_v12 = vsub.f32 1.0, %v3661_v23 }
 0x873   : > { %v3471_v10 = vsel %vm8829_vm15, %v3438_v33, %v3457_v31  ;;  %v3473_v17 = vsel %vm8830_vm5, %v3438_v33, %v3457_v31  ;;  %v3476_v43 = vsel %vm8831_vm14, %v3438_v33, %v3457_v31  ;;  %v3653_v31 = vadd.f32 %v4086_v7, %v3652_v19 }
 0x874   : > { %v3472_v13 = vsel %vm3065_vm11, %v3471_v10, %v3458_v58  ;;  %v3474_v62 = vsel %vm3464_vm13, %v3473_v17, %v3458_v58  ;;  %v3477_v16 = vsel %vm3468_vm10, %v3476_v43, %v3458_v58  ;;  %vm3629_vm11 = vcmask 253952  }
 0x875   : > { %v3475_v42 = vrot.slane %v3474_v62, 1  ;;  %v3478_v34 = vrot.slane %v3477_v16, 2  ;;  %3533 = vst [vmem:[#allocation1 + $0x3] ss:$9 sm:$0xff] %v3472_v13  ;;  %vm3654_vm13 = vweird.f32 %v4086_v7  ;;  %v3663_v62 = vmul.f32 %v4088_v11, %v3662_v12 }
 0x876   : > { %v3655_v13 = vsel %vm3654_vm13, %v4086_v7, %v3653_v31  ;;  %vm3695_vm10 = vcmask 516352  }
 0x877   : > { %3535 = vst [vmem:[#allocation1 + $0x4] ss:$9 sm:$0xff] %v3475_v42  ;;  %v3664_v50 = vadd.f32 %v4088_v11, %v3663_v62 }
 0x878   : > { %3537 = vst [vmem:[#allocation1 + $0x5] ss:$9 sm:$0xff] %v3478_v34 }
 0x87f   : > { %v3542_v60 = vld [vmem:[#allocation1] sm:$0xff]  ;;  %v3543_v44 = vld [vmem:[#allocation1 + $0x9] sm:$0xff]  ;;  %v3544_v45 = vld [vmem:[#allocation1 + $0x12] sm:$0xff] }
 0x880   : > { %3573 = vmatmul.f32.vlgmr.msra.gmra.mxu2 %v3542_v60  ;;  %3596 = vmatmul.f32.vlgmr.msra.gmra.mxu3 %v3543_v44  ;;  %3545 = vst [vmem:[#allocation1] ss:$9 sm:$0xff] %v3486_v63 }
 0x881   : > { %4016 = vmatmul.msk.f32.vlgmr.msrb.gmra.mxu1 %vm3429_vm12, %v3544_v45 }
 0x887   : > { %v3546_v9 = vld [vmem:[#allocation1] sm:$0xff]  ;;  %v3547_v56 = vld [vmem:[#allocation1 + $0x9] sm:$0xff]  ;;  %v3548_v20 = vld [vmem:[#allocation1 + $0x12] sm:$0xff] }
 0x888   : > { %3576 = vmatmul.f32.gmra.mxu2 %v3546_v9  ;;  %3599 = vmatmul.f32.gmra.mxu3 %v3547_v56 }
 0x889   : > { %4017 = vmatmul.msk.f32.gmra.mxu1 %vm3429_vm12, %v3548_v20 }
 0x8fe   : > { %v3620_v28 = vpop.f32.mrf.mxu1 }
 0x903   : > { %v3574_v41 = vpop.f32.mrf.mxu2  ;;  %v3597_v52 = vpop.f32.mrf.mxu3 }
 0x904   : > { %v3575_v26 = vadd.f32 %v4084_v40, %v3574_v41 }
 0x906   : > { %v3598_v6 = vadd.f32 %v3597_v52, %v3575_v26  ;;  %v3623_v49 = vpop.f32.mrf.mxu1 }
 0x908   : > { %v3621_v8 = vadd.f32 %v3620_v28, %v3598_v6 }
 0x90a   : > { %v3626_v14 = vmax.f32 %v3621_v8, 0.0 }
 0x90b   : > { %v3577_v3 = vpop.f32.mrf.mxu2  ;;  %v3600_v39 = vpop.f32.mrf.mxu3 }
 0x90c   : > { %v3578_v51 = vadd.f32 %v4084_v40, %v3577_v3  ;;  %v3638_v36 = vmul.f32 %v3626_v14, %v3626_v14  ;;  %v3628_v22 = vsel %vm3429_vm12, %v3626_v14, 0.0  ;;  %v3681_v38 = vsel %vm3429_vm12, %v3626_v14, -inf }
 0x90e   : > { %v3601_v32 = vadd.f32 %v3600_v39, %v3578_v51  ;;  %v3640_v2 = vsel %vm3429_vm12, %v3638_v36, 0.0  ;;  %vm3665_vm12 = vweird.f32 %v4088_v11 }
 0x90f   : > { %v3666_v45 = vsel %vm3665_vm12, %v4088_v11, %v3664_v50 }
 0x910   : > { %v3624_v35 = vadd.f32 %v3623_v49, %v3601_v32 }
 0x912   : > { %v3627_v61 = vmax.f32 %v3624_v35, 0.0 }
 0x914   : > { %v3630_v47 = vsel %vm3629_vm11, %v3627_v61, 0.0  ;;  %v3639_v25 = vmul.f32 %v3627_v61, %v3627_v61  ;;  %v3682_v24 = vsel %vm3629_vm11, %v3627_v61, -inf }
 0x915   : > { %v3631_v30 = vadd.f32 %v3630_v47, %v3628_v22  ;;  %v3683_v27 = vmax.f32 %v3681_v38, %v3682_v24 }
 0x916   : > { %v3641_v4 = vsel %vm3629_vm11, %v3639_v25, 0.0 }
 0x917   : > { %v3632_v15 = vrot.slane %v3631_v30, 4  ;;  %v3642_v46 = vadd.f32 %v3641_v4, %v3640_v2  ;;  %v3684_v57 = vrot.slane %v3683_v27, 4 }
 0x919   : > { %v3633_v55 = vadd.f32 %v3632_v15, %v3631_v30  ;;  %v3643_v1 = vrot.slane %v3642_v46, 4  ;;  %v3685_v21 = vmax.f32 %v3683_v27, %v3684_v57 }
 0x91b   : > { %v3634_v48 = vrot.slane %v3633_v55, 2  ;;  %v3644_v59 = vadd.f32 %v3643_v1, %v3642_v46  ;;  %v3686_v29 = vrot.slane %v3685_v21, 2 }
 0x91d   : > { %v3645_v37 = vrot.slane %v3644_v59, 2  ;;  %v3687_v33 = vmax.f32 %v3685_v21, %v3686_v29  ;;  %v3635_v58 = vadd.f32 %v3634_v48, %v3633_v55 }
 0x91f   : > { %v3646_v10 = vadd.f32 %v3645_v37, %v3644_v59  ;;  %v3688_v17 = vrot.slane %v3687_v33, 1  ;;  %v3636_v43 = vrot.slane %v3635_v58, 1 }
 0x921   : > { %v3689_v16 = vmax.f32 %v3687_v33, %v3688_v17  ;;  %v3637_v42 = vadd.f32 %v3636_v43, %v3635_v58  ;;  %v3647_v34 = vrot.slane %v3646_v10, 1 }
 0x923   : > { %3698 = vrot.lane.b32.xlu1 %v3689_v16, %s4357_s9  ;;  %v3656_v18 = vmul.f32 %v3655_v13, %v3637_v42  ;;  %v3648_v60 = vadd.f32 %v3647_v34, %v3646_v10  ;;  %s215_s9 = sand.u32 1, %s4328_s19  }
 0x924   : > { %s3704_s23 = scalar_lea.sflag [#allocation3], %s215_s9 }
 0x925   : > { %3692 = vrot.lane.b32.xlu0 %v3656_v18, %s4356_s27  ;;  %v3657_v63 = vmul.f32 9.0, %v3656_v18  ;;  %s216_s27 = scalar_lea.vmem [#allocation2], %s215_s9 }
 0x926   : > { %s3714_s13 = sshll.u32 %s216_s27, 4  ;;  %s3715_s13 = int_to_ptr.vmem [resolvable:$true] %s3714_s13 }
 0x927   : > { %v3658_v44 = vmul.f32 %v3657_v63, %v3656_v18 }
 0x929   : > { %v3659_v9 = vsub.f32 %v3648_v60, %v3658_v44 }
 0x92b   : > { %v3667_v56 = vmul.f32 %v3666_v45, %v3659_v9 }
 0x92d   : > { %v3668_v20 = vmax.f32 %v3667_v56, 0.0 }
 0x92f   : > { %4089 = vrsqrt.f32 %v3668_v20  ;;  %vm3676_vm7 = vcmp.eq.f32.partialorder %v3668_v20, inf  ;;  %v3679_v8 = vand.u32 2147483648, %v3668_v20  ;;  %vm3678_vm6 = vcmp.eq.f32.partialorder %v3668_v20, 0.0 }
 0x935   : > { %v4090_v40 = vpop.eup %4089 }
 0x936   : > { %v3670_v41 = vmul.f32 %v4090_v40, %v3668_v20 }
 0x938   : > { %v3671_v52 = vmul.f32 %v4090_v40, %v3670_v41 }
 0x93a   : > { %v3672_v26 = vmul.f32 0.5, %v3671_v52 }
 0x93c   : > { %v3673_v28 = vsub.f32 1.5, %v3672_v26 }
 0x93e   : > { %v3674_v6 = vmul.f32 %v4090_v40, %v3673_v28 }
 0x940   : > { %v3675_v5 = vmul.f32 %v3674_v6, %v3668_v20 }
 0x942   : > { %v3677_v3 = vsel %vm3676_vm7, %v3668_v20, %v3675_v5 }
 0x943   : > { %v3680_v7 = vsel %vm3678_vm6, %v3679_v8, %v3677_v3 }
 0x944   : > { %3690 = vst.msk [vmem:[%s216_s27] sm:$0x1] %vm3629_vm11, %v3680_v7 }
 0x995   : > { %v3699_v39 = vpop.permute.xlu1 %3698 }
 0x997   : > { %v3693_v51 = vpop.permute.xlu0 %3692 }
 0x998   : > { %3696 = vst.msk [vmem:[%s216_s27] sm:$0x1] %vm3695_vm10, %v3693_v51 }
 0x999   : > { %3702 = vst.msk [vmem:[%s216_s27] sm:$0x1] %vm3701_vm0, %v3699_v39 }
 0x99a   : > { %4301 = shalt.err (!%p4298_p3)
}
 0x99b   : > { %4021 = dma.vmem_to_hbm [thread:$0]  (%p4429_p5), %s3715_s13, 16, %s3717_s26, %s3704_s23  }
 0x99c PF: > { %p4027_p4 = scmp.ge.s32.totalorder %s4336_s21, 2  ;;  %s3728_s11 = sand.u32 1, %s4324_s18  }
 0x99d   : > { %s3729_s12 = scalar_lea.sflag [#allocation3], %s3728_s11 }
 0x99e   : > { %p4024_p7 = pnand %p4027_p4, %p4433_p6 }
 0x9a0   : > { %p4025_p8 = pneg %p4024_p7 }
 0x9a2   : > { %4319 = dma.done.wait (%p4025_p8), %s3729_s12, 16  }
 0x9a3   : > { %4321 = vsyncadd (%p4025_p8), %s3729_s12, 4294967280  ;;  %s8833_s25 = sld [smem:[#allocation5_spill]]  ;;  %p15_p9 = scmp.ge.s32.totalorder %s4416_s24, 4  }
 0x9a4   : > { %s8834_s18 = smov %s4328_s19  ;;  %s8835_s19 = smov %s4332_s20 }
 0x9a5   : > { %s8837_s21 = smov %s4416_s24  ;;  %17 = sbr.rel (!%p15_p9) target bundleno = 6 (0x6), region = 182 }
 0x9a9   : > { %s8836_s20 = smov %s8833_s25 }
 0x9aa   :  { %3734 = vsyncpa [#allocation3], 1 }
 0x9ab   :  { %3736 = vsyncpa [#allocation3 + $0x1], 1 }

</bundles_post_ra>
